<compile_context>
chip_gen: v7x
topology: tpu7x:2x2x1
jax: 0.10.0
libtpu: 0.0.40
codegen_flags: <defaults>
</compile_context>

<pallas_src>
import math
import jax
import jax.numpy as jnp
from jax.experimental import pallas as pl
from jax.experimental.pallas import tpu as pltpu

# ----------------------------- config --------------------------------------
B, S, T = 2, 3, 16        # batch, sentences per sample, tokens per sentence
E = 128                   # embedding dim / d_model
NHID = 768                # transformer feed-forward hidden (as in module)
NLAYERS = 6               # encoder layers (as in module)
DOUT = 768                # decoder output dim (as in module)
VOCAB = 1000
DEC_IN = T * E            # flattened encoder output per sentence
R = B * S                 # number of (b, s) sentences
R_PAD = 8                 # pad sentence rows to a full sublane group
LN_EPS = 1e-5
SQRT_E = math.sqrt(E)

# grid structure
TK = 1024                           # decoder K tile
T_PER_STEP = TK // E                # tokens covered by one decoder K tile (8)
N_DEC_TILES = DEC_IN // TK          # 2
LAYERS_PER_CHUNK = 3
N_ENC_CHUNKS = NLAYERS // LAYERS_PER_CHUNK   # 2
DEC_START = N_ENC_CHUNKS - 1                 # decoder tile 0 runs on step 1
GRID_STEPS = N_ENC_CHUNKS + N_DEC_TILES - 1  # 3

# rows inside the packed per-layer small-parameter slab (lsmall)
ROW_B1, ROW_BVO, ROW_G1, ROW_BE1, ROW_B2, ROW_G2, ROW_BE2 = range(7)


# ------------------------------ kernel --------------------------------------
def _ln(x, g, b):
    mu = jnp.mean(x, axis=-1, keepdims=True)
    xc = x - mu
    var = jnp.mean(xc * xc, axis=-1, keepdims=True)
    return xc * jax.lax.rsqrt(var + LN_EPS) * g + b


def fused_kernel(tok_ref, gsmall_ref, lsmall_ref, wvo_ref, w1_ref, w2_ref,
                 wd_ref, o_ref, hcarry_ref, hslab_ref):
    k = pl.program_id(0)

    # ----------------- encoder: LAYERS_PER_CHUNK layers per step -------------
    @pl.when(k < N_ENC_CHUNKS)
    def _encoder_chunk():
        @pl.when(k == 0)
        def _init():
            # src = emb * sqrt(d_model) + pe[0]  (PositionalEncoding; dropout = id)
            pe0 = gsmall_ref[1:2, 0:E]                        # (1, E)
            hcarry_ref[...] = tok_ref[...] * SQRT_E + pe0
            bd = gsmall_ref[0:1, :]                           # (1, DOUT)
            o_ref[...] = jnp.broadcast_to(bd, (R_PAD, DOUT))  # decoder bias init

        h = hcarry_ref[...]                                   # (T*R_PAD, E) f32
        for lc in range(LAYERS_PER_CHUNK):
            b1 = lsmall_ref[lc, ROW_B1:ROW_B1 + 1, :]         # (1, NHID)
            bvo = lsmall_ref[lc, ROW_BVO:ROW_BVO + 1, 0:E]
            g1 = lsmall_ref[lc, ROW_G1:ROW_G1 + 1, 0:E]
            be1 = lsmall_ref[lc, ROW_BE1:ROW_BE1 + 1, 0:E]
            b2 = lsmall_ref[lc, ROW_B2:ROW_B2 + 1, 0:E]
            g2 = lsmall_ref[lc, ROW_G2:ROW_G2 + 1, 0:E]
            be2 = lsmall_ref[lc, ROW_BE2:ROW_BE2 + 1, 0:E]

            # length-1 self-attention == fused V/out projection (exact).
            a = jnp.dot(h.astype(jnp.bfloat16), wvo_ref[lc],
                        preferred_element_type=jnp.float32) + bvo
            h1 = _ln(h + a, g1, be1)
            f = jnp.dot(h1.astype(jnp.bfloat16), w1_ref[lc],
                        preferred_element_type=jnp.float32) + b1
            f = jnp.maximum(f, 0.0)           # default ReLU of TransformerEncoderLayer
            f = jnp.dot(f.astype(jnp.bfloat16), w2_ref[lc],
                        preferred_element_type=jnp.float32) + b2
            h = _ln(h1 + f, g2, be2)
        hcarry_ref[...] = h

        # last encoder chunk: build the decoder LHS slab (pure tile re-arrange)
        @pl.when(k == N_ENC_CHUNKS - 1)
        def _build_slab():
            for kd in range(N_DEC_TILES):
                for tl in range(T_PER_STEP):
                    t = kd * T_PER_STEP + tl
                    hslab_ref[kd, :, tl * E:(tl + 1) * E] = (
                        h[t * R_PAD:(t + 1) * R_PAD, :].astype(jnp.bfloat16))

    # ----------------- decoder: one bf16 dot per K tile ----------------------
    @pl.when(k >= DEC_START)
    def _decoder_tile():
        kd = jnp.maximum(k - DEC_START, 0)                    # 0 on step 1, 1 on step 2
        o_ref[...] += jnp.dot(hslab_ref[kd], wd_ref[...],
                              preferred_element_type=jnp.float32)


def fused_forward(tok, kp):
    chunk_map = lambda k: (jnp.minimum(k, N_ENC_CHUNKS - 1), 0, 0)

    grid_spec = pltpu.PrefetchScalarGridSpec(
        num_scalar_prefetch=0,
        grid=(GRID_STEPS,),
        in_specs=[
            pl.BlockSpec((T * R_PAD, E), lambda k: (0, 0)),       # tok (f32)
            pl.BlockSpec((8, DOUT), lambda k: (0, 0)),            # gsmall: bd + pe0
            pl.BlockSpec((LAYERS_PER_CHUNK, 8, NHID), chunk_map),  # lsmall (per-layer, f32)
            pl.BlockSpec((LAYERS_PER_CHUNK, E, E), chunk_map),     # wvo (bf16)
            pl.BlockSpec((LAYERS_PER_CHUNK, E, NHID), chunk_map),  # w1  (bf16)
            pl.BlockSpec((LAYERS_PER_CHUNK, NHID, E), chunk_map),  # w2  (bf16)
            pl.BlockSpec((TK, DOUT),
                         lambda k: (jnp.maximum(k - DEC_START, 0), 0)),  # wd (bf16)
        ],
        out_specs=pl.BlockSpec((R_PAD, DOUT), lambda k: (0, 0)),  # resident accumulator
        scratch_shapes=[
            pltpu.VMEM((T * R_PAD, E), jnp.float32),              # residual-stream carry
            pltpu.VMEM((N_DEC_TILES, R_PAD, TK), jnp.bfloat16),   # decoder LHS slab
        ],
    )
    return pl.pallas_call(
        fused_kernel,
        out_shape=jax.ShapeDtypeStruct((R_PAD, DOUT), jnp.float32),
        grid_spec=grid_spec,
        compiler_params=pltpu.CompilerParams(
            dimension_semantics=("arbitrary",),       # sequential reduction-style axis
            vmem_limit_bytes=16 * 1024 * 1024),       # live footprint ~6 MiB
    )(tok, kp["gsmall"], kp["lsmall"], kp["wvo"], kp["w1"], kp["w2"], kp["wd"])


# ----------------------------- parameters ----------------------------------
def init_params(key):
    keys = jax.random.split(key, 11)
    scale = 0.02

    def nrm(k, shape):
        return scale * jax.random.normal(k, shape, jnp.float32)

    emb_w = nrm(keys[0], (VOCAB, E)).at[0].set(0.0)   # row 0 = <pad> row
    # PositionalEncoding at position 0: sin(0)=0 on even dims, cos(0)=1 on odd
    pe0 = jnp.zeros((1, E), jnp.float32).at[0, 1::2].set(1.0)
    return dict(
        emb=emb_w, pe0=pe0,
        wv=nrm(keys[1], (NLAYERS, E, E)),    bv=nrm(keys[2], (NLAYERS, 1, E)),
        wo=nrm(keys[3], (NLAYERS, E, E)),    bo=nrm(keys[4], (NLAYERS, 1, E)),
        g1=jnp.ones((NLAYERS, 1, E), jnp.float32),
        be1=jnp.zeros((NLAYERS, 1, E), jnp.float32),
        w1=nrm(keys[5], (NLAYERS, E, NHID)), b1=nrm(keys[6], (NLAYERS, 1, NHID)),
        w2=nrm(keys[7], (NLAYERS, NHID, E)), b2=nrm(keys[8], (NLAYERS, 1, E)),
        g2=jnp.ones((NLAYERS, 1, E), jnp.float32),
        be2=jnp.zeros((NLAYERS, 1, E), jnp.float32),
        wd=nrm(keys[9], (DEC_IN, DOUT)),     bd=nrm(keys[10], (1, DOUT)),
    )


def prepare_kernel_params(p):
    # Fold the attention V/out projections (exact for seq_len == 1), cast the
    # big weight streams to bf16, and pack the tiny params into two operands.
    wvo = jnp.einsum('lij,ljk->lik', p["wv"], p["wo"])
    bvo = jnp.einsum('lij,ljk->lik', p["bv"], p["wo"]) + p["bo"]   # (L,1,E)

    lsmall = jnp.zeros((NLAYERS, 8, NHID), jnp.float32)
    lsmall = lsmall.at[:, ROW_B1, :].set(p["b1"][:, 0, :])
    lsmall = lsmall.at[:, ROW_BVO, :E].set(bvo[:, 0, :])
    lsmall = lsmall.at[:, ROW_G1, :E].set(p["g1"][:, 0, :])
    lsmall = lsmall.at[:, ROW_BE1, :E].set(p["be1"][:, 0, :])
    lsmall = lsmall.at[:, ROW_B2, :E].set(p["b2"][:, 0, :])
    lsmall = lsmall.at[:, ROW_G2, :E].set(p["g2"][:, 0, :])
    lsmall = lsmall.at[:, ROW_BE2, :E].set(p["be2"][:, 0, :])

    gsmall = jnp.zeros((8, DOUT), jnp.float32)
    gsmall = gsmall.at[0, :].set(p["bd"][0])       # decoder bias
    gsmall = gsmall.at[1, :E].set(p["pe0"][0])     # positional encoding, pos 0

    return dict(
        emb=p["emb"], gsmall=gsmall, lsmall=lsmall,
        wvo=wvo.astype(jnp.bfloat16),
        w1=p["w1"].astype(jnp.bfloat16),
        w2=p["w2"].astype(jnp.bfloat16),
        wd=p["wd"].astype(jnp.bfloat16),
    )


# ------------------------------ forward ------------------------------------
def utterance_emb_forward(x_ids, kp):
    # x_ids: (B, S, T) int32 token ids
    # TODO(synk): the nn.Embedding gather stays in XLA; it is fused into a
    # single take that directly emits the padded, token-major (T*R_PAD, E)
    # slab (pad rows gather the all-zero <pad> embedding, row 0).
    x_flat = x_ids.reshape(R, T)
    x_pad = jnp.concatenate(
        [x_flat, jnp.zeros((R_PAD - R, T), x_flat.dtype)], axis=0)   # (R_PAD, T)
    gather_idx = x_pad.T.reshape(T * R_PAD)        # row = t * R_PAD + r
    tok = kp["emb"][gather_idx]                    # (T*R_PAD, E) f32
    out = fused_forward(tok, kp)                   # (R_PAD, DOUT)
    return out[:R].reshape(B, S, DOUT)


# ------------------------- pure-JAX reference -------------------------------
def reference_forward(x_ids, p):
    emb = p["emb"][x_ids]
    h = emb * SQRT_E + p["pe0"][0]

    def ln(x, g, b):
        mu = x.mean(-1, keepdims=True)
        var = ((x - mu) ** 2).mean(-1, keepdims=True)
        return (x - mu) / jnp.sqrt(var + LN_EPS) * g + b

    for l in range(NLAYERS):
        a = (h @ p["wv"][l] + p["bv"][l]) @ p["wo"][l] + p["bo"][l]
        h = ln(h + a, p["g1"][l], p["be1"][l])
        f = jnp.maximum(h @ p["w1"][l] + p["b1"][l], 0.0) @ p["w2"][l] + p["b2"][l]
        h = ln(h + f, p["g2"][l], p["be2"][l])
    flat = h.reshape(B, S, T * E)
    return flat @ p["wd"] + p["bd"][0]


if __name__ == "__main__":
    key = jax.random.PRNGKey(0)
    pkey, xkey = jax.random.split(key)
    master = init_params(pkey)                   # f32 master copy (reference)
    kparams = prepare_kernel_params(master)      # folded / packed / bf16 weights
    x_ids = jax.random.randint(xkey, (B, S, T), 0, VOCAB, dtype=jnp.int32)

    out = utterance_emb_forward(x_ids, kparams)
    out = jax.block_until_ready(out)

    ref = reference_forward(x_ids, master)
    assert out.shape == (B, S, DOUT), out.shape
    # Kernel uses bf16 weights AND bf16 matmul inputs vs. the f32 reference,
    # so the gate is slightly looser than pure-f32 parity.
    if not jnp.allclose(out, ref, rtol=3e-2, atol=3e-2):
        err = float(jnp.max(jnp.abs(out - ref)))
        raise AssertionError(f"Pallas output mismatch vs JAX reference (max abs err {err})")
    print("KERNEL_OK")
</pallas_src>

<mosaic_0001>
module attributes {stable_mosaic.version = 11 : i64} {
  func.func @fused_kernel(%arg0: i32, %arg1: memref<128x128xf32, #tpu.memory_space<vmem>>, %arg2: memref<8x768xf32, #tpu.memory_space<vmem>>, %arg3: memref<3x8x768xf32, #tpu.memory_space<vmem>>, %arg4: memref<3x128x128xbf16, #tpu.memory_space<vmem>>, %arg5: memref<3x128x768xbf16, #tpu.memory_space<vmem>>, %arg6: memref<3x768x128xbf16, #tpu.memory_space<vmem>>, %arg7: memref<1024x768xbf16, #tpu.memory_space<vmem>>, %arg8: memref<8x768xf32, #tpu.memory_space<vmem>>, %arg9: memref<128x128xf32, #tpu.memory_space<vmem>>, %arg10: memref<2x8x1024xbf16, #tpu.memory_space<vmem>>) attributes {dimension_semantics = [#tpu.dimension_semantics<arbitrary>], iteration_bounds = array<i64: 3>, scalar_prefetch = 0 : i64, scratch_operands = 2 : i64, tpu.core_type = #tpu.core_type<tc>, window_params = [{pipeline_mode = #tpu.pipeline_mode<synchronous>, transform_indices = @transform_0, window_bounds = array<i64: 128, 128>}, {pipeline_mode = #tpu.pipeline_mode<synchronous>, transform_indices = @transform_1, window_bounds = array<i64: 8, 768>}, {transform_indices = @transform_2, window_bounds = array<i64: 3, 8, 768>}, {transform_indices = @transform_3, window_bounds = array<i64: 3, 128, 128>}, {transform_indices = @transform_4, window_bounds = array<i64: 3, 128, 768>}, {transform_indices = @transform_5, window_bounds = array<i64: 3, 768, 128>}, {transform_indices = @transform_6, window_bounds = array<i64: 1024, 768>}, {pipeline_mode = #tpu.pipeline_mode<synchronous>, transform_indices = @transform_7, window_bounds = array<i64: 8, 768>}]} {
    %c2_i32 = arith.constant 2 : i32
    %0 = arith.cmpi slt, %arg0, %c2_i32 : i32
    %1 = arith.extui %0 : i1 to i32
    %c0_i32 = arith.constant 0 : i32
    %2 = arith.cmpi ne, %1, %c0_i32 : i32
    scf.if %2 {
      %c0_i32_1 = arith.constant 0 : i32
      %6 = arith.cmpi eq, %arg0, %c0_i32_1 : i32
      %7 = arith.extui %6 : i1 to i32
      %c0_i32_2 = arith.constant 0 : i32
      %8 = arith.cmpi ne, %7, %c0_i32_2 : i32
      scf.if %8 {
        %c1_133 = arith.constant 1 : index
        %c0_134 = arith.constant 0 : index
        %242 = vector.load %arg2[%c1_133, %c0_134] : memref<8x768xf32, #tpu.memory_space<vmem>>, vector<1x128xf32>
        %c0_135 = arith.constant 0 : index
        %c0_136 = arith.constant 0 : index
        %243 = vector.load %arg1[%c0_135, %c0_136] : memref<128x128xf32, #tpu.memory_space<vmem>>, vector<128x128xf32>
        %cst_137 = arith.constant 11.3137083 : f32
        %244 = vector.broadcast %cst_137 : f32 to vector<128x128xf32>
        %245 = arith.mulf %243, %244 : vector<128x128xf32>
        %246 = vector.broadcast %242 : vector<1x128xf32> to vector<128x128xf32>
        %247 = arith.addf %245, %246 : vector<128x128xf32>
        %c0_138 = arith.constant 0 : index
        %c0_139 = arith.constant 0 : index
        %248 = vector.load %arg9[%c0_138, %c0_139] : memref<128x128xf32, #tpu.memory_space<vmem>>, vector<128x128xf32>
        tpu.vector_store %arg9[%c0_138, %c0_139], %247 {strides = array<i32>} : memref<128x128xf32, #tpu.memory_space<vmem>>, vector<128x128xf32>,
        %c0_140 = arith.constant 0 : index
        %c0_141 = arith.constant 0 : index
        %249 = vector.load %arg2[%c0_140, %c0_141] : memref<8x768xf32, #tpu.memory_space<vmem>>, vector<1x768xf32>
        %250 = vector.shape_cast %249 : vector<1x768xf32> to vector<1x768xf32>
        %251 = vector.broadcast %250 : vector<1x768xf32> to vector<8x768xf32>
        %c0_142 = arith.constant 0 : index
        %c0_143 = arith.constant 0 : index
        %252 = vector.load %arg8[%c0_142, %c0_143] : memref<8x768xf32, #tpu.memory_space<vmem>>, vector<8x768xf32>
        tpu.vector_store %arg8[%c0_142, %c0_143], %251 {strides = array<i32>} : memref<8x768xf32, #tpu.memory_space<vmem>>, vector<8x768xf32>,
      } else {
      }
      %c0 = arith.constant 0 : index
      %c0_3 = arith.constant 0 : index
      %9 = vector.load %arg9[%c0, %c0_3] : memref<128x128xf32, #tpu.memory_space<vmem>>, vector<128x128xf32>
      %c0_4 = arith.constant 0 : index
      %c0_5 = arith.constant 0 : index
      %c0_6 = arith.constant 0 : index
      %10 = vector.load %arg3[%c0_4, %c0_5, %c0_6] : memref<3x8x768xf32, #tpu.memory_space<vmem>>, vector<1x1x768xf32>
      %11 = vector.shape_cast %10 : vector<1x1x768xf32> to vector<1x768xf32>
      %c0_7 = arith.constant 0 : index
      %c1 = arith.constant 1 : index
      %c0_8 = arith.constant 0 : index
      %12 = vector.load %arg3[%c0_7, %c1, %c0_8] : memref<3x8x768xf32, #tpu.memory_space<vmem>>, vector<1x1x128xf32>
      %13 = vector.shape_cast %12 : vector<1x1x128xf32> to vector<1x128xf32>
      %c0_9 = arith.constant 0 : index
      %c2 = arith.constant 2 : index
      %c0_10 = arith.constant 0 : index
      %14 = vector.load %arg3[%c0_9, %c2, %c0_10] : memref<3x8x768xf32, #tpu.memory_space<vmem>>, vector<1x1x128xf32>
      %15 = vector.shape_cast %14 : vector<1x1x128xf32> to vector<1x128xf32>
      %c0_11 = arith.constant 0 : index
      %c3 = arith.constant 3 : index
      %c0_12 = arith.constant 0 : index
      %16 = vector.load %arg3[%c0_11, %c3, %c0_12] : memref<3x8x768xf32, #tpu.memory_space<vmem>>, vector<1x1x128xf32>
      %17 = vector.shape_cast %16 : vector<1x1x128xf32> to vector<1x128xf32>
      %c0_13 = arith.constant 0 : index
      %c4 = arith.constant 4 : index
      %c0_14 = arith.constant 0 : index
      %18 = vector.load %arg3[%c0_13, %c4, %c0_14] : memref<3x8x768xf32, #tpu.memory_space<vmem>>, vector<1x1x128xf32>
      %19 = vector.shape_cast %18 : vector<1x1x128xf32> to vector<1x128xf32>
      %c0_15 = arith.constant 0 : index
      %c5 = arith.constant 5 : index
      %c0_16 = arith.constant 0 : index
      %20 = vector.load %arg3[%c0_15, %c5, %c0_16] : memref<3x8x768xf32, #tpu.memory_space<vmem>>, vector<1x1x128xf32>
      %21 = vector.shape_cast %20 : vector<1x1x128xf32> to vector<1x128xf32>
      %c0_17 = arith.constant 0 : index
      %c6 = arith.constant 6 : index
      %c0_18 = arith.constant 0 : index
      %22 = vector.load %arg3[%c0_17, %c6, %c0_18] : memref<3x8x768xf32, #tpu.memory_space<vmem>>, vector<1x1x128xf32>
      %23 = vector.shape_cast %22 : vector<1x1x128xf32> to vector<1x128xf32>
      %24 = arith.truncf %9 : vector<128x128xf32> to vector<128x128xbf16>
      %c0_19 = arith.constant 0 : index
      %c0_20 = arith.constant 0 : index
      %c0_21 = arith.constant 0 : index
      %25 = vector.load %arg4[%c0_19, %c0_20, %c0_21] : memref<3x128x128xbf16, #tpu.memory_space<vmem>>, vector<1x128x128xbf16>
      %26 = vector.shape_cast %25 : vector<1x128x128xbf16> to vector<128x128xbf16>
      %cst = arith.constant dense<0.000000e+00> : vector<128x128xf32>
      %27 = tpu.matmul %24, %26, %cst {dimension_numbers = #tpu.dot_dimension_numbers<[1], [0], [0], [1], [0, 0, 1, 1], [], []>} : vector<128x128xbf16>, vector<128x128xbf16>, vector<128x128xf32> -> vector<128x128xf32>
      %28 = vector.broadcast %13 : vector<1x128xf32> to vector<128x128xf32>
      %29 = arith.addf %27, %28 : vector<128x128xf32>
      %30 = arith.addf %9, %29 : vector<128x128xf32>
      %cst_22 = arith.constant dense<0.000000e+00> : vector<128xf32>
      %31 = vector.multi_reduction <add>, %30, %cst_22 [1] : vector<128x128xf32> to vector<128xf32>
      %32 = vector.shape_cast %31 : vector<128xf32> to vector<128x1xf32>
      %cst_23 = arith.constant 1.280000e+02 : f32
      %33 = vector.broadcast %cst_23 : f32 to vector<128x1xf32>
      %34 = arith.divf %32, %33 : vector<128x1xf32>
      %35 = vector.broadcast %34 : vector<128x1xf32> to vector<128x128xf32>
      %36 = arith.subf %30, %35 : vector<128x128xf32>
      %37 = arith.mulf %36, %36 : vector<128x128xf32>
      %cst_24 = arith.constant dense<0.000000e+00> : vector<128xf32>
      %38 = vector.multi_reduction <add>, %37, %cst_24 [1] : vector<128x128xf32> to vector<128xf32>
      %39 = vector.shape_cast %38 : vector<128xf32> to vector<128x1xf32>
      %cst_25 = arith.constant 1.280000e+02 : f32
      %40 = vector.broadcast %cst_25 : f32 to vector<128x1xf32>
      %41 = arith.divf %39, %40 : vector<128x1xf32>
      %cst_26 = arith.constant 9.99999974E-6 : f32
      %42 = vector.broadcast %cst_26 : f32 to vector<128x1xf32>
      %43 = arith.addf %41, %42 : vector<128x1xf32>
      %44 = math.rsqrt %43 : vector<128x1xf32>
      %45 = vector.broadcast %44 : vector<128x1xf32> to vector<128x128xf32>
      %46 = arith.mulf %36, %45 : vector<128x128xf32>
      %47 = vector.broadcast %15 : vector<1x128xf32> to vector<128x128xf32>
      %48 = arith.mulf %46, %47 : vector<128x128xf32>
      %49 = vector.broadcast %17 : vector<1x128xf32> to vector<128x128xf32>
      %50 = arith.addf %48, %49 : vector<128x128xf32>
      %51 = arith.truncf %50 : vector<128x128xf32> to vector<128x128xbf16>
      %c0_27 = arith.constant 0 : index
      %c0_28 = arith.constant 0 : index
      %c0_29 = arith.constant 0 : index
      %52 = vector.load %arg5[%c0_27, %c0_28, %c0_29] : memref<3x128x768xbf16, #tpu.memory_space<vmem>>, vector<1x128x768xbf16>
      %53 = vector.shape_cast %52 : vector<1x128x768xbf16> to vector<128x768xbf16>
      %cst_30 = arith.constant dense<0.000000e+00> : vector<128x768xf32>
      %54 = tpu.matmul %51, %53, %cst_30 {dimension_numbers = #tpu.dot_dimension_numbers<[1], [0], [0], [1], [0, 0, 1, 1], [], []>} : vector<128x128xbf16>, vector<128x768xbf16>, vector<128x768xf32> -> vector<128x768xf32>
      %55 = vector.broadcast %11 : vector<1x768xf32> to vector<128x768xf32>
      %56 = arith.addf %54, %55 : vector<128x768xf32>
      %cst_31 = arith.constant 0.000000e+00 : f32
      %57 = vector.broadcast %cst_31 : f32 to vector<128x768xf32>
      %58 = arith.maximumf %56, %57 : vector<128x768xf32>
      %59 = arith.truncf %58 : vector<128x768xf32> to vector<128x768xbf16>
      %c0_32 = arith.constant 0 : index
      %c0_33 = arith.constant 0 : index
      %c0_34 = arith.constant 0 : index
      %60 = vector.load %arg6[%c0_32, %c0_33, %c0_34] : memref<3x768x128xbf16, #tpu.memory_space<vmem>>, vector<1x768x128xbf16>
      %61 = vector.shape_cast %60 : vector<1x768x128xbf16> to vector<768x128xbf16>
      %cst_35 = arith.constant dense<0.000000e+00> : vector<128x128xf32>
      %62 = tpu.matmul %59, %61, %cst_35 {dimension_numbers = #tpu.dot_dimension_numbers<[1], [0], [0], [1], [0, 0, 1, 1], [], []>} : vector<128x768xbf16>, vector<768x128xbf16>, vector<128x128xf32> -> vector<128x128xf32>
      %63 = vector.broadcast %19 : vector<1x128xf32> to vector<128x128xf32>
      %64 = arith.addf %62, %63 : vector<128x128xf32>
      %65 = arith.addf %50, %64 : vector<128x128xf32>
      %cst_36 = arith.constant dense<0.000000e+00> : vector<128xf32>
      %66 = vector.multi_reduction <add>, %65, %cst_36 [1] : vector<128x128xf32> to vector<128xf32>
      %67 = vector.shape_cast %66 : vector<128xf32> to vector<128x1xf32>
      %cst_37 = arith.constant 1.280000e+02 : f32
      %68 = vector.broadcast %cst_37 : f32 to vector<128x1xf32>
      %69 = arith.divf %67, %68 : vector<128x1xf32>
      %70 = vector.broadcast %69 : vector<128x1xf32> to vector<128x128xf32>
      %71 = arith.subf %65, %70 : vector<128x128xf32>
      %72 = arith.mulf %71, %71 : vector<128x128xf32>
      %cst_38 = arith.constant dense<0.000000e+00> : vector<128xf32>
      %73 = vector.multi_reduction <add>, %72, %cst_38 [1] : vector<128x128xf32> to vector<128xf32>
      %74 = vector.shape_cast %73 : vector<128xf32> to vector<128x1xf32>
      %cst_39 = arith.constant 1.280000e+02 : f32
      %75 = vector.broadcast %cst_39 : f32 to vector<128x1xf32>
      %76 = arith.divf %74, %75 : vector<128x1xf32>
      %cst_40 = arith.constant 9.99999974E-6 : f32
      %77 = vector.broadcast %cst_40 : f32 to vector<128x1xf32>
      %78 = arith.addf %76, %77 : vector<128x1xf32>
      %79 = math.rsqrt %78 : vector<128x1xf32>
      %80 = vector.broadcast %79 : vector<128x1xf32> to vector<128x128xf32>
      %81 = arith.mulf %71, %80 : vector<128x128xf32>
      %82 = vector.broadcast %21 : vector<1x128xf32> to vector<128x128xf32>
      %83 = arith.mulf %81, %82 : vector<128x128xf32>
      %84 = vector.broadcast %23 : vector<1x128xf32> to vector<128x128xf32>
      %85 = arith.addf %83, %84 : vector<128x128xf32>
      %c1_41 = arith.constant 1 : index
      %c0_42 = arith.constant 0 : index
      %c0_43 = arith.constant 0 : index
      %86 = vector.load %arg3[%c1_41, %c0_42, %c0_43] : memref<3x8x768xf32, #tpu.memory_space<vmem>>, vector<1x1x768xf32>
      %87 = vector.shape_cast %86 : vector<1x1x768xf32> to vector<1x768xf32>
      %c1_44 = arith.constant 1 : index
      %c1_45 = arith.constant 1 : index
      %c0_46 = arith.constant 0 : index
      %88 = vector.load %arg3[%c1_44, %c1_45, %c0_46] : memref<3x8x768xf32, #tpu.memory_space<vmem>>, vector<1x1x128xf32>
      %89 = vector.shape_cast %88 : vector<1x1x128xf32> to vector<1x128xf32>
      %c1_47 = arith.constant 1 : index
      %c2_48 = arith.constant 2 : index
      %c0_49 = arith.constant 0 : index
      %90 = vector.load %arg3[%c1_47, %c2_48, %c0_49] : memref<3x8x768xf32, #tpu.memory_space<vmem>>, vector<1x1x128xf32>
      %91 = vector.shape_cast %90 : vector<1x1x128xf32> to vector<1x128xf32>
      %c1_50 = arith.constant 1 : index
      %c3_51 = arith.constant 3 : index
      %c0_52 = arith.constant 0 : index
      %92 = vector.load %arg3[%c1_50, %c3_51, %c0_52] : memref<3x8x768xf32, #tpu.memory_space<vmem>>, vector<1x1x128xf32>
      %93 = vector.shape_cast %92 : vector<1x1x128xf32> to vector<1x128xf32>
      %c1_53 = arith.constant 1 : index
      %c4_54 = arith.constant 4 : index
      %c0_55 = arith.constant 0 : index
      %94 = vector.load %arg3[%c1_53, %c4_54, %c0_55] : memref<3x8x768xf32, #tpu.memory_space<vmem>>, vector<1x1x128xf32>
      %95 = vector.shape_cast %94 : vector<1x1x128xf32> to vector<1x128xf32>
      %c1_56 = arith.constant 1 : index
      %c5_57 = arith.constant 5 : index
      %c0_58 = arith.constant 0 : index
      %96 = vector.load %arg3[%c1_56, %c5_57, %c0_58] : memref<3x8x768xf32, #tpu.memory_space<vmem>>, vector<1x1x128xf32>
      %97 = vector.shape_cast %96 : vector<1x1x128xf32> to vector<1x128xf32>
      %c1_59 = arith.constant 1 : index
      %c6_60 = arith.constant 6 : index
      %c0_61 = arith.constant 0 : index
      %98 = vector.load %arg3[%c1_59, %c6_60, %c0_61] : memref<3x8x768xf32, #tpu.memory_space<vmem>>, vector<1x1x128xf32>
      %99 = vector.shape_cast %98 : vector<1x1x128xf32> to vector<1x128xf32>
      %100 = arith.truncf %85 : vector<128x128xf32> to vector<128x128xbf16>
      %c1_62 = arith.constant 1 : index
      %c0_63 = arith.constant 0 : index
      %c0_64 = arith.constant 0 : index
      %101 = vector.load %arg4[%c1_62, %c0_63, %c0_64] : memref<3x128x128xbf16, #tpu.memory_space<vmem>>, vector<1x128x128xbf16>
      %102 = vector.shape_cast %101 : vector<1x128x128xbf16> to vector<128x128xbf16>
      %cst_65 = arith.constant dense<0.000000e+00> : vector<128x128xf32>
      %103 = tpu.matmul %100, %102, %cst_65 {dimension_numbers = #tpu.dot_dimension_numbers<[1], [0], [0], [1], [0, 0, 1, 1], [], []>} : vector<128x128xbf16>, vector<128x128xbf16>, vector<128x128xf32> -> vector<128x128xf32>
      %104 = vector.broadcast %89 : vector<1x128xf32> to vector<128x128xf32>
      %105 = arith.addf %103, %104 : vector<128x128xf32>
      %106 = arith.addf %85, %105 : vector<128x128xf32>
      %cst_66 = arith.constant dense<0.000000e+00> : vector<128xf32>
      %107 = vector.multi_reduction <add>, %106, %cst_66 [1] : vector<128x128xf32> to vector<128xf32>
      %108 = vector.shape_cast %107 : vector<128xf32> to vector<128x1xf32>
      %cst_67 = arith.constant 1.280000e+02 : f32
      %109 = vector.broadcast %cst_67 : f32 to vector<128x1xf32>
      %110 = arith.divf %108, %109 : vector<128x1xf32>
      %111 = vector.broadcast %110 : vector<128x1xf32> to vector<128x128xf32>
      %112 = arith.subf %106, %111 : vector<128x128xf32>
      %113 = arith.mulf %112, %112 : vector<128x128xf32>
      %cst_68 = arith.constant dense<0.000000e+00> : vector<128xf32>
      %114 = vector.multi_reduction <add>, %113, %cst_68 [1] : vector<128x128xf32> to vector<128xf32>
      %115 = vector.shape_cast %114 : vector<128xf32> to vector<128x1xf32>
      %cst_69 = arith.constant 1.280000e+02 : f32
      %116 = vector.broadcast %cst_69 : f32 to vector<128x1xf32>
      %117 = arith.divf %115, %116 : vector<128x1xf32>
      %cst_70 = arith.constant 9.99999974E-6 : f32
      %118 = vector.broadcast %cst_70 : f32 to vector<128x1xf32>
      %119 = arith.addf %117, %118 : vector<128x1xf32>
      %120 = math.rsqrt %119 : vector<128x1xf32>
      %121 = vector.broadcast %120 : vector<128x1xf32> to vector<128x128xf32>
      %122 = arith.mulf %112, %121 : vector<128x128xf32>
      %123 = vector.broadcast %91 : vector<1x128xf32> to vector<128x128xf32>
      %124 = arith.mulf %122, %123 : vector<128x128xf32>
      %125 = vector.broadcast %93 : vector<1x128xf32> to vector<128x128xf32>
      %126 = arith.addf %124, %125 : vector<128x128xf32>
      %127 = arith.truncf %126 : vector<128x128xf32> to vector<128x128xbf16>
      %c1_71 = arith.constant 1 : index
      %c0_72 = arith.constant 0 : index
      %c0_73 = arith.constant 0 : index
      %128 = vector.load %arg5[%c1_71, %c0_72, %c0_73] : memref<3x128x768xbf16, #tpu.memory_space<vmem>>, vector<1x128x768xbf16>
      %129 = vector.shape_cast %128 : vector<1x128x768xbf16> to vector<128x768xbf16>
      %cst_74 = arith.constant dense<0.000000e+00> : vector<128x768xf32>
      %130 = tpu.matmul %127, %129, %cst_74 {dimension_numbers = #tpu.dot_dimension_numbers<[1], [0], [0], [1], [0, 0, 1, 1], [], []>} : vector<128x128xbf16>, vector<128x768xbf16>, vector<128x768xf32> -> vector<128x768xf32>
      %131 = vector.broadcast %87 : vector<1x768xf32> to vector<128x768xf32>
      %132 = arith.addf %130, %131 : vector<128x768xf32>
      %cst_75 = arith.constant 0.000000e+00 : f32
      %133 = vector.broadcast %cst_75 : f32 to vector<128x768xf32>
      %134 = arith.maximumf %132, %133 : vector<128x768xf32>
      %135 = arith.truncf %134 : vector<128x768xf32> to vector<128x768xbf16>
      %c1_76 = arith.constant 1 : index
      %c0_77 = arith.constant 0 : index
      %c0_78 = arith.constant 0 : index
      %136 = vector.load %arg6[%c1_76, %c0_77, %c0_78] : memref<3x768x128xbf16, #tpu.memory_space<vmem>>, vector<1x768x128xbf16>
      %137 = vector.shape_cast %136 : vector<1x768x128xbf16> to vector<768x128xbf16>
      %cst_79 = arith.constant dense<0.000000e+00> : vector<128x128xf32>
      %138 = tpu.matmul %135, %137, %cst_79 {dimension_numbers = #tpu.dot_dimension_numbers<[1], [0], [0], [1], [0, 0, 1, 1], [], []>} : vector<128x768xbf16>, vector<768x128xbf16>, vector<128x128xf32> -> vector<128x128xf32>
      %139 = vector.broadcast %95 : vector<1x128xf32> to vector<128x128xf32>
      %140 = arith.addf %138, %139 : vector<128x128xf32>
      %141 = arith.addf %126, %140 : vector<128x128xf32>
      %cst_80 = arith.constant dense<0.000000e+00> : vector<128xf32>
      %142 = vector.multi_reduction <add>, %141, %cst_80 [1] : vector<128x128xf32> to vector<128xf32>
      %143 = vector.shape_cast %142 : vector<128xf32> to vector<128x1xf32>
      %cst_81 = arith.constant 1.280000e+02 : f32
      %144 = vector.broadcast %cst_81 : f32 to vector<128x1xf32>
      %145 = arith.divf %143, %144 : vector<128x1xf32>
      %146 = vector.broadcast %145 : vector<128x1xf32> to vector<128x128xf32>
      %147 = arith.subf %141, %146 : vector<128x128xf32>
      %148 = arith.mulf %147, %147 : vector<128x128xf32>
      %cst_82 = arith.constant dense<0.000000e+00> : vector<128xf32>
      %149 = vector.multi_reduction <add>, %148, %cst_82 [1] : vector<128x128xf32> to vector<128xf32>
      %150 = vector.shape_cast %149 : vector<128xf32> to vector<128x1xf32>
      %cst_83 = arith.constant 1.280000e+02 : f32
      %151 = vector.broadcast %cst_83 : f32 to vector<128x1xf32>
      %152 = arith.divf %150, %151 : vector<128x1xf32>
      %cst_84 = arith.constant 9.99999974E-6 : f32
      %153 = vector.broadcast %cst_84 : f32 to vector<128x1xf32>
      %154 = arith.addf %152, %153 : vector<128x1xf32>
      %155 = math.rsqrt %154 : vector<128x1xf32>
      %156 = vector.broadcast %155 : vector<128x1xf32> to vector<128x128xf32>
      %157 = arith.mulf %147, %156 : vector<128x128xf32>
      %158 = vector.broadcast %97 : vector<1x128xf32> to vector<128x128xf32>
      %159 = arith.mulf %157, %158 : vector<128x128xf32>
      %160 = vector.broadcast %99 : vector<1x128xf32> to vector<128x128xf32>
      %161 = arith.addf %159, %160 : vector<128x128xf32>
      %c2_85 = arith.constant 2 : index
      %c0_86 = arith.constant 0 : index
      %c0_87 = arith.constant 0 : index
      %162 = vector.load %arg3[%c2_85, %c0_86, %c0_87] : memref<3x8x768xf32, #tpu.memory_space<vmem>>, vector<1x1x768xf32>
      %163 = vector.shape_cast %162 : vector<1x1x768xf32> to vector<1x768xf32>
      %c2_88 = arith.constant 2 : index
      %c1_89 = arith.constant 1 : index
      %c0_90 = arith.constant 0 : index
      %164 = vector.load %arg3[%c2_88, %c1_89, %c0_90] : memref<3x8x768xf32, #tpu.memory_space<vmem>>, vector<1x1x128xf32>
      %165 = vector.shape_cast %164 : vector<1x1x128xf32> to vector<1x128xf32>
      %c2_91 = arith.constant 2 : index
      %c2_92 = arith.constant 2 : index
      %c0_93 = arith.constant 0 : index
      %166 = vector.load %arg3[%c2_91, %c2_92, %c0_93] : memref<3x8x768xf32, #tpu.memory_space<vmem>>, vector<1x1x128xf32>
      %167 = vector.shape_cast %166 : vector<1x1x128xf32> to vector<1x128xf32>
      %c2_94 = arith.constant 2 : index
      %c3_95 = arith.constant 3 : index
      %c0_96 = arith.constant 0 : index
      %168 = vector.load %arg3[%c2_94, %c3_95, %c0_96] : memref<3x8x768xf32, #tpu.memory_space<vmem>>, vector<1x1x128xf32>
      %169 = vector.shape_cast %168 : vector<1x1x128xf32> to vector<1x128xf32>
      %c2_97 = arith.constant 2 : index
      %c4_98 = arith.constant 4 : index
      %c0_99 = arith.constant 0 : index
      %170 = vector.load %arg3[%c2_97, %c4_98, %c0_99] : memref<3x8x768xf32, #tpu.memory_space<vmem>>, vector<1x1x128xf32>
      %171 = vector.shape_cast %170 : vector<1x1x128xf32> to vector<1x128xf32>
      %c2_100 = arith.constant 2 : index
      %c5_101 = arith.constant 5 : index
      %c0_102 = arith.constant 0 : index
      %172 = vector.load %arg3[%c2_100, %c5_101, %c0_102] : memref<3x8x768xf32, #tpu.memory_space<vmem>>, vector<1x1x128xf32>
      %173 = vector.shape_cast %172 : vector<1x1x128xf32> to vector<1x128xf32>
      %c2_103 = arith.constant 2 : index
      %c6_104 = arith.constant 6 : index
      %c0_105 = arith.constant 0 : index
      %174 = vector.load %arg3[%c2_103, %c6_104, %c0_105] : memref<3x8x768xf32, #tpu.memory_space<vmem>>, vector<1x1x128xf32>
      %175 = vector.shape_cast %174 : vector<1x1x128xf32> to vector<1x128xf32>
      %176 = arith.truncf %161 : vector<128x128xf32> to vector<128x128xbf16>
      %c2_106 = arith.constant 2 : index
      %c0_107 = arith.constant 0 : index
      %c0_108 = arith.constant 0 : index
      %177 = vector.load %arg4[%c2_106, %c0_107, %c0_108] : memref<3x128x128xbf16, #tpu.memory_space<vmem>>, vector<1x128x128xbf16>
      %178 = vector.shape_cast %177 : vector<1x128x128xbf16> to vector<128x128xbf16>
      %cst_109 = arith.constant dense<0.000000e+00> : vector<128x128xf32>
      %179 = tpu.matmul %176, %178, %cst_109 {dimension_numbers = #tpu.dot_dimension_numbers<[1], [0], [0], [1], [0, 0, 1, 1], [], []>} : vector<128x128xbf16>, vector<128x128xbf16>, vector<128x128xf32> -> vector<128x128xf32>
      %180 = vector.broadcast %165 : vector<1x128xf32> to vector<128x128xf32>
      %181 = arith.addf %179, %180 : vector<128x128xf32>
      %182 = arith.addf %161, %181 : vector<128x128xf32>
      %cst_110 = arith.constant dense<0.000000e+00> : vector<128xf32>
      %183 = vector.multi_reduction <add>, %182, %cst_110 [1] : vector<128x128xf32> to vector<128xf32>
      %184 = vector.shape_cast %183 : vector<128xf32> to vector<128x1xf32>
      %cst_111 = arith.constant 1.280000e+02 : f32
      %185 = vector.broadcast %cst_111 : f32 to vector<128x1xf32>
      %186 = arith.divf %184, %185 : vector<128x1xf32>
      %187 = vector.broadcast %186 : vector<128x1xf32> to vector<128x128xf32>
      %188 = arith.subf %182, %187 : vector<128x128xf32>
      %189 = arith.mulf %188, %188 : vector<128x128xf32>
      %cst_112 = arith.constant dense<0.000000e+00> : vector<128xf32>
      %190 = vector.multi_reduction <add>, %189, %cst_112 [1] : vector<128x128xf32> to vector<128xf32>
      %191 = vector.shape_cast %190 : vector<128xf32> to vector<128x1xf32>
      %cst_113 = arith.constant 1.280000e+02 : f32
      %192 = vector.broadcast %cst_113 : f32 to vector<128x1xf32>
      %193 = arith.divf %191, %192 : vector<128x1xf32>
      %cst_114 = arith.constant 9.99999974E-6 : f32
      %194 = vector.broadcast %cst_114 : f32 to vector<128x1xf32>
      %195 = arith.addf %193, %194 : vector<128x1xf32>
      %196 = math.rsqrt %195 : vector<128x1xf32>
      %197 = vector.broadcast %196 : vector<128x1xf32> to vector<128x128xf32>
      %198 = arith.mulf %188, %197 : vector<128x128xf32>
      %199 = vector.broadcast %167 : vector<1x128xf32> to vector<128x128xf32>
      %200 = arith.mulf %198, %199 : vector<128x128xf32>
      %201 = vector.broadcast %169 : vector<1x128xf32> to vector<128x128xf32>
      %202 = arith.addf %200, %201 : vector<128x128xf32>
      %203 = arith.truncf %202 : vector<128x128xf32> to vector<128x128xbf16>
      %c2_115 = arith.constant 2 : index
      %c0_116 = arith.constant 0 : index
      %c0_117 = arith.constant 0 : index
      %204 = vector.load %arg5[%c2_115, %c0_116, %c0_117] : memref<3x128x768xbf16, #tpu.memory_space<vmem>>, vector<1x128x768xbf16>
      %205 = vector.shape_cast %204 : vector<1x128x768xbf16> to vector<128x768xbf16>
      %cst_118 = arith.constant dense<0.000000e+00> : vector<128x768xf32>
      %206 = tpu.matmul %203, %205, %cst_118 {dimension_numbers = #tpu.dot_dimension_numbers<[1], [0], [0], [1], [0, 0, 1, 1], [], []>} : vector<128x128xbf16>, vector<128x768xbf16>, vector<128x768xf32> -> vector<128x768xf32>
      %207 = vector.broadcast %163 : vector<1x768xf32> to vector<128x768xf32>
      %208 = arith.addf %206, %207 : vector<128x768xf32>
      %cst_119 = arith.constant 0.000000e+00 : f32
      %209 = vector.broadcast %cst_119 : f32 to vector<128x768xf32>
      %210 = arith.maximumf %208, %209 : vector<128x768xf32>
      %211 = arith.truncf %210 : vector<128x768xf32> to vector<128x768xbf16>
      %c2_120 = arith.constant 2 : index
      %c0_121 = arith.constant 0 : index
      %c0_122 = arith.constant 0 : index
      %212 = vector.load %arg6[%c2_120, %c0_121, %c0_122] : memref<3x768x128xbf16, #tpu.memory_space<vmem>>, vector<1x768x128xbf16>
      %213 = vector.shape_cast %212 : vector<1x768x128xbf16> to vector<768x128xbf16>
      %cst_123 = arith.constant dense<0.000000e+00> : vector<128x128xf32>
      %214 = tpu.matmul %211, %213, %cst_123 {dimension_numbers = #tpu.dot_dimension_numbers<[1], [0], [0], [1], [0, 0, 1, 1], [], []>} : vector<128x768xbf16>, vector<768x128xbf16>, vector<128x128xf32> -> vector<128x128xf32>
      %215 = vector.broadcast %171 : vector<1x128xf32> to vector<128x128xf32>
      %216 = arith.addf %214, %215 : vector<128x128xf32>
      %217 = arith.addf %202, %216 : vector<128x128xf32>
      %cst_124 = arith.constant dense<0.000000e+00> : vector<128xf32>
      %218 = vector.multi_reduction <add>, %217, %cst_124 [1] : vector<128x128xf32> to vector<128xf32>
      %219 = vector.shape_cast %218 : vector<128xf32> to vector<128x1xf32>
      %cst_125 = arith.constant 1.280000e+02 : f32
      %220 = vector.broadcast %cst_125 : f32 to vector<128x1xf32>
      %221 = arith.divf %219, %220 : vector<128x1xf32>
      %222 = vector.broadcast %221 : vector<128x1xf32> to vector<128x128xf32>
      %223 = arith.subf %217, %222 : vector<128x128xf32>
      %224 = arith.mulf %223, %223 : vector<128x128xf32>
      %cst_126 = arith.constant dense<0.000000e+00> : vector<128xf32>
      %225 = vector.multi_reduction <add>, %224, %cst_126 [1] : vector<128x128xf32> to vector<128xf32>
      %226 = vector.shape_cast %225 : vector<128xf32> to vector<128x1xf32>
      %cst_127 = arith.constant 1.280000e+02 : f32
      %227 = vector.broadcast %cst_127 : f32 to vector<128x1xf32>
      %228 = arith.divf %226, %227 : vector<128x1xf32>
      %cst_128 = arith.constant 9.99999974E-6 : f32
      %229 = vector.broadcast %cst_128 : f32 to vector<128x1xf32>
      %230 = arith.addf %228, %229 : vector<128x1xf32>
      %231 = math.rsqrt %230 : vector<128x1xf32>
      %232 = vector.broadcast %231 : vector<128x1xf32> to vector<128x128xf32>
      %233 = arith.mulf %223, %232 : vector<128x128xf32>
      %234 = vector.broadcast %173 : vector<1x128xf32> to vector<128x128xf32>
      %235 = arith.mulf %233, %234 : vector<128x128xf32>
      %236 = vector.broadcast %175 : vector<1x128xf32> to vector<128x128xf32>
      %237 = arith.addf %235, %236 : vector<128x128xf32>
      %c0_129 = arith.constant 0 : index
      %c0_130 = arith.constant 0 : index
      %238 = vector.load %arg9[%c0_129, %c0_130] : memref<128x128xf32, #tpu.memory_space<vmem>>, vector<128x128xf32>
      tpu.vector_store %arg9[%c0_129, %c0_130], %237 {strides = array<i32>} : memref<128x128xf32, #tpu.memory_space<vmem>>, vector<128x128xf32>,
      %c1_i32_131 = arith.constant 1 : i32
      %239 = arith.cmpi eq, %arg0, %c1_i32_131 : i32
      %240 = arith.extui %239 : i1 to i32
      %c0_i32_132 = arith.constant 0 : i32
      %241 = arith.cmpi ne, %240, %c0_i32_132 : i32
      scf.if %241 {
        %242 = vector.extract_strided_slice %237 {offsets = [0, 0], sizes = [8, 128], strides = [1, 1]} : vector<128x128xf32> to vector<8x128xf32>
        %243 = arith.truncf %242 : vector<8x128xf32> to vector<8x128xbf16>
        %c0_133 = arith.constant 0 : index
        %c0_134 = arith.constant 0 : index
        %c0_135 = arith.constant 0 : index
        %244 = vector.load %arg10[%c0_133, %c0_134, %c0_135] : memref<2x8x1024xbf16, #tpu.memory_space<vmem>>, vector<1x8x128xbf16>
        %245 = vector.shape_cast %244 : vector<1x8x128xbf16> to vector<8x128xbf16>
        %246 = vector.shape_cast %243 : vector<8x128xbf16> to vector<1x8x128xbf16>
        tpu.vector_store %arg10[%c0_133, %c0_134, %c0_135], %246 {strides = array<i32>} : memref<2x8x1024xbf16, #tpu.memory_space<vmem>>, vector<1x8x128xbf16>,
        %247 = vector.extract_strided_slice %237 {offsets = [8, 0], sizes = [8, 128], strides = [1, 1]} : vector<128x128xf32> to vector<8x128xf32>
        %248 = arith.truncf %247 : vector<8x128xf32> to vector<8x128xbf16>
        %c0_136 = arith.constant 0 : index
        %c0_137 = arith.constant 0 : index
        %c128 = arith.constant 128 : index
        %249 = vector.load %arg10[%c0_136, %c0_137, %c128] : memref<2x8x1024xbf16, #tpu.memory_space<vmem>>, vector<1x8x128xbf16>
        %250 = vector.shape_cast %249 : vector<1x8x128xbf16> to vector<8x128xbf16>
        %251 = vector.shape_cast %248 : vector<8x128xbf16> to vector<1x8x128xbf16>
        tpu.vector_store %arg10[%c0_136, %c0_137, %c128], %251 {strides = array<i32>} : memref<2x8x1024xbf16, #tpu.memory_space<vmem>>, vector<1x8x128xbf16>,
        %252 = vector.extract_strided_slice %237 {offsets = [16, 0], sizes = [8, 128], strides = [1, 1]} : vector<128x128xf32> to vector<8x128xf32>
        %253 = arith.truncf %252 : vector<8x128xf32> to vector<8x128xbf16>
        %c0_138 = arith.constant 0 : index
        %c0_139 = arith.constant 0 : index
        %c256 = arith.constant 256 : index
        %254 = vector.load %arg10[%c0_138, %c0_139, %c256] : memref<2x8x1024xbf16, #tpu.memory_space<vmem>>, vector<1x8x128xbf16>
        %255 = vector.shape_cast %254 : vector<1x8x128xbf16> to vector<8x128xbf16>
        %256 = vector.shape_cast %253 : vector<8x128xbf16> to vector<1x8x128xbf16>
        tpu.vector_store %arg10[%c0_138, %c0_139, %c256], %256 {strides = array<i32>} : memref<2x8x1024xbf16, #tpu.memory_space<vmem>>, vector<1x8x128xbf16>,
        %257 = vector.extract_strided_slice %237 {offsets = [24, 0], sizes = [8, 128], strides = [1, 1]} : vector<128x128xf32> to vector<8x128xf32>
        %258 = arith.truncf %257 : vector<8x128xf32> to vector<8x128xbf16>
        %c0_140 = arith.constant 0 : index
        %c0_141 = arith.constant 0 : index
        %c384 = arith.constant 384 : index
        %259 = vector.load %arg10[%c0_140, %c0_141, %c384] : memref<2x8x1024xbf16, #tpu.memory_space<vmem>>, vector<1x8x128xbf16>
        %260 = vector.shape_cast %259 : vector<1x8x128xbf16> to vector<8x128xbf16>
        %261 = vector.shape_cast %258 : vector<8x128xbf16> to vector<1x8x128xbf16>
        tpu.vector_store %arg10[%c0_140, %c0_141, %c384], %261 {strides = array<i32>} : memref<2x8x1024xbf16, #tpu.memory_space<vmem>>, vector<1x8x128xbf16>,
        %262 = vector.extract_strided_slice %237 {offsets = [32, 0], sizes = [8, 128], strides = [1, 1]} : vector<128x128xf32> to vector<8x128xf32>
        %263 = arith.truncf %262 : vector<8x128xf32> to vector<8x128xbf16>
        %c0_142 = arith.constant 0 : index
        %c0_143 = arith.constant 0 : index
        %c512 = arith.constant 512 : index
        %264 = vector.load %arg10[%c0_142, %c0_143, %c512] : memref<2x8x1024xbf16, #tpu.memory_space<vmem>>, vector<1x8x128xbf16>
        %265 = vector.shape_cast %264 : vector<1x8x128xbf16> to vector<8x128xbf16>
        %266 = vector.shape_cast %263 : vector<8x128xbf16> to vector<1x8x128xbf16>
        tpu.vector_store %arg10[%c0_142, %c0_143, %c512], %266 {strides = array<i32>} : memref<2x8x1024xbf16, #tpu.memory_space<vmem>>, vector<1x8x128xbf16>,
        %267 = vector.extract_strided_slice %237 {offsets = [40, 0], sizes = [8, 128], strides = [1, 1]} : vector<128x128xf32> to vector<8x128xf32>
        %268 = arith.truncf %267 : vector<8x128xf32> to vector<8x128xbf16>
        %c0_144 = arith.constant 0 : index
        %c0_145 = arith.constant 0 : index
        %c640 = arith.constant 640 : index
        %269 = vector.load %arg10[%c0_144, %c0_145, %c640] : memref<2x8x1024xbf16, #tpu.memory_space<vmem>>, vector<1x8x128xbf16>
        %270 = vector.shape_cast %269 : vector<1x8x128xbf16> to vector<8x128xbf16>
        %271 = vector.shape_cast %268 : vector<8x128xbf16> to vector<1x8x128xbf16>
        tpu.vector_store %arg10[%c0_144, %c0_145, %c640], %271 {strides = array<i32>} : memref<2x8x1024xbf16, #tpu.memory_space<vmem>>, vector<1x8x128xbf16>,
        %272 = vector.extract_strided_slice %237 {offsets = [48, 0], sizes = [8, 128], strides = [1, 1]} : vector<128x128xf32> to vector<8x128xf32>
        %273 = arith.truncf %272 : vector<8x128xf32> to vector<8x128xbf16>
        %c0_146 = arith.constant 0 : index
        %c0_147 = arith.constant 0 : index
        %c768 = arith.constant 768 : index
        %274 = vector.load %arg10[%c0_146, %c0_147, %c768] : memref<2x8x1024xbf16, #tpu.memory_space<vmem>>, vector<1x8x128xbf16>
        %275 = vector.shape_cast %274 : vector<1x8x128xbf16> to vector<8x128xbf16>
        %276 = vector.shape_cast %273 : vector<8x128xbf16> to vector<1x8x128xbf16>
        tpu.vector_store %arg10[%c0_146, %c0_147, %c768], %276 {strides = array<i32>} : memref<2x8x1024xbf16, #tpu.memory_space<vmem>>, vector<1x8x128xbf16>,
        %277 = vector.extract_strided_slice %237 {offsets = [56, 0], sizes = [8, 128], strides = [1, 1]} : vector<128x128xf32> to vector<8x128xf32>
        %278 = arith.truncf %277 : vector<8x128xf32> to vector<8x128xbf16>
        %c0_148 = arith.constant 0 : index
        %c0_149 = arith.constant 0 : index
        %c896 = arith.constant 896 : index
        %279 = vector.load %arg10[%c0_148, %c0_149, %c896] : memref<2x8x1024xbf16, #tpu.memory_space<vmem>>, vector<1x8x128xbf16>
        %280 = vector.shape_cast %279 : vector<1x8x128xbf16> to vector<8x128xbf16>
        %281 = vector.shape_cast %278 : vector<8x128xbf16> to vector<1x8x128xbf16>
        tpu.vector_store %arg10[%c0_148, %c0_149, %c896], %281 {strides = array<i32>} : memref<2x8x1024xbf16, #tpu.memory_space<vmem>>, vector<1x8x128xbf16>,
        %282 = vector.extract_strided_slice %237 {offsets = [64, 0], sizes = [8, 128], strides = [1, 1]} : vector<128x128xf32> to vector<8x128xf32>
        %283 = arith.truncf %282 : vector<8x128xf32> to vector<8x128xbf16>
        %c1_150 = arith.constant 1 : index
        %c0_151 = arith.constant 0 : index
        %c0_152 = arith.constant 0 : index
        %284 = vector.load %arg10[%c1_150, %c0_151, %c0_152] : memref<2x8x1024xbf16, #tpu.memory_space<vmem>>, vector<1x8x128xbf16>
        %285 = vector.shape_cast %284 : vector<1x8x128xbf16> to vector<8x128xbf16>
        %286 = vector.shape_cast %283 : vector<8x128xbf16> to vector<1x8x128xbf16>
        tpu.vector_store %arg10[%c1_150, %c0_151, %c0_152], %286 {strides = array<i32>} : memref<2x8x1024xbf16, #tpu.memory_space<vmem>>, vector<1x8x128xbf16>,
        %287 = vector.extract_strided_slice %237 {offsets = [72, 0], sizes = [8, 128], strides = [1, 1]} : vector<128x128xf32> to vector<8x128xf32>
        %288 = arith.truncf %287 : vector<8x128xf32> to vector<8x128xbf16>
        %c1_153 = arith.constant 1 : index
        %c0_154 = arith.constant 0 : index
        %c128_155 = arith.constant 128 : index
        %289 = vector.load %arg10[%c1_153, %c0_154, %c128_155] : memref<2x8x1024xbf16, #tpu.memory_space<vmem>>, vector<1x8x128xbf16>
        %290 = vector.shape_cast %289 : vector<1x8x128xbf16> to vector<8x128xbf16>
        %291 = vector.shape_cast %288 : vector<8x128xbf16> to vector<1x8x128xbf16>
        tpu.vector_store %arg10[%c1_153, %c0_154, %c128_155], %291 {strides = array<i32>} : memref<2x8x1024xbf16, #tpu.memory_space<vmem>>, vector<1x8x128xbf16>,
        %292 = vector.extract_strided_slice %237 {offsets = [80, 0], sizes = [8, 128], strides = [1, 1]} : vector<128x128xf32> to vector<8x128xf32>
        %293 = arith.truncf %292 : vector<8x128xf32> to vector<8x128xbf16>
        %c1_156 = arith.constant 1 : index
        %c0_157 = arith.constant 0 : index
        %c256_158 = arith.constant 256 : index
        %294 = vector.load %arg10[%c1_156, %c0_157, %c256_158] : memref<2x8x1024xbf16, #tpu.memory_space<vmem>>, vector<1x8x128xbf16>
        %295 = vector.shape_cast %294 : vector<1x8x128xbf16> to vector<8x128xbf16>
        %296 = vector.shape_cast %293 : vector<8x128xbf16> to vector<1x8x128xbf16>
        tpu.vector_store %arg10[%c1_156, %c0_157, %c256_158], %296 {strides = array<i32>} : memref<2x8x1024xbf16, #tpu.memory_space<vmem>>, vector<1x8x128xbf16>,
        %297 = vector.extract_strided_slice %237 {offsets = [88, 0], sizes = [8, 128], strides = [1, 1]} : vector<128x128xf32> to vector<8x128xf32>
        %298 = arith.truncf %297 : vector<8x128xf32> to vector<8x128xbf16>
        %c1_159 = arith.constant 1 : index
        %c0_160 = arith.constant 0 : index
        %c384_161 = arith.constant 384 : index
        %299 = vector.load %arg10[%c1_159, %c0_160, %c384_161] : memref<2x8x1024xbf16, #tpu.memory_space<vmem>>, vector<1x8x128xbf16>
        %300 = vector.shape_cast %299 : vector<1x8x128xbf16> to vector<8x128xbf16>
        %301 = vector.shape_cast %298 : vector<8x128xbf16> to vector<1x8x128xbf16>
        tpu.vector_store %arg10[%c1_159, %c0_160, %c384_161], %301 {strides = array<i32>} : memref<2x8x1024xbf16, #tpu.memory_space<vmem>>, vector<1x8x128xbf16>,
        %302 = vector.extract_strided_slice %237 {offsets = [96, 0], sizes = [8, 128], strides = [1, 1]} : vector<128x128xf32> to vector<8x128xf32>
        %303 = arith.truncf %302 : vector<8x128xf32> to vector<8x128xbf16>
        %c1_162 = arith.constant 1 : index
        %c0_163 = arith.constant 0 : index
        %c512_164 = arith.constant 512 : index
        %304 = vector.load %arg10[%c1_162, %c0_163, %c512_164] : memref<2x8x1024xbf16, #tpu.memory_space<vmem>>, vector<1x8x128xbf16>
        %305 = vector.shape_cast %304 : vector<1x8x128xbf16> to vector<8x128xbf16>
        %306 = vector.shape_cast %303 : vector<8x128xbf16> to vector<1x8x128xbf16>
        tpu.vector_store %arg10[%c1_162, %c0_163, %c512_164], %306 {strides = array<i32>} : memref<2x8x1024xbf16, #tpu.memory_space<vmem>>, vector<1x8x128xbf16>,
        %307 = vector.extract_strided_slice %237 {offsets = [104, 0], sizes = [8, 128], strides = [1, 1]} : vector<128x128xf32> to vector<8x128xf32>
        %308 = arith.truncf %307 : vector<8x128xf32> to vector<8x128xbf16>
        %c1_165 = arith.constant 1 : index
        %c0_166 = arith.constant 0 : index
        %c640_167 = arith.constant 640 : index
        %309 = vector.load %arg10[%c1_165, %c0_166, %c640_167] : memref<2x8x1024xbf16, #tpu.memory_space<vmem>>, vector<1x8x128xbf16>
        %310 = vector.shape_cast %309 : vector<1x8x128xbf16> to vector<8x128xbf16>
        %311 = vector.shape_cast %308 : vector<8x128xbf16> to vector<1x8x128xbf16>
        tpu.vector_store %arg10[%c1_165, %c0_166, %c640_167], %311 {strides = array<i32>} : memref<2x8x1024xbf16, #tpu.memory_space<vmem>>, vector<1x8x128xbf16>,
        %312 = vector.extract_strided_slice %237 {offsets = [112, 0], sizes = [8, 128], strides = [1, 1]} : vector<128x128xf32> to vector<8x128xf32>
        %313 = arith.truncf %312 : vector<8x128xf32> to vector<8x128xbf16>
        %c1_168 = arith.constant 1 : index
        %c0_169 = arith.constant 0 : index
        %c768_170 = arith.constant 768 : index
        %314 = vector.load %arg10[%c1_168, %c0_169, %c768_170] : memref<2x8x1024xbf16, #tpu.memory_space<vmem>>, vector<1x8x128xbf16>
        %315 = vector.shape_cast %314 : vector<1x8x128xbf16> to vector<8x128xbf16>
        %316 = vector.shape_cast %313 : vector<8x128xbf16> to vector<1x8x128xbf16>
        tpu.vector_store %arg10[%c1_168, %c0_169, %c768_170], %316 {strides = array<i32>} : memref<2x8x1024xbf16, #tpu.memory_space<vmem>>, vector<1x8x128xbf16>,
        %317 = vector.extract_strided_slice %237 {offsets = [120, 0], sizes = [8, 128], strides = [1, 1]} : vector<128x128xf32> to vector<8x128xf32>
        %318 = arith.truncf %317 : vector<8x128xf32> to vector<8x128xbf16>
        %c1_171 = arith.constant 1 : index
        %c0_172 = arith.constant 0 : index
        %c896_173 = arith.constant 896 : index
        %319 = vector.load %arg10[%c1_171, %c0_172, %c896_173] : memref<2x8x1024xbf16, #tpu.memory_space<vmem>>, vector<1x8x128xbf16>
        %320 = vector.shape_cast %319 : vector<1x8x128xbf16> to vector<8x128xbf16>
        %321 = vector.shape_cast %318 : vector<8x128xbf16> to vector<1x8x128xbf16>
        tpu.vector_store %arg10[%c1_171, %c0_172, %c896_173], %321 {strides = array<i32>} : memref<2x8x1024xbf16, #tpu.memory_space<vmem>>, vector<1x8x128xbf16>,
      } else {
      }
    } else {
    }
    %c1_i32 = arith.constant 1 : i32
    %3 = arith.cmpi sge, %arg0, %c1_i32 : i32
    %4 = arith.extui %3 : i1 to i32
    %c0_i32_0 = arith.constant 0 : i32
    %5 = arith.cmpi ne, %4, %c0_i32_0 : i32
    scf.if %5 {
      %c1_i32_1 = arith.constant 1 : i32
      %6 = arith.subi %arg0, %c1_i32_1 : i32
      %c0_i32_2 = arith.constant 0 : i32
      %7 = arith.maxsi %6, %c0_i32_2 : i32
      %c0 = arith.constant 0 : index
      %c0_3 = arith.constant 0 : index
      %8 = vector.load %arg8[%c0, %c0_3] : memref<8x768xf32, #tpu.memory_space<vmem>>, vector<8x768xf32>
      %9 = arith.index_cast %7 : i32 to index
      %c0_4 = arith.constant 0 : index
      %c0_5 = arith.constant 0 : index
      %10 = vector.load %arg10[%9, %c0_4, %c0_5] : memref<2x8x1024xbf16, #tpu.memory_space<vmem>>, vector<1x8x1024xbf16>
      %11 = vector.shape_cast %10 : vector<1x8x1024xbf16> to vector<8x1024xbf16>
      %c0_6 = arith.constant 0 : index
      %c0_7 = arith.constant 0 : index
      %12 = vector.load %arg7[%c0_6, %c0_7] : memref<1024x768xbf16, #tpu.memory_space<vmem>>, vector<1024x768xbf16>
      %cst = arith.constant dense<0.000000e+00> : vector<8x768xf32>
      %13 = tpu.matmul %11, %12, %cst {dimension_numbers = #tpu.dot_dimension_numbers<[1], [0], [0], [1], [0, 0, 1, 1], [], []>} : vector<8x1024xbf16>, vector<1024x768xbf16>, vector<8x768xf32> -> vector<8x768xf32>
      %14 = arith.addf %8, %13 : vector<8x768xf32>
      %c0_8 = arith.constant 0 : index
      %c0_9 = arith.constant 0 : index
      %15 = vector.load %arg8[%c0_8, %c0_9] : memref<8x768xf32, #tpu.memory_space<vmem>>, vector<8x768xf32>
      tpu.vector_store %arg8[%c0_8, %c0_9], %14 {strides = array<i32>} : memref<8x768xf32, #tpu.memory_space<vmem>>, vector<8x768xf32>,
    } else {
    }
    return
  }
  func.func @transform_0(%arg0: i32) -> (i32, i32) {
    %c0_i32 = arith.constant 0 : i32
    %c0_i32_0 = arith.constant 0 : i32
    %c0_i32_1 = arith.constant 0 : i32
    return %c0_i32, %c0_i32_0 : i32, i32
  }
  func.func @transform_1(%arg0: i32) -> (i32, i32) {
    %c0_i32 = arith.constant 0 : i32
    %c0_i32_0 = arith.constant 0 : i32
    %c0_i32_1 = arith.constant 0 : i32
    return %c0_i32, %c0_i32_0 : i32, i32
  }
  func.func @transform_2(%arg0: i32) -> (i32, i32, i32) {
    %c1_i32 = arith.constant 1 : i32
    %0 = arith.minsi %arg0, %c1_i32 : i32
    %c0_i32 = arith.constant 0 : i32
    %c0_i32_0 = arith.constant 0 : i32
    %c0_i32_1 = arith.constant 0 : i32
    return %0, %c0_i32, %c0_i32_0 : i32, i32, i32
  }
  func.func @transform_3(%arg0: i32) -> (i32, i32, i32) {
    %c1_i32 = arith.constant 1 : i32
    %0 = arith.minsi %arg0, %c1_i32 : i32
    %c0_i32 = arith.constant 0 : i32
    %c0_i32_0 = arith.constant 0 : i32
    %c0_i32_1 = arith.constant 0 : i32
    return %0, %c0_i32, %c0_i32_0 : i32, i32, i32
  }
  func.func @transform_4(%arg0: i32) -> (i32, i32, i32) {
    %c1_i32 = arith.constant 1 : i32
    %0 = arith.minsi %arg0, %c1_i32 : i32
    %c0_i32 = arith.constant 0 : i32
    %c0_i32_0 = arith.constant 0 : i32
    %c0_i32_1 = arith.constant 0 : i32
    return %0, %c0_i32, %c0_i32_0 : i32, i32, i32
  }
  func.func @transform_5(%arg0: i32) -> (i32, i32, i32) {
    %c1_i32 = arith.constant 1 : i32
    %0 = arith.minsi %arg0, %c1_i32 : i32
    %c0_i32 = arith.constant 0 : i32
    %c0_i32_0 = arith.constant 0 : i32
    %c0_i32_1 = arith.constant 0 : i32
    return %0, %c0_i32, %c0_i32_0 : i32, i32, i32
  }
  func.func @transform_6(%arg0: i32) -> (i32, i32) {
    %c1_i32 = arith.constant 1 : i32
    %0 = arith.subi %arg0, %c1_i32 : i32
    %c0_i32 = arith.constant 0 : i32
    %1 = arith.maxsi %0, %c0_i32 : i32
    %c0_i32_0 = arith.constant 0 : i32
    %c0_i32_1 = arith.constant 0 : i32
    return %1, %c0_i32_0 : i32, i32
  }
  func.func @transform_7(%arg0: i32) -> (i32, i32) {
    %c0_i32 = arith.constant 0 : i32
    %c0_i32_0 = arith.constant 0 : i32
    %c0_i32_1 = arith.constant 0 : i32
    return %c0_i32, %c0_i32_0 : i32, i32
  }
}

</mosaic_0001>

<bundles_post_ra>
// kernel: tpu_custom_call.1
= control target key start
LH: loop header
LB: loop body
LE: loop exit
PB: predicated region body
PF: predicated region fallthrough
CT: control target
= control target key end

     0   :  { %s17000_s0 = inlined_call_operand.hbm [shape: f32[128,128], index: 0, kind: input, shape index: {}]   ;;  %s17001_s1 = inlined_call_operand.hbm [shape: f32[8,768], index: 1, kind: input, shape index: {}]   ;;  %s17002_s2 = inlined_call_operand.hbm [shape: f32[6,8,768], index: 2, kind: input, shape index: {}]   ;;  %s17003_s3 = inlined_call_operand.hbm [shape: bf16[6,128,128], index: 3, kind: input, shape index: {}]   ;;  %s17004_s4 = inlined_call_operand.hbm [shape: bf16[6,128,768], index: 4, kind: input, shape index: {}]   ;;  %s17005_s5 = inlined_call_operand.hbm [shape: bf16[6,768,128], index: 5, kind: input, shape index: {}]   ;;  %s17006_s6 = inlined_call_operand.hbm [shape: bf16[2048,768], index: 6, kind: input, shape index: {}]   ;;  %s17007_s7 = inlined_call_operand.hbm [shape: f32[8,768], index: 7, kind: output, shape index: {}]  }
   0x1   :  { %17023 = sst [smem:[#allocation22_spill]] %s17000_s0 }
   0x2   :  { %17024 = sst [smem:[#allocation23_spill]] %s17002_s2 }
   0x3   :  { %17025 = sst [smem:[#allocation24_spill]] %s17007_s7 }
   0x4   :  { %12 = vsyncpa [#allocation5], 0 }
   0x5   :  { %13 = vsyncpa [#allocation8], 0 }
   0x6   :  { %14 = vsyncpa [#allocation6], 0  ;;  %s13570_s24 = smov 0   ;;  %s13572_s25 = smov 0  }
   0x7   :  { %s13574_s26 = smov 0   ;;  %s13576_s27 = smov 0  }
   0x8   :  { %s13578_s28 = smov 0   ;;  %s13580_s29 = smov 0  }
   0x9   :  { %s13582_s30 = smov 0  }
   0xa LB: > { %s13602_s8 = sadd.s32 4294967295, %s13511_s30   ;;  %p86_p0 = scmp.ne.s32.totalorder %s13503_s28, %s13499_s27  ;;  %s13511_s30 = sphi %s13582_s30, %s17062_s30   ;;  %s13507_s29 = sphi %s13580_s29, %s17061_s29   ;;  %s13503_s28 = sphi %s13578_s28, %s17060_s28   ;;  %s13499_s27 = sphi %s13576_s27, %s17059_s27   ;;  %s13495_s26 = sphi %s13574_s26, %s17058_s26   ;;  %s13491_s25 = sphi %s13572_s25, %s17057_s25   ;;  %s13487_s24 = sphi %s13570_s24, %s17056_s24  }
   0xb   : > { %p17008_p1 = scmp.eq.s32.totalorder %s13602_s8, 0  ;;  %p208_p2 = scmp.ne.s32.totalorder %s13491_s25, %s13487_s24 }
   0xc   : > { %p10054_p3 = scmp.ge.s32.totalorder %s13511_s30, 1  ;;  %p240_p4 = scmp.lt.s32.totalorder %s13511_s30, 4 }
   0xd   : > { %p13611_p5 = por %p17008_p1, %p86_p0  ;;  %p13617_p6 = por %p208_p2, %p17008_p1 }
   0xe   : > { %p13621_p7 = pnand %p10054_p3, %p240_p4  ;;  %s13513_s12 = smov [#allocation4]  }
   0xf   : > { %s17026_s9 = scalar_select %p13611_p5, 1, 0 }
  0x10   : > { %s17028_s10 = scalar_select %p13617_p6, 1, 0 }
  0x11   : > { %17027 = sst [smem:[#allocation20_spill]] %s17026_s9  ;;  %p11942_p9 = pneg %p13621_p7 }
  0x12   : > { %17029 = sst [smem:[#allocation21_spill]] %s17028_s10  ;;  %s252_s13 = sshll.u32 %s13513_s12, 4  ;;  %s253_s13 = int_to_ptr.vmem [resolvable:$true] %s252_s13 }
  0x13   : > { %s17030_s11 = scalar_select %p13621_p7, 1, 0 }
  0x14   : > { %p13630_p10 = pnand %p11942_p9, %p17008_p1  ;;  %s17032_s0 = sld [smem:[#allocation22_spill]] }
  0x16   : > { %s17031_s14 = scalar_select %p13630_p10, 1, 0 }
  0x17   : > { %p17015_p13 = pneg %p13630_p10 }
  0x1a   : > { %s13205_s17 = scalar_lea.hbm %s17032_s0, 2048 }
  0x1b   : > { %p13206_p12 = scmp.ne.s32.totalorder %s17032_s0, %s13205_s17  ;;  %p13212_p3 = scmp.lt.u32.totalorder %s13205_s17, %s17032_s0 }
  0x1d   : > { %p13208_p0 = pnand %p17015_p13, %p13206_p12 }
  0x1f   : > { %p13209_p2 = pneg %p13208_p0 }
  0x21   : > { %p13214_p4 = pnand %p13212_p3, %p13209_p2 }
  0x23   : > { %13217 = shalt.err (!%p13214_p4)
}
  0x24   : > { %s13218_s22 = scalar_lea.vmem %s253_s13, 2048  ;;  %p13226_p11 = scmp.lt.s32.totalorder %s253_s13, %s253_s13 }
  0x25   : > { %p13219_p9 = scmp.ne.s32.totalorder %s253_s13, %s13218_s22  ;;  %p13227_p6 = scmp.lt.s32.totalorder %s13218_s22, %s13218_s22 }
  0x27   : > { %p13221_p8 = pnand %p13219_p9, %p17015_p13  ;;  %p13228_p5 = por %p13227_p6, %p13226_p11 }
  0x29   : > { %p13222_p1 = pneg %p13221_p8 }
  0x2b   : > { %p13229_p7 = pnand %p13228_p5, %p13222_p1 }
  0x2d   : > { %13232 = shalt.err (!%p13229_p7)
}
  0x2e   : > { %s13514_s23 = smov 128   ;;  %s13515_s24 = smov 8  }
  0x2f   : > { %11945 = dma.hbm_to_vmem [thread:$0]  (!%p13630_p10), %s17032_s0, 2048, %s253_s13, [#allocation5], %s13514_s23, %s13514_s23, %s13515_s24  }
  0x30   : > { %p17033_p1 = scmp.lt.s32.totalorder %s13511_s30, 1  ;;  %p80_p5 = scmp.ne.s32.totalorder %s13507_s29, %s13503_s28 }
  0x31   : > { %p17014_p6 = scmp.eq.s32.totalorder %s13511_s30, 0  ;;  %p17013_p7 = scmp.lt.s32.totalorder %s13511_s30, 3 }
  0x32   : > { %s13660_s15 = scalar_select %p17033_p1, %s13511_s30, 1 }
  0x33   : > { %s277_s17 = sand.u32 1, %s13511_s30   ;;  %s13669_s18 = sand.u32 1, %s13507_s29  }
  0x34   : > { %p82_p8 = por %p17014_p6, %p80_p5  ;;  %s11907_s19 = smul.u32 144, %s13669_s18 }
  0x35   : > { %s11968_s13 = smul.u32 2304, %s13660_s15  ;;  %s17035_s2 = sld [smem:[#allocation23_spill]] }
  0x36   : > { %p13676_p11 = pnand %p17013_p7, %p82_p8  ;;  %s281_s21 = scalar_lea.vmem [#allocation9], %s11907_s19 }
  0x37   : > { %s291_s22 = sshll.u32 %s281_s21, 4  ;;  %s11909_s12 = smul.u32 192, %s13669_s18  ;;  %s13686_s22 = int_to_ptr.vmem [resolvable:$true] %s291_s22 }
  0x38   : > { %s13689_s16 = scalar_lea.sflag [#allocation5], %s277_s17  ;;  %p13695_p0 = pneg %p13676_p11 }
  0x3b   : > { %s13684_s27 = scalar_lea.hbm %s17035_s2, %s11968_s13  ;;  %s13238_s23 = scalar_lea.hbm %s17035_s2, 4608 }
  0x3c   : > { %s13233_s0 = scalar_lea.hbm %s13684_s27, 2304  ;;  %p13239_p4 = scmp.lt.u32.totalorder %s13684_s27, %s17035_s2 }
  0x3d   : > { %p13234_p12 = scmp.ne.s32.totalorder %s13684_s27, %s13233_s0  ;;  %p13240_p9 = scmp.lt.u32.totalorder %s13238_s23, %s13233_s0 }
  0x3e   : > { %p13242_p5 = scmp.lt.u32.totalorder %s13233_s0, %s13684_s27 }
  0x3f   : > { %p13236_p2 = pnand %p13695_p0, %p13234_p12  ;;  %p13241_p1 = por %p13240_p9, %p13239_p4 }
  0x41   : > { %p13237_p3 = pneg %p13236_p2  ;;  %p13243_p8 = por %p13242_p5, %p13241_p1 }
  0x43   : > { %p13244_p7 = pnand %p13243_p8, %p13237_p3 }
  0x45   : > { %13247 = shalt.err (!%p13244_p7)
}
  0x46   : > { %s13248_s17 = scalar_lea.vmem %s13686_s22, 2304  ;;  %s13516_s13 = smov [#allocation9]  }
  0x47   : > { %p13249_p12 = scmp.ne.s32.totalorder %s13686_s22, %s13248_s17  ;;  %s13253_s21 = sshll.u32 %s13516_s13, 4  ;;  %s13254_s21 = int_to_ptr.vmem [resolvable:$false] %s13253_s21 }
  0x48   : > { %s13255_s7 = scalar_lea.vmem %s13254_s21, 4608  ;;  %p13256_p13 = scmp.lt.s32.totalorder %s13686_s22, %s13254_s21 }
  0x49   : > { %p13251_p2 = pnand %p13249_p12, %p13695_p0  ;;  %p13257_p10 = scmp.lt.s32.totalorder %s13255_s7, %s13248_s17 }
  0x4b   : > { %p13252_p6 = pneg %p13251_p2  ;;  %p13258_p4 = por %p13257_p10, %p13256_p13 }
  0x4d   : > { %p13259_p9 = pnand %p13258_p4, %p13252_p6 }
  0x4f   : > { %13262 = shalt.err (!%p13259_p9)
}
  0x50   : > { %s13517_s0 = smov 768   ;;  %s13518_s23 = smov 48  }
  0x51   : > { %11952 = dma.hbm_to_vmem [thread:$0]  (!%p13676_p11), %s13684_s27, 2304, %s13686_s22, %s13689_s16, %s13517_s0, %s13517_s0, %s13518_s23  }
  0x52   : > { %s11164_s24 = smul.u32 3072, %s13660_s15  ;;  %s305_s13 = scalar_lea.vmem [#allocation10], %s11909_s12 }
  0x53   : > { %s315_s21 = sshll.u32 %s305_s13, 4  ;;  %s11910_s10 = smul.u32 1152, %s13669_s18  ;;  %s13727_s21 = int_to_ptr.vmem [resolvable:$true] %s315_s21 }
  0x54   : > { %s13725_s2 = scalar_lea.hbm %s17003_s3, %s11164_s24  ;;  %s13268_s12 = scalar_lea.hbm %s17003_s3, 6144 }
  0x55   : > { %s13263_s9 = scalar_lea.hbm %s13725_s2, 3072  ;;  %p13269_p7 = scmp.lt.u32.totalorder %s13725_s2, %s17003_s3 }
  0x56   : > { %p13264_p10 = scmp.ne.s32.totalorder %s13725_s2, %s13263_s9  ;;  %p13270_p3 = scmp.lt.u32.totalorder %s13268_s12, %s13263_s9 }
  0x57   : > { %p13272_p5 = scmp.lt.u32.totalorder %s13263_s9, %s13725_s2 }
  0x58   : > { %p13266_p13 = pnand %p13264_p10, %p13695_p0  ;;  %p13271_p1 = por %p13270_p3, %p13269_p7 }
  0x5a   : > { %p13267_p6 = pneg %p13266_p13  ;;  %p13273_p8 = por %p13272_p5, %p13271_p1 }
  0x5c   : > { %p13274_p12 = pnand %p13273_p8, %p13267_p6 }
  0x5e   : > { %13277 = shalt.err (!%p13274_p12)
}
  0x5f   : > { %s13278_s24 = scalar_lea.vmem %s13727_s21, 3072  ;;  %s13519_s13 = smov [#allocation10]  }
  0x60   : > { %p13279_p2 = scmp.ne.s32.totalorder %s13727_s21, %s13278_s24  ;;  %s13283_s17 = sshll.u32 %s13519_s13, 4  ;;  %s13284_s17 = int_to_ptr.vmem [resolvable:$false] %s13283_s17 }
  0x61   : > { %s13285_s7 = scalar_lea.vmem %s13284_s17, 6144  ;;  %p13286_p10 = scmp.lt.s32.totalorder %s13727_s21, %s13284_s17 }
  0x62   : > { %p13281_p4 = pnand %p13279_p2, %p13695_p0  ;;  %p13287_p13 = scmp.lt.s32.totalorder %s13285_s7, %s13278_s24 }
  0x64   : > { %p13282_p9 = pneg %p13281_p4  ;;  %p13288_p7 = por %p13287_p13, %p13286_p10 }
  0x66   : > { %p13289_p3 = pnand %p13288_p7, %p13282_p9 }
  0x68   : > { %13292 = shalt.err (!%p13289_p3)
}
  0x69   : > { %s17022_s9 = smov 64   ;;  %s13521_s22 = smov 4  }
  0x6a   : > { %11955 = dma.hbm_to_vmem [thread:$0]  (!%p13676_p11), %s13725_s2, 3072, %s13727_s21, %s13689_s16, %s17022_s9, %s17022_s9, %s13521_s22  }
  0x6b   : > { %s11969_s27 = smul.u32 18432, %s13660_s15  ;;  %s329_s12 = scalar_lea.vmem [#allocation11], %s11910_s10 }
  0x6c   : > { %s339_s0 = sshll.u32 %s329_s12, 4  ;;  %s13298_s7 = scalar_lea.hbm %s17004_s4, 36864  ;;  %s13765_s0 = int_to_ptr.vmem [resolvable:$true] %s339_s0 }
  0x6d   : > { %s13763_s13 = scalar_lea.hbm %s17004_s4, %s11969_s27 }
  0x6e   : > { %s13293_s17 = scalar_lea.hbm %s13763_s13, 18432  ;;  %p13299_p8 = scmp.lt.u32.totalorder %s13763_s13, %s17004_s4 }
  0x6f   : > { %p13294_p6 = scmp.ne.s32.totalorder %s13763_s13, %s13293_s17  ;;  %p13300_p12 = scmp.lt.u32.totalorder %s13298_s7, %s13293_s17 }
  0x70   : > { %p13302_p4 = scmp.lt.u32.totalorder %s13293_s17, %s13763_s13 }
  0x71   : > { %p13296_p1 = pnand %p13294_p6, %p13695_p0  ;;  %p13301_p2 = por %p13300_p12, %p13299_p8 }
  0x73   : > { %p13297_p5 = pneg %p13296_p1  ;;  %p13303_p9 = por %p13302_p4, %p13301_p2 }
  0x75   : > { %p13304_p10 = pnand %p13303_p9, %p13297_p5 }
  0x77   : > { %13307 = shalt.err (!%p13304_p10)
}
  0x78   : > { %s13308_s23 = scalar_lea.vmem %s13765_s0, 18432  ;;  %s13522_s24 = smov [#allocation11]  }
  0x79   : > { %p13309_p13 = scmp.ne.s32.totalorder %s13765_s0, %s13308_s23  ;;  %s13313_s2 = sshll.u32 %s13522_s24, 4  ;;  %s13314_s2 = int_to_ptr.vmem [resolvable:$false] %s13313_s2 }
  0x7a   : > { %s13315_s9 = scalar_lea.vmem %s13314_s2, 36864  ;;  %p13316_p6 = scmp.lt.s32.totalorder %s13765_s0, %s13314_s2 }
  0x7b   : > { %p13311_p7 = pnand %p13309_p13, %p13695_p0  ;;  %p13317_p1 = scmp.lt.s32.totalorder %s13315_s9, %s13308_s23 }
  0x7d   : > { %p13312_p3 = pneg %p13311_p7  ;;  %p13318_p8 = por %p13317_p1, %p13316_p6 }
  0x7f   : > { %p13319_p12 = pnand %p13318_p8, %p13312_p3 }
  0x81   : > { %13322 = shalt.err (!%p13319_p12)
}
  0x82   : > { %s13523_s17 = smov 384   ;;  %s13524_s21 = smov 24  }
  0x83   : > { %11958 = dma.hbm_to_vmem [thread:$0]  (!%p13676_p11), %s13763_s13, 18432, %s13765_s0, %s13689_s16, %s13523_s17, %s13523_s17, %s13524_s21  }
  0x84   : > { %s13797_s23 = scalar_lea.hbm %s17005_s5, %s11969_s27  ;;  %s353_s24 = scalar_lea.vmem [#allocation12], %s11910_s10 }
  0x85   : > { %s363_s2 = sshll.u32 %s353_s24, 4  ;;  %s13323_s9 = scalar_lea.hbm %s13797_s23, 18432  ;;  %s13801_s2 = int_to_ptr.vmem [resolvable:$true] %s363_s2 }
  0x86   : > { %p13324_p5 = scmp.ne.s32.totalorder %s13797_s23, %s13323_s9  ;;  %s13328_s7 = scalar_lea.hbm %s17005_s5, 36864 }
  0x87   : > { %p13329_p9 = scmp.lt.u32.totalorder %s13797_s23, %s17005_s5  ;;  %p13330_p10 = scmp.lt.u32.totalorder %s13328_s7, %s13323_s9 }
  0x88   : > { %p13326_p2 = pnand %p13324_p5, %p13695_p0  ;;  %p13332_p7 = scmp.lt.u32.totalorder %s13323_s9, %s13797_s23 }
  0x89   : > { %p13331_p13 = por %p13330_p10, %p13329_p9 }
  0x8a   : > { %p13327_p4 = pneg %p13326_p2 }
  0x8b   : > { %p13333_p3 = por %p13332_p7, %p13331_p13 }
  0x8d   : > { %p13334_p6 = pnand %p13333_p3, %p13327_p4 }
  0x8f   : > { %13337 = shalt.err (!%p13334_p6)
}
  0x90   : > { %s13338_s10 = scalar_lea.vmem %s13801_s2, 18432  ;;  %s13525_s18 = smov [#allocation12]  }
  0x91   : > { %p13339_p1 = scmp.ne.s32.totalorder %s13801_s2, %s13338_s10  ;;  %s13343_s24 = sshll.u32 %s13525_s18, 4  ;;  %s13344_s24 = int_to_ptr.vmem [resolvable:$false] %s13343_s24 }
  0x92   : > { %s13345_s0 = scalar_lea.vmem %s13344_s24, 36864  ;;  %p13346_p5 = scmp.lt.s32.totalorder %s13801_s2, %s13344_s24 }
  0x93   : > { %p13341_p8 = pnand %p13339_p1, %p13695_p0  ;;  %p13347_p2 = scmp.lt.s32.totalorder %s13345_s0, %s13338_s10 }
  0x95   : > { %p13342_p12 = pneg %p13341_p8  ;;  %p13348_p9 = por %p13347_p2, %p13346_p5 }
  0x97   : > { %p13349_p10 = pnand %p13348_p9, %p13342_p12 }
  0x99   : > { %13352 = shalt.err (!%p13349_p10)
}
  0x9a   : > { %s17037_s9 = smov 64   ;;  %s13526_s19 = smov [#allocation7]  }
  0x9b   : > { %11961 = dma.hbm_to_vmem [thread:$0]  (!%p13676_p11), %s13797_s23, 18432, %s13801_s2, %s13689_s16, %s17037_s9, %s17037_s9, %s13521_s22  }
  0x9c   : > { %s266_s13 = sshll.u32 %s13526_s19, 4  ;;  %s13353_s12 = scalar_lea.hbm %s17001_s1, 768  ;;  %s267_s13 = int_to_ptr.vmem [resolvable:$true] %s266_s13 }
  0x9d   : > { %p13354_p0 = scmp.ne.s32.totalorder %s17001_s1, %s13353_s12  ;;  %p17038_p4 = scmp.ne.s32.totalorder %s17031_s14, 0 }
  0x9e   : > { %p13360_p6 = scmp.lt.u32.totalorder %s13353_s12, %s17001_s1 }
  0x9f   : > { %p17039_p13 = pneg %p17038_p4 }
  0xa1   : > { %p13356_p7 = pnand %p13354_p0, %p17039_p13 }
  0xa3   : > { %p13357_p3 = pneg %p13356_p7 }
  0xa5   : > { %p13362_p11 = pnand %p13360_p6, %p13357_p3 }
  0xa7   : > { %13365 = shalt.err (!%p13362_p11)
}
  0xa8   : > { %s13366_s22 = scalar_lea.vmem %s267_s13, 768  ;;  %p17040_p8 = pmov %p17039_p13 }
  0xa9   : > { %p13367_p1 = scmp.ne.s32.totalorder %s267_s13, %s13366_s22  ;;  %p13374_p2 = scmp.lt.s32.totalorder %s267_s13, %s267_s13 }
  0xaa   : > { %p13375_p9 = scmp.lt.s32.totalorder %s13366_s22, %s13366_s22 }
  0xab   : > { %p13369_p12 = pnand %p13367_p1, %p17040_p8 }
  0xac   : > { %p13376_p10 = por %p13375_p9, %p13374_p2 }
  0xad   : > { %p13370_p5 = pneg %p13369_p12 }
  0xaf   : > { %p13377_p0 = pnand %p13376_p10, %p13370_p5 }
  0xb1   : > { %13380 = shalt.err (!%p13377_p0)
}
  0xb2   : > { %11948 = dma.hbm_to_vmem [thread:$0]  (!%p17038_p4), %s17001_s1, 768, %s267_s13, [#allocation8]  }
  0xb3   : > { %s13849_s0 = sadd.s32 1, %s13511_s30   ;;  %p187_p13 = scmp.gt.s32.totalorder %s13602_s8, 0 }
  0xb4   : > { %p68_p7 = scmp.lt.s32.totalorder %s13849_s0, 1  ;;  %s10053_s14 = sadd.s32 4294967295, %s13849_s0 }
  0xb5   : > { %s188_s9 = scalar_select %p187_p13, %s13602_s8, 0 }
  0xb6   : > { %s69_s19 = scalar_select %p68_p7, %s13849_s0, 1 }
  0xb7   : > { %p190_p3 = scmp.gt.s32.totalorder %s10053_s14, 0  ;;  %s195_s7 = sadd.s32 1, %s13495_s26 }
  0xb8   : > { %s70_s27 = ssub.s32 %s13660_s15, %s69_s19  ;;  %p202_p6 = scmp.ne.s32.totalorder %s13495_s26, %s13491_s25 }
  0xb9   : > { %p71_p11 = scmp.eq.s32.totalorder %s70_s27, 0  ;;  %s375_s12 = sand.u32 1, %s13495_s26  }
  0xba   : > { %s17064_s14 = smov (!%p190_p3, %s10053_s14), 0  ;;  %s17041_s13 = sadd.s32 1, %s13507_s29 }
  0xbb   : > { %s13864_s10 = scalar_select %p71_p11, %s13507_s29, %s17041_s13  }
  0xbc   : > { %s192_s18 = ssub.s32 %s188_s9, %s17064_s14  ;;  %p17042_p4 = scmp.eq.s32.totalorder %s13511_s30, 0 }
  0xbd   : > { %p193_p8 = scmp.eq.s32.totalorder %s192_s18, 0  ;;  %s11914_s20 = smul.u32 3072, %s375_s12 }
  0xbe   : > { %p204_p1 = por %p202_p6, %p17042_p4  ;;  %s11915_s24 = smul.u32 49152, %s188_s9 }
  0xbf   : > { %p17043_p12 = scmp.lt.s32.totalorder %s13511_s30, 3  ;;  %s377_s14 = scalar_lea.vmem [#allocation13], %s11914_s20 }
  0xc0   : > { %s13875_s15 = scalar_select %p193_p8, %s13495_s26, %s195_s7  }
  0xc1   : > { %p13870_p5 = pnand %p17043_p12, %p204_p1  ;;  %s13880_s19 = scalar_lea.hbm %s17006_s6, %s11915_s24 }
  0xc2   : > { %s388_s9 = sshll.u32 %s377_s14, 4  ;;  %s13381_s30 = scalar_lea.hbm %s13880_s19, 49152  ;;  %s13882_s9 = int_to_ptr.vmem [resolvable:$true] %s388_s9 }
  0xc3   : > { %p13382_p2 = scmp.ne.s32.totalorder %s13880_s19, %s13381_s30  ;;  %p13383_p9 = pneg %p13870_p5 }
  0xc4   : > { %s13386_s12 = scalar_lea.hbm %s17006_s6, 98304  ;;  %p13387_p13 = scmp.lt.u32.totalorder %s13880_s19, %s17006_s6 }
  0xc5   : > { %p13384_p10 = pnand %p13383_p9, %p13382_p2  ;;  %p13388_p7 = scmp.lt.u32.totalorder %s13386_s12, %s13381_s30 }
  0xc6   : > { %p13390_p6 = scmp.lt.u32.totalorder %s13381_s30, %s13880_s19 }
  0xc7   : > { %p13385_p0 = pneg %p13384_p10  ;;  %p13389_p3 = por %p13388_p7, %p13387_p13 }
  0xc9   : > { %p13391_p11 = por %p13390_p6, %p13389_p3 }
  0xcb   : > { %p13392_p4 = pnand %p13391_p11, %p13385_p0 }
  0xcd   : > { %13395 = shalt.err (!%p13392_p4)
}
  0xce   : > { %s13396_s20 = scalar_lea.vmem %s13882_s9, 49152  ;;  %s13527_s24 = smov [#allocation13]  }
  0xcf   : > { %p13397_p1 = scmp.ne.s32.totalorder %s13882_s9, %s13396_s20  ;;  %s13401_s23 = sshll.u32 %s13527_s24, 4  ;;  %s13402_s23 = int_to_ptr.vmem [resolvable:$false] %s13401_s23 }
  0xd0   : > { %s13403_s2 = scalar_lea.vmem %s13402_s23, 98304  ;;  %p13404_p2 = scmp.lt.s32.totalorder %s13882_s9, %s13402_s23 }
  0xd1   : > { %p13399_p8 = pnand %p13397_p1, %p13383_p9  ;;  %p13405_p10 = scmp.lt.s32.totalorder %s13403_s2, %s13396_s20 }
  0xd3   : > { %p13400_p12 = pneg %p13399_p8  ;;  %p13406_p13 = por %p13405_p10, %p13404_p2 }
  0xd5   : > { %p13407_p7 = pnand %p13406_p13, %p13400_p12 }
  0xd7   : > { %13410 = shalt.err (!%p13407_p7)
}
  0xd8   : > { %11964 = dma.hbm_to_vmem [thread:$0]  (!%p13870_p5), %s13880_s19, 49152, %s13882_s9, %s13689_s16, %s13523_s17, %s13523_s17, %s13524_s21  }
  0xd9   : > { %p17045_p9 = scmp.ne.s32.totalorder %s17030_s11, 0 }
  0xda   : > { %p17046_p0 = scmp.eq.s32.totalorder (!%p17045_p9), %s13602_s8, 0 }
  0xdb   : > { %400 = sbr.rel (%p17045_p9) target bundleno = 5077 (0x13d5), region = 48 }
  0xe2   : > { %13466 = dma.done.wait (%p17046_p0), [#allocation5], 2048   ;;  %p17047_p3 = pmov %p17046_p0 }
  0xe3   : > { %p17048_p6 = pmov %p17046_p0 }
  0xe4   : > { %13468 = vsyncadd (%p17047_p3), [#allocation5], 4294965248 }
  0xe5   : > { %13470 = dma.done.wait (%p17048_p6), [#allocation8], 768   ;;  %p17049_p11 = pmov %p17046_p0 }
  0xe6   : > { %s17050_s22 = sld [smem:[#allocation20_spill]]  ;;  %s410_s14 = sand.u32 1, %s13602_s8  }
  0xe7   : > { %13472 = vsyncadd (%p17049_p11), [#allocation8], 4294966528  ;;  %s412_s16 = sand.u32 1, %s13503_s28   ;;  %s411_s11 = scalar_lea.sflag [#allocation5], %s410_s14 }
  0xe8   : > { %s11916_s17 = smul.u32 144, %s412_s16 }
  0xea   : > { %s13925_s21 = scalar_lea.vmem [#allocation9], %s11916_s17 }
  0xec   : > { %p17051_p5 = scmp.ne.s32.totalorder %s17050_s22, 0 }
  0xee   : > { %13474 = dma.done.wait (%p17051_p5), %s411_s11, 42240  }
  0xef   : > { %13476 = vsyncadd (%p17051_p5), %s411_s11, 4294925056  ;;  %s17052_s19 = sld [smem:[#allocation21_spill]]  ;;  %s11917_s9 = smul.u32 192, %s412_s16 }
  0xf0   : > { %s448_s30 = sand.u32 1, %s13491_s25   ;;  %s11918_s7 = smul.u32 1152, %s412_s16 }
  0xf1   : > { %s11919_s27 = smul.u32 3072, %s448_s30  ;;  %s13932_s12 = scalar_lea.vmem [#allocation10], %s11917_s9 }
  0xf2   : > { %s13934_s13 = scalar_lea.vmem [#allocation11], %s11918_s7  ;;  %s13936_s18 = scalar_lea.vmem [#allocation12], %s11918_s7 }
  0xf3   : > { %s13938_s20 = scalar_lea.vmem [#allocation13], %s11919_s27 }
  0xf5   : > { %p17053_p4 = scmp.ne.s32.totalorder %s17052_s19, 0 }
  0xf7   : > { %13478 = dma.done.wait (%p17053_p4), %s411_s11, 49152  }
  0xf8   : > { %13480 = vsyncadd (%p17053_p4), %s411_s11, 4294918144  ;;  %p10070_p1 = scmp.ge.s32.totalorder %s13602_s8, 2 }
  0xf9   : > { %p17054_p8 = scmp.ne.s32.totalorder (!%p10070_p1), %s13602_s8, 0 }
  0xfa   : > { %516 = sbr.rel (%p10070_p1) target bundleno = 4440 (0x1158), region = 80 }
 0x101   : > { %520 = sbr.rel (%p17054_p8) target bundleno = 276 (0x114), region = 84  ;;  %v13947_v0 = vld [vmem:[#allocation7 + $0x1] ss:$0 sm:$0xff] (!%p17054_p8)  ;;  %v523_v2 = vld [vmem:[#allocation4 + $0x8] sm:$0xff] (!%p17054_p8)  ;;  %v524_v5 = vld [vmem:[#allocation4 + $0x10] sm:$0xff] (!%p17054_p8)  ;;  %v590_v11 = vlaneseq (!%p17054_p8) }
 0x102   : > { %v522_v1 = vld [vmem:[#allocation4] sm:$0xff] (!%p17054_p8)  ;;  %v539_v4 = vmul.f32 (!%p17054_p8), 11.313708, %v523_v2  ;;  %v525_v6 = vld [vmem:[#allocation4 + $0x18] sm:$0xff] (!%p17054_p8)  ;;  %v540_v7 = vmul.f32 (!%p17054_p8), 11.313708, %v524_v5 }
 0x103   : > { %v538_v3 = vmul.f32 (!%p17054_p8), 11.313708, %v522_v1  ;;  %v541_v8 = vmul.f32 (!%p17054_p8), 11.313708, %v525_v6  ;;  %v526_v9 = vld [vmem:[#allocation4 + $0x20] sm:$0xff] (!%p17054_p8)  ;;  %v527_v10 = vld [vmem:[#allocation4 + $0x28] sm:$0xff] (!%p17054_p8) }
 0x104   : > { %v555_v13 = vadd.f32 (!%p17054_p8), %v539_v4, %v13947_v0  ;;  %v542_v14 = vmul.f32 (!%p17054_p8), 11.313708, %v526_v9  ;;  %v543_v15 = vmul.f32 (!%p17054_p8), 11.313708, %v527_v10  ;;  %v528_v16 = vld [vmem:[#allocation4 + $0x30] sm:$0xff] (!%p17054_p8)  ;;  %v529_v17 = vld [vmem:[#allocation4 + $0x38] sm:$0xff] (!%p17054_p8)  ;;  %v556_v18 = vadd.f32 (!%p17054_p8), %v540_v7, %v13947_v0 }
 0x105   : > { %v554_v12 = vadd.f32 (!%p17054_p8), %v538_v3, %v13947_v0  ;;  %v557_v19 = vadd.f32 (!%p17054_p8), %v541_v8, %v13947_v0  ;;  %v544_v20 = vmul.f32 (!%p17054_p8), 11.313708, %v528_v16  ;;  %v545_v21 = vmul.f32 (!%p17054_p8), 11.313708, %v529_v17  ;;  %v530_v22 = vld [vmem:[#allocation4 + $0x40] sm:$0xff] (!%p17054_p8)  ;;  %v531_v23 = vld [vmem:[#allocation4 + $0x48] sm:$0xff] (!%p17054_p8) }
 0x106   : > { %571 = vst [vmem:[#allocation2 + $0x8] sm:$0xff] (!%p17054_p8), %v555_v13  ;;  %v558_v24 = vadd.f32 (!%p17054_p8), %v542_v14, %v13947_v0  ;;  %v559_v25 = vadd.f32 (!%p17054_p8), %v543_v15, %v13947_v0  ;;  %v546_v26 = vmul.f32 (!%p17054_p8), 11.313708, %v530_v22  ;;  %v547_v27 = vmul.f32 (!%p17054_p8), 11.313708, %v531_v23  ;;  %v532_v28 = vld [vmem:[#allocation4 + $0x50] sm:$0xff] (!%p17054_p8) }
 0x107   : > { %570 = vst [vmem:[#allocation2] sm:$0xff] (!%p17054_p8), %v554_v12  ;;  %v533_v29 = vld [vmem:[#allocation4 + $0x58] sm:$0xff] (!%p17054_p8)  ;;  %572 = vst [vmem:[#allocation2 + $0x10] sm:$0xff] (!%p17054_p8), %v556_v18  ;;  %v560_v30 = vadd.f32 (!%p17054_p8), %v544_v20, %v13947_v0  ;;  %v561_v31 = vadd.f32 (!%p17054_p8), %v545_v21, %v13947_v0  ;;  %v548_v32 = vmul.f32 (!%p17054_p8), 11.313708, %v532_v28  ;;  %v534_v34 = vld [vmem:[#allocation4 + $0x60] sm:$0xff] (!%p17054_p8) }
 0x108   : > { %573 = vst [vmem:[#allocation2 + $0x18] sm:$0xff] %v557_v19  ;;  %v549_v33 = vmul.f32 11.313708, %v533_v29  ;;  %v535_v35 = vld [vmem:[#allocation4 + $0x68] sm:$0xff]  ;;  %574 = vst [vmem:[#allocation2 + $0x20] sm:$0xff] %v558_v24  ;;  %v562_v36 = vadd.f32 %v546_v26, %v13947_v0  ;;  %v563_v37 = vadd.f32 %v547_v27, %v13947_v0  ;;  %v536_v40 = vld [vmem:[#allocation4 + $0x70] sm:$0xff] }
 0x109   : > { %575 = vst [vmem:[#allocation2 + $0x28] sm:$0xff] %v559_v25  ;;  %v550_v38 = vmul.f32 11.313708, %v534_v34  ;;  %v551_v39 = vmul.f32 11.313708, %v535_v35  ;;  %v537_v41 = vld [vmem:[#allocation4 + $0x78] sm:$0xff]  ;;  %v564_v42 = vadd.f32 %v548_v32, %v13947_v0 }
 0x10a   : > { %576 = vst [vmem:[#allocation2 + $0x30] sm:$0xff] %v560_v30  ;;  %577 = vst [vmem:[#allocation2 + $0x38] sm:$0xff] %v561_v31  ;;  %v565_v43 = vadd.f32 %v549_v33, %v13947_v0  ;;  %v552_v44 = vmul.f32 11.313708, %v536_v40  ;;  %v553_v45 = vmul.f32 11.313708, %v537_v41 }
 0x10b   : > { %578 = vst [vmem:[#allocation2 + $0x40] sm:$0xff] %v562_v36  ;;  %579 = vst [vmem:[#allocation2 + $0x48] sm:$0xff] %v563_v37  ;;  %v566_v46 = vadd.f32 %v550_v38, %v13947_v0  ;;  %v567_v47 = vadd.f32 %v551_v39, %v13947_v0  ;;  %v586_v48 = vld [vmem:[#allocation7] ss:$8 sm:$0xf]  ;;  %v591_v53 = vshrl.u32 %v590_v11, 7 }
 0x10c   : > { %v587_v49 = vld [vmem:[#allocation7] ss:$8 sm:$0x30]  ;;  %580 = vst [vmem:[#allocation2 + $0x50] sm:$0xff] %v564_v42  ;;  %581 = vst [vmem:[#allocation2 + $0x58] sm:$0xff] %v565_v43  ;;  %v568_v50 = vadd.f32 %v552_v44, %v13947_v0  ;;  %v569_v51 = vadd.f32 %v553_v45, %v13947_v0 }
 0x10d   : > { %v588_v52 = vor.u32 %v587_v49, %v586_v48  ;;  %582 = vst [vmem:[#allocation2 + $0x60] sm:$0xff] %v566_v46  ;;  %583 = vst [vmem:[#allocation2 + $0x68] sm:$0xff] %v567_v47  ;;  %v592_v54 = vsub.s32 0, %v591_v53  ;;  %v596_v55 = vsub.s32 1, %v591_v53  ;;  %v600_v56 = vsub.s32 2, %v591_v53 }
 0x10e   : > { %584 = vst [vmem:[#allocation2 + $0x70] sm:$0xff] %v568_v50  ;;  %585 = vst [vmem:[#allocation2 + $0x78] sm:$0xff] %v569_v51  ;;  %v604_v57 = vsub.s32 3, %v591_v53  ;;  %v608_v58 = vsub.s32 4, %v591_v53  ;;  %v612_v59 = vsub.s32 5, %v591_v53 }
 0x10f   : > { %v593_v60 = vrot.slane %v588_v52, %v592_v54  ;;  %v597_v61 = vrot.slane %v588_v52, %v596_v55  ;;  %v601_v62 = vrot.slane %v588_v52, %v600_v56 }
 0x110   : > { %v605_v63 = vrot.slane %v588_v52, %v604_v57  ;;  %v609_v1 = vrot.slane %v588_v52, %v608_v58  ;;  %v613_v2 = vrot.slane %v588_v52, %v612_v59 }
 0x111   : > { %620 = vst [vmem:[#allocation14] sm:$0xff] %v593_v60  ;;  %621 = vst [vmem:[#allocation14 + $0x8] sm:$0xff] %v597_v61 }
 0x112   : > { %622 = vst [vmem:[#allocation14 + $0x10] sm:$0xff] %v601_v62  ;;  %623 = vst [vmem:[#allocation14 + $0x18] sm:$0xff] %v605_v63 }
 0x113   : > { %624 = vst [vmem:[#allocation14 + $0x20] sm:$0xff] %v609_v1  ;;  %625 = vst [vmem:[#allocation14 + $0x28] sm:$0xff] %v613_v2 }
 0x114 PF: > { %v12043_v0 = vld [vmem:[%s13932_s12] sm:$0xff]   ;;  %v12044_v3 = vld [vmem:[%s13932_s12 + $0x8] sm:$0xff]   ;;  %v12045_v4 = vld [vmem:[%s13932_s12 + $0x10] sm:$0xff]   ;;  %p10720_p12 = scmp.ne.s32.totalorder %s13602_s8, 1 }
 0x115   : > { %11795 = vmatprep.subr.bf16.mxu0 %v12043_v0  ;;  %v12046_v5 = vld [vmem:[%s13932_s12 + $0x18] sm:$0xff]   ;;  %v12047_v9 = vld [vmem:[%s13932_s12 + $0x20] sm:$0xff]   ;;  %v12048_v10 = vld [vmem:[%s13932_s12 + $0x28] sm:$0xff]  }
 0x116   : > { %11796 = vmatpush3.bf16.msra.mxu0 %v12043_v0  ;;  %v12049_v11 = vld [vmem:[%s13932_s12 + $0x30] sm:$0xff]   ;;  %v12050_v12 = vld [vmem:[%s13932_s12 + $0x38] sm:$0xff]   ;;  %v632_v19 = vld [vmem:[#allocation2 + $0x30] sm:$0xff] }
 0x117   : > { %11797 = vmatprep.subr.bf16.mxu0 %v12044_v3  ;;  %v631_v16 = vld [vmem:[#allocation2 + $0x28] sm:$0xff]  ;;  %v633_v20 = vld [vmem:[#allocation2 + $0x38] sm:$0xff]  ;;  %v634_v21 = vld [vmem:[#allocation2 + $0x40] sm:$0xff] }
 0x118   : > { %v13973_v22 = vld [vmem:[#allocation2 + $0x48] sm:$0xff]  ;;  %v654_v23 = vpack.c.bf16 %v633_v20, %v632_v19  ;;  %v636_v25 = vld [vmem:[#allocation2 + $0x50] sm:$0xff]  ;;  %v637_v26 = vld [vmem:[#allocation2 + $0x58] sm:$0xff] }
 0x119   : > { %v627_v7 = vld [vmem:[#allocation2 + $0x8] sm:$0xff]  ;;  %v655_v24 = vpack.c.bf16 %v13973_v22, %v634_v21  ;;  %v13976_v27 = vld [vmem:[#allocation2 + $0x60] sm:$0xff]  ;;  %v656_v29 = vpack.c.bf16 %v637_v26, %v636_v25  ;;  %v13982_v31 = vld [vmem:[#allocation2 + $0x70] sm:$0xff] }
 0x11a   : > { %11798 = vmatpush3.bf16.msra.mxu0 %v12044_v3  ;;  %v626_v6 = vld [vmem:[#allocation2] sm:$0xff]  ;;  %v628_v13 = vld [vmem:[#allocation2 + $0x10] sm:$0xff]  ;;  %v13978_v28 = vld [vmem:[#allocation2 + $0x68] sm:$0xff] }
 0x11b   : > { %11799 = vmatprep.subr.bf16.mxu0 %v12045_v4  ;;  %v651_v8 = vpack.c.bf16 %v627_v7, %v626_v6  ;;  %v629_v14 = vld [vmem:[#allocation2 + $0x18] sm:$0xff]  ;;  %v630_v15 = vld [vmem:[#allocation2 + $0x20] sm:$0xff]  ;;  %v657_v30 = vpack.c.bf16 %v13978_v28, %v13976_v27  ;;  %v12620_v48 = vld [vmem:[#allocation2 + $0x8] sm:$0xff] }
 0x11c   : > { %v652_v17 = vpack.c.bf16 %v629_v14, %v628_v13  ;;  %v653_v18 = vpack.c.bf16 %v631_v16, %v630_v15  ;;  %v13984_v32 = vld [vmem:[#allocation2 + $0x78] sm:$0xff]  ;;  %v645_v34 = vld [vmem:[%s13925_s21 + $0x1] ss:$0 sm:$0xff] }
 0x11d   : > { %11811 = vmatprep.mubr.bf16.mxu0 %v651_v8  ;;  %v658_v33 = vpack.c.bf16 %v13984_v32, %v13982_v31  ;;  %v12619_v43 = vld [vmem:[#allocation2] sm:$0xff] }
 0x11e   : > { %11800 = vmatpush3.bf16.msra.mxu0 %v12045_v4 }
 0x11f   : > { %11801 = vmatprep.subr.bf16.mxu0 %v12046_v5 }
 0x122   : > { %11802 = vmatpush3.bf16.msra.mxu0 %v12046_v5 }
 0x123   : > { %11803 = vmatprep.subr.bf16.mxu0 %v12047_v9 }
 0x126   : > { %11804 = vmatpush3.bf16.msra.mxu0 %v12047_v9 }
 0x127   : > { %11805 = vmatprep.subr.bf16.mxu0 %v12048_v10 }
 0x12a   : > { %11806 = vmatpush3.bf16.msra.mxu0 %v12048_v10 }
 0x12b   : > { %11807 = vmatprep.subr.bf16.mxu0 %v12049_v11 }
 0x12e   : > { %11808 = vmatpush3.bf16.msra.mxu0 %v12049_v11 }
 0x12f   : > { %11809 = vmatprep.subr.bf16.mxu0 %v12050_v12 }
 0x132   : > { %11810 = vmatpush3.bf16.msra.mxu0 %v12050_v12 }
 0x135   : > { %11812 = vmatmul.mubr.bf16.vlgmr.msra.gmra.mrb[0].mxu0 %v652_v17 }
 0x136   : > { %11815 = vmatprep.mubr.bf16.mxu0 %v653_v18 }
 0x13d   : > { %11816 = vmatmul.mubr.bf16.gmra.mrb[4].mxu0 %v654_v23  ;;  %v12054_v23 = vld [vmem:[%s13934_s13 + $0x8] ss:$24 sps:$4 sm:$0xff]  }
 0x13e   : > { %11819 = vmatprep.mubr.bf16.mxu0 %v655_v24  ;;  %v12056_v24 = vld [vmem:[%s13934_s13 + $0xc] ss:$24 sps:$4 sm:$0xff]  }
 0x13f   : > { %1485 = vmatprep.subr.bf16.mxu0 %v12056_v24 }
 0x140   : > { %1486 = vmatpush1.bf16.msra.mxu0 %v12054_v23 }
 0x145   : > { %11820 = vmatmul.mubr.bf16.gmra.mrb[8].mxu0 %v656_v29 }
 0x146   : > { %11823 = vmatprep.mubr.bf16.mxu0 %v657_v30 }
 0x14d   : > { %11824 = vmatmul.mubr.bf16.gmra.mrb[12].mxu0 %v658_v33 }
 0x208   : > { %v11813_v35 = vpop.f32.mrb[0].mxu0 }
 0x209   : > { %v757_v36 = vpop.f32.mrb[1].mxu0  ;;  %v766_v37 = vadd.f32 %v11813_v35, %v645_v34 }
 0x20a   : > { %v11814_v38 = vpop.f32.mrb[2].mxu0  ;;  %v758_v39 = vadd.f32 %v757_v36, %v645_v34 }
 0x20b   : > { %v760_v40 = vpop.f32.mrb[3].mxu0  ;;  %v13989_v41 = vadd.f32 %v766_v37, %v628_v13  ;;  %v769_v42 = vadd.f32 %v11814_v38, %v645_v34 }
 0x20c   : > { %v13991_v44 = vadd.f32 %v12619_v43, %v758_v39  ;;  %v761_v45 = vadd.f32 %v760_v40, %v645_v34 }
 0x20d   : > { %840 = vadd.xlane.f32.xlu1 %v13989_v41  ;;  %v13995_v46 = vadd.f32 %v769_v42, %v629_v14 }
 0x20e   : > { %836 = vadd.xlane.f32.xlu0 %v13991_v44  ;;  %v13997_v49 = vadd.f32 %v12620_v48, %v761_v45 }
 0x210   : > { %v11817_v47 = vpop.f32.mrb[4].mxu0 }
 0x211   : > { %842 = vadd.xlane.f32.xlu1 %v13995_v46  ;;  %v773_v50 = vpop.f32.mrb[5].mxu0  ;;  %v782_v53 = vadd.f32 %v11817_v47, %v645_v34 }
 0x212   : > { %v11818_v51 = vpop.f32.mrb[6].mxu0  ;;  %838 = vadd.xlane.f32.xlu0 %v13997_v49  ;;  %v774_v52 = vadd.f32 %v773_v50, %v645_v34 }
 0x213   : > { %v776_v54 = vpop.f32.mrb[7].mxu0  ;;  %v785_v57 = vadd.f32 %v11818_v51, %v645_v34  ;;  %v14006_v59 = vadd.f32 %v782_v53, %v632_v19 }
 0x214   : > { %v14001_v55 = vadd.f32 %v774_v52, %v630_v15  ;;  %v777_v56 = vadd.f32 %v776_v54, %v645_v34 }
 0x215   : > { %v14009_v61 = vadd.f32 %v785_v57, %v633_v20 }
 0x216   : > { %844 = vadd.xlane.f32.xlu0 %v14001_v55  ;;  %v14004_v58 = vadd.f32 %v777_v56, %v631_v16 }
 0x218   : > { %v11821_v60 = vpop.f32.mrb[8].mxu0  ;;  %846 = vadd.xlane.f32.xlu1 %v14004_v58 }
 0x219   : > { %v789_v62 = vpop.f32.mrb[9].mxu0  ;;  %v798_v2 = vadd.f32 %v11821_v60, %v645_v34 }
 0x21a   : > { %v11822_v63 = vpop.f32.mrb[10].mxu0  ;;  %848 = vadd.xlane.f32.xlu0 %v14006_v59  ;;  %v790_v1 = vadd.f32 %v789_v62, %v645_v34 }
 0x21b   : > { %v792_v0 = vpop.f32.mrb[11].mxu0  ;;  %v801_v5 = vadd.f32 %v11822_v63, %v645_v34  ;;  %v14019_v7 = vadd.f32 %v798_v2, %v636_v25  ;;  %v12057_v25 = vld [vmem:[%s13934_s13 + $0x34] ss:$24 sps:$4 sm:$0xff]  }
 0x21c   : > { %850 = vadd.xlane.f32.xlu1 %v14009_v61  ;;  %v14013_v3 = vadd.f32 %v790_v1, %v634_v21  ;;  %v793_v4 = vadd.f32 %v792_v0, %v645_v34  ;;  %v12051_v21 = vld [vmem:[%s13934_s13 + $0x4] ss:$24 sps:$4 sm:$0xff]  }
 0x21d   : > { %v14022_v9 = vadd.f32 %v801_v5, %v637_v26  ;;  %1372 = vmatprep.subr.bf16.mxu1 %v12051_v21  ;;  %v12062_v26 = vld [vmem:[%s13934_s13 + $0x3c] ss:$24 sps:$4 sm:$0xff]  }
 0x21e   : > { %852 = vadd.xlane.f32.xlu0 %v14013_v3  ;;  %v14017_v6 = vadd.f32 %v793_v4, %v13973_v22  ;;  %v12053_v22 = vld [vmem:[%s13934_s13] ss:$24 sps:$4 sm:$0xff]   ;;  %1487 = vmatprep.subr.bf16.mxu0 %v12062_v26  ;;  %v12069_v26 = vld [vmem:[%s13934_s13 + $0x94] ss:$24 sps:$4 sm:$0xff]  }
 0x21f   : > { %1373 = vmatpush1.bf16.msra.mxu1 %v12053_v22 }
 0x220   : > { %v11825_v8 = vpop.f32.mrb[12].mxu0  ;;  %854 = vadd.xlane.f32.xlu1 %v14017_v6  ;;  %1374 = vmatprep.subr.bf16.mxu1 %v12057_v25 }
 0x221   : > { %v805_v10 = vpop.f32.mrb[13].mxu0  ;;  %v814_v13 = vadd.f32 %v11825_v8, %v645_v34 }
 0x222   : > { %v11826_v11 = vpop.f32.mrb[14].mxu0  ;;  %856 = vadd.xlane.f32.xlu0 %v14019_v7  ;;  %v806_v12 = vadd.f32 %v805_v10, %v645_v34 }
 0x223   : > { %v808_v14 = vpop.f32.mrb[15].mxu0  ;;  %v817_v17 = vadd.f32 %v11826_v11, %v645_v34  ;;  %v14034_v19 = vadd.f32 %v814_v13, %v13982_v31  ;;  %v12063_v11 = vld [vmem:[%s13934_s13 + $0x64] ss:$24 sps:$4 sm:$0xff]  }
 0x224   : > { %858 = vadd.xlane.f32.xlu1 %v14022_v9  ;;  %v14027_v15 = vadd.f32 %v806_v12, %v13976_v27  ;;  %v809_v16 = vadd.f32 %v808_v14, %v645_v34  ;;  %v12059_v27 = vld [vmem:[%s13934_s13 + $0x30] ss:$24 sps:$4 sm:$0xff]   ;;  %v12068_v12 = vld [vmem:[%s13934_s13 + $0x6c] ss:$24 sps:$4 sm:$0xff]   ;;  %v12065_v14 = vld [vmem:[%s13934_s13 + $0x60] ss:$24 sps:$4 sm:$0xff]  }
 0x225   : > { %v14038_v20 = vadd.f32 %v817_v17, %v13984_v32  ;;  %1375 = vmatpush1.bf16.msra.mxu1 %v12059_v27  ;;  %v12074_v27 = vld [vmem:[%s13934_s13 + $0x9c] ss:$24 sps:$4 sm:$0xff]  }
 0x226   : > { %860 = vadd.xlane.f32.xlu0 %v14027_v15  ;;  %v14031_v18 = vadd.f32 %v809_v16, %v13978_v28  ;;  %v12060_v28 = vld [vmem:[%s13934_s13 + $0x38] ss:$24 sps:$4 sm:$0xff]   ;;  %v12066_v16 = vld [vmem:[%s13934_s13 + $0x68] ss:$24 sps:$4 sm:$0xff]   ;;  %1376 = vmatprep.subr.bf16.mxu1 %v12063_v11 }
 0x227   : > { %1488 = vmatpush1.bf16.msra.mxu0 %v12060_v28 }
 0x228   : > { %862 = vadd.xlane.f32.xlu1 %v14031_v18  ;;  %1489 = vmatprep.subr.bf16.mxu0 %v12068_v12 }
 0x229   : > { %1377 = vmatpush1.bf16.msra.mxu1 %v12065_v14 }
 0x22a   : > { %864 = vadd.xlane.f32.xlu0 %v14034_v19  ;;  %1378 = vmatprep.subr.bf16.mxu1 %v12069_v26 }
 0x22b   : > { %1490 = vmatpush1.bf16.msra.mxu0 %v12066_v16 }
 0x22c   : > { %866 = vadd.xlane.f32.xlu1 %v14038_v20  ;;  %1491 = vmatprep.subr.bf16.mxu0 %v12074_v27 }
 0x29a   : > { %v841_v29 = vpop.xlane.xlu1 %840 }
 0x29b   : > { %v837_v30 = vpop.xlane.xlu0 %836  ;;  %v871_v31 = vmul.f32 0.0078125, %v841_v29  ;;  %v12071_v29 = vld [vmem:[%s13934_s13 + $0x90] ss:$24 sps:$4 sm:$0xff]  }
 0x29c   : > { %v869_v32 = vmul.f32 0.0078125, %v837_v30  ;;  %v12072_v30 = vld [vmem:[%s13934_s13 + $0x98] ss:$24 sps:$4 sm:$0xff]   ;;  %1379 = vmatpush1.bf16.msra.mxu1 %v12071_v29 }
 0x29d   : > { %v14056_v39 = vsub.f32 %v13989_v41, %v871_v31  ;;  %1492 = vmatpush1.bf16.msra.mxu0 %v12072_v30 }
 0x29e   : > { %v843_v33 = vpop.xlane.xlu1 %842  ;;  %v14051_v34 = vsub.f32 %v13991_v44, %v869_v32 }
 0x29f   : > { %v839_v35 = vpop.xlane.xlu0 %838  ;;  %v872_v36 = vmul.f32 0.0078125, %v843_v33  ;;  %v903_v45 = vmul.f32 %v14056_v39, %v14056_v39 }
 0x2a0   : > { %v870_v37 = vmul.f32 0.0078125, %v839_v35  ;;  %v901_v38 = vmul.f32 %v14051_v34, %v14051_v34 }
 0x2a1   : > { %v14066_v47 = vsub.f32 %v13995_v46, %v872_v36 }
 0x2a2   : > { %917 = vadd.xlane.f32.xlu0 %v901_v38  ;;  %v14059_v40 = vsub.f32 %v13997_v49, %v870_v37  ;;  %v12075_v37 = vld [vmem:[%s13934_s13 + $0xc4] ss:$24 sps:$4 sm:$0xff]  }
 0x2a3   : > { %v845_v42 = vpop.xlane.xlu0 %844  ;;  %v904_v52 = vmul.f32 %v14066_v47, %v14066_v47  ;;  %v12080_v38 = vld [vmem:[%s13934_s13 + $0xcc] ss:$24 sps:$4 sm:$0xff]   ;;  %1380 = vmatprep.subr.bf16.mxu1 %v12075_v37 }
 0x2a4   : > { %v873_v43 = vmul.f32 0.0078125, %v845_v42  ;;  %v902_v44 = vmul.f32 %v14059_v40, %v14059_v40  ;;  %v12077_v42 = vld [vmem:[%s13934_s13 + $0xc0] ss:$24 sps:$4 sm:$0xff]   ;;  %1493 = vmatprep.subr.bf16.mxu0 %v12080_v38 }
 0x2a5   : > { %v847_v48 = vpop.xlane.xlu1 %846  ;;  %1381 = vmatpush1.bf16.msra.mxu1 %v12077_v42  ;;  %v12123_v38 = vld [vmem:[%s13936_s18 + $0x40] sm:$0xff]  }
 0x2a6   : > { %v874_v50 = vmul.f32 0.0078125, %v847_v48  ;;  %921 = vadd.xlane.f32.xlu0 %v903_v45  ;;  %919 = vadd.xlane.f32.xlu1 %v902_v44  ;;  %v14069_v41 = vsub.f32 %v14001_v55, %v873_v43  ;;  %v12086_v48 = vld [vmem:[%s13934_s13 + $0xfc] ss:$24 sps:$4 sm:$0xff]  }
 0x2a7   : > { %v849_v49 = vpop.xlane.xlu0 %848 }
 0x2a8   : > { %v875_v51 = vmul.f32 0.0078125, %v849_v49  ;;  %v905_v53 = vmul.f32 %v14069_v41, %v14069_v41  ;;  %v14076_v54 = vsub.f32 %v14004_v58, %v874_v50  ;;  %v12083_v50 = vld [vmem:[%s13934_s13 + $0xf0] ss:$24 sps:$4 sm:$0xff]  }
 0x2a9   : > { %v851_v46 = vpop.xlane.xlu1 %850  ;;  %v12084_v49 = vld [vmem:[%s13934_s13 + $0xf8] ss:$24 sps:$4 sm:$0xff]  }
 0x2aa   : > { %v876_v56 = vmul.f32 0.0078125, %v851_v46  ;;  %923 = vadd.xlane.f32.xlu1 %v904_v52  ;;  %925 = vadd.xlane.f32.xlu0 %v905_v53  ;;  %v14079_v57 = vsub.f32 %v14006_v59, %v875_v51  ;;  %v906_v62 = vmul.f32 %v14076_v54, %v14076_v54  ;;  %v12087_v51 = vld [vmem:[%s13934_s13 + $0x124] ss:$24 sps:$4 sm:$0xff]   ;;  %v12089_v53 = vld [vmem:[%s13934_s13 + $0x120] ss:$24 sps:$4 sm:$0xff]  }
 0x2ab   : > { %v853_v55 = vpop.xlane.xlu0 %852  ;;  %v12092_v52 = vld [vmem:[%s13934_s13 + $0x12c] ss:$24 sps:$4 sm:$0xff]   ;;  %v12090_v46 = vld [vmem:[%s13934_s13 + $0x128] ss:$24 sps:$4 sm:$0xff]  }
 0x2ac   : > { %v877_v60 = vmul.f32 0.0078125, %v853_v55  ;;  %v907_v63 = vmul.f32 %v14079_v57, %v14079_v57  ;;  %v14086_v58 = vsub.f32 %v14009_v61, %v876_v56  ;;  %v12093_v56 = vld [vmem:[%s13934_s13 + $0x154] ss:$24 sps:$4 sm:$0xff]  }
 0x2ad   : > { %v855_v1 = vpop.xlane.xlu1 %854  ;;  %v12098_v55 = vld [vmem:[%s13934_s13 + $0x15c] ss:$24 sps:$4 sm:$0xff]  }
 0x2ae   : > { %v878_v2 = vmul.f32 0.0078125, %v855_v1  ;;  %927 = vadd.xlane.f32.xlu1 %v906_v62  ;;  %929 = vadd.xlane.f32.xlu0 %v907_v63  ;;  %v14089_v59 = vsub.f32 %v14013_v3, %v877_v60  ;;  %v908_v5 = vmul.f32 %v14086_v58, %v14086_v58  ;;  %v12095_v60 = vld [vmem:[%s13934_s13 + $0x150] ss:$24 sps:$4 sm:$0xff]   ;;  %v13528_v63 = vmov 0   ;;  %v12101_v1 = vld [vmem:[%s13934_s13 + $0x14] ss:$24 sps:$4 sm:$0xff]  }
 0x2af   : > { %v857_v0 = vpop.xlane.xlu0 %856  ;;  %v12096_v62 = vld [vmem:[%s13934_s13 + $0x158] ss:$24 sps:$4 sm:$0xff]   ;;  %1404 = vmatprep.mubr.bf16.mxu1 %v13528_v63  ;;  %1517 = vmatprep.mubr.bf16.mxu0 %v13528_v63 }
 0x2b0   : > { %v879_v4 = vmul.f32 0.0078125, %v857_v0  ;;  %v909_v8 = vmul.f32 %v14089_v59, %v14089_v59  ;;  %v14096_v61 = vsub.f32 %v14017_v6, %v878_v2 }
 0x2b1   : > { %v859_v10 = vpop.xlane.xlu1 %858 }
 0x2b2   : > { %v880_v13 = vmul.f32 0.0078125, %v859_v10  ;;  %931 = vadd.xlane.f32.xlu1 %v908_v5  ;;  %933 = vadd.xlane.f32.xlu0 %v909_v8  ;;  %v14101_v3 = vsub.f32 %v14019_v7, %v879_v4  ;;  %v910_v21 = vmul.f32 %v14096_v61, %v14096_v61 }
 0x2b3   : > { %v861_v17 = vpop.xlane.xlu0 %860 }
 0x2b4   : > { %v881_v6 = vmul.f32 0.0078125, %v861_v17  ;;  %v911_v22 = vmul.f32 %v14101_v3, %v14101_v3  ;;  %v14110_v23 = vsub.f32 %v14022_v9, %v880_v13 }
 0x2b5   : > { %v863_v7 = vpop.xlane.xlu1 %862 }
 0x2b6   : > { %v882_v24 = vmul.f32 0.0078125, %v863_v7  ;;  %935 = vadd.xlane.f32.xlu1 %v910_v21  ;;  %937 = vadd.xlane.f32.xlu0 %v911_v22  ;;  %v14113_v25 = vsub.f32 %v14027_v15, %v881_v6  ;;  %v912_v9 = vmul.f32 %v14110_v23, %v14110_v23 }
 0x2b7   : > { %v865_v28 = vpop.xlane.xlu0 %864 }
 0x2b8   : > { %v883_v31 = vmul.f32 0.0078125, %v865_v28  ;;  %v913_v32 = vmul.f32 %v14113_v25, %v14113_v25  ;;  %v14124_v33 = vsub.f32 %v14031_v18, %v882_v24  ;;  %v12078_v18 = vld [vmem:[%s13934_s13 + $0xc8] ss:$24 sps:$4 sm:$0xff]  }
 0x2b9   : > { %v867_v15 = vpop.xlane.xlu1 %866  ;;  %1494 = vmatpush1.bf16.msra.mxu0 %v12078_v18 }
 0x2ba   : > { %v884_v35 = vmul.f32 0.0078125, %v867_v15  ;;  %939 = vadd.xlane.f32.xlu1 %v912_v9  ;;  %941 = vadd.xlane.f32.xlu0 %v913_v32  ;;  %v14127_v36 = vsub.f32 %v14034_v19, %v883_v31  ;;  %v914_v43 = vmul.f32 %v14124_v33, %v14124_v33  ;;  %v12081_v19 = vld [vmem:[%s13934_s13 + $0xf4] ss:$24 sps:$4 sm:$0xff]   ;;  %v14159_v9 = vld [vmem:[%s13925_s21 + $0x2] ss:$0 sm:$0xff] }
 0x2bb   : > { %1382 = vmatprep.subr.bf16.mxu1 %v12081_v19  ;;  %1495 = vmatprep.subr.bf16.mxu0 %v12086_v48 }
 0x2bc   : > { %v915_v45 = vmul.f32 %v14127_v36, %v14127_v36  ;;  %v14138_v44 = vsub.f32 %v14038_v20, %v884_v35  ;;  %1383 = vmatpush1.bf16.msra.mxu1 %v12083_v50 }
 0x2bd   : > { %1496 = vmatpush1.bf16.msra.mxu0 %v12084_v49  ;;  %1384 = vmatprep.subr.bf16.mxu1 %v12087_v51 }
 0x2be   : > { %943 = vadd.xlane.f32.xlu1 %v914_v43  ;;  %945 = vadd.xlane.f32.xlu0 %v915_v45  ;;  %v916_v20 = vmul.f32 %v14138_v44, %v14138_v44  ;;  %v14165_v43 = vld [vmem:[%s13925_s21 + $0x3] ss:$0 sm:$0xff] }
 0x2bf   : > { %1497 = vmatprep.subr.bf16.mxu0 %v12092_v52 }
 0x2c0   : > { %1385 = vmatpush1.bf16.msra.mxu1 %v12089_v53  ;;  %v12099_v53 = vld [vmem:[%s13934_s13 + $0x10] ss:$24 sps:$4 sm:$0xff]  }
 0x2c1   : > { %1498 = vmatpush1.bf16.msra.mxu0 %v12090_v46  ;;  %1386 = vmatprep.subr.bf16.mxu1 %v12093_v56  ;;  %v12104_v56 = vld [vmem:[%s13934_s13 + $0x44] ss:$24 sps:$4 sm:$0xff]  }
 0x2c2   : > { %947 = vadd.xlane.f32.xlu1 %v916_v20  ;;  %1499 = vmatprep.subr.bf16.mxu0 %v12098_v55 }
 0x2c4   : > { %1387 = vmatpush1.bf16.msra.mxu1 %v12095_v60 }
 0x2c5   : > { %1500 = vmatpush1.bf16.msra.mxu0 %v12096_v62  ;;  %1598 = vmatprep.subr.bf16.mxu1 %v12101_v1  ;;  %v12124_v1 = vld [vmem:[%s13936_s18] sm:$0xff]  }
 0x2c6   : > { %11187 = vmatprep.subr.bf16.mxu0 %v12123_v38 }
 0x32f   : > { %v918_v2 = vpop.xlane.xlu0 %917 }
 0x330   : > { %v949_v0 = vmul.f32 0.0078125, %v918_v2 }
 0x332   : > { %v965_v4 = vadd.f32 1e-05, %v949_v0 }
 0x333   : > { %v920_v5 = vpop.xlane.xlu1 %919  ;;  %v922_v8 = vpop.xlane.xlu0 %921 }
 0x334   : > { %12427 = vrsqrt.f32 %v965_v4  ;;  %v950_v10 = vmul.f32 0.0078125, %v920_v5  ;;  %v951_v11 = vmul.f32 0.0078125, %v922_v8  ;;  %v12102_v4 = vld [vmem:[%s13934_s13 + $0x40] ss:$24 sps:$4 sm:$0xff]  }
 0x336   : > { %v966_v12 = vadd.f32 1e-05, %v950_v10  ;;  %v967_v13 = vadd.f32 1e-05, %v951_v11  ;;  %v12107_v10 = vld [vmem:[%s13934_s13 + $0x74] ss:$24 sps:$4 sm:$0xff]  }
 0x337   : > { %v924_v14 = vpop.xlane.xlu1 %923  ;;  %v926_v16 = vpop.xlane.xlu0 %925 }
 0x338   : > { %12429 = vrsqrt.f32 %v966_v12  ;;  %v952_v17 = vmul.f32 0.0078125, %v924_v14  ;;  %v953_v21 = vmul.f32 0.0078125, %v926_v16 }
 0x339   : > { %12431 = vrsqrt.f32 %v967_v13  ;;  %v12126_v13 = vld [vmem:[%s13936_s18 + $0x8] sm:$0xff]  }
 0x33a   : > { %v968_v6 = vadd.f32 1e-05, %v952_v17  ;;  %v969_v26 = vadd.f32 1e-05, %v953_v21 }
 0x33b   : > { %v928_v22 = vpop.xlane.xlu1 %927  ;;  %v930_v28 = vpop.xlane.xlu0 %929 }
 0x33c   : > { %12433 = vrsqrt.f32 %v968_v6  ;;  %v954_v7 = vmul.f32 0.0078125, %v928_v22  ;;  %v955_v15 = vmul.f32 0.0078125, %v930_v28 }
 0x33e   : > { %v12428_v24 = vpop.eup %12427  ;;  %v970_v27 = vadd.f32 1e-05, %v954_v7  ;;  %v971_v48 = vadd.f32 1e-05, %v955_v15  ;;  %v12127_v7 = vld [vmem:[%s13936_s18 + $0x50] sm:$0xff]  }
 0x33f   : > { %v932_v29 = vpop.xlane.xlu1 %931  ;;  %v997_v30 = vmul.f32 %v12428_v24, %v14051_v34  ;;  %v934_v50 = vpop.xlane.xlu0 %933 }
 0x340   : > { %12435 = vrsqrt.f32 %v970_v27  ;;  %v956_v31 = vmul.f32 0.0078125, %v932_v29  ;;  %v957_v62 = vmul.f32 0.0078125, %v934_v50  ;;  %v12110_v27 = vld [vmem:[%s13934_s13 + $0xa4] ss:$24 sps:$4 sm:$0xff]  }
 0x341   : > { %12437 = vrsqrt.f32 %v969_v26  ;;  %v1013_v37 = vmul.f32 %v997_v30, %v14159_v9  ;;  %v12129_v29 = vld [vmem:[%s13936_s18 + $0x58] sm:$0xff]  }
 0x342   : > { %v12430_v32 = vpop.eup %12429  ;;  %v972_v18 = vadd.f32 1e-05, %v956_v31  ;;  %v973_v12 = vadd.f32 1e-05, %v957_v62 }
 0x343   : > { %v998_v35 = vmul.f32 %v12430_v32, %v14059_v40  ;;  %v12432_v42 = vpop.eup %12431  ;;  %v936_v45 = vpop.xlane.xlu1 %935  ;;  %v14169_v49 = vadd.f32 %v1013_v37, %v14165_v43 }
 0x344   : > { %v999_v20 = vmul.f32 %v12432_v42, %v14056_v39  ;;  %12439 = vrsqrt.f32 %v972_v18  ;;  %v958_v52 = vmul.f32 0.0078125, %v936_v45  ;;  %v938_v14 = vpop.xlane.xlu0 %937  ;;  %v12113_v42 = vld [vmem:[%s13934_s13 + $0xd4] ss:$24 sps:$4 sm:$0xff]   ;;  %v12130_v18 = vld [vmem:[%s13936_s18 + $0x18] sm:$0xff]  }
 0x345   : > { %v1014_v34 = vmul.f32 %v998_v35, %v14159_v9  ;;  %12441 = vrsqrt.f32 %v971_v48  ;;  %v959_v26 = vmul.f32 0.0078125, %v938_v14  ;;  %v12108_v35 = vld [vmem:[%s13934_s13 + $0xa0] ss:$24 sps:$4 sm:$0xff]  }
 0x346   : > { %v12434_v19 = vpop.eup %12433  ;;  %v1015_v39 = vmul.f32 %v999_v20, %v14159_v9  ;;  %v974_v0 = vadd.f32 1e-05, %v958_v52  ;;  %v12111_v20 = vld [vmem:[%s13934_s13 + $0xd0] ss:$24 sps:$4 sm:$0xff]  }
 0x347   : > { %v14172_v40 = vadd.f32 %v1014_v34, %v14165_v43  ;;  %v1000_v51 = vmul.f32 %v12434_v19, %v14066_v47  ;;  %v12125_v47 = vld [vmem:[%s13936_s18 + $0x48] sm:$0xff]   ;;  %v940_v5 = vpop.xlane.xlu1 %939  ;;  %v975_v38 = vadd.f32 1e-05, %v959_v26 }
 0x348   : > { %v14198_v16 = vadd.f32 %v1015_v39, %v14165_v43  ;;  %12443 = vrsqrt.f32 %v974_v0  ;;  %v960_v6 = vmul.f32 0.0078125, %v940_v5  ;;  %v942_v45 = vpop.xlane.xlu0 %941  ;;  %v12114_v0 = vld [vmem:[%s13934_s13 + $0x100] ss:$24 sps:$4 sm:$0xff]   ;;  %v12119_v5 = vld [vmem:[%s13934_s13 + $0x134] ss:$24 sps:$4 sm:$0xff]  }
 0x349   : > { %v14179_v46 = vpack.c.bf16 %v14172_v40, %v14169_v49  ;;  %v1016_v55 = vmul.f32 %v1000_v51, %v14159_v9  ;;  %12445 = vrsqrt.f32 %v973_v12  ;;  %v12131_v51 = vld [vmem:[%s13936_s18 + $0x60] sm:$0xff]  }
 0x34a   : > { %v12436_v60 = vpop.eup %12435  ;;  %v976_v31 = vadd.f32 1e-05, %v960_v6  ;;  %v12117_v6 = vld [vmem:[%s13934_s13 + $0x130] ss:$24 sps:$4 sm:$0xff]  }
 0x34b   : > { %1405 = vmatmul.mubr.bf16.vlgmr.msra.gmra.mrb[0].mxu1 %v14179_v46  ;;  %1518 = vmatmul.mubr.bf16.vlgmr.msra.gmra.mrb[16].mxu0 %v14179_v46  ;;  %v12438_v2 = vpop.eup %12437  ;;  %v14192_v8 = vadd.f32 %v1016_v55, %v14165_v43  ;;  %v1002_v11 = vmul.f32 %v12436_v60, %v14076_v54  ;;  %v12105_v54 = vld [vmem:[%s13934_s13 + $0x70] ss:$24 sps:$4 sm:$0xff]   ;;  %v944_v32 = vpop.xlane.xlu1 %943 }
 0x34c   : > { %1599 = vmatpush1.bf16.msra.mxu1 %v12099_v53  ;;  %1414 = vmatprep.mubr.bf16.mxu1 %v13528_v63  ;;  %v1001_v17 = vmul.f32 %v12438_v2, %v14069_v41  ;;  %v12128_v41 = vld [vmem:[%s13936_s18 + $0x10] sm:$0xff]   ;;  %12447 = vrsqrt.f32 %v976_v31  ;;  %v962_v48 = vmul.f32 0.0078125, %v944_v32  ;;  %v961_v53 = vmul.f32 0.0078125, %v942_v45  ;;  %v12137_v60 = vld [vmem:[%s13936_s18 + $0x68] sm:$0xff]   ;;  %v12133_v32 = vld [vmem:[%s13936_s18 + $0xc0] sm:$0xff]  }
 0x34d   : > { %1527 = vmatprep.mubr.bf16.mxu0 %v13528_v63  ;;  %1600 = vmatprep.subr.bf16.mxu1 %v12104_v56  ;;  %v14203_v21 = vpack.c.bf16 %v14192_v8, %v14198_v16  ;;  %v1018_v22 = vmul.f32 %v1002_v11, %v14159_v9  ;;  %12449 = vrsqrt.f32 %v975_v38  ;;  %v12116_v56 = vld [vmem:[%s13934_s13 + $0x104] ss:$24 sps:$4 sm:$0xff]   ;;  %v946_v11 = vpop.xlane.xlu0 %945 }
 0x34e   : > { %11188 = vmatpush3.bf16.msra.mxu0 %v12124_v1  ;;  %v12440_v24 = vpop.eup %12439  ;;  %v1017_v28 = vmul.f32 %v1001_v17, %v14159_v9  ;;  %v978_v1 = vadd.f32 1e-05, %v962_v48 }
 0x34f   : > { %11189 = vmatprep.subr.bf16.mxu0 %v12125_v47  ;;  %v12442_v30 = vpop.eup %12441  ;;  %v14217_v15 = vadd.f32 %v1018_v22, %v14165_v43  ;;  %v1004_v37 = vmul.f32 %v12440_v24, %v14086_v58  ;;  %v948_v39 = vpop.xlane.xlu1 %947  ;;  %v12122_v24 = vld [vmem:[%s13934_s13 + $0x164] ss:$24 sps:$4 sm:$0xff]  }
 0x350   : > { %1601 = vmatpush1.bf16.msra.mxu1 %v12102_v4  ;;  %v14224_v34 = vadd.f32 %v1017_v28, %v14165_v43  ;;  %v1003_v19 = vmul.f32 %v12442_v30, %v14079_v57  ;;  %v12132_v57 = vld [vmem:[%s13936_s18 + $0x20] sm:$0xff]   ;;  %v977_v4 = vadd.f32 1e-05, %v961_v53  ;;  %12451 = vrsqrt.f32 %v978_v1 }
 0x351   : > { %1602 = vmatprep.subr.bf16.mxu1 %v12107_v10  ;;  %v1020_v50 = vmul.f32 %v1004_v37, %v14159_v9  ;;  %v12138_v10 = vld [vmem:[%s13936_s18 + $0x28] sm:$0xff]   ;;  %v12120_v30 = vld [vmem:[%s13934_s13 + $0x160] ss:$24 sps:$4 sm:$0xff]  }
 0x352   : > { %11190 = vmatpush3.bf16.msra.mxu0 %v12126_v13  ;;  %v14229_v58 = vpack.c.bf16 %v14217_v15, %v14224_v34  ;;  %v12444_v52 = vpop.eup %12443  ;;  %v1019_v55 = vmul.f32 %v1003_v19, %v14159_v9  ;;  %12453 = vrsqrt.f32 %v977_v4  ;;  %v12140_v4 = vld [vmem:[%s13936_s18 + $0x90] sm:$0xff]  }
 0x353   : > { %1415 = vmatmul.mubr.bf16.gmra.mrb[4].mxu1 %v14203_v21  ;;  %1528 = vmatmul.mubr.bf16.gmra.mrb[20].mxu0 %v14203_v21  ;;  %v12446_v62 = vpop.eup %12445  ;;  %v14243_v47 = vadd.f32 %v1020_v50, %v14165_v43  ;;  %v1006_v2 = vmul.f32 %v12444_v52, %v14096_v61  ;;  %v964_v61 = vmul.f32 0.0078125, %v948_v39 }
 0x354   : > { %1424 = vmatprep.mubr.bf16.mxu1 %v13528_v63  ;;  %1537 = vmatprep.mubr.bf16.mxu0 %v13528_v63  ;;  %v14250_v12 = vadd.f32 %v1019_v55, %v14165_v43  ;;  %v1005_v13 = vmul.f32 %v12446_v62, %v14089_v59  ;;  %v12144_v59 = vld [vmem:[%s13936_s18 + $0x30] sm:$0xff]  }
 0x355   : > { %1603 = vmatpush1.bf16.msra.mxu1 %v12105_v54  ;;  %11191 = vmatprep.subr.bf16.mxu0 %v12127_v7  ;;  %v1022_v17 = vmul.f32 %v1006_v2, %v14159_v9  ;;  %v12143_v54 = vld [vmem:[%s13936_s18 + $0x70] sm:$0xff]   ;;  %v963_v7 = vmul.f32 0.0078125, %v946_v11  ;;  %v12135_v2 = vld [vmem:[%s13936_s18 + $0xc8] sm:$0xff]   ;;  %v12146_v11 = vld [vmem:[%s13936_s18 + $0xa0] sm:$0xff]  }
 0x356   : > { %1604 = vmatprep.subr.bf16.mxu1 %v12110_v27  ;;  %11192 = vmatpush3.bf16.msra.mxu0 %v12128_v41  ;;  %v14255_v14 = vpack.c.bf16 %v14243_v47, %v14250_v12  ;;  %v12448_v22 = vpop.eup %12447  ;;  %v1021_v26 = vmul.f32 %v1005_v13, %v14159_v9  ;;  %v980_v41 = vadd.f32 1e-05, %v964_v61  ;;  %v12147_v13 = vld [vmem:[%s13936_s18 + $0xe8] sm:$0xff]   ;;  %v12151_v61 = vld [vmem:[%s13936_s18 + $0xf0] sm:$0xff]  }
 0x357   : > { %11193 = vmatprep.subr.bf16.mxu0 %v12129_v29  ;;  %v12450_v27 = vpop.eup %12449  ;;  %v14268_v28 = vadd.f32 %v1022_v17, %v14165_v43  ;;  %v1008_v29 = vmul.f32 %v12448_v22, %v14110_v23  ;;  %v979_v31 = vadd.f32 1e-05, %v963_v7  ;;  %v12152_v17 = vld [vmem:[%s13936_s18 + $0xb0] sm:$0xff]   ;;  %v12153_v22 = vld [vmem:[%s13936_s18 + $0xf8] sm:$0xff]  }
 0x358   : > { %v1007_v37 = vmul.f32 %v12450_v27, %v14101_v3  ;;  %12455 = vrsqrt.f32 %v980_v41  ;;  %v12154_v7 = vld [vmem:[%s13936_s18 + $0xb8] sm:$0xff]  }
 0x359   : > { %1605 = vmatpush1.bf16.msra.mxu1 %v12108_v35  ;;  %v14274_v35 = vadd.f32 %v1021_v26, %v14165_v43  ;;  %12457 = vrsqrt.f32 %v979_v31  ;;  %v643_v26 = vld [vmem:[%s13925_s21] ss:$8 sm:$0x30] }
 0x35a   : > { %1606 = vmatprep.subr.bf16.mxu1 %v12113_v42  ;;  %11194 = vmatpush3.bf16.msra.mxu0 %v12130_v18  ;;  %v1024_v42 = vmul.f32 %v1008_v29, %v14159_v9  ;;  %v12452_v23 = vpop.eup %12451  ;;  %v1023_v18 = vmul.f32 %v1007_v37, %v14159_v9 }
 0x35b   : > { %1425 = vmatmul.mubr.bf16.gmra.mrb[8].mxu1 %v14229_v58  ;;  %1538 = vmatmul.mubr.bf16.gmra.mrb[24].mxu0 %v14229_v58  ;;  %v14279_v38 = vpack.c.bf16 %v14268_v28, %v14274_v35  ;;  %v1010_v19 = vmul.f32 %v12452_v23, %v14124_v33 }
 0x35c   : > { %1434 = vmatprep.mubr.bf16.mxu1 %v13528_v63  ;;  %1547 = vmatprep.mubr.bf16.mxu0 %v13528_v63  ;;  %v12454_v45 = vpop.eup %12453  ;;  %v14288_v3 = vadd.f32 %v1024_v42, %v14165_v43  ;;  %v14292_v48 = vadd.f32 %v1023_v18, %v14165_v43 }
 0x35d   : > { %1607 = vmatpush1.bf16.msra.mxu1 %v12111_v20  ;;  %11195 = vmatprep.subr.bf16.mxu0 %v12131_v51  ;;  %v1009_v50 = vmul.f32 %v12454_v45, %v14113_v25  ;;  %v1026_v51 = vmul.f32 %v1010_v19, %v14159_v9 }
 0x35e   : > { %1608 = vmatprep.subr.bf16.mxu1 %v12116_v56  ;;  %11196 = vmatpush3.bf16.msra.mxu0 %v12132_v57  ;;  %v14297_v20 = vpack.c.bf16 %v14288_v3, %v14292_v48 }
 0x35f   : > { %11197 = vmatprep.subr.bf16.mxu0 %v12137_v60  ;;  %v1025_v53 = vmul.f32 %v1009_v50, %v14159_v9  ;;  %v14306_v25 = vadd.f32 %v1026_v51, %v14165_v43 }
 0x361   : > { %1609 = vmatpush1.bf16.msra.mxu1 %v12114_v0  ;;  %v14310_v57 = vadd.f32 %v1025_v53, %v14165_v43  ;;  %v12139_v0 = vld [vmem:[%s13936_s18 + $0xd0] sm:$0xff]  }
 0x362   : > { %1610 = vmatprep.subr.bf16.mxu1 %v12119_v5  ;;  %11198 = vmatpush3.bf16.msra.mxu0 %v12138_v10  ;;  %v12456_v52 = vpop.eup %12455  ;;  %v12141_v5 = vld [vmem:[%s13936_s18 + $0xd8] sm:$0xff]   ;;  %v12145_v10 = vld [vmem:[%s13936_s18 + $0xe0] sm:$0xff]  }
 0x363   : > { %1435 = vmatmul.mubr.bf16.gmra.mrb[12].mxu1 %v14255_v14  ;;  %1548 = vmatmul.mubr.bf16.gmra.mrb[28].mxu0 %v14255_v14  ;;  %v12458_v56 = vpop.eup %12457  ;;  %v1012_v33 = vmul.f32 %v12456_v52, %v14138_v44  ;;  %v1051_v60 = vpack.c.bf16 %v14306_v25, %v14310_v57 }
 0x364   : > { %1444 = vmatprep.mubr.bf16.mxu1 %v13528_v63  ;;  %1557 = vmatprep.mubr.bf16.mxu0 %v13528_v63  ;;  %v1011_v55 = vmul.f32 %v12458_v56, %v14127_v36 }
 0x365   : > { %1611 = vmatpush1.bf16.msra.mxu1 %v12117_v6  ;;  %11199 = vmatprep.subr.bf16.mxu0 %v12143_v54  ;;  %v1028_v62 = vmul.f32 %v1012_v33, %v14159_v9  ;;  %v12149_v6 = vld [vmem:[%s13936_s18 + $0x78] sm:$0xff]  }
 0x366   : > { %1612 = vmatprep.subr.bf16.mxu1 %v12122_v24  ;;  %11200 = vmatpush3.bf16.msra.mxu0 %v12144_v59  ;;  %v1027_v1 = vmul.f32 %v1011_v55, %v14159_v9  ;;  %v12134_v9 = vld [vmem:[%s13936_s18 + $0x80] sm:$0xff]   ;;  %v12150_v54 = vld [vmem:[%s13936_s18 + $0x38] sm:$0xff]  }
 0x367   : > { %v14320_v44 = vadd.f32 %v1028_v62, %v14165_v43  ;;  %11201 = vmatprep.subr.bf16.mxu0 %v12149_v6  ;;  %v642_v59 = vld [vmem:[%s13925_s21] ss:$8 sm:$0xf] }
 0x368   : > { %v14323_v36 = vadd.f32 %v1027_v1, %v14165_v43  ;;  %v12136_v43 = vld [vmem:[%s13936_s18 + $0x88] sm:$0xff]   ;;  %v14363_v27 = vor.u32 %v643_v26, %v642_v59 }
 0x369   : > { %1613 = vmatpush1.bf16.msra.mxu1 %v12120_v30  ;;  %v12157_v59 = vld [vmem:[%s13936_s18 + $0x148] sm:$0xff]  }
 0x36a   : > { %11251 = vmatprep.subr.bf16.mxu1 %v12133_v32  ;;  %v1052_v39 = vpack.c.bf16 %v14320_v44, %v14323_v36  ;;  %11202 = vmatpush3.bf16.msra.mxu0 %v12150_v54  ;;  %v12156_v54 = vld [vmem:[%s13936_s18 + $0x100] sm:$0xff]  }
 0x36b   : > { %1445 = vmatmul.mubr.bf16.gmra.mrb[16].mxu1 %v14279_v38  ;;  %1558 = vmatmul.mubr.bf16.gmra.mrb[32].mxu0 %v14279_v38 }
 0x36c   : > { %1454 = vmatprep.mubr.bf16.mxu1 %v13528_v63  ;;  %1567 = vmatprep.mubr.bf16.mxu0 %v13528_v63 }
 0x373   : > { %1455 = vmatmul.mubr.bf16.gmra.mrb[20].mxu1 %v14297_v20  ;;  %1568 = vmatmul.mubr.bf16.gmra.mrb[36].mxu0 %v14297_v20 }
 0x374   : > { %1464 = vmatprep.mubr.bf16.mxu1 %v13528_v63  ;;  %1577 = vmatprep.mubr.bf16.mxu0 %v13528_v63 }
 0x37b   : > { %1465 = vmatmul.mubr.bf16.gmra.mrb[24].mxu1 %v1051_v60  ;;  %1578 = vmatmul.mubr.bf16.gmra.mrb[40].mxu0 %v1051_v60 }
 0x37c   : > { %1474 = vmatprep.mubr.bf16.mxu1 %v13528_v63  ;;  %1587 = vmatprep.mubr.bf16.mxu0 %v13528_v63 }
 0x383   : > { %1475 = vmatmul.mubr.bf16.gmra.mrb[28].mxu1 %v1052_v39  ;;  %1588 = vmatmul.mubr.bf16.gmra.mrb[44].mxu0 %v1052_v39 }
 0x384   : > { %1630 = vmatprep.mubr.bf16.mxu1 %v13528_v63 }
 0x38b   : > { %1631 = vmatmul.mubr.bf16.vlgmr.msra.gmra.mrb[32].mxu1 %v14179_v46  ;;  %v12142_v46 = vld [vmem:[%s13936_s18 + $0x98] sm:$0xff]  }
 0x38c   : > { %1640 = vmatprep.mubr.bf16.mxu1 %v13528_v63  ;;  %11252 = vmatpush3.bf16.msra.mxu1 %v12134_v9 }
 0x38d   : > { %11253 = vmatprep.subr.bf16.mxu1 %v12135_v2 }
 0x390   : > { %11254 = vmatpush3.bf16.msra.mxu1 %v12136_v43 }
 0x391   : > { %11255 = vmatprep.subr.bf16.mxu1 %v12139_v0 }
 0x393   : > { %1641 = vmatmul.mubr.bf16.gmra.mrb[36].mxu1 %v14203_v21  ;;  %v12148_v21 = vld [vmem:[%s13936_s18 + $0xa8] sm:$0xff]  }
 0x394   : > { %1650 = vmatprep.mubr.bf16.mxu1 %v13528_v63  ;;  %11256 = vmatpush3.bf16.msra.mxu1 %v12140_v4 }
 0x395   : > { %11257 = vmatprep.subr.bf16.mxu1 %v12141_v5 }
 0x398   : > { %11258 = vmatpush3.bf16.msra.mxu1 %v12142_v46 }
 0x399   : > { %11259 = vmatprep.subr.bf16.mxu1 %v12145_v10 }
 0x39b   : > { %1651 = vmatmul.mubr.bf16.gmra.mrb[40].mxu1 %v14229_v58  ;;  %v12155_v58 = vld [vmem:[%s13936_s18 + $0x140] sm:$0xff]  }
 0x39c   : > { %1660 = vmatprep.mubr.bf16.mxu1 %v13528_v63  ;;  %11260 = vmatpush3.bf16.msra.mxu1 %v12146_v11 }
 0x39d   : > { %11261 = vmatprep.subr.bf16.mxu1 %v12147_v13  ;;  %11315 = vmatprep.subr.bf16.mxu0 %v12155_v58 }
 0x3a0   : > { %11262 = vmatpush3.bf16.msra.mxu1 %v12148_v21 }
 0x3a1   : > { %11263 = vmatprep.subr.bf16.mxu1 %v12151_v61 }
 0x3a3   : > { %1661 = vmatmul.mubr.bf16.gmra.mrb[44].mxu1 %v14255_v14  ;;  %v1102_v14 = vlaneseq }
 0x3a4   : > { %1670 = vmatprep.mubr.bf16.mxu1 %v13528_v63  ;;  %11264 = vmatpush3.bf16.msra.mxu1 %v12152_v17 }
 0x3a5   : > { %11265 = vmatprep.subr.bf16.mxu1 %v12153_v22  ;;  %v14359_v24 = vshrl.u32 %v1102_v14, 7 }
 0x3a7   : > { %v14366_v41 = vsub.s32 0, %v14359_v24  ;;  %v14369_v29 = vsub.s32 2, %v14359_v24  ;;  %v14372_v30 = vsub.s32 1, %v14359_v24  ;;  %v14375_v31 = vsub.s32 3, %v14359_v24 }
 0x3a8   : > { %11266 = vmatpush3.bf16.msra.mxu1 %v12154_v7 }
 0x3a9   : > { %v14379_v32 = vrot.slane %v14363_v27, %v14366_v41  ;;  %v14383_v37 = vrot.slane %v14363_v27, %v14369_v29  ;;  %v14391_v42 = vrot.slane %v14363_v27, %v14375_v31 }
 0x3ab   : > { %1671 = vmatmul.mubr.bf16.gmra.mrb[48].mxu1 %v14279_v38  ;;  %v14387_v38 = vrot.slane %v14363_v27, %v14372_v30 }
 0x3ac   : > { %1680 = vmatprep.mubr.bf16.mxu1 %v13528_v63 }
 0x3b3   : > { %1681 = vmatmul.mubr.bf16.gmra.mrb[52].mxu1 %v14297_v20 }
 0x3b4   : > { %1690 = vmatprep.mubr.bf16.mxu1 %v13528_v63 }
 0x3bb   : > { %1691 = vmatmul.mubr.bf16.gmra.mrb[56].mxu1 %v1051_v60 }
 0x3bc   : > { %1700 = vmatprep.mubr.bf16.mxu1 %v13528_v63 }
 0x3c3   : > { %1701 = vmatmul.mubr.bf16.gmra.mrb[60].mxu1 %v1052_v39 }
 0x41e   : > { %v1406_v23 = vpop.f32.mrb[0].mxu1  ;;  %v1519_v18 = vpop.f32.mrb[16].mxu0 }
 0x41f   : > { %v1407_v45 = vadd.f32 %v1406_v23, %v14379_v32  ;;  %v1520_v19 = vadd.f32 %v1519_v18, %v14383_v37  ;;  %v1408_v50 = vpop.f32.mrb[1].mxu1  ;;  %v1521_v20 = vpop.f32.mrb[17].mxu0 }
 0x420   : > { %v1409_v51 = vadd.f32 %v1408_v50, %v14387_v38  ;;  %v1522_v52 = vadd.f32 %v1521_v20, %v14391_v42  ;;  %v1410_v53 = vpop.f32.mrb[2].mxu1  ;;  %v1523_v56 = vpop.f32.mrb[18].mxu0 }
 0x421   : > { %v1411_v33 = vadd.f32 %v1410_v53, %v14379_v32  ;;  %v1524_v55 = vadd.f32 %v1523_v56, %v14383_v37  ;;  %v1412_v60 = vpop.f32.mrb[3].mxu1  ;;  %v1525_v62 = vpop.f32.mrb[19].mxu0  ;;  %v1711_v9 = vmax.f32 %v1407_v45, 0.0  ;;  %v1713_v2 = vmax.f32 %v1520_v19, 0.0  ;;  %v12158_v56 = vld [vmem:[%s13936_s18 + $0x108] sm:$0xff]  }
 0x422   : > { %v1413_v1 = vadd.f32 %v1412_v60, %v14387_v38  ;;  %v1526_v39 = vadd.f32 %v1525_v62, %v14391_v42  ;;  %v1712_v4 = vmax.f32 %v1409_v51, 0.0  ;;  %v1714_v5 = vmax.f32 %v1522_v52, 0.0 }
 0x423   : > { %v1717_v43 = vmax.f32 %v1411_v33, 0.0  ;;  %v1719_v0 = vmax.f32 %v1524_v55, 0.0 }
 0x424   : > { %v1718_v46 = vmax.f32 %v1413_v1, 0.0  ;;  %v1720_v10 = vmax.f32 %v1526_v39, 0.0  ;;  %v12159_v1 = vld [vmem:[%s13936_s18 + $0x150] sm:$0xff]  }
 0x425   : > { %v1807_v11 = vpack.c.bf16 %v1717_v43, %v1711_v9  ;;  %v1809_v13 = vpack.c.bf16 %v1719_v0, %v1713_v2 }
 0x426   : > { %v1416_v21 = vpop.f32.mrb[4].mxu1  ;;  %v1529_v61 = vpop.f32.mrb[20].mxu0  ;;  %v1808_v17 = vpack.c.bf16 %v1718_v46, %v1712_v4  ;;  %v1810_v6 = vpack.c.bf16 %v1720_v10, %v1714_v5 }
 0x427   : > { %v1417_v22 = vadd.f32 %v1416_v21, %v14379_v32  ;;  %v1530_v7 = vadd.f32 %v1529_v61, %v14383_v37  ;;  %v1418_v58 = vpop.f32.mrb[5].mxu1  ;;  %v1531_v14 = vpop.f32.mrb[21].mxu0 }
 0x428   : > { %v1419_v26 = vadd.f32 %v1418_v58, %v14387_v38  ;;  %v1532_v23 = vadd.f32 %v1531_v14, %v14391_v42  ;;  %v1420_v18 = vpop.f32.mrb[6].mxu1  ;;  %v1533_v45 = vpop.f32.mrb[22].mxu0  ;;  %2271 = vmatprep.mubr.bf16.mxu0 %v1808_v17  ;;  %2368 = vmatprep.mubr.bf16.mxu1 %v1810_v6 }
 0x429   : > { %v1421_v19 = vadd.f32 %v1420_v18, %v14379_v32  ;;  %v1534_v50 = vadd.f32 %v1533_v45, %v14383_v37  ;;  %v1422_v20 = vpop.f32.mrb[7].mxu1  ;;  %v1535_v51 = vpop.f32.mrb[23].mxu0  ;;  %2272 = vmatmul.mubr.bf16.vlgmr.msra.gmra.mrb[48].mxu0 %v1807_v11  ;;  %2369 = vmatmul.mubr.bf16.vlgmr.msra.gmra.mrb[64].mxu1 %v1809_v13  ;;  %v1723_v33 = vmax.f32 %v1417_v22, 0.0  ;;  %v1725_v55 = vmax.f32 %v1530_v7, 0.0  ;;  %v12160_v13 = vld [vmem:[%s13936_s18 + $0x110] sm:$0xff]  }
 0x42a   : > { %v1423_v52 = vadd.f32 %v1422_v20, %v14387_v38  ;;  %v1536_v53 = vadd.f32 %v1535_v51, %v14391_v42  ;;  %11316 = vmatpush3.bf16.msra.mxu0 %v12156_v54  ;;  %v1724_v39 = vmax.f32 %v1419_v26, 0.0  ;;  %v1726_v9 = vmax.f32 %v1532_v23, 0.0  ;;  %v12161_v54 = vld [vmem:[%s13936_s18 + $0x158] sm:$0xff]  }
 0x42b   : > { %v1729_v60 = vmax.f32 %v1421_v19, 0.0  ;;  %v1731_v62 = vmax.f32 %v1534_v50, 0.0  ;;  %11317 = vmatprep.subr.bf16.mxu0 %v12157_v59  ;;  %v12162_v50 = vld [vmem:[%s13936_s18 + $0x118] sm:$0xff]  }
 0x42c   : > { %v1730_v2 = vmax.f32 %v1423_v52, 0.0  ;;  %v1732_v43 = vmax.f32 %v1536_v53, 0.0 }
 0x42d   : > { %v1813_v0 = vpack.c.bf16 %v1729_v60, %v1723_v33  ;;  %v1815_v4 = vpack.c.bf16 %v1731_v62, %v1725_v55 }
 0x42e   : > { %v1426_v5 = vpop.f32.mrb[8].mxu1  ;;  %v1539_v46 = vpop.f32.mrb[24].mxu0  ;;  %v1814_v10 = vpack.c.bf16 %v1730_v2, %v1724_v39  ;;  %v1816_v11 = vpack.c.bf16 %v1732_v43, %v1726_v9  ;;  %11318 = vmatpush3.bf16.msra.mxu0 %v12158_v56  ;;  %v12163_v56 = vld [vmem:[%s13936_s18 + $0x160] sm:$0xff]  }
 0x42f   : > { %v1427_v21 = vadd.f32 %v1426_v5, %v14379_v32  ;;  %v1540_v61 = vadd.f32 %v1539_v46, %v14383_v37  ;;  %v1428_v17 = vpop.f32.mrb[9].mxu1  ;;  %v1541_v6 = vpop.f32.mrb[25].mxu0  ;;  %11319 = vmatprep.subr.bf16.mxu0 %v12159_v1 }
 0x430   : > { %v1429_v22 = vadd.f32 %v1428_v17, %v14387_v38  ;;  %v1542_v7 = vadd.f32 %v1541_v6, %v14391_v42  ;;  %v1430_v58 = vpop.f32.mrb[10].mxu1  ;;  %v1543_v14 = vpop.f32.mrb[26].mxu0  ;;  %2279 = vmatprep.mubr.bf16.mxu0 %v1814_v10  ;;  %2376 = vmatprep.mubr.bf16.mxu1 %v1816_v11 }
 0x431   : > { %v1431_v59 = vadd.f32 %v1430_v58, %v14379_v32  ;;  %v1544_v26 = vadd.f32 %v1543_v14, %v14383_v37  ;;  %v1432_v23 = vpop.f32.mrb[11].mxu1  ;;  %v1545_v18 = vpop.f32.mrb[27].mxu0  ;;  %2280 = vmatmul.mubr.bf16.gmra.mrb[52].mxu0 %v1813_v0  ;;  %2377 = vmatmul.mubr.bf16.gmra.mrb[68].mxu1 %v1815_v4  ;;  %v1735_v20 = vmax.f32 %v1427_v21, 0.0  ;;  %v1737_v51 = vmax.f32 %v1540_v61, 0.0  ;;  %v12164_v4 = vld [vmem:[%s13936_s18 + $0x120] sm:$0xff]  }
 0x432   : > { %v1433_v45 = vadd.f32 %v1432_v23, %v14387_v38  ;;  %v1546_v19 = vadd.f32 %v1545_v18, %v14391_v42  ;;  %11320 = vmatpush3.bf16.msra.mxu0 %v12160_v13  ;;  %v1736_v33 = vmax.f32 %v1429_v22, 0.0  ;;  %v1738_v55 = vmax.f32 %v1542_v7, 0.0  ;;  %v12165_v13 = vld [vmem:[%s13936_s18 + $0x168] sm:$0xff]  }
 0x433   : > { %v1741_v52 = vmax.f32 %v1431_v59, 0.0  ;;  %v1743_v53 = vmax.f32 %v1544_v26, 0.0  ;;  %11321 = vmatprep.subr.bf16.mxu0 %v12161_v54  ;;  %v12166_v26 = vld [vmem:[%s13936_s18 + $0x128] sm:$0xff]  }
 0x434   : > { %v1742_v60 = vmax.f32 %v1433_v45, 0.0  ;;  %v1744_v62 = vmax.f32 %v1546_v19, 0.0 }
 0x435   : > { %v1819_v1 = vpack.c.bf16 %v1741_v52, %v1735_v20  ;;  %v1821_v39 = vpack.c.bf16 %v1743_v53, %v1737_v51 }
 0x436   : > { %v1436_v9 = vpop.f32.mrb[12].mxu1  ;;  %v1549_v2 = vpop.f32.mrb[28].mxu0  ;;  %v1820_v43 = vpack.c.bf16 %v1742_v60, %v1736_v33  ;;  %v1822_v0 = vpack.c.bf16 %v1744_v62, %v1738_v55  ;;  %11322 = vmatpush3.bf16.msra.mxu0 %v12162_v50  ;;  %v12167_v50 = vld [vmem:[%s13936_s18 + $0x170] sm:$0xff]  }
 0x437   : > { %v1437_v5 = vadd.f32 %v1436_v9, %v14379_v32  ;;  %v1550_v46 = vadd.f32 %v1549_v2, %v14383_v37  ;;  %v1438_v10 = vpop.f32.mrb[13].mxu1  ;;  %v1551_v11 = vpop.f32.mrb[29].mxu0  ;;  %11323 = vmatprep.subr.bf16.mxu0 %v12163_v56 }
 0x438   : > { %v1439_v21 = vadd.f32 %v1438_v10, %v14387_v38  ;;  %v1552_v61 = vadd.f32 %v1551_v11, %v14391_v42  ;;  %v1440_v17 = vpop.f32.mrb[14].mxu1  ;;  %v1553_v6 = vpop.f32.mrb[30].mxu0  ;;  %2287 = vmatprep.mubr.bf16.mxu0 %v1820_v43  ;;  %2384 = vmatprep.mubr.bf16.mxu1 %v1822_v0 }
 0x439   : > { %v1441_v54 = vadd.f32 %v1440_v17, %v14379_v32  ;;  %v1554_v22 = vadd.f32 %v1553_v6, %v14383_v37  ;;  %v1442_v7 = vpop.f32.mrb[15].mxu1  ;;  %v1555_v58 = vpop.f32.mrb[31].mxu0  ;;  %2288 = vmatmul.mubr.bf16.gmra.mrb[56].mxu0 %v1819_v1  ;;  %2385 = vmatmul.mubr.bf16.gmra.mrb[72].mxu1 %v1821_v39  ;;  %v1747_v23 = vmax.f32 %v1437_v5, 0.0  ;;  %v1749_v18 = vmax.f32 %v1550_v46, 0.0  ;;  %v12168_v39 = vld [vmem:[%s13936_s18 + $0x130] sm:$0xff]  }
 0x43a   : > { %v1443_v14 = vadd.f32 %v1442_v7, %v14387_v38  ;;  %v1556_v59 = vadd.f32 %v1555_v58, %v14391_v42  ;;  %11324 = vmatpush3.bf16.msra.mxu0 %v12164_v4  ;;  %v1748_v20 = vmax.f32 %v1439_v21, 0.0  ;;  %v1750_v51 = vmax.f32 %v1552_v61, 0.0  ;;  %v12169_v4 = vld [vmem:[%s13936_s18 + $0x178] sm:$0xff]  }
 0x43b   : > { %v1753_v45 = vmax.f32 %v1441_v54, 0.0  ;;  %v1755_v19 = vmax.f32 %v1554_v22, 0.0  ;;  %11325 = vmatprep.subr.bf16.mxu0 %v12165_v13  ;;  %v12170_v22 = vld [vmem:[%s13936_s18 + $0x138] sm:$0xff]  }
 0x43c   : > { %v1754_v52 = vmax.f32 %v1443_v14, 0.0  ;;  %v1756_v53 = vmax.f32 %v1556_v59, 0.0 }
 0x43d   : > { %v1825_v56 = vpack.c.bf16 %v1753_v45, %v1747_v23  ;;  %v1827_v33 = vpack.c.bf16 %v1755_v19, %v1749_v18 }
 0x43e   : > { %v1446_v55 = vpop.f32.mrb[16].mxu1  ;;  %v1559_v60 = vpop.f32.mrb[32].mxu0  ;;  %v1826_v62 = vpack.c.bf16 %v1754_v52, %v1748_v20  ;;  %v1828_v1 = vpack.c.bf16 %v1756_v53, %v1750_v51  ;;  %11326 = vmatpush3.bf16.msra.mxu0 %v12166_v26 }
 0x43f   : > { %v1447_v9 = vadd.f32 %v1446_v55, %v14379_v32  ;;  %v1560_v2 = vadd.f32 %v1559_v60, %v14383_v37  ;;  %v1448_v43 = vpop.f32.mrb[17].mxu1  ;;  %v1561_v0 = vpop.f32.mrb[33].mxu0  ;;  %11327 = vmatprep.subr.bf16.mxu0 %v12167_v50 }
 0x440   : > { %v1449_v5 = vadd.f32 %v1448_v43, %v14387_v38  ;;  %v1562_v46 = vadd.f32 %v1561_v0, %v14391_v42  ;;  %v1450_v10 = vpop.f32.mrb[18].mxu1  ;;  %v1563_v11 = vpop.f32.mrb[34].mxu0  ;;  %2295 = vmatprep.mubr.bf16.mxu0 %v1826_v62  ;;  %2392 = vmatprep.mubr.bf16.mxu1 %v1828_v1 }
 0x441   : > { %v1451_v13 = vadd.f32 %v1450_v10, %v14379_v32  ;;  %v1564_v21 = vadd.f32 %v1563_v11, %v14383_v37  ;;  %v1452_v61 = vpop.f32.mrb[19].mxu1  ;;  %v1565_v17 = vpop.f32.mrb[35].mxu0  ;;  %2296 = vmatmul.mubr.bf16.gmra.mrb[60].mxu0 %v1825_v56  ;;  %2393 = vmatmul.mubr.bf16.gmra.mrb[76].mxu1 %v1827_v33  ;;  %v1759_v7 = vmax.f32 %v1447_v9, 0.0  ;;  %v1761_v58 = vmax.f32 %v1560_v2, 0.0 }
 0x442   : > { %v1453_v6 = vadd.f32 %v1452_v61, %v14387_v38  ;;  %v1566_v54 = vadd.f32 %v1565_v17, %v14391_v42  ;;  %11328 = vmatpush3.bf16.msra.mxu0 %v12168_v39  ;;  %v1760_v26 = vmax.f32 %v1449_v5, 0.0  ;;  %v1762_v23 = vmax.f32 %v1562_v46, 0.0 }
 0x443   : > { %v1765_v14 = vmax.f32 %v1451_v13, 0.0  ;;  %v1767_v59 = vmax.f32 %v1564_v21, 0.0  ;;  %11329 = vmatprep.subr.bf16.mxu0 %v12169_v4 }
 0x444   : > { %v1766_v18 = vmax.f32 %v1453_v6, 0.0  ;;  %v1768_v45 = vmax.f32 %v1566_v54, 0.0 }
 0x445   : > { %v1831_v19 = vpack.c.bf16 %v1765_v14, %v1759_v7  ;;  %v1833_v50 = vpack.c.bf16 %v1767_v59, %v1761_v58 }
 0x446   : > { %v1456_v20 = vpop.f32.mrb[20].mxu1  ;;  %v1569_v51 = vpop.f32.mrb[36].mxu0  ;;  %v1832_v52 = vpack.c.bf16 %v1766_v18, %v1760_v26  ;;  %v1834_v53 = vpack.c.bf16 %v1768_v45, %v1762_v23  ;;  %11330 = vmatpush3.bf16.msra.mxu0 %v12170_v22 }
 0x447   : > { %v1457_v56 = vadd.f32 %v1456_v20, %v14379_v32  ;;  %v1570_v33 = vadd.f32 %v1569_v51, %v14383_v37  ;;  %v1458_v55 = vpop.f32.mrb[21].mxu1  ;;  %v1571_v60 = vpop.f32.mrb[37].mxu0 }
 0x448   : > { %v1459_v62 = vadd.f32 %v1458_v55, %v14387_v38  ;;  %v1572_v1 = vadd.f32 %v1571_v60, %v14391_v42  ;;  %v1460_v39 = vpop.f32.mrb[22].mxu1  ;;  %v1573_v9 = vpop.f32.mrb[38].mxu0  ;;  %2303 = vmatprep.mubr.bf16.mxu0 %v1832_v52  ;;  %2400 = vmatprep.mubr.bf16.mxu1 %v1834_v53 }
 0x449   : > { %v1461_v2 = vadd.f32 %v1460_v39, %v14379_v32  ;;  %v1574_v43 = vadd.f32 %v1573_v9, %v14383_v37  ;;  %v1462_v0 = vpop.f32.mrb[23].mxu1  ;;  %v1575_v4 = vpop.f32.mrb[39].mxu0  ;;  %2304 = vmatmul.mubr.bf16.gmra.mrb[64].mxu0 %v1831_v19  ;;  %2401 = vmatmul.mubr.bf16.gmra.mrb[80].mxu1 %v1833_v50  ;;  %v1771_v10 = vmax.f32 %v1457_v56, 0.0  ;;  %v1773_v11 = vmax.f32 %v1570_v33, 0.0 }
 0x44a   : > { %v1463_v5 = vadd.f32 %v1462_v0, %v14387_v38  ;;  %v1576_v46 = vadd.f32 %v1575_v4, %v14391_v42  ;;  %v1772_v61 = vmax.f32 %v1459_v62, 0.0  ;;  %v1774_v17 = vmax.f32 %v1572_v1, 0.0 }
 0x44b   : > { %v1777_v13 = vmax.f32 %v1461_v2, 0.0  ;;  %v1779_v21 = vmax.f32 %v1574_v43, 0.0 }
 0x44c   : > { %v1778_v6 = vmax.f32 %v1463_v5, 0.0  ;;  %v1780_v54 = vmax.f32 %v1576_v46, 0.0 }
 0x44d   : > { %v1837_v22 = vpack.c.bf16 %v1777_v13, %v1771_v10  ;;  %v1839_v7 = vpack.c.bf16 %v1779_v21, %v1773_v11 }
 0x44e   : > { %v1466_v58 = vpop.f32.mrb[24].mxu1  ;;  %v1579_v14 = vpop.f32.mrb[40].mxu0  ;;  %v1838_v59 = vpack.c.bf16 %v1778_v6, %v1772_v61  ;;  %v1840_v26 = vpack.c.bf16 %v1780_v54, %v1774_v17  ;;  %v14465_v17 = vsub.s32 4, %v14359_v24  ;;  %v14468_v6 = vsub.s32 5, %v14359_v24 }
 0x44f   : > { %v1467_v23 = vadd.f32 %v1466_v58, %v14379_v32  ;;  %v1580_v18 = vadd.f32 %v1579_v14, %v14383_v37  ;;  %v1468_v45 = vpop.f32.mrb[25].mxu1  ;;  %v1581_v19 = vpop.f32.mrb[41].mxu0 }
 0x450   : > { %v1469_v50 = vadd.f32 %v1468_v45, %v14387_v38  ;;  %v1582_v20 = vadd.f32 %v1581_v19, %v14391_v42  ;;  %v1470_v51 = vpop.f32.mrb[26].mxu1  ;;  %v1583_v52 = vpop.f32.mrb[42].mxu0  ;;  %2311 = vmatprep.mubr.bf16.mxu0 %v1838_v59  ;;  %2408 = vmatprep.mubr.bf16.mxu1 %v1840_v26 }
 0x451   : > { %v1471_v53 = vadd.f32 %v1470_v51, %v14379_v32  ;;  %v1584_v56 = vadd.f32 %v1583_v52, %v14383_v37  ;;  %v1472_v33 = vpop.f32.mrb[27].mxu1  ;;  %v1585_v55 = vpop.f32.mrb[43].mxu0  ;;  %2312 = vmatmul.mubr.bf16.gmra.mrb[68].mxu0 %v1837_v22  ;;  %2409 = vmatmul.mubr.bf16.gmra.mrb[84].mxu1 %v1839_v7  ;;  %v1783_v1 = vmax.f32 %v1467_v23, 0.0  ;;  %v1785_v39 = vmax.f32 %v1580_v18, 0.0 }
 0x452   : > { %v1473_v60 = vadd.f32 %v1472_v33, %v14387_v38  ;;  %v1586_v62 = vadd.f32 %v1585_v55, %v14391_v42  ;;  %v1784_v43 = vmax.f32 %v1469_v50, 0.0  ;;  %v1786_v0 = vmax.f32 %v1582_v20, 0.0 }
 0x453   : > { %v1789_v9 = vmax.f32 %v1471_v53, 0.0  ;;  %v1791_v2 = vmax.f32 %v1584_v56, 0.0  ;;  %v14480_v51 = vrot.slane %v14363_v27, %v14465_v17  ;;  %v14484_v52 = vrot.slane %v14363_v27, %v14468_v6 }
 0x454   : > { %v1790_v4 = vmax.f32 %v1473_v60, 0.0  ;;  %v1792_v5 = vmax.f32 %v1586_v62, 0.0 }
 0x455   : > { %v1843_v46 = vpack.c.bf16 %v1789_v9, %v1783_v1  ;;  %v1845_v10 = vpack.c.bf16 %v1791_v2, %v1785_v39 }
 0x456   : > { %v1476_v11 = vpop.f32.mrb[28].mxu1  ;;  %v1589_v13 = vpop.f32.mrb[44].mxu0  ;;  %v1844_v21 = vpack.c.bf16 %v1790_v4, %v1784_v43  ;;  %v1846_v61 = vpack.c.bf16 %v1792_v5, %v1786_v0 }
 0x457   : > { %v1477_v54 = vadd.f32 %v1476_v11, %v14379_v32  ;;  %v1590_v22 = vadd.f32 %v1589_v13, %v14383_v37  ;;  %v1478_v7 = vpop.f32.mrb[29].mxu1  ;;  %v1591_v58 = vpop.f32.mrb[45].mxu0 }
 0x458   : > { %v1479_v14 = vadd.f32 %v1478_v7, %v14387_v38  ;;  %v1592_v59 = vadd.f32 %v1591_v58, %v14391_v42  ;;  %v1480_v26 = vpop.f32.mrb[30].mxu1  ;;  %v1593_v23 = vpop.f32.mrb[46].mxu0  ;;  %2319 = vmatprep.mubr.bf16.mxu0 %v1844_v21  ;;  %2416 = vmatprep.mubr.bf16.mxu1 %v1846_v61 }
 0x459   : > { %v1481_v18 = vadd.f32 %v1480_v26, %v14379_v32  ;;  %v1594_v45 = vadd.f32 %v1593_v23, %v14383_v37  ;;  %v1482_v24 = vpop.f32.mrb[31].mxu1  ;;  %v1595_v19 = vpop.f32.mrb[47].mxu0  ;;  %2320 = vmatmul.mubr.bf16.gmra.mrb[72].mxu0 %v1843_v46  ;;  %2417 = vmatmul.mubr.bf16.gmra.mrb[88].mxu1 %v1845_v10  ;;  %v1795_v53 = vmax.f32 %v1477_v54, 0.0  ;;  %v1797_v32 = vmax.f32 %v1590_v22, 0.0 }
 0x45a   : > { %v1483_v50 = vadd.f32 %v1482_v24, %v14387_v38  ;;  %v1596_v20 = vadd.f32 %v1595_v19, %v14391_v42  ;;  %v1796_v33 = vmax.f32 %v1479_v14, 0.0  ;;  %v1798_v55 = vmax.f32 %v1592_v59, 0.0 }
 0x45b   : > { %v1801_v56 = vmax.f32 %v1481_v18, 0.0  ;;  %v1803_v37 = vmax.f32 %v1594_v45, 0.0 }
 0x45c   : > { %v1802_v60 = vmax.f32 %v1483_v50, 0.0  ;;  %v1804_v62 = vmax.f32 %v1596_v20, 0.0 }
 0x45d   : > { %v1849_v1 = vpack.c.bf16 %v1801_v56, %v1795_v53  ;;  %v1851_v38 = vpack.c.bf16 %v1803_v37, %v1797_v32 }
 0x45e   : > { %v1632_v39 = vpop.f32.mrb[32].mxu1  ;;  %v1850_v42 = vpack.c.bf16 %v1802_v60, %v1796_v33  ;;  %v1852_v9 = vpack.c.bf16 %v1804_v62, %v1798_v55 }
 0x45f   : > { %v1633_v2 = vadd.f32 %v1632_v39, %v14480_v51  ;;  %v1634_v43 = vpop.f32.mrb[33].mxu1 }
 0x460   : > { %v1635_v0 = vadd.f32 %v1634_v43, %v14484_v52  ;;  %v1636_v27 = vpop.f32.mrb[34].mxu1  ;;  %2327 = vmatprep.mubr.bf16.mxu0 %v1850_v42  ;;  %2424 = vmatprep.mubr.bf16.mxu1 %v1852_v9 }
 0x461   : > { %v1637_v4 = vadd.f32 %v1636_v27, %v14480_v51  ;;  %v1638_v5 = vpop.f32.mrb[35].mxu1  ;;  %2328 = vmatmul.mubr.bf16.gmra.mrb[76].mxu0 %v1849_v1  ;;  %2425 = vmatmul.mubr.bf16.gmra.mrb[92].mxu1 %v1851_v38  ;;  %v1715_v10 = vmax.f32 %v1633_v2, 0.0 }
 0x462   : > { %v1639_v46 = vadd.f32 %v1638_v5, %v14484_v52  ;;  %v1716_v13 = vmax.f32 %v1635_v0, 0.0 }
 0x463   : > { %v1721_v11 = vmax.f32 %v1637_v4, 0.0 }
 0x464   : > { %v1722_v21 = vmax.f32 %v1639_v46, 0.0 }
 0x465   : > { %v1811_v61 = vpack.c.bf16 %v1721_v11, %v1715_v10 }
 0x466   : > { %v1642_v54 = vpop.f32.mrb[36].mxu1  ;;  %v1812_v22 = vpack.c.bf16 %v1722_v21, %v1716_v13 }
 0x467   : > { %v1643_v7 = vadd.f32 %v1642_v54, %v14480_v51  ;;  %v1644_v58 = vpop.f32.mrb[37].mxu1 }
 0x468   : > { %v1645_v14 = vadd.f32 %v1644_v58, %v14484_v52  ;;  %v1646_v59 = vpop.f32.mrb[38].mxu1  ;;  %2465 = vmatprep.mubr.bf16.mxu0 %v1812_v22 }
 0x469   : > { %v1647_v26 = vadd.f32 %v1646_v59, %v14480_v51  ;;  %v1648_v23 = vpop.f32.mrb[39].mxu1  ;;  %2466 = vmatmul.mubr.bf16.vlgmr.msra.gmra.mrb[80].mxu0 %v1811_v61  ;;  %v1727_v45 = vmax.f32 %v1643_v7, 0.0 }
 0x46a   : > { %v1649_v18 = vadd.f32 %v1648_v23, %v14484_v52  ;;  %v1728_v19 = vmax.f32 %v1645_v14, 0.0 }
 0x46b   : > { %v1733_v24 = vmax.f32 %v1647_v26, 0.0 }
 0x46c   : > { %v1734_v50 = vmax.f32 %v1649_v18, 0.0 }
 0x46d   : > { %v1817_v20 = vpack.c.bf16 %v1733_v24, %v1727_v45 }
 0x46e   : > { %v1652_v53 = vpop.f32.mrb[40].mxu1  ;;  %v1818_v32 = vpack.c.bf16 %v1734_v50, %v1728_v19 }
 0x46f   : > { %v1653_v56 = vadd.f32 %v1652_v53, %v14480_v51  ;;  %v1654_v37 = vpop.f32.mrb[41].mxu1 }
 0x470   : > { %v1655_v33 = vadd.f32 %v1654_v37, %v14484_v52  ;;  %v1656_v55 = vpop.f32.mrb[42].mxu1  ;;  %2473 = vmatprep.mubr.bf16.mxu0 %v1818_v32 }
 0x471   : > { %v1657_v60 = vadd.f32 %v1656_v55, %v14480_v51  ;;  %v1658_v62 = vpop.f32.mrb[43].mxu1  ;;  %2474 = vmatmul.mubr.bf16.gmra.mrb[84].mxu0 %v1817_v20  ;;  %v1739_v38 = vmax.f32 %v1653_v56, 0.0 }
 0x472   : > { %v1659_v1 = vadd.f32 %v1658_v62, %v14484_v52  ;;  %v1740_v42 = vmax.f32 %v1655_v33, 0.0 }
 0x473   : > { %v1745_v39 = vmax.f32 %v1657_v60, 0.0 }
 0x474   : > { %v1746_v9 = vmax.f32 %v1659_v1, 0.0 }
 0x475   : > { %v1823_v2 = vpack.c.bf16 %v1745_v39, %v1739_v38 }
 0x476   : > { %v1662_v43 = vpop.f32.mrb[44].mxu1  ;;  %v1824_v0 = vpack.c.bf16 %v1746_v9, %v1740_v42 }
 0x477   : > { %v1663_v27 = vadd.f32 %v1662_v43, %v14480_v51  ;;  %v1664_v4 = vpop.f32.mrb[45].mxu1 }
 0x478   : > { %v1665_v5 = vadd.f32 %v1664_v4, %v14484_v52  ;;  %v1666_v46 = vpop.f32.mrb[46].mxu1  ;;  %2481 = vmatprep.mubr.bf16.mxu0 %v1824_v0 }
 0x479   : > { %v1667_v10 = vadd.f32 %v1666_v46, %v14480_v51  ;;  %v1668_v11 = vpop.f32.mrb[47].mxu1  ;;  %2482 = vmatmul.mubr.bf16.gmra.mrb[88].mxu0 %v1823_v2  ;;  %v1751_v21 = vmax.f32 %v1663_v27, 0.0 }
 0x47a   : > { %v1669_v13 = vadd.f32 %v1668_v11, %v14484_v52  ;;  %v1752_v54 = vmax.f32 %v1665_v5, 0.0 }
 0x47b   : > { %v1757_v61 = vmax.f32 %v1667_v10, 0.0 }
 0x47c   : > { %v1758_v22 = vmax.f32 %v1669_v13, 0.0 }
 0x47d   : > { %v1829_v7 = vpack.c.bf16 %v1757_v61, %v1751_v21 }
 0x47e   : > { %v1672_v58 = vpop.f32.mrb[48].mxu1  ;;  %v1830_v14 = vpack.c.bf16 %v1758_v22, %v1752_v54 }
 0x47f   : > { %v1673_v59 = vadd.f32 %v1672_v58, %v14480_v51  ;;  %v1674_v26 = vpop.f32.mrb[49].mxu1 }
 0x480   : > { %v1675_v23 = vadd.f32 %v1674_v26, %v14484_v52  ;;  %v1676_v18 = vpop.f32.mrb[50].mxu1  ;;  %2489 = vmatprep.mubr.bf16.mxu0 %v1830_v14 }
 0x481   : > { %v1677_v45 = vadd.f32 %v1676_v18, %v14480_v51  ;;  %v1678_v24 = vpop.f32.mrb[51].mxu1  ;;  %2490 = vmatmul.mubr.bf16.gmra.mrb[92].mxu0 %v1829_v7  ;;  %v1763_v50 = vmax.f32 %v1673_v59, 0.0 }
 0x482   : > { %v1679_v19 = vadd.f32 %v1678_v24, %v14484_v52  ;;  %v1764_v53 = vmax.f32 %v1675_v23, 0.0 }
 0x483   : > { %v1769_v20 = vmax.f32 %v1677_v45, 0.0 }
 0x484   : > { %v1770_v32 = vmax.f32 %v1679_v19, 0.0 }
 0x485   : > { %v1835_v56 = vpack.c.bf16 %v1769_v20, %v1763_v50 }
 0x486   : > { %v1682_v37 = vpop.f32.mrb[52].mxu1  ;;  %v1836_v33 = vpack.c.bf16 %v1770_v32, %v1764_v53 }
 0x487   : > { %v1683_v55 = vadd.f32 %v1682_v37, %v14480_v51  ;;  %v1684_v60 = vpop.f32.mrb[53].mxu1 }
 0x488   : > { %v1685_v62 = vadd.f32 %v1684_v60, %v14484_v52  ;;  %v1686_v1 = vpop.f32.mrb[54].mxu1  ;;  %2497 = vmatprep.mubr.bf16.mxu0 %v1836_v33 }
 0x489   : > { %v1687_v38 = vadd.f32 %v1686_v1, %v14480_v51  ;;  %v1688_v39 = vpop.f32.mrb[55].mxu1  ;;  %2498 = vmatmul.mubr.bf16.gmra.mrb[96].mxu0 %v1835_v56  ;;  %v1775_v9 = vmax.f32 %v1683_v55, 0.0 }
 0x48a   : > { %v1689_v42 = vadd.f32 %v1688_v39, %v14484_v52  ;;  %v1776_v43 = vmax.f32 %v1685_v62, 0.0  ;;  %v14520_v39 = vld [vmem:[%s13925_s21 + $0x4] ss:$0 sm:$0xff] }
 0x48b   : > { %v1781_v2 = vmax.f32 %v1687_v38, 0.0 }
 0x48c   : > { %v1782_v0 = vmax.f32 %v1689_v42, 0.0 }
 0x48d   : > { %v1841_v27 = vpack.c.bf16 %v1781_v2, %v1775_v9 }
 0x48e   : > { %v1692_v4 = vpop.f32.mrb[56].mxu1  ;;  %v1842_v5 = vpack.c.bf16 %v1782_v0, %v1776_v43 }
 0x48f   : > { %v1693_v46 = vadd.f32 %v1692_v4, %v14480_v51  ;;  %v1694_v10 = vpop.f32.mrb[57].mxu1 }
 0x490   : > { %v1695_v11 = vadd.f32 %v1694_v10, %v14484_v52  ;;  %v1696_v13 = vpop.f32.mrb[58].mxu1  ;;  %2505 = vmatprep.mubr.bf16.mxu0 %v1842_v5 }
 0x491   : > { %v1697_v21 = vadd.f32 %v1696_v13, %v14480_v51  ;;  %v1698_v61 = vpop.f32.mrb[59].mxu1  ;;  %2506 = vmatmul.mubr.bf16.gmra.mrb[100].mxu0 %v1841_v27  ;;  %v1787_v22 = vmax.f32 %v1693_v46, 0.0 }
 0x492   : > { %v1699_v54 = vadd.f32 %v1698_v61, %v14484_v52  ;;  %v1788_v58 = vmax.f32 %v1695_v11, 0.0 }
 0x493   : > { %v1793_v7 = vmax.f32 %v1697_v21, 0.0 }
 0x494   : > { %v1794_v14 = vmax.f32 %v1699_v54, 0.0 }
 0x495   : > { %v1847_v59 = vpack.c.bf16 %v1793_v7, %v1787_v22 }
 0x496   : > { %v1848_v26 = vpack.c.bf16 %v1794_v14, %v1788_v58  ;;  %v1702_v23 = vpop.f32.mrb[60].mxu1 }
 0x497   : > { %v1703_v18 = vadd.f32 %v1702_v23, %v14480_v51  ;;  %v1704_v45 = vpop.f32.mrb[61].mxu1 }
 0x498   : > { %v1705_v24 = vadd.f32 %v1704_v45, %v14484_v52  ;;  %v1706_v19 = vpop.f32.mrb[62].mxu1  ;;  %2513 = vmatprep.mubr.bf16.mxu0 %v1848_v26 }
 0x499   : > { %v1707_v50 = vadd.f32 %v1706_v19, %v14480_v51  ;;  %v1708_v20 = vpop.f32.mrb[63].mxu1  ;;  %2514 = vmatmul.mubr.bf16.gmra.mrb[104].mxu0 %v1847_v59  ;;  %v1799_v32 = vmax.f32 %v1703_v18, 0.0 }
 0x49a   : > { %v1709_v53 = vadd.f32 %v1708_v20, %v14484_v52  ;;  %v1800_v37 = vmax.f32 %v1705_v24, 0.0 }
 0x49b   : > { %v1805_v56 = vmax.f32 %v1707_v50, 0.0 }
 0x49c   : > { %v1806_v33 = vmax.f32 %v1709_v53, 0.0 }
 0x49d   : > { %v1853_v55 = vpack.c.bf16 %v1805_v56, %v1799_v32 }
 0x49e   : > { %v1854_v60 = vpack.c.bf16 %v1806_v33, %v1800_v37 }
 0x4a0   : > { %2521 = vmatprep.mubr.bf16.mxu0 %v1854_v60 }
 0x4a1   : > { %2522 = vmatmul.mubr.bf16.gmra.mrb[108].mxu0 %v1853_v55 }
 0x4a2   : > { %3518 = vmatprep.mubr.bf16.mxu0 %v13528_v63 }
 0x4fc   : > { %v11203_v62 = vpop.f32.mrb[48].mxu0  ;;  %v11267_v1 = vpop.f32.mrb[64].mxu1 }
 0x4fd   : > { %v11204_v38 = vpop.f32.mrb[49].mxu0  ;;  %v11268_v51 = vpop.f32.mrb[65].mxu1 }
 0x4fe   : > { %v11205_v42 = vadd.f32 %v11204_v38, %v11203_v62  ;;  %v11269_v9 = vadd.f32 %v11268_v51, %v11267_v1  ;;  %v11206_v2 = vpop.f32.mrb[50].mxu0  ;;  %v11270_v52 = vpop.f32.mrb[66].mxu1 }
 0x4ff   : > { %v11207_v43 = vpop.f32.mrb[51].mxu0  ;;  %v11271_v0 = vpop.f32.mrb[67].mxu1 }
 0x500   : > { %v2274_v27 = vadd.f32 %v11205_v42, %v14520_v39  ;;  %v11208_v4 = vadd.f32 %v11207_v43, %v11206_v2  ;;  %v11272_v5 = vadd.f32 %v11271_v0, %v11270_v52 }
 0x502   : > { %v14523_v46 = vadd.f32 %v11269_v9, %v2274_v27  ;;  %v2277_v10 = vadd.f32 %v11208_v4, %v14520_v39 }
 0x504   : > { %v14526_v11 = vadd.f32 %v11272_v5, %v2277_v10  ;;  %v11209_v13 = vpop.f32.mrb[52].mxu0  ;;  %v11273_v21 = vpop.f32.mrb[68].mxu1 }
 0x505   : > { %v11210_v61 = vpop.f32.mrb[53].mxu0  ;;  %v11274_v54 = vpop.f32.mrb[69].mxu1 }
 0x506   : > { %v11211_v22 = vadd.f32 %v11210_v61, %v11209_v13  ;;  %v11275_v7 = vadd.f32 %v11274_v54, %v11273_v21  ;;  %v11212_v58 = vpop.f32.mrb[54].mxu0  ;;  %v11276_v14 = vpop.f32.mrb[70].mxu1 }
 0x507   : > { %v11213_v59 = vpop.f32.mrb[55].mxu0  ;;  %v11277_v26 = vpop.f32.mrb[71].mxu1 }
 0x508   : > { %v2282_v23 = vadd.f32 %v11211_v22, %v14520_v39  ;;  %v11214_v18 = vadd.f32 %v11213_v59, %v11212_v58  ;;  %v11278_v45 = vadd.f32 %v11277_v26, %v11276_v14 }
 0x50a   : > { %v14529_v24 = vadd.f32 %v11275_v7, %v2282_v23  ;;  %v2285_v19 = vadd.f32 %v11214_v18, %v14520_v39 }
 0x50c   : > { %v14532_v50 = vadd.f32 %v11278_v45, %v2285_v19  ;;  %v11215_v20 = vpop.f32.mrb[56].mxu0  ;;  %v11279_v53 = vpop.f32.mrb[72].mxu1 }
 0x50d   : > { %v11216_v32 = vpop.f32.mrb[57].mxu0  ;;  %v11280_v56 = vpop.f32.mrb[73].mxu1 }
 0x50e   : > { %v11217_v37 = vadd.f32 %v11216_v32, %v11215_v20  ;;  %v11281_v33 = vadd.f32 %v11280_v56, %v11279_v53  ;;  %v11218_v55 = vpop.f32.mrb[58].mxu0  ;;  %v11282_v60 = vpop.f32.mrb[74].mxu1 }
 0x50f   : > { %v11219_v62 = vpop.f32.mrb[59].mxu0  ;;  %v11283_v1 = vpop.f32.mrb[75].mxu1 }
 0x510   : > { %v2290_v38 = vadd.f32 %v11217_v37, %v14520_v39  ;;  %v11220_v51 = vadd.f32 %v11219_v62, %v11218_v55  ;;  %v11284_v42 = vadd.f32 %v11283_v1, %v11282_v60 }
 0x512   : > { %v14535_v9 = vadd.f32 %v11281_v33, %v2290_v38  ;;  %v2293_v2 = vadd.f32 %v11220_v51, %v14520_v39 }
 0x514   : > { %v14538_v52 = vadd.f32 %v11284_v42, %v2293_v2  ;;  %v11221_v43 = vpop.f32.mrb[60].mxu0  ;;  %v11285_v0 = vpop.f32.mrb[76].mxu1 }
 0x515   : > { %v11222_v27 = vpop.f32.mrb[61].mxu0  ;;  %v11286_v4 = vpop.f32.mrb[77].mxu1 }
 0x516   : > { %v11223_v5 = vadd.f32 %v11222_v27, %v11221_v43  ;;  %v11287_v10 = vadd.f32 %v11286_v4, %v11285_v0  ;;  %v11224_v13 = vpop.f32.mrb[62].mxu0  ;;  %v11288_v21 = vpop.f32.mrb[78].mxu1 }
 0x517   : > { %v11225_v61 = vpop.f32.mrb[63].mxu0  ;;  %v11289_v54 = vpop.f32.mrb[79].mxu1 }
 0x518   : > { %v2298_v22 = vadd.f32 %v11223_v5, %v14520_v39  ;;  %v11226_v7 = vadd.f32 %v11225_v61, %v11224_v13  ;;  %v11290_v58 = vadd.f32 %v11289_v54, %v11288_v21 }
 0x51a   : > { %v14541_v14 = vadd.f32 %v11287_v10, %v2298_v22  ;;  %v2301_v59 = vadd.f32 %v11226_v7, %v14520_v39 }
 0x51c   : > { %v14544_v26 = vadd.f32 %v11290_v58, %v2301_v59  ;;  %v11227_v23 = vpop.f32.mrb[64].mxu0  ;;  %v11291_v18 = vpop.f32.mrb[80].mxu1 }
 0x51d   : > { %v11228_v45 = vpop.f32.mrb[65].mxu0  ;;  %v11292_v19 = vpop.f32.mrb[81].mxu1 }
 0x51e   : > { %v11229_v20 = vadd.f32 %v11228_v45, %v11227_v23  ;;  %v11293_v53 = vadd.f32 %v11292_v19, %v11291_v18  ;;  %v11230_v32 = vpop.f32.mrb[66].mxu0  ;;  %v11294_v56 = vpop.f32.mrb[82].mxu1 }
 0x51f   : > { %v11231_v37 = vpop.f32.mrb[67].mxu0  ;;  %v11295_v33 = vpop.f32.mrb[83].mxu1 }
 0x520   : > { %v2306_v55 = vadd.f32 %v11229_v20, %v14520_v39  ;;  %v11232_v60 = vadd.f32 %v11231_v37, %v11230_v32  ;;  %v11296_v62 = vadd.f32 %v11295_v33, %v11294_v56 }
 0x522   : > { %v14547_v1 = vadd.f32 %v11293_v53, %v2306_v55  ;;  %v2309_v38 = vadd.f32 %v11232_v60, %v14520_v39 }
 0x524   : > { %v14550_v51 = vadd.f32 %v11296_v62, %v2309_v38  ;;  %v11233_v42 = vpop.f32.mrb[68].mxu0  ;;  %v11297_v2 = vpop.f32.mrb[84].mxu1 }
 0x525   : > { %v11234_v43 = vpop.f32.mrb[69].mxu0  ;;  %v11298_v0 = vpop.f32.mrb[85].mxu1 }
 0x526   : > { %v11235_v27 = vadd.f32 %v11234_v43, %v11233_v42  ;;  %v11299_v4 = vadd.f32 %v11298_v0, %v11297_v2  ;;  %v11236_v5 = vpop.f32.mrb[70].mxu0  ;;  %v11300_v10 = vpop.f32.mrb[86].mxu1 }
 0x527   : > { %v11237_v13 = vpop.f32.mrb[71].mxu0  ;;  %v11301_v21 = vpop.f32.mrb[87].mxu1 }
 0x528   : > { %v2314_v61 = vadd.f32 %v11235_v27, %v14520_v39  ;;  %v11238_v54 = vadd.f32 %v11237_v13, %v11236_v5  ;;  %v11302_v22 = vadd.f32 %v11301_v21, %v11300_v10 }
 0x52a   : > { %v14553_v7 = vadd.f32 %v11299_v4, %v2314_v61  ;;  %v2317_v58 = vadd.f32 %v11238_v54, %v14520_v39 }
 0x52c   : > { %v14556_v59 = vadd.f32 %v11302_v22, %v2317_v58  ;;  %v11239_v23 = vpop.f32.mrb[72].mxu0  ;;  %v11303_v18 = vpop.f32.mrb[88].mxu1 }
 0x52d   : > { %v11240_v45 = vpop.f32.mrb[73].mxu0  ;;  %v11304_v19 = vpop.f32.mrb[89].mxu1 }
 0x52e   : > { %v11241_v20 = vadd.f32 %v11240_v45, %v11239_v23  ;;  %v11305_v53 = vadd.f32 %v11304_v19, %v11303_v18  ;;  %v11242_v32 = vpop.f32.mrb[74].mxu0  ;;  %v11306_v56 = vpop.f32.mrb[90].mxu1 }
 0x52f   : > { %v11243_v37 = vpop.f32.mrb[75].mxu0  ;;  %v11307_v33 = vpop.f32.mrb[91].mxu1 }
 0x530   : > { %v2322_v55 = vadd.f32 %v11241_v20, %v14520_v39  ;;  %v11244_v60 = vadd.f32 %v11243_v37, %v11242_v32  ;;  %v11308_v62 = vadd.f32 %v11307_v33, %v11306_v56 }
 0x532   : > { %v14559_v38 = vadd.f32 %v11305_v53, %v2322_v55  ;;  %v2325_v42 = vadd.f32 %v11244_v60, %v14520_v39 }
 0x534   : > { %v14562_v2 = vadd.f32 %v11308_v62, %v2325_v42  ;;  %v11245_v43 = vpop.f32.mrb[76].mxu0  ;;  %v11309_v0 = vpop.f32.mrb[92].mxu1 }
 0x535   : > { %v11246_v27 = vpop.f32.mrb[77].mxu0  ;;  %v11310_v4 = vpop.f32.mrb[93].mxu1 }
 0x536   : > { %v11247_v5 = vadd.f32 %v11246_v27, %v11245_v43  ;;  %v11311_v10 = vadd.f32 %v11310_v4, %v11309_v0  ;;  %v11248_v13 = vpop.f32.mrb[78].mxu0  ;;  %v11312_v21 = vpop.f32.mrb[94].mxu1 }
 0x537   : > { %v11249_v61 = vpop.f32.mrb[79].mxu0  ;;  %v11313_v54 = vpop.f32.mrb[95].mxu1 }
 0x538   : > { %v2330_v22 = vadd.f32 %v11247_v5, %v14520_v39  ;;  %v11250_v58 = vadd.f32 %v11249_v61, %v11248_v13  ;;  %v11314_v23 = vadd.f32 %v11313_v54, %v11312_v21 }
 0x53a   : > { %v14565_v18 = vadd.f32 %v11311_v10, %v2330_v22  ;;  %v2333_v45 = vadd.f32 %v11250_v58, %v14520_v39 }
 0x53c   : > { %v14568_v19 = vadd.f32 %v11314_v23, %v2333_v45  ;;  %v11331_v20 = vpop.f32.mrb[80].mxu0 }
 0x53d   : > { %v11332_v53 = vpop.f32.mrb[81].mxu0 }
 0x53e   : > { %v11333_v32 = vadd.f32 %v11332_v53, %v11331_v20  ;;  %v11334_v56 = vpop.f32.mrb[82].mxu0 }
 0x53f   : > { %v11335_v37 = vpop.f32.mrb[83].mxu0 }
 0x540   : > { %v2468_v33 = vadd.f32 %v11333_v32, %v14523_v46  ;;  %v11336_v55 = vadd.f32 %v11335_v37, %v11334_v56 }
 0x542   : > { %v2471_v60 = vadd.f32 %v11336_v55, %v14526_v11  ;;  %v14573_v62 = vadd.f32 %v2468_v33, %v14169_v49 }
 0x544   : > { %v11337_v42 = vpop.f32.mrb[84].mxu0  ;;  %2546 = vadd.xlane.f32.xlu0 %v14573_v62  ;;  %v14577_v39 = vadd.f32 %v2471_v60, %v14172_v40 }
 0x545   : > { %v11338_v43 = vpop.f32.mrb[85].mxu0 }
 0x546   : > { %v11339_v0 = vadd.f32 %v11338_v43, %v11337_v42  ;;  %v11340_v27 = vpop.f32.mrb[86].mxu0  ;;  %2548 = vadd.xlane.f32.xlu1 %v14577_v39 }
 0x547   : > { %v11341_v4 = vpop.f32.mrb[87].mxu0 }
 0x548   : > { %v2476_v46 = vadd.f32 %v11339_v0, %v14529_v24  ;;  %v11342_v5 = vadd.f32 %v11341_v4, %v11340_v27 }
 0x54a   : > { %v2479_v11 = vadd.f32 %v11342_v5, %v14532_v50  ;;  %v14583_v49 = vadd.f32 %v2476_v46, %v14198_v16 }
 0x54c   : > { %v11343_v10 = vpop.f32.mrb[88].mxu0  ;;  %2550 = vadd.xlane.f32.xlu0 %v14583_v49  ;;  %v14587_v40 = vadd.f32 %v2479_v11, %v14192_v8 }
 0x54d   : > { %v11344_v13 = vpop.f32.mrb[89].mxu0 }
 0x54e   : > { %v11345_v21 = vadd.f32 %v11344_v13, %v11343_v10  ;;  %v11346_v61 = vpop.f32.mrb[90].mxu0  ;;  %2552 = vadd.xlane.f32.xlu1 %v14587_v40 }
 0x54f   : > { %v11347_v54 = vpop.f32.mrb[91].mxu0 }
 0x550   : > { %v2484_v24 = vadd.f32 %v11345_v21, %v14535_v9  ;;  %v11348_v22 = vadd.f32 %v11347_v54, %v11346_v61 }
 0x552   : > { %v2487_v50 = vadd.f32 %v11348_v22, %v14538_v52  ;;  %v14593_v16 = vadd.f32 %v2484_v24, %v14224_v34 }
 0x554   : > { %v11349_v58 = vpop.f32.mrb[92].mxu0  ;;  %2554 = vadd.xlane.f32.xlu0 %v14593_v16  ;;  %v14597_v8 = vadd.f32 %v2487_v50, %v14217_v15 }
 0x555   : > { %v11350_v23 = vpop.f32.mrb[93].mxu0 }
 0x556   : > { %v11351_v45 = vadd.f32 %v11350_v23, %v11349_v58  ;;  %v11352_v20 = vpop.f32.mrb[94].mxu0  ;;  %2556 = vadd.xlane.f32.xlu1 %v14597_v8 }
 0x557   : > { %v11353_v53 = vpop.f32.mrb[95].mxu0 }
 0x558   : > { %v2492_v9 = vadd.f32 %v11351_v45, %v14541_v14  ;;  %v11354_v32 = vadd.f32 %v11353_v53, %v11352_v20  ;;  %v12171_v20 = vld [vmem:[%s13932_s12 + $0x40] sm:$0xff]   ;;  %v12172_v53 = vld [vmem:[%s13932_s12 + $0x48] sm:$0xff]  }
 0x559   : > { %11827 = vmatprep.subr.bf16.mxu1 %v12171_v20 }
 0x55a   : > { %v2495_v52 = vadd.f32 %v11354_v32, %v14544_v26  ;;  %v14603_v34 = vadd.f32 %v2492_v9, %v14250_v12  ;;  %11828 = vmatpush3.bf16.msra.mxu1 %v12171_v20  ;;  %v12173_v9 = vld [vmem:[%s13932_s12 + $0x50] sm:$0xff]  }
 0x55b   : > { %11829 = vmatprep.subr.bf16.mxu1 %v12172_v53 }
 0x55c   : > { %v11355_v56 = vpop.f32.mrb[96].mxu0  ;;  %2558 = vadd.xlane.f32.xlu0 %v14603_v34  ;;  %v14607_v15 = vadd.f32 %v2495_v52, %v14243_v47 }
 0x55d   : > { %v11356_v37 = vpop.f32.mrb[97].mxu0 }
 0x55e   : > { %v11357_v33 = vadd.f32 %v11356_v37, %v11355_v56  ;;  %v11358_v55 = vpop.f32.mrb[98].mxu0  ;;  %2560 = vadd.xlane.f32.xlu1 %v14607_v15  ;;  %11830 = vmatpush3.bf16.msra.mxu1 %v12172_v53 }
 0x55f   : > { %v11359_v60 = vpop.f32.mrb[99].mxu0  ;;  %11831 = vmatprep.subr.bf16.mxu1 %v12173_v9 }
 0x560   : > { %v2500_v14 = vadd.f32 %v11357_v33, %v14547_v1  ;;  %v11360_v42 = vadd.f32 %v11359_v60, %v11358_v55 }
 0x562   : > { %v2503_v26 = vadd.f32 %v11360_v42, %v14550_v51  ;;  %v14613_v12 = vadd.f32 %v2500_v14, %v14274_v35  ;;  %11832 = vmatpush3.bf16.msra.mxu1 %v12173_v9  ;;  %v12177_v9 = vld [vmem:[%s13932_s12 + $0x70] sm:$0xff]  }
 0x564   : > { %v11361_v43 = vpop.f32.mrb[100].mxu0  ;;  %2562 = vadd.xlane.f32.xlu0 %v14613_v12  ;;  %v14617_v47 = vadd.f32 %v2503_v26, %v14268_v28 }
 0x565   : > { %v11362_v0 = vpop.f32.mrb[101].mxu0 }
 0x566   : > { %v11363_v27 = vadd.f32 %v11362_v0, %v11361_v43  ;;  %v11364_v4 = vpop.f32.mrb[102].mxu0  ;;  %2564 = vadd.xlane.f32.xlu1 %v14617_v47 }
 0x567   : > { %v11365_v46 = vpop.f32.mrb[103].mxu0 }
 0x568   : > { %v2508_v1 = vadd.f32 %v11363_v27, %v14553_v7  ;;  %v11366_v5 = vadd.f32 %v11365_v46, %v11364_v4 }
 0x56a   : > { %v2511_v51 = vadd.f32 %v11366_v5, %v14556_v59  ;;  %v14623_v35 = vadd.f32 %v2508_v1, %v14292_v48 }
 0x56c   : > { %v11367_v11 = vpop.f32.mrb[104].mxu0  ;;  %2566 = vadd.xlane.f32.xlu0 %v14623_v35  ;;  %v14627_v28 = vadd.f32 %v2511_v51, %v14288_v3 }
 0x56d   : > { %v11368_v10 = vpop.f32.mrb[105].mxu0 }
 0x56e   : > { %v11369_v13 = vadd.f32 %v11368_v10, %v11367_v11  ;;  %v11370_v21 = vpop.f32.mrb[106].mxu0  ;;  %2568 = vadd.xlane.f32.xlu1 %v14627_v28  ;;  %v12175_v10 = vld [vmem:[%s13932_s12 + $0x60] sm:$0xff]  }
 0x56f   : > { %v11371_v61 = vpop.f32.mrb[107].mxu0 }
 0x570   : > { %v2516_v7 = vadd.f32 %v11369_v13, %v14559_v38  ;;  %v11372_v54 = vadd.f32 %v11371_v61, %v11370_v21 }
 0x572   : > { %v2519_v59 = vadd.f32 %v11372_v54, %v14562_v2  ;;  %v14633_v48 = vadd.f32 %v2516_v7, %v14310_v57 }
 0x574   : > { %v11373_v24 = vpop.f32.mrb[108].mxu0  ;;  %2570 = vadd.xlane.f32.xlu0 %v14633_v48  ;;  %v14637_v3 = vadd.f32 %v2519_v59, %v14306_v25 }
 0x575   : > { %v11374_v22 = vpop.f32.mrb[109].mxu0 }
 0x576   : > { %v11375_v50 = vadd.f32 %v11374_v22, %v11373_v24  ;;  %v11376_v58 = vpop.f32.mrb[110].mxu0  ;;  %2572 = vadd.xlane.f32.xlu1 %v14637_v3 }
 0x577   : > { %v11377_v38 = vpop.f32.mrb[111].mxu0 }
 0x578   : > { %v2524_v2 = vadd.f32 %v11375_v50, %v14565_v18  ;;  %v11378_v57 = vadd.f32 %v11377_v38, %v11376_v58  ;;  %v12174_v18 = vld [vmem:[%s13932_s12 + $0x58] sm:$0xff]  }
 0x579   : > { %11833 = vmatprep.subr.bf16.mxu1 %v12174_v18 }
 0x57a   : > { %v2527_v23 = vadd.f32 %v11378_v57, %v14568_v19  ;;  %v14643_v45 = vadd.f32 %v2524_v2, %v14323_v36  ;;  %11834 = vmatpush3.bf16.msra.mxu1 %v12174_v18 }
 0x57b   : > { %11835 = vmatprep.subr.bf16.mxu1 %v12175_v10 }
 0x57c   : > { %2574 = vadd.xlane.f32.xlu0 %v14643_v45  ;;  %v14647_v25 = vadd.f32 %v2527_v23, %v14320_v44  ;;  %v12176_v23 = vld [vmem:[%s13932_s12 + $0x68] sm:$0xff]  }
 0x57e   : > { %2576 = vadd.xlane.f32.xlu1 %v14647_v25  ;;  %11836 = vmatpush3.bf16.msra.mxu1 %v12175_v10 }
 0x57f   : > { %11837 = vmatprep.subr.bf16.mxu1 %v12176_v23 }
 0x582   : > { %11838 = vmatpush3.bf16.msra.mxu1 %v12176_v23  ;;  %v14745_v23 = vld [vmem:[%s13925_s21 + $0x6] ss:$0 sm:$0xff] }
 0x583   : > { %11839 = vmatprep.subr.bf16.mxu1 %v12177_v9 }
 0x586   : > { %11840 = vmatpush3.bf16.msra.mxu1 %v12177_v9 }
 0x5d1   : > { %v2547_v36 = vpop.xlane.xlu0 %2546 }
 0x5d2   : > { %v2578_v19 = vmul.f32 0.0078125, %v2547_v36 }
 0x5d3   : > { %v2549_v32 = vpop.xlane.xlu1 %2548 }
 0x5d4   : > { %v2579_v52 = vmul.f32 0.0078125, %v2549_v32  ;;  %v14655_v44 = vsub.f32 %v14573_v62, %v2578_v19 }
 0x5d6   : > { %v2610_v56 = vmul.f32 %v14655_v44, %v14655_v44  ;;  %v14660_v37 = vsub.f32 %v14577_v39, %v2579_v52 }
 0x5d8   : > { %2626 = vadd.xlane.f32.xlu0 %v2610_v56  ;;  %v2611_v33 = vmul.f32 %v14660_v37, %v14660_v37 }
 0x5d9   : > { %v2551_v55 = vpop.xlane.xlu0 %2550 }
 0x5da   : > { %v2580_v60 = vmul.f32 0.0078125, %v2551_v55  ;;  %2628 = vadd.xlane.f32.xlu1 %v2611_v33 }
 0x5db   : > { %v2553_v14 = vpop.xlane.xlu1 %2552 }
 0x5dc   : > { %v2581_v42 = vmul.f32 0.0078125, %v2553_v14  ;;  %v14665_v26 = vsub.f32 %v14583_v49, %v2580_v60 }
 0x5de   : > { %v2612_v62 = vmul.f32 %v14665_v26, %v14665_v26  ;;  %v14670_v43 = vsub.f32 %v14587_v40, %v2581_v42 }
 0x5e0   : > { %2630 = vadd.xlane.f32.xlu0 %v2612_v62  ;;  %v2613_v39 = vmul.f32 %v14670_v43, %v14670_v43 }
 0x5e1   : > { %v2555_v0 = vpop.xlane.xlu0 %2554 }
 0x5e2   : > { %v2582_v27 = vmul.f32 0.0078125, %v2555_v0  ;;  %2632 = vadd.xlane.f32.xlu1 %v2613_v39 }
 0x5e3   : > { %v2557_v4 = vpop.xlane.xlu1 %2556 }
 0x5e4   : > { %v2583_v46 = vmul.f32 0.0078125, %v2557_v4  ;;  %v14675_v1 = vsub.f32 %v14593_v16, %v2582_v27 }
 0x5e6   : > { %v2614_v49 = vmul.f32 %v14675_v1, %v14675_v1  ;;  %v14680_v5 = vsub.f32 %v14597_v8, %v2583_v46 }
 0x5e8   : > { %2634 = vadd.xlane.f32.xlu0 %v2614_v49  ;;  %v2615_v40 = vmul.f32 %v14680_v5, %v14680_v5 }
 0x5e9   : > { %v2559_v51 = vpop.xlane.xlu0 %2558 }
 0x5ea   : > { %v2584_v11 = vmul.f32 0.0078125, %v2559_v51  ;;  %2636 = vadd.xlane.f32.xlu1 %v2615_v40 }
 0x5eb   : > { %v2561_v13 = vpop.xlane.xlu1 %2560 }
 0x5ec   : > { %v2585_v21 = vmul.f32 0.0078125, %v2561_v13  ;;  %v14686_v61 = vsub.f32 %v14603_v34, %v2584_v11 }
 0x5ee   : > { %v2616_v16 = vmul.f32 %v14686_v61, %v14686_v61  ;;  %v14691_v8 = vsub.f32 %v14607_v15, %v2585_v21 }
 0x5f0   : > { %2638 = vadd.xlane.f32.xlu0 %v2616_v16  ;;  %v2617_v7 = vmul.f32 %v14691_v8, %v14691_v8 }
 0x5f1   : > { %v2563_v54 = vpop.xlane.xlu0 %2562 }
 0x5f2   : > { %v2586_v59 = vmul.f32 0.0078125, %v2563_v54  ;;  %2640 = vadd.xlane.f32.xlu1 %v2617_v7  ;;  %v14739_v7 = vld [vmem:[%s13925_s21 + $0x5] ss:$0 sm:$0xff] }
 0x5f3   : > { %v2565_v24 = vpop.xlane.xlu1 %2564 }
 0x5f4   : > { %v2587_v22 = vmul.f32 0.0078125, %v2565_v24  ;;  %v14696_v34 = vsub.f32 %v14613_v12, %v2586_v59 }
 0x5f6   : > { %v2618_v50 = vmul.f32 %v14696_v34, %v14696_v34  ;;  %v14701_v15 = vsub.f32 %v14617_v47, %v2587_v22 }
 0x5f8   : > { %2642 = vadd.xlane.f32.xlu0 %v2618_v50  ;;  %v2619_v58 = vmul.f32 %v14701_v15, %v14701_v15 }
 0x5f9   : > { %v2567_v38 = vpop.xlane.xlu0 %2566 }
 0x5fa   : > { %v2588_v2 = vmul.f32 0.0078125, %v2567_v38  ;;  %2644 = vadd.xlane.f32.xlu1 %v2619_v58 }
 0x5fb   : > { %v2569_v57 = vpop.xlane.xlu1 %2568 }
 0x5fc   : > { %v2589_v20 = vmul.f32 0.0078125, %v2569_v57  ;;  %v14707_v12 = vsub.f32 %v14623_v35, %v2588_v2  ;;  %v12178_v35 = vld [vmem:[%s13932_s12 + $0x78] sm:$0xff]  }
 0x5fd   : > { %11841 = vmatprep.subr.bf16.mxu1 %v12178_v35 }
 0x5fe   : > { %v2620_v53 = vmul.f32 %v14707_v12, %v14707_v12  ;;  %v14712_v47 = vsub.f32 %v14627_v28, %v2589_v20  ;;  %11842 = vmatpush3.bf16.msra.mxu1 %v12178_v35 }
 0x600   : > { %2646 = vadd.xlane.f32.xlu0 %v2620_v53  ;;  %v2621_v18 = vmul.f32 %v14712_v47, %v14712_v47 }
 0x601   : > { %v2571_v36 = vpop.xlane.xlu0 %2570 }
 0x602   : > { %v2590_v19 = vmul.f32 0.0078125, %v2571_v36  ;;  %2648 = vadd.xlane.f32.xlu1 %v2621_v18 }
 0x603   : > { %v2573_v32 = vpop.xlane.xlu1 %2572 }
 0x604   : > { %v2591_v52 = vmul.f32 0.0078125, %v2573_v32  ;;  %v14719_v56 = vsub.f32 %v14633_v48, %v2590_v19 }
 0x606   : > { %v2622_v28 = vmul.f32 %v14719_v56, %v14719_v56  ;;  %v14724_v33 = vsub.f32 %v14637_v3, %v2591_v52 }
 0x608   : > { %2650 = vadd.xlane.f32.xlu0 %v2622_v28  ;;  %v2623_v55 = vmul.f32 %v14724_v33, %v14724_v33 }
 0x609   : > { %v2575_v60 = vpop.xlane.xlu0 %2574 }
 0x60a   : > { %v2592_v14 = vmul.f32 0.0078125, %v2575_v60  ;;  %2652 = vadd.xlane.f32.xlu1 %v2623_v55 }
 0x60b   : > { %v2577_v42 = vpop.xlane.xlu1 %2576 }
 0x60c   : > { %v2593_v62 = vmul.f32 0.0078125, %v2577_v42  ;;  %v14729_v48 = vsub.f32 %v14643_v45, %v2592_v14 }
 0x60e   : > { %v2624_v39 = vmul.f32 %v14729_v48, %v14729_v48  ;;  %v14734_v0 = vsub.f32 %v14647_v25, %v2593_v62 }
 0x610   : > { %2654 = vadd.xlane.f32.xlu0 %v2624_v39  ;;  %v2625_v3 = vmul.f32 %v14734_v0, %v14734_v0 }
 0x612   : > { %2656 = vadd.xlane.f32.xlu1 %v2625_v3 }
 0x665   : > { %v2627_v27 = vpop.xlane.xlu0 %2626 }
 0x666   : > { %v2658_v4 = vmul.f32 0.0078125, %v2627_v27 }
 0x667   : > { %v2629_v46 = vpop.xlane.xlu1 %2628 }
 0x668   : > { %v2674_v49 = vadd.f32 1e-05, %v2658_v4  ;;  %v2659_v40 = vmul.f32 0.0078125, %v2629_v46 }
 0x66a   : > { %12459 = vrsqrt.f32 %v2674_v49  ;;  %v2675_v45 = vadd.f32 1e-05, %v2659_v40 }
 0x66c   : > { %12461 = vrsqrt.f32 %v2675_v45 }
 0x66d   : > { %v2631_v51 = vpop.xlane.xlu0 %2630 }
 0x66e   : > { %v2660_v11 = vmul.f32 0.0078125, %v2631_v51 }
 0x66f   : > { %v2633_v10 = vpop.xlane.xlu1 %2632 }
 0x670   : > { %v2676_v13 = vadd.f32 1e-05, %v2660_v11  ;;  %v2661_v25 = vmul.f32 0.0078125, %v2633_v10 }
 0x672   : > { %12463 = vrsqrt.f32 %v2676_v13  ;;  %v2677_v21 = vadd.f32 1e-05, %v2661_v25 }
 0x674   : > { %v12460_v16 = vpop.eup %12459  ;;  %12465 = vrsqrt.f32 %v2677_v21 }
 0x675   : > { %v2635_v54 = vpop.xlane.xlu0 %2634  ;;  %v2706_v59 = vmul.f32 %v12460_v16, %v14655_v44 }
 0x676   : > { %v12462_v24 = vpop.eup %12461  ;;  %v2662_v22 = vmul.f32 0.0078125, %v2635_v54 }
 0x677   : > { %v2637_v50 = vpop.xlane.xlu1 %2636  ;;  %v2707_v58 = vmul.f32 %v12462_v24, %v14660_v37  ;;  %v2722_v38 = vmul.f32 %v2706_v59, %v14739_v7 }
 0x678   : > { %v2678_v2 = vadd.f32 1e-05, %v2662_v22  ;;  %v2663_v57 = vmul.f32 0.0078125, %v2637_v50 }
 0x679   : > { %v2723_v20 = vmul.f32 %v2707_v58, %v14739_v7  ;;  %v14749_v9 = vadd.f32 %v2722_v38, %v14745_v23 }
 0x67a   : > { %12467 = vrsqrt.f32 %v2678_v2  ;;  %v2679_v53 = vadd.f32 1e-05, %v2663_v57 }
 0x67b   : > { %v14752_v44 = vadd.f32 %v2723_v20, %v14745_v23 }
 0x67c   : > { %v12464_v18 = vpop.eup %12463  ;;  %12469 = vrsqrt.f32 %v2679_v53 }
 0x67d   : > { %v2708_v37 = vmul.f32 %v12464_v18, %v14665_v26  ;;  %v2639_v36 = vpop.xlane.xlu0 %2638  ;;  %v2764_v19 = vpack.c.bf16 %v14752_v44, %v14749_v9 }
 0x67e   : > { %v12466_v35 = vpop.eup %12465  ;;  %v2664_v32 = vmul.f32 0.0078125, %v2639_v36 }
 0x67f   : > { %v2724_v52 = vmul.f32 %v2708_v37, %v14739_v7  ;;  %v2709_v28 = vmul.f32 %v12466_v35, %v14670_v43  ;;  %v2641_v55 = vpop.xlane.xlu1 %2640  ;;  %11843 = vmatprep.mubr.bf16.mxu1 %v2764_v19 }
 0x680   : > { %v2680_v60 = vadd.f32 1e-05, %v2664_v32  ;;  %v2665_v14 = vmul.f32 0.0078125, %v2641_v55 }
 0x681   : > { %v2725_v42 = vmul.f32 %v2709_v28, %v14739_v7  ;;  %v14761_v26 = vadd.f32 %v2724_v52, %v14745_v23 }
 0x682   : > { %12471 = vrsqrt.f32 %v2680_v60  ;;  %v2681_v62 = vadd.f32 1e-05, %v2665_v14 }
 0x683   : > { %v14764_v39 = vadd.f32 %v2725_v42, %v14745_v23 }
 0x684   : > { %v12468_v3 = vpop.eup %12467  ;;  %12473 = vrsqrt.f32 %v2681_v62 }
 0x685   : > { %v2643_v27 = vpop.xlane.xlu0 %2642  ;;  %v2765_v43 = vpack.c.bf16 %v14764_v39, %v14761_v26  ;;  %v2710_v4 = vmul.f32 %v12468_v3, %v14675_v1 }
 0x686   : > { %v12470_v46 = vpop.eup %12469  ;;  %v2666_v49 = vmul.f32 0.0078125, %v2643_v27 }
 0x687   : > { %v2645_v40 = vpop.xlane.xlu1 %2644  ;;  %11844 = vmatmul.mubr.bf16.vlgmr.msra.gmra.mrb[96].mxu1 %v2765_v43  ;;  %v2711_v45 = vmul.f32 %v12470_v46, %v14680_v5  ;;  %v2726_v51 = vmul.f32 %v2710_v4, %v14739_v7 }
 0x688   : > { %v2682_v11 = vadd.f32 1e-05, %v2666_v49  ;;  %v2667_v10 = vmul.f32 0.0078125, %v2645_v40 }
 0x689   : > { %v2727_v13 = vmul.f32 %v2711_v45, %v14739_v7  ;;  %v14773_v21 = vadd.f32 %v2726_v51, %v14745_v23 }
 0x68a   : > { %12475 = vrsqrt.f32 %v2682_v11  ;;  %v2683_v25 = vadd.f32 1e-05, %v2667_v10 }
 0x68b   : > { %v14776_v16 = vadd.f32 %v2727_v13, %v14745_v23 }
 0x68c   : > { %v12472_v1 = vpop.eup %12471  ;;  %12477 = vrsqrt.f32 %v2683_v25 }
 0x68d   : > { %v2647_v54 = vpop.xlane.xlu0 %2646  ;;  %v2766_v5 = vpack.c.bf16 %v14776_v16, %v14773_v21  ;;  %v2712_v59 = vmul.f32 %v12472_v1, %v14686_v61 }
 0x68e   : > { %v12474_v24 = vpop.eup %12473  ;;  %v2668_v22 = vmul.f32 0.0078125, %v2647_v54 }
 0x68f   : > { %v2649_v50 = vpop.xlane.xlu1 %2648  ;;  %11847 = vmatprep.mubr.bf16.mxu1 %v2766_v5  ;;  %v2713_v58 = vmul.f32 %v12474_v24, %v14691_v8  ;;  %v2728_v38 = vmul.f32 %v2712_v59, %v14739_v7 }
 0x690   : > { %v2684_v2 = vadd.f32 1e-05, %v2668_v22  ;;  %v2669_v57 = vmul.f32 0.0078125, %v2649_v50 }
 0x691   : > { %v2729_v20 = vmul.f32 %v2713_v58, %v14739_v7  ;;  %v14785_v18 = vadd.f32 %v2728_v38, %v14745_v23 }
 0x692   : > { %12479 = vrsqrt.f32 %v2684_v2  ;;  %v2685_v53 = vadd.f32 1e-05, %v2669_v57 }
 0x693   : > { %v14788_v37 = vadd.f32 %v2729_v20, %v14745_v23 }
 0x694   : > { %v12476_v61 = vpop.eup %12475  ;;  %12481 = vrsqrt.f32 %v2685_v53 }
 0x695   : > { %v2651_v36 = vpop.xlane.xlu0 %2650  ;;  %v2767_v8 = vpack.c.bf16 %v14788_v37, %v14785_v18  ;;  %v2714_v19 = vmul.f32 %v12476_v61, %v14696_v34 }
 0x696   : > { %v12478_v35 = vpop.eup %12477  ;;  %v2670_v32 = vmul.f32 0.0078125, %v2651_v36 }
 0x697   : > { %v2653_v52 = vpop.xlane.xlu1 %2652  ;;  %11848 = vmatmul.mubr.bf16.gmra.mrb[100].mxu1 %v2767_v8  ;;  %v2715_v28 = vmul.f32 %v12478_v35, %v14701_v15  ;;  %v2730_v55 = vmul.f32 %v2714_v19, %v14739_v7 }
 0x698   : > { %v2686_v60 = vadd.f32 1e-05, %v2670_v32  ;;  %v2671_v14 = vmul.f32 0.0078125, %v2653_v52 }
 0x699   : > { %v2731_v42 = vmul.f32 %v2715_v28, %v14739_v7  ;;  %v14797_v3 = vadd.f32 %v2730_v55, %v14745_v23 }
 0x69a   : > { %12483 = vrsqrt.f32 %v2686_v60  ;;  %v2687_v62 = vadd.f32 1e-05, %v2671_v14 }
 0x69b   : > { %v14800_v27 = vadd.f32 %v2731_v42, %v14745_v23 }
 0x69c   : > { %v12480_v34 = vpop.eup %12479  ;;  %12485 = vrsqrt.f32 %v2687_v62 }
 0x69d   : > { %v2655_v43 = vpop.xlane.xlu0 %2654  ;;  %v2768_v15 = vpack.c.bf16 %v14800_v27, %v14797_v3  ;;  %v2716_v4 = vmul.f32 %v12480_v34, %v14707_v12 }
 0x69e   : > { %v12482_v46 = vpop.eup %12481  ;;  %v2672_v49 = vmul.f32 0.0078125, %v2655_v43 }
 0x69f   : > { %v2657_v40 = vpop.xlane.xlu1 %2656  ;;  %11851 = vmatprep.mubr.bf16.mxu1 %v2768_v15  ;;  %v2717_v45 = vmul.f32 %v12482_v46, %v14712_v47  ;;  %v2732_v51 = vmul.f32 %v2716_v4, %v14739_v7 }
 0x6a0   : > { %v2688_v11 = vadd.f32 1e-05, %v2672_v49  ;;  %v2673_v10 = vmul.f32 0.0078125, %v2657_v40 }
 0x6a1   : > { %v2733_v13 = vmul.f32 %v2717_v45, %v14739_v7  ;;  %v14809_v1 = vadd.f32 %v2732_v51, %v14745_v23 }
 0x6a2   : > { %12487 = vrsqrt.f32 %v2688_v11  ;;  %v2689_v25 = vadd.f32 1e-05, %v2673_v10 }
 0x6a3   : > { %v14812_v54 = vadd.f32 %v2733_v13, %v14745_v23 }
 0x6a4   : > { %v12484_v12 = vpop.eup %12483  ;;  %12489 = vrsqrt.f32 %v2689_v25 }
 0x6a5   : > { %v2769_v5 = vpack.c.bf16 %v14812_v54, %v14809_v1  ;;  %v2718_v47 = vmul.f32 %v12484_v12, %v14719_v56 }
 0x6a6   : > { %v12486_v59 = vpop.eup %12485 }
 0x6a7   : > { %11852 = vmatmul.mubr.bf16.gmra.mrb[104].mxu1 %v2769_v5  ;;  %v2719_v24 = vmul.f32 %v12486_v59, %v14724_v33  ;;  %v2734_v22 = vmul.f32 %v2718_v47, %v14739_v7 }
 0x6a9   : > { %v2735_v50 = vmul.f32 %v2719_v24, %v14739_v7  ;;  %v14821_v58 = vadd.f32 %v2734_v22, %v14745_v23 }
 0x6ab   : > { %v14824_v38 = vadd.f32 %v2735_v50, %v14745_v23 }
 0x6ac   : > { %v12488_v2 = vpop.eup %12487 }
 0x6ad   : > { %v2770_v57 = vpack.c.bf16 %v14824_v38, %v14821_v58  ;;  %v2720_v56 = vmul.f32 %v12488_v2, %v14729_v48  ;;  %v10178_v48 = vld [vmem:[%s13925_s21 + $0x31] ss:$0 sm:$0xff] }
 0x6ae   : > { %v12490_v20 = vpop.eup %12489 }
 0x6af   : > { %11855 = vmatprep.mubr.bf16.mxu1 %v2770_v57  ;;  %v2721_v33 = vmul.f32 %v12490_v20, %v14734_v0  ;;  %v2736_v53 = vmul.f32 %v2720_v56, %v14739_v7  ;;  %v12179_v20 = vld [vmem:[%s13934_s13 + $0x180] ss:$24 sps:$4 sm:$0xff]  }
 0x6b1   : > { %v2737_v61 = vmul.f32 %v2721_v33, %v14739_v7  ;;  %v14833_v36 = vadd.f32 %v2736_v53, %v14745_v23  ;;  %v12181_v33 = vld [vmem:[%s13934_s13 + $0x184] ss:$24 sps:$4 sm:$0xff]   ;;  %v12184_v53 = vld [vmem:[%s13934_s13 + $0x1b4] ss:$24 sps:$4 sm:$0xff]  }
 0x6b2   : > { %3486 = vmatprep.subr.bf16.mxu0 %v12181_v33 }
 0x6b3   : > { %v14836_v8 = vadd.f32 %v2737_v61, %v14745_v23  ;;  %3487 = vmatpush1.bf16.msra.mxu0 %v12179_v20  ;;  %v12194_v61 = vld [vmem:[%s13934_s13 + $0x188] ss:$24 sps:$4 sm:$0xff]   ;;  %v12208_v20 = vld [vmem:[%s13934_s13 + $0x21c] ss:$24 sps:$4 sm:$0xff]  }
 0x6b4   : > { %3488 = vmatprep.subr.bf16.mxu0 %v12184_v53  ;;  %v12214_v53 = vld [vmem:[%s13934_s13 + $0x24c] ss:$24 sps:$4 sm:$0xff]  }
 0x6b5   : > { %v2771_v19 = vpack.c.bf16 %v14836_v8, %v14833_v36 }
 0x6b7   : > { %11856 = vmatmul.mubr.bf16.gmra.mrb[108].mxu1 %v2771_v19  ;;  %v12187_v19 = vld [vmem:[%s13934_s13 + $0x1e4] ss:$24 sps:$4 sm:$0xff]  }
 0x6b8   : > { %3631 = vmatprep.mubr.bf16.mxu1 %v13528_v63 }
 0x75a   : > { %v11845_v35 = vpop.f32.mrb[96].mxu1 }
 0x75b   : > { %v2871_v32 = vpop.f32.mrb[97].mxu1  ;;  %v2880_v55 = vadd.f32 %v11845_v35, %v10178_v48  ;;  %v12185_v35 = vld [vmem:[%s13934_s13 + $0x1e0] ss:$24 sps:$4 sm:$0xff]  }
 0x75c   : > { %v2872_v0 = vadd.f32 %v10178_v48, %v2871_v32  ;;  %v11846_v52 = vpop.f32.mrb[98].mxu1  ;;  %v12190_v32 = vld [vmem:[%s13934_s13 + $0x214] ss:$24 sps:$4 sm:$0xff]  }
 0x75d   : > { %v2874_v28 = vpop.f32.mrb[99].mxu1  ;;  %v2883_v14 = vadd.f32 %v11846_v52, %v10178_v48  ;;  %v14851_v42 = vadd.f32 %v2880_v55, %v14761_v26  ;;  %v12193_v52 = vld [vmem:[%s13934_s13 + $0x244] ss:$24 sps:$4 sm:$0xff]  }
 0x75e   : > { %v2875_v7 = vadd.f32 %v10178_v48, %v2874_v28  ;;  %v14843_v60 = vadd.f32 %v2872_v0, %v14749_v9  ;;  %v12188_v0 = vld [vmem:[%s13934_s13 + $0x210] ss:$24 sps:$4 sm:$0xff]   ;;  %v12191_v28 = vld [vmem:[%s13934_s13 + $0x240] ss:$24 sps:$4 sm:$0xff]  }
 0x75f   : > { %v14855_v62 = vadd.f32 %v2883_v14, %v14764_v39 }
 0x760   : > { %2950 = vadd.xlane.f32.xlu0 %v14843_v60  ;;  %v14847_v23 = vadd.f32 %v2875_v7, %v14752_v44 }
 0x762   : > { %2952 = vadd.xlane.f32.xlu1 %v14847_v23 }
 0x764   : > { %2954 = vadd.xlane.f32.xlu0 %v14851_v42 }
 0x766   : > { %2956 = vadd.xlane.f32.xlu1 %v14855_v62 }
 0x76a   : > { %v11849_v9 = vpop.f32.mrb[100].mxu1 }
 0x76b   : > { %v2887_v34 = vpop.f32.mrb[101].mxu1  ;;  %v2896_v46 = vadd.f32 %v11849_v9, %v10178_v48 }
 0x76c   : > { %v2888_v43 = vadd.f32 %v10178_v48, %v2887_v34  ;;  %v11850_v15 = vpop.f32.mrb[102].mxu1 }
 0x76d   : > { %v2890_v4 = vpop.f32.mrb[103].mxu1  ;;  %v2899_v40 = vadd.f32 %v11850_v15, %v10178_v48  ;;  %v14867_v39 = vadd.f32 %v2896_v46, %v14785_v18 }
 0x76e   : > { %v2891_v44 = vadd.f32 %v10178_v48, %v2890_v4  ;;  %v14859_v49 = vadd.f32 %v2888_v43, %v14773_v21 }
 0x76f   : > { %v14871_v45 = vadd.f32 %v2899_v40, %v14788_v37 }
 0x770   : > { %2958 = vadd.xlane.f32.xlu0 %v14859_v49  ;;  %v14863_v26 = vadd.f32 %v2891_v44, %v14776_v16 }
 0x772   : > { %2960 = vadd.xlane.f32.xlu1 %v14863_v26 }
 0x774   : > { %2962 = vadd.xlane.f32.xlu0 %v14867_v39 }
 0x776   : > { %2964 = vadd.xlane.f32.xlu1 %v14871_v45 }
 0x77a   : > { %v11853_v21 = vpop.f32.mrb[104].mxu1 }
 0x77b   : > { %v2903_v51 = vpop.f32.mrb[105].mxu1  ;;  %v2912_v25 = vadd.f32 %v11853_v21, %v10178_v48 }
 0x77c   : > { %v2904_v11 = vadd.f32 %v10178_v48, %v2903_v51  ;;  %v11854_v10 = vpop.f32.mrb[106].mxu1 }
 0x77d   : > { %v2906_v13 = vpop.f32.mrb[107].mxu1  ;;  %v2915_v5 = vadd.f32 %v11854_v10, %v10178_v48  ;;  %v14883_v37 = vadd.f32 %v2912_v25, %v14809_v1 }
 0x77e   : > { %v2907_v16 = vadd.f32 %v10178_v48, %v2906_v13  ;;  %v14875_v12 = vadd.f32 %v2904_v11, %v14797_v3 }
 0x77f   : > { %v14887_v47 = vadd.f32 %v2915_v5, %v14812_v54 }
 0x780   : > { %2966 = vadd.xlane.f32.xlu0 %v14875_v12  ;;  %v14879_v18 = vadd.f32 %v2907_v16, %v14800_v27 }
 0x782   : > { %2968 = vadd.xlane.f32.xlu1 %v14879_v18 }
 0x784   : > { %2970 = vadd.xlane.f32.xlu0 %v14883_v37 }
 0x786   : > { %2972 = vadd.xlane.f32.xlu1 %v14887_v47 }
 0x78a   : > { %v11857_v3 = vpop.f32.mrb[108].mxu1 }
 0x78b   : > { %v2919_v59 = vpop.f32.mrb[109].mxu1  ;;  %v2928_v50 = vadd.f32 %v11857_v3, %v10178_v48 }
 0x78c   : > { %v2920_v24 = vadd.f32 %v10178_v48, %v2919_v59  ;;  %v11858_v27 = vpop.f32.mrb[110].mxu1 }
 0x78d   : > { %v2922_v22 = vpop.f32.mrb[111].mxu1  ;;  %v2931_v54 = vadd.f32 %v11858_v27, %v10178_v48  ;;  %v14899_v56 = vadd.f32 %v2928_v50, %v14833_v36  ;;  %v12196_v36 = vld [vmem:[%s13934_s13 + $0x18c] ss:$24 sps:$4 sm:$0xff]  }
 0x78e   : > { %v2923_v2 = vadd.f32 %v10178_v48, %v2922_v22  ;;  %v14891_v1 = vadd.f32 %v2920_v24, %v14821_v58  ;;  %v12199_v48 = vld [vmem:[%s13934_s13 + $0x1bc] ss:$24 sps:$4 sm:$0xff]   ;;  %3599 = vmatprep.subr.bf16.mxu1 %v12196_v36  ;;  %v12205_v27 = vld [vmem:[%s13934_s13 + $0x1ec] ss:$24 sps:$4 sm:$0xff]  }
 0x78f   : > { %v14903_v58 = vadd.f32 %v2931_v54, %v14836_v8  ;;  %3600 = vmatpush1.bf16.msra.mxu1 %v12194_v61  ;;  %v12197_v8 = vld [vmem:[%s13934_s13 + $0x1b8] ss:$24 sps:$4 sm:$0xff]  }
 0x790   : > { %2974 = vadd.xlane.f32.xlu0 %v14891_v1  ;;  %v14895_v57 = vadd.f32 %v2923_v2, %v14824_v38  ;;  %v12182_v38 = vld [vmem:[%s13934_s13 + $0x1b0] ss:$24 sps:$4 sm:$0xff]   ;;  %3601 = vmatprep.subr.bf16.mxu1 %v12199_v48  ;;  %v12217_v48 = vld [vmem:[%s13934_s13 + $0x27c] ss:$24 sps:$4 sm:$0xff]  }
 0x791   : > { %3489 = vmatpush1.bf16.msra.mxu0 %v12182_v38  ;;  %v12203_v2 = vld [vmem:[%s13934_s13 + $0x1e8] ss:$24 sps:$4 sm:$0xff]  }
 0x792   : > { %2976 = vadd.xlane.f32.xlu1 %v14895_v57  ;;  %3490 = vmatprep.subr.bf16.mxu0 %v12187_v19  ;;  %v12212_v38 = vld [vmem:[%s13934_s13 + $0x248] ss:$24 sps:$4 sm:$0xff]   ;;  %v12202_v19 = vld [vmem:[%s13934_s13 + $0x274] ss:$24 sps:$4 sm:$0xff]  }
 0x793   : > { %3602 = vmatpush1.bf16.msra.mxu1 %v12197_v8 }
 0x794   : > { %2978 = vadd.xlane.f32.xlu0 %v14899_v56  ;;  %3603 = vmatprep.subr.bf16.mxu1 %v12205_v27 }
 0x795   : > { %3491 = vmatpush1.bf16.msra.mxu0 %v12185_v35 }
 0x796   : > { %2980 = vadd.xlane.f32.xlu1 %v14903_v58  ;;  %3492 = vmatprep.subr.bf16.mxu0 %v12190_v32  ;;  %v12200_v32 = vld [vmem:[%s13934_s13 + $0x270] ss:$24 sps:$4 sm:$0xff]  }
 0x797   : > { %3604 = vmatpush1.bf16.msra.mxu1 %v12203_v2 }
 0x798   : > { %3605 = vmatprep.subr.bf16.mxu1 %v12208_v20 }
 0x799   : > { %3493 = vmatpush1.bf16.msra.mxu0 %v12188_v0  ;;  %v12215_v0 = vld [vmem:[%s13934_s13 + $0x278] ss:$24 sps:$4 sm:$0xff]  }
 0x79a   : > { %3494 = vmatprep.subr.bf16.mxu0 %v12193_v52 }
 0x79d   : > { %3495 = vmatpush1.bf16.msra.mxu0 %v12191_v28 }
 0x79e   : > { %3496 = vmatprep.subr.bf16.mxu0 %v12202_v19 }
 0x7a1   : > { %3497 = vmatpush1.bf16.msra.mxu0 %v12200_v32 }
 0x7ed   : > { %v2951_v55 = vpop.xlane.xlu0 %2950 }
 0x7ee   : > { %v2982_v7 = vmul.f32 0.0078125, %v2951_v55 }
 0x7ef   : > { %v2953_v14 = vpop.xlane.xlu1 %2952 }
 0x7f0   : > { %v2983_v9 = vmul.f32 0.0078125, %v2953_v14  ;;  %v14921_v34 = vsub.f32 %v14843_v60, %v2982_v7 }
 0x7f1   : > { %v2955_v43 = vpop.xlane.xlu0 %2954 }
 0x7f2   : > { %v2984_v15 = vmul.f32 0.0078125, %v2955_v43  ;;  %v3014_v4 = vmul.f32 %v14921_v34, %v14921_v34  ;;  %v14926_v46 = vsub.f32 %v14847_v23, %v2983_v9  ;;  %v12223_v9 = vld [vmem:[%s13934_s13 + $0x2ac] ss:$24 sps:$4 sm:$0xff]  }
 0x7f3   : > { %v2957_v44 = vpop.xlane.xlu1 %2956 }
 0x7f4   : > { %v2985_v40 = vmul.f32 0.0078125, %v2957_v44  ;;  %3030 = vadd.xlane.f32.xlu0 %v3014_v4  ;;  %v3015_v21 = vmul.f32 %v14926_v46, %v14926_v46  ;;  %v14931_v51 = vsub.f32 %v14851_v42, %v2984_v15  ;;  %v12209_v44 = vld [vmem:[%s13934_s13 + $0x2a0] ss:$24 sps:$4 sm:$0xff]  }
 0x7f6   : > { %3032 = vadd.xlane.f32.xlu1 %v3015_v21  ;;  %v3016_v60 = vmul.f32 %v14931_v51, %v14931_v51  ;;  %v14936_v11 = vsub.f32 %v14855_v62, %v2985_v40 }
 0x7f8   : > { %3034 = vadd.xlane.f32.xlu0 %v3016_v60  ;;  %v3017_v23 = vmul.f32 %v14936_v11, %v14936_v11  ;;  %v12218_v60 = vld [vmem:[%s13934_s13 + $0x2d0] ss:$24 sps:$4 sm:$0xff]  }
 0x7fa   : > { %3036 = vadd.xlane.f32.xlu1 %v3017_v23  ;;  %v12220_v23 = vld [vmem:[%s13934_s13 + $0x2d4] ss:$24 sps:$4 sm:$0xff]  }
 0x7fd   : > { %v2959_v10 = vpop.xlane.xlu0 %2958 }
 0x7fe   : > { %v2986_v13 = vmul.f32 0.0078125, %v2959_v10  ;;  %v12226_v10 = vld [vmem:[%s13934_s13 + $0x2dc] ss:$24 sps:$4 sm:$0xff]  }
 0x7ff   : > { %v2961_v25 = vpop.xlane.xlu1 %2960 }
 0x800   : > { %v2987_v16 = vmul.f32 0.0078125, %v2961_v25  ;;  %v14941_v42 = vsub.f32 %v14859_v49, %v2986_v13  ;;  %v12224_v13 = vld [vmem:[%s13934_s13 + $0x2d8] ss:$24 sps:$4 sm:$0xff]   ;;  %v12229_v25 = vld [vmem:[%s13934_s13 + $0x194] ss:$24 sps:$4 sm:$0xff]  }
 0x801   : > { %v2963_v5 = vpop.xlane.xlu0 %2962 }
 0x802   : > { %v2988_v3 = vmul.f32 0.0078125, %v2963_v5  ;;  %v3018_v62 = vmul.f32 %v14941_v42, %v14941_v42  ;;  %v14946_v59 = vsub.f32 %v14863_v26, %v2987_v16 }
 0x803   : > { %v2965_v24 = vpop.xlane.xlu1 %2964 }
 0x804   : > { %v2989_v22 = vmul.f32 0.0078125, %v2965_v24  ;;  %3038 = vadd.xlane.f32.xlu0 %v3018_v62  ;;  %v3019_v50 = vmul.f32 %v14946_v59, %v14946_v59  ;;  %v14952_v49 = vsub.f32 %v14867_v39, %v2988_v3  ;;  %v12206_v39 = vld [vmem:[%s13934_s13 + $0x218] ss:$24 sps:$4 sm:$0xff]  }
 0x805   : > { %3606 = vmatpush1.bf16.msra.mxu1 %v12206_v39 }
 0x806   : > { %3040 = vadd.xlane.f32.xlu1 %v3019_v50  ;;  %v3020_v26 = vmul.f32 %v14952_v49, %v14952_v49  ;;  %v14958_v54 = vsub.f32 %v14871_v45, %v2989_v22  ;;  %3607 = vmatprep.subr.bf16.mxu1 %v12214_v53 }
 0x808   : > { %3042 = vadd.xlane.f32.xlu0 %v3020_v26  ;;  %v3021_v33 = vmul.f32 %v14958_v54, %v14958_v54 }
 0x809   : > { %3608 = vmatpush1.bf16.msra.mxu1 %v12212_v38 }
 0x80a   : > { %3044 = vadd.xlane.f32.xlu1 %v3021_v33  ;;  %3609 = vmatprep.subr.bf16.mxu1 %v12217_v48 }
 0x80d   : > { %v2967_v61 = vpop.xlane.xlu0 %2966  ;;  %3610 = vmatpush1.bf16.msra.mxu1 %v12215_v0 }
 0x80e   : > { %v2990_v45 = vmul.f32 0.0078125, %v2967_v61  ;;  %3611 = vmatprep.subr.bf16.mxu1 %v12223_v9 }
 0x80f   : > { %v2969_v36 = vpop.xlane.xlu1 %2968 }
 0x810   : > { %v2991_v8 = vmul.f32 0.0078125, %v2969_v36  ;;  %v14969_v35 = vsub.f32 %v14875_v12, %v2990_v45  ;;  %v12211_v12 = vld [vmem:[%s13934_s13 + $0x2a4] ss:$24 sps:$4 sm:$0xff]  }
 0x811   : > { %v2971_v52 = vpop.xlane.xlu0 %2970  ;;  %3498 = vmatprep.subr.bf16.mxu0 %v12211_v12 }
 0x812   : > { %v2992_v28 = vmul.f32 0.0078125, %v2971_v52  ;;  %v3022_v55 = vmul.f32 %v14969_v35, %v14969_v35  ;;  %v14976_v7 = vsub.f32 %v14879_v18, %v2991_v8  ;;  %v12221_v18 = vld [vmem:[%s13934_s13 + $0x2a8] ss:$24 sps:$4 sm:$0xff]   ;;  %3499 = vmatpush1.bf16.msra.mxu0 %v12209_v44 }
 0x813   : > { %v2973_v14 = vpop.xlane.xlu1 %2972  ;;  %3612 = vmatpush1.bf16.msra.mxu1 %v12221_v18  ;;  %3500 = vmatprep.subr.bf16.mxu0 %v12220_v23  ;;  %v12251_v18 = vld [vmem:[%s13936_s18 + $0x1c0] sm:$0xff]  }
 0x814   : > { %v2993_v43 = vmul.f32 0.0078125, %v2973_v14  ;;  %3046 = vadd.xlane.f32.xlu0 %v3022_v55  ;;  %v3023_v15 = vmul.f32 %v14976_v7, %v14976_v7  ;;  %v14983_v4 = vsub.f32 %v14883_v37, %v2992_v28  ;;  %3613 = vmatprep.subr.bf16.mxu1 %v12226_v10  ;;  %v15020_v28 = vld [vmem:[%s13925_s21 + $0x32] ss:$0 sm:$0xff]  ;;  %v15027_v10 = vld [vmem:[%s13925_s21 + $0x33] ss:$0 sm:$0xff] }
 0x816   : > { %3048 = vadd.xlane.f32.xlu1 %v3023_v15  ;;  %v3024_v40 = vmul.f32 %v14983_v4, %v14983_v4  ;;  %v14990_v21 = vsub.f32 %v14887_v47, %v2993_v43  ;;  %3501 = vmatpush1.bf16.msra.mxu0 %v12218_v60 }
 0x817   : > { %3614 = vmatpush1.bf16.msra.mxu1 %v12224_v13  ;;  %3712 = vmatprep.subr.bf16.mxu0 %v12229_v25 }
 0x818   : > { %3050 = vadd.xlane.f32.xlu0 %v3024_v40  ;;  %v3025_v37 = vmul.f32 %v14990_v21, %v14990_v21  ;;  %11395 = vmatprep.subr.bf16.mxu1 %v12251_v18 }
 0x81a   : > { %3052 = vadd.xlane.f32.xlu1 %v3025_v37 }
 0x81d   : > { %v2975_v16 = vpop.xlane.xlu0 %2974 }
 0x81e   : > { %v2994_v5 = vmul.f32 0.0078125, %v2975_v16 }
 0x81f   : > { %v2977_v47 = vpop.xlane.xlu1 %2976 }
 0x820   : > { %v2995_v3 = vmul.f32 0.0078125, %v2977_v47  ;;  %v15000_v62 = vsub.f32 %v14891_v1, %v2994_v5 }
 0x821   : > { %v2979_v24 = vpop.xlane.xlu0 %2978 }
 0x822   : > { %v2996_v27 = vmul.f32 0.0078125, %v2979_v24  ;;  %v3026_v22 = vmul.f32 %v15000_v62, %v15000_v62  ;;  %v15005_v50 = vsub.f32 %v14895_v57, %v2995_v3 }
 0x823   : > { %v2981_v2 = vpop.xlane.xlu1 %2980 }
 0x824   : > { %v2997_v26 = vmul.f32 0.0078125, %v2981_v2  ;;  %3054 = vadd.xlane.f32.xlu0 %v3026_v22  ;;  %v3027_v20 = vmul.f32 %v15005_v50, %v15005_v50  ;;  %v15010_v33 = vsub.f32 %v14899_v56, %v2996_v27  ;;  %v12227_v2 = vld [vmem:[%s13934_s13 + $0x190] ss:$24 sps:$4 sm:$0xff]  }
 0x826   : > { %3056 = vadd.xlane.f32.xlu1 %v3027_v20  ;;  %v3028_v1 = vmul.f32 %v15010_v33, %v15010_v33  ;;  %v15015_v39 = vsub.f32 %v14903_v58, %v2997_v26  ;;  %v12232_v20 = vld [vmem:[%s13934_s13 + $0x1c4] ss:$24 sps:$4 sm:$0xff]  }
 0x828   : > { %3058 = vadd.xlane.f32.xlu0 %v3028_v1  ;;  %v3029_v57 = vmul.f32 %v15015_v39, %v15015_v39 }
 0x82a   : > { %3060 = vadd.xlane.f32.xlu1 %v3029_v57 }
 0x881   : > { %v3031_v53 = vpop.xlane.xlu0 %3030 }
 0x882   : > { %v3062_v38 = vmul.f32 0.0078125, %v3031_v53  ;;  %v12252_v53 = vld [vmem:[%s13936_s18 + $0x180] sm:$0xff]  }
 0x883   : > { %v3033_v61 = vpop.xlane.xlu1 %3032 }
 0x884   : > { %v3078_v45 = vadd.f32 1e-05, %v3062_v38  ;;  %v3063_v36 = vmul.f32 0.0078125, %v3033_v61  ;;  %v12230_v38 = vld [vmem:[%s13934_s13 + $0x1c0] ss:$24 sps:$4 sm:$0xff]  }
 0x885   : > { %v3035_v56 = vpop.xlane.xlu0 %3034 }
 0x886   : > { %12491 = vrsqrt.f32 %v3078_v45  ;;  %v3079_v19 = vadd.f32 1e-05, %v3063_v36  ;;  %v3064_v48 = vmul.f32 0.0078125, %v3035_v56  ;;  %v12235_v45 = vld [vmem:[%s13934_s13 + $0x1f4] ss:$24 sps:$4 sm:$0xff]  }
 0x887   : > { %v3037_v8 = vpop.xlane.xlu1 %3036  ;;  %v12254_v36 = vld [vmem:[%s13936_s18 + $0x188] sm:$0xff]  }
 0x888   : > { %12493 = vrsqrt.f32 %v3079_v19  ;;  %v3080_v58 = vadd.f32 1e-05, %v3064_v48  ;;  %v3065_v32 = vmul.f32 0.0078125, %v3037_v8 }
 0x88a   : > { %12495 = vrsqrt.f32 %v3080_v58  ;;  %v3081_v0 = vadd.f32 1e-05, %v3065_v32  ;;  %v12233_v58 = vld [vmem:[%s13934_s13 + $0x1f0] ss:$24 sps:$4 sm:$0xff]  }
 0x88c   : > { %12497 = vrsqrt.f32 %v3081_v0  ;;  %v12255_v0 = vld [vmem:[%s13936_s18 + $0x1d0] sm:$0xff]  }
 0x890   : > { %v12492_v52 = vpop.eup %12491 }
 0x891   : > { %v3110_v55 = vmul.f32 %v12492_v52, %v14921_v34  ;;  %v3039_v14 = vpop.xlane.xlu0 %3038 }
 0x892   : > { %v12494_v12 = vpop.eup %12493  ;;  %v3066_v9 = vmul.f32 0.0078125, %v3039_v14  ;;  %v12238_v14 = vld [vmem:[%s13934_s13 + $0x224] ss:$24 sps:$4 sm:$0xff]  }
 0x893   : > { %v3126_v43 = vmul.f32 %v15020_v28, %v3110_v55  ;;  %v3111_v15 = vmul.f32 %v12494_v12, %v14926_v46  ;;  %v3041_v44 = vpop.xlane.xlu1 %3040  ;;  %v12256_v12 = vld [vmem:[%s13936_s18 + $0x190] sm:$0xff]  }
 0x894   : > { %v12496_v40 = vpop.eup %12495  ;;  %v3082_v60 = vadd.f32 1e-05, %v3066_v9  ;;  %v3067_v23 = vmul.f32 0.0078125, %v3041_v44  ;;  %v12257_v44 = vld [vmem:[%s13936_s18 + $0x1d8] sm:$0xff]  }
 0x895   : > { %v3127_v37 = vmul.f32 %v15020_v28, %v3111_v15  ;;  %v3043_v13 = vpop.xlane.xlu0 %3042  ;;  %v15031_v46 = vadd.f32 %v15027_v10, %v3126_v43  ;;  %v3112_v3 = vmul.f32 %v12496_v40, %v14931_v51 }
 0x896   : > { %v12498_v34 = vpop.eup %12497  ;;  %12499 = vrsqrt.f32 %v3082_v60  ;;  %v3083_v25 = vadd.f32 1e-05, %v3067_v23  ;;  %v3068_v16 = vmul.f32 0.0078125, %v3043_v13 }
 0x897   : > { %v3045_v5 = vpop.xlane.xlu1 %3044  ;;  %v15034_v47 = vadd.f32 %v15027_v10, %v3127_v37  ;;  %v3113_v24 = vmul.f32 %v12498_v34, %v14936_v11  ;;  %v3128_v51 = vmul.f32 %v15020_v28, %v3112_v3  ;;  %v12253_v11 = vld [vmem:[%s13936_s18 + $0x1c8] sm:$0xff]   ;;  %v12236_v37 = vld [vmem:[%s13934_s13 + $0x220] ss:$24 sps:$4 sm:$0xff]  }
 0x898   : > { %12501 = vrsqrt.f32 %v3083_v25  ;;  %v3084_v27 = vadd.f32 1e-05, %v3068_v16  ;;  %v3069_v22 = vmul.f32 0.0078125, %v3045_v5  ;;  %v12241_v25 = vld [vmem:[%s13934_s13 + $0x254] ss:$24 sps:$4 sm:$0xff]   ;;  %v12258_v16 = vld [vmem:[%s13936_s18 + $0x198] sm:$0xff]  }
 0x899   : > { %v15041_v26 = vpack.c.bf16 %v15034_v47, %v15031_v46  ;;  %v3129_v1 = vmul.f32 %v15020_v28, %v3113_v24  ;;  %v15059_v56 = vadd.f32 %v15027_v10, %v3128_v51  ;;  %v12259_v51 = vld [vmem:[%s13936_s18 + $0x1e0] sm:$0xff]  }
 0x89a   : > { %12503 = vrsqrt.f32 %v3084_v27  ;;  %v3085_v57 = vadd.f32 1e-05, %v3069_v22 }
 0x89b   : > { %3519 = vmatmul.mubr.bf16.vlgmr.msra.gmra.mrb[112].mxu0 %v15041_v26  ;;  %3632 = vmatmul.mubr.bf16.vlgmr.msra.gmra.mrb[112].mxu1 %v15041_v26  ;;  %v15054_v61 = vadd.f32 %v15027_v10, %v3129_v1 }
 0x89c   : > { %12505 = vrsqrt.f32 %v3085_v57  ;;  %3713 = vmatpush1.bf16.msra.mxu0 %v12227_v2  ;;  %3528 = vmatprep.mubr.bf16.mxu0 %v13528_v63 }
 0x89d   : > { %3641 = vmatprep.mubr.bf16.mxu1 %v13528_v63  ;;  %3714 = vmatprep.subr.bf16.mxu0 %v12232_v20  ;;  %v15063_v8 = vpack.c.bf16 %v15054_v61, %v15059_v56 }
 0x89e   : > { %11396 = vmatpush3.bf16.msra.mxu1 %v12252_v53  ;;  %v12239_v53 = vld [vmem:[%s13934_s13 + $0x250] ss:$24 sps:$4 sm:$0xff]  }
 0x89f   : > { %11397 = vmatprep.subr.bf16.mxu1 %v12253_v11  ;;  %v12260_v11 = vld [vmem:[%s13936_s18 + $0x1a0] sm:$0xff]  }
 0x8a0   : > { %v12500_v19 = vpop.eup %12499  ;;  %3715 = vmatpush1.bf16.msra.mxu0 %v12230_v38 }
 0x8a1   : > { %v3047_v48 = vpop.xlane.xlu0 %3046  ;;  %3716 = vmatprep.subr.bf16.mxu0 %v12235_v45  ;;  %v3114_v32 = vmul.f32 %v12500_v19, %v14941_v42  ;;  %v12265_v45 = vld [vmem:[%s13936_s18 + $0x1e8] sm:$0xff]   ;;  %v12242_v19 = vld [vmem:[%s13934_s13 + $0x280] ss:$24 sps:$4 sm:$0xff]  }
 0x8a2   : > { %v12502_v52 = vpop.eup %12501  ;;  %v3070_v55 = vmul.f32 0.0078125, %v3047_v48  ;;  %11398 = vmatpush3.bf16.msra.mxu1 %v12254_v36  ;;  %v12247_v48 = vld [vmem:[%s13934_s13 + $0x2b4] ss:$24 sps:$4 sm:$0xff]  }
 0x8a3   : > { %v3049_v9 = vpop.xlane.xlu1 %3048  ;;  %3529 = vmatmul.mubr.bf16.gmra.mrb[116].mxu0 %v15063_v8  ;;  %3642 = vmatmul.mubr.bf16.gmra.mrb[116].mxu1 %v15063_v8  ;;  %v3115_v43 = vmul.f32 %v12502_v52, %v14946_v59  ;;  %v3130_v15 = vmul.f32 %v15020_v28, %v3114_v32 }
 0x8a4   : > { %v12504_v18 = vpop.eup %12503  ;;  %v3086_v42 = vadd.f32 1e-05, %v3070_v55  ;;  %v3071_v40 = vmul.f32 0.0078125, %v3049_v9  ;;  %3538 = vmatprep.mubr.bf16.mxu0 %v13528_v63  ;;  %3651 = vmatprep.mubr.bf16.mxu1 %v13528_v63  ;;  %v12271_v9 = vld [vmem:[%s13936_s18 + $0x1f0] sm:$0xff]  }
 0x8a5   : > { %v3051_v60 = vpop.xlane.xlu0 %3050  ;;  %v3131_v23 = vmul.f32 %v15020_v28, %v3115_v43  ;;  %3717 = vmatpush1.bf16.msra.mxu0 %v12233_v58  ;;  %11399 = vmatprep.subr.bf16.mxu1 %v12255_v0  ;;  %v15082_v3 = vadd.f32 %v15027_v10, %v3130_v15  ;;  %v3116_v27 = vmul.f32 %v12504_v18, %v14952_v49  ;;  %v12266_v58 = vld [vmem:[%s13936_s18 + $0x1a8] sm:$0xff]   ;;  %v12272_v18 = vld [vmem:[%s13936_s18 + $0x1b0] sm:$0xff]  }
 0x8a6   : > { %v12506_v13 = vpop.eup %12505  ;;  %12507 = vrsqrt.f32 %v3086_v42  ;;  %v3087_v59 = vadd.f32 1e-05, %v3071_v40  ;;  %v3072_v34 = vmul.f32 0.0078125, %v3051_v60  ;;  %3718 = vmatprep.subr.bf16.mxu0 %v12238_v14  ;;  %11400 = vmatpush3.bf16.msra.mxu1 %v12256_v12  ;;  %v12245_v12 = vld [vmem:[%s13934_s13 + $0x2b0] ss:$24 sps:$4 sm:$0xff]  }
 0x8a7   : > { %v3053_v5 = vpop.xlane.xlu1 %3052  ;;  %v15085_v24 = vadd.f32 %v15027_v10, %v3131_v23  ;;  %v3117_v22 = vmul.f32 %v12506_v13, %v14958_v54  ;;  %11401 = vmatprep.subr.bf16.mxu1 %v12257_v44  ;;  %v12244_v54 = vld [vmem:[%s13934_s13 + $0x284] ss:$24 sps:$4 sm:$0xff]   ;;  %v3132_v38 = vmul.f32 %v15020_v28, %v3116_v27 }
 0x8a8   : > { %12509 = vrsqrt.f32 %v3087_v59  ;;  %v3088_v2 = vadd.f32 1e-05, %v3072_v34  ;;  %v3073_v20 = vmul.f32 0.0078125, %v3053_v5  ;;  %v12250_v44 = vld [vmem:[%s13934_s13 + $0x2e4] ss:$24 sps:$4 sm:$0xff]  }
 0x8a9   : > { %v15091_v1 = vpack.c.bf16 %v15085_v24, %v15082_v3  ;;  %v3133_v57 = vmul.f32 %v15020_v28, %v3117_v22  ;;  %3719 = vmatpush1.bf16.msra.mxu0 %v12236_v37  ;;  %v15111_v32 = vadd.f32 %v15027_v10, %v3132_v38  ;;  %v12248_v34 = vld [vmem:[%s13934_s13 + $0x2e0] ss:$24 sps:$4 sm:$0xff]  }
 0x8aa   : > { %12511 = vrsqrt.f32 %v3088_v2  ;;  %v3089_v49 = vadd.f32 1e-05, %v3073_v20  ;;  %3720 = vmatprep.subr.bf16.mxu0 %v12241_v25  ;;  %11402 = vmatpush3.bf16.msra.mxu1 %v12258_v16  ;;  %v12261_v5 = vld [vmem:[%s13936_s18 + $0x240] sm:$0xff]  }
 0x8ab   : > { %3539 = vmatmul.mubr.bf16.gmra.mrb[120].mxu0 %v15091_v1  ;;  %3652 = vmatmul.mubr.bf16.gmra.mrb[120].mxu1 %v15091_v1  ;;  %v15105_v36 = vadd.f32 %v15027_v10, %v3133_v57 }
 0x8ac   : > { %12513 = vrsqrt.f32 %v3089_v49  ;;  %3548 = vmatprep.mubr.bf16.mxu0 %v13528_v63  ;;  %3661 = vmatprep.mubr.bf16.mxu1 %v13528_v63 }
 0x8ad   : > { %3721 = vmatpush1.bf16.msra.mxu0 %v12239_v53  ;;  %11403 = vmatprep.subr.bf16.mxu1 %v12259_v51  ;;  %v15115_v55 = vpack.c.bf16 %v15105_v36, %v15111_v32 }
 0x8ae   : > { %3722 = vmatprep.subr.bf16.mxu0 %v12244_v54  ;;  %11404 = vmatpush3.bf16.msra.mxu1 %v12260_v11 }
 0x8af   : > { %11405 = vmatprep.subr.bf16.mxu1 %v12265_v45 }
 0x8b0   : > { %v12508_v0 = vpop.eup %12507 }
 0x8b1   : > { %v3055_v52 = vpop.xlane.xlu0 %3054  ;;  %v3118_v14 = vmul.f32 %v12508_v0, %v14969_v35  ;;  %3723 = vmatpush1.bf16.msra.mxu0 %v12242_v19 }
 0x8b2   : > { %v12510_v43 = vpop.eup %12509  ;;  %v3074_v15 = vmul.f32 0.0078125, %v3055_v52  ;;  %3724 = vmatprep.subr.bf16.mxu0 %v12247_v48  ;;  %11406 = vmatpush3.bf16.msra.mxu1 %v12266_v58 }
 0x8b3   : > { %v3057_v42 = vpop.xlane.xlu1 %3056  ;;  %3549 = vmatmul.mubr.bf16.gmra.mrb[124].mxu0 %v15115_v55  ;;  %3662 = vmatmul.mubr.bf16.gmra.mrb[124].mxu1 %v15115_v55  ;;  %v3119_v40 = vmul.f32 %v12510_v43, %v14976_v7  ;;  %v3134_v60 = vmul.f32 %v15020_v28, %v3118_v14 }
 0x8b4   : > { %v12512_v35 = vpop.eup %12511  ;;  %v3090_v23 = vadd.f32 1e-05, %v3074_v15  ;;  %v3075_v37 = vmul.f32 0.0078125, %v3057_v42  ;;  %3558 = vmatprep.mubr.bf16.mxu0 %v13528_v63  ;;  %3671 = vmatprep.mubr.bf16.mxu1 %v13528_v63 }
 0x8b5   : > { %v3059_v13 = vpop.xlane.xlu0 %3058  ;;  %v3135_v59 = vmul.f32 %v15020_v28, %v3119_v40  ;;  %3725 = vmatpush1.bf16.msra.mxu0 %v12245_v12  ;;  %11407 = vmatprep.subr.bf16.mxu1 %v12271_v9  ;;  %v15132_v22 = vadd.f32 %v15027_v10, %v3134_v60  ;;  %v3120_v20 = vmul.f32 %v12512_v35, %v14983_v4  ;;  %v12263_v60 = vld [vmem:[%s13936_s18 + $0x248] sm:$0xff]   ;;  %v12267_v35 = vld [vmem:[%s13936_s18 + $0x250] sm:$0xff]  }
 0x8b6   : > { %v12514_v25 = vpop.eup %12513  ;;  %12515 = vrsqrt.f32 %v3090_v23  ;;  %v3091_v16 = vadd.f32 1e-05, %v3075_v37  ;;  %v3076_v7 = vmul.f32 0.0078125, %v3059_v13  ;;  %3726 = vmatprep.subr.bf16.mxu0 %v12250_v44  ;;  %11408 = vmatpush3.bf16.msra.mxu1 %v12272_v18  ;;  %v12268_v23 = vld [vmem:[%s13936_s18 + $0x210] sm:$0xff]   ;;  %v12269_v37 = vld [vmem:[%s13936_s18 + $0x258] sm:$0xff]   ;;  %v12273_v13 = vld [vmem:[%s13936_s18 + $0x260] sm:$0xff]  }
 0x8b7   : > { %v3061_v27 = vpop.xlane.xlu1 %3060  ;;  %v15135_v2 = vadd.f32 %v15027_v10, %v3135_v59  ;;  %v3121_v57 = vmul.f32 %v12514_v25, %v14990_v21  ;;  %v3136_v4 = vmul.f32 %v15020_v28, %v3120_v20  ;;  %v12274_v59 = vld [vmem:[%s13936_s18 + $0x220] sm:$0xff]   ;;  %v12279_v25 = vld [vmem:[%s13936_s18 + $0x270] sm:$0xff]  }
 0x8b8   : > { %12517 = vrsqrt.f32 %v3091_v16  ;;  %v3092_v53 = vadd.f32 1e-05, %v3076_v7  ;;  %v3077_v51 = vmul.f32 0.0078125, %v3061_v27  ;;  %v12280_v16 = vld [vmem:[%s13936_s18 + $0x230] sm:$0xff]   ;;  %v12277_v7 = vld [vmem:[%s13936_s18 + $0x1f8] sm:$0xff]   ;;  %v12283_v20 = vld [vmem:[%s13936_s18 + $0x2c0] sm:$0xff]  }
 0x8b9   : > { %v15141_v49 = vpack.c.bf16 %v15135_v2, %v15132_v22  ;;  %v3137_v54 = vmul.f32 %v15020_v28, %v3121_v57  ;;  %3727 = vmatpush1.bf16.msra.mxu0 %v12248_v34  ;;  %v15153_v38 = vadd.f32 %v15027_v10, %v3136_v4  ;;  %v12275_v34 = vld [vmem:[%s13936_s18 + $0x268] sm:$0xff]   ;;  %v12278_v27 = vld [vmem:[%s13936_s18 + $0x1b8] sm:$0xff]   ;;  %11409 = vmatprep.subr.bf16.mxu1 %v12277_v7 }
 0x8ba   : > { %12519 = vrsqrt.f32 %v3092_v53  ;;  %v3093_v11 = vadd.f32 1e-05, %v3077_v51  ;;  %11459 = vmatprep.subr.bf16.mxu0 %v12261_v5  ;;  %v12281_v5 = vld [vmem:[%s13936_s18 + $0x278] sm:$0xff]   ;;  %11410 = vmatpush3.bf16.msra.mxu1 %v12278_v27 }
 0x8bb   : > { %3559 = vmatmul.mubr.bf16.gmra.mrb[128].mxu0 %v15141_v49  ;;  %3672 = vmatmul.mubr.bf16.gmra.mrb[128].mxu1 %v15141_v49  ;;  %v15150_v21 = vadd.f32 %v15027_v10, %v3137_v54  ;;  %v10177_v57 = vld [vmem:[%s13925_s21 + $0x30] ss:$8 sm:$0x30] }
 0x8bc   : > { %12521 = vrsqrt.f32 %v3093_v11  ;;  %3568 = vmatprep.mubr.bf16.mxu0 %v13528_v63  ;;  %3681 = vmatprep.mubr.bf16.mxu1 %v13528_v63 }
 0x8bd   : > { %v15157_v19 = vpack.c.bf16 %v15150_v21, %v15153_v38  ;;  %11523 = vmatprep.subr.bf16.mxu1 %v12283_v20 }
 0x8c0   : > { %v12516_v45 = vpop.eup %12515 }
 0x8c1   : > { %v3122_v48 = vmul.f32 %v12516_v45, %v15000_v62 }
 0x8c2   : > { %v12518_v58 = vpop.eup %12517 }
 0x8c3   : > { %3569 = vmatmul.mubr.bf16.gmra.mrb[132].mxu0 %v15157_v19  ;;  %3682 = vmatmul.mubr.bf16.gmra.mrb[132].mxu1 %v15157_v19  ;;  %v3123_v0 = vmul.f32 %v12518_v58, %v15005_v50  ;;  %v3138_v52 = vmul.f32 %v15020_v28, %v3122_v48 }
 0x8c4   : > { %v12520_v14 = vpop.eup %12519  ;;  %3578 = vmatprep.mubr.bf16.mxu0 %v13528_v63  ;;  %3691 = vmatprep.mubr.bf16.mxu1 %v13528_v63 }
 0x8c5   : > { %v3139_v12 = vmul.f32 %v15020_v28, %v3123_v0  ;;  %v15168_v43 = vadd.f32 %v15027_v10, %v3138_v52  ;;  %v3124_v15 = vmul.f32 %v12520_v14, %v15010_v33 }
 0x8c6   : > { %v12522_v9 = vpop.eup %12521 }
 0x8c7   : > { %v15171_v62 = vadd.f32 %v15027_v10, %v3139_v12  ;;  %v3125_v50 = vmul.f32 %v12522_v9, %v15015_v39  ;;  %v3140_v42 = vmul.f32 %v15020_v28, %v3124_v15 }
 0x8c9   : > { %v3164_v44 = vpack.c.bf16 %v15171_v62, %v15168_v43  ;;  %v3141_v18 = vmul.f32 %v15020_v28, %v3125_v50  ;;  %v15185_v39 = vadd.f32 %v15027_v10, %v3140_v42  ;;  %v12262_v28 = vld [vmem:[%s13936_s18 + $0x200] sm:$0xff]  }
 0x8cb   : > { %3579 = vmatmul.mubr.bf16.gmra.mrb[136].mxu0 %v3164_v44  ;;  %3692 = vmatmul.mubr.bf16.gmra.mrb[136].mxu1 %v3164_v44  ;;  %v15182_v33 = vadd.f32 %v15027_v10, %v3141_v18  ;;  %v12264_v10 = vld [vmem:[%s13936_s18 + $0x208] sm:$0xff]  }
 0x8cc   : > { %3588 = vmatprep.mubr.bf16.mxu0 %v13528_v63  ;;  %3701 = vmatprep.mubr.bf16.mxu1 %v13528_v63 }
 0x8cd   : > { %v3165_v40 = vpack.c.bf16 %v15182_v33, %v15185_v39 }
 0x8d3   : > { %3589 = vmatmul.mubr.bf16.gmra.mrb[140].mxu0 %v3165_v40  ;;  %3702 = vmatmul.mubr.bf16.gmra.mrb[140].mxu1 %v3165_v40 }
 0x8d4   : > { %3744 = vmatprep.mubr.bf16.mxu0 %v13528_v63 }
 0x8db   : > { %3745 = vmatmul.mubr.bf16.vlgmr.msra.gmra.mrb[144].mxu0 %v15041_v26  ;;  %v12270_v26 = vld [vmem:[%s13936_s18 + $0x218] sm:$0xff]  }
 0x8dc   : > { %3754 = vmatprep.mubr.bf16.mxu0 %v13528_v63  ;;  %11460 = vmatpush3.bf16.msra.mxu0 %v12262_v28 }
 0x8dd   : > { %11461 = vmatprep.subr.bf16.mxu0 %v12263_v60 }
 0x8e0   : > { %11462 = vmatpush3.bf16.msra.mxu0 %v12264_v10 }
 0x8e1   : > { %11463 = vmatprep.subr.bf16.mxu0 %v12267_v35 }
 0x8e3   : > { %3755 = vmatmul.mubr.bf16.gmra.mrb[148].mxu0 %v15063_v8  ;;  %v12276_v8 = vld [vmem:[%s13936_s18 + $0x228] sm:$0xff]  }
 0x8e4   : > { %3764 = vmatprep.mubr.bf16.mxu0 %v13528_v63  ;;  %11464 = vmatpush3.bf16.msra.mxu0 %v12268_v23 }
 0x8e5   : > { %11465 = vmatprep.subr.bf16.mxu0 %v12269_v37 }
 0x8e8   : > { %11466 = vmatpush3.bf16.msra.mxu0 %v12270_v26 }
 0x8e9   : > { %11467 = vmatprep.subr.bf16.mxu0 %v12273_v13 }
 0x8eb   : > { %3765 = vmatmul.mubr.bf16.gmra.mrb[152].mxu0 %v15091_v1  ;;  %v12282_v1 = vld [vmem:[%s13936_s18 + $0x238] sm:$0xff]  }
 0x8ec   : > { %3774 = vmatprep.mubr.bf16.mxu0 %v13528_v63  ;;  %11468 = vmatpush3.bf16.msra.mxu0 %v12274_v59 }
 0x8ed   : > { %11469 = vmatprep.subr.bf16.mxu0 %v12275_v34 }
 0x8f0   : > { %11470 = vmatpush3.bf16.msra.mxu0 %v12276_v8 }
 0x8f1   : > { %11471 = vmatprep.subr.bf16.mxu0 %v12279_v25 }
 0x8f3   : > { %3775 = vmatmul.mubr.bf16.gmra.mrb[156].mxu0 %v15115_v55  ;;  %v10176_v55 = vld [vmem:[%s13925_s21 + $0x30] ss:$8 sm:$0xf] }
 0x8f4   : > { %3784 = vmatprep.mubr.bf16.mxu0 %v13528_v63  ;;  %11472 = vmatpush3.bf16.msra.mxu0 %v12280_v16  ;;  %v15223_v53 = vor.u32 %v10177_v57, %v10176_v55  ;;  %v12285_v57 = vld [vmem:[%s13936_s18 + $0x2c8] sm:$0xff]  }
 0x8f5   : > { %11473 = vmatprep.subr.bf16.mxu0 %v12281_v5  ;;  %v12284_v5 = vld [vmem:[%s13936_s18 + $0x280] sm:$0xff]  }
 0x8f6   : > { %v15227_v51 = vrot.slane %v15223_v53, %v14366_v41  ;;  %v15235_v54 = vrot.slane %v15223_v53, %v14372_v30  ;;  %v15239_v11 = vrot.slane %v15223_v53, %v14375_v31 }
 0x8f8   : > { %11474 = vmatpush3.bf16.msra.mxu0 %v12282_v1 }
 0x8fb   : > { %3785 = vmatmul.mubr.bf16.gmra.mrb[160].mxu0 %v15141_v49  ;;  %v15231_v49 = vrot.slane %v15223_v53, %v14369_v29 }
 0x8fc   : > { %3794 = vmatprep.mubr.bf16.mxu0 %v13528_v63 }
 0x903   : > { %3795 = vmatmul.mubr.bf16.gmra.mrb[164].mxu0 %v15157_v19 }
 0x904   : > { %3804 = vmatprep.mubr.bf16.mxu0 %v13528_v63 }
 0x90b   : > { %3805 = vmatmul.mubr.bf16.gmra.mrb[168].mxu0 %v3164_v44 }
 0x90c   : > { %3814 = vmatprep.mubr.bf16.mxu0 %v13528_v63 }
 0x913   : > { %3815 = vmatmul.mubr.bf16.gmra.mrb[172].mxu0 %v3165_v40 }
 0x96e   : > { %v3520_v4 = vpop.f32.mrb[112].mxu0  ;;  %v3633_v45 = vpop.f32.mrb[112].mxu1 }
 0x96f   : > { %v3521_v19 = vadd.f32 %v3520_v4, %v15227_v51  ;;  %v3634_v48 = vadd.f32 %v3633_v45, %v15231_v49  ;;  %v3522_v58 = vpop.f32.mrb[113].mxu0  ;;  %v3635_v0 = vpop.f32.mrb[113].mxu1 }
 0x970   : > { %v3523_v52 = vadd.f32 %v3522_v58, %v15235_v54  ;;  %v3636_v14 = vadd.f32 %v3635_v0, %v15239_v11  ;;  %v3524_v12 = vpop.f32.mrb[114].mxu0  ;;  %v3637_v9 = vpop.f32.mrb[114].mxu1 }
 0x971   : > { %v3525_v15 = vadd.f32 %v3524_v12, %v15227_v51  ;;  %v3638_v50 = vadd.f32 %v3637_v9, %v15231_v49  ;;  %v3526_v44 = vpop.f32.mrb[115].mxu0  ;;  %v3639_v18 = vpop.f32.mrb[115].mxu1  ;;  %v3825_v28 = vmax.f32 %v3521_v19, 0.0  ;;  %v3827_v60 = vmax.f32 %v3634_v48, 0.0 }
 0x972   : > { %v3527_v42 = vadd.f32 %v3526_v44, %v15235_v54  ;;  %v3640_v40 = vadd.f32 %v3639_v18, %v15239_v11  ;;  %v3826_v23 = vmax.f32 %v3523_v52, 0.0  ;;  %v3828_v37 = vmax.f32 %v3636_v14, 0.0 }
 0x973   : > { %v3831_v10 = vmax.f32 %v3525_v15, 0.0  ;;  %v3833_v35 = vmax.f32 %v3638_v50, 0.0  ;;  %v12286_v15 = vld [vmem:[%s13936_s18 + $0x288] sm:$0xff]  }
 0x974   : > { %v3832_v26 = vmax.f32 %v3527_v42, 0.0  ;;  %v3834_v13 = vmax.f32 %v3640_v40, 0.0  ;;  %v12287_v40 = vld [vmem:[%s13936_s18 + $0x2d0] sm:$0xff]  }
 0x975   : > { %v3921_v59 = vpack.c.bf16 %v3831_v10, %v3825_v28  ;;  %v3923_v34 = vpack.c.bf16 %v3833_v35, %v3827_v60 }
 0x976   : > { %v3922_v8 = vpack.c.bf16 %v3832_v26, %v3826_v23  ;;  %v3924_v25 = vpack.c.bf16 %v3834_v13, %v3828_v37  ;;  %v3530_v16 = vpop.f32.mrb[116].mxu0  ;;  %v3643_v7 = vpop.f32.mrb[116].mxu1 }
 0x977   : > { %v3531_v27 = vadd.f32 %v3530_v16, %v15227_v51  ;;  %v3644_v1 = vadd.f32 %v3643_v7, %v15231_v49  ;;  %v3532_v20 = vpop.f32.mrb[117].mxu0  ;;  %v3645_v55 = vpop.f32.mrb[117].mxu1 }
 0x978   : > { %v3533_v4 = vadd.f32 %v3532_v20, %v15235_v54  ;;  %v3646_v45 = vadd.f32 %v3645_v55, %v15239_v11  ;;  %v3534_v19 = vpop.f32.mrb[118].mxu0  ;;  %v3647_v48 = vpop.f32.mrb[118].mxu1  ;;  %4386 = vmatprep.mubr.bf16.mxu1 %v3922_v8  ;;  %4483 = vmatprep.mubr.bf16.mxu0 %v3924_v25  ;;  %v12288_v8 = vld [vmem:[%s13936_s18 + $0x290] sm:$0xff]  }
 0x979   : > { %v3535_v58 = vadd.f32 %v3534_v19, %v15227_v51  ;;  %v3648_v0 = vadd.f32 %v3647_v48, %v15231_v49  ;;  %v3536_v52 = vpop.f32.mrb[119].mxu0  ;;  %v3649_v14 = vpop.f32.mrb[119].mxu1  ;;  %4387 = vmatmul.mubr.bf16.vlgmr.msra.gmra.mrb[144].mxu1 %v3921_v59  ;;  %4484 = vmatmul.mubr.bf16.vlgmr.msra.gmra.mrb[176].mxu0 %v3923_v34  ;;  %v3837_v50 = vmax.f32 %v3531_v27, 0.0  ;;  %v3839_v44 = vmax.f32 %v3644_v1, 0.0  ;;  %v12289_v27 = vld [vmem:[%s13936_s18 + $0x2d8] sm:$0xff]  }
 0x97a   : > { %v3537_v12 = vadd.f32 %v3536_v52, %v15235_v54  ;;  %v3650_v9 = vadd.f32 %v3649_v14, %v15239_v11  ;;  %11524 = vmatpush3.bf16.msra.mxu1 %v12284_v5  ;;  %v3838_v28 = vmax.f32 %v3533_v4, 0.0  ;;  %v3840_v60 = vmax.f32 %v3646_v45, 0.0  ;;  %v12290_v52 = vld [vmem:[%s13936_s18 + $0x298] sm:$0xff]  }
 0x97b   : > { %v3843_v18 = vmax.f32 %v3535_v58, 0.0  ;;  %v3845_v42 = vmax.f32 %v3648_v0, 0.0  ;;  %11525 = vmatprep.subr.bf16.mxu1 %v12285_v57 }
 0x97c   : > { %v3844_v10 = vmax.f32 %v3537_v12, 0.0  ;;  %v3846_v35 = vmax.f32 %v3650_v9, 0.0 }
 0x97d   : > { %v3927_v23 = vpack.c.bf16 %v3843_v18, %v3837_v50  ;;  %v3929_v37 = vpack.c.bf16 %v3845_v42, %v3839_v44  ;;  %v12291_v50 = vld [vmem:[%s13936_s18 + $0x2e0] sm:$0xff]  }
 0x97e   : > { %v3928_v26 = vpack.c.bf16 %v3844_v10, %v3838_v28  ;;  %v3930_v13 = vpack.c.bf16 %v3846_v35, %v3840_v60  ;;  %v3540_v59 = vpop.f32.mrb[120].mxu0  ;;  %v3653_v34 = vpop.f32.mrb[120].mxu1  ;;  %11526 = vmatpush3.bf16.msra.mxu1 %v12286_v15 }
 0x97f   : > { %v3541_v25 = vadd.f32 %v3540_v59, %v15227_v51  ;;  %v3654_v16 = vadd.f32 %v3653_v34, %v15231_v49  ;;  %v3542_v7 = vpop.f32.mrb[121].mxu0  ;;  %v3655_v5 = vpop.f32.mrb[121].mxu1  ;;  %11527 = vmatprep.subr.bf16.mxu1 %v12287_v40 }
 0x980   : > { %v3543_v1 = vadd.f32 %v3542_v7, %v15235_v54  ;;  %v3656_v20 = vadd.f32 %v3655_v5, %v15239_v11  ;;  %v3544_v55 = vpop.f32.mrb[122].mxu0  ;;  %v3657_v57 = vpop.f32.mrb[122].mxu1  ;;  %4394 = vmatprep.mubr.bf16.mxu1 %v3928_v26  ;;  %4491 = vmatprep.mubr.bf16.mxu0 %v3930_v13  ;;  %v12292_v26 = vld [vmem:[%s13936_s18 + $0x2a0] sm:$0xff]  }
 0x981   : > { %v3545_v4 = vadd.f32 %v3544_v55, %v15227_v51  ;;  %v3658_v45 = vadd.f32 %v3657_v57, %v15231_v49  ;;  %v3546_v19 = vpop.f32.mrb[123].mxu0  ;;  %v3659_v48 = vpop.f32.mrb[123].mxu1  ;;  %4395 = vmatmul.mubr.bf16.gmra.mrb[148].mxu1 %v3927_v23  ;;  %4492 = vmatmul.mubr.bf16.gmra.mrb[180].mxu0 %v3929_v37  ;;  %v3849_v14 = vmax.f32 %v3541_v25, 0.0  ;;  %v3851_v12 = vmax.f32 %v3654_v16, 0.0  ;;  %v12293_v25 = vld [vmem:[%s13936_s18 + $0x2e8] sm:$0xff]  }
 0x982   : > { %v3547_v58 = vadd.f32 %v3546_v19, %v15235_v54  ;;  %v3660_v0 = vadd.f32 %v3659_v48, %v15239_v11  ;;  %11528 = vmatpush3.bf16.msra.mxu1 %v12288_v8  ;;  %v3850_v44 = vmax.f32 %v3543_v1, 0.0  ;;  %v3852_v18 = vmax.f32 %v3656_v20, 0.0  ;;  %v12294_v19 = vld [vmem:[%s13936_s18 + $0x2a8] sm:$0xff]  }
 0x983   : > { %v3855_v9 = vmax.f32 %v3545_v4, 0.0  ;;  %v3857_v15 = vmax.f32 %v3658_v45, 0.0  ;;  %11529 = vmatprep.subr.bf16.mxu1 %v12289_v27 }
 0x984   : > { %v3856_v42 = vmax.f32 %v3547_v58, 0.0  ;;  %v3858_v40 = vmax.f32 %v3660_v0, 0.0 }
 0x985   : > { %v3933_v28 = vpack.c.bf16 %v3855_v9, %v3849_v14  ;;  %v3935_v60 = vpack.c.bf16 %v3857_v15, %v3851_v12  ;;  %v12295_v14 = vld [vmem:[%s13936_s18 + $0x2f0] sm:$0xff]  }
 0x986   : > { %v3934_v10 = vpack.c.bf16 %v3856_v42, %v3850_v44  ;;  %v3936_v35 = vpack.c.bf16 %v3858_v40, %v3852_v18  ;;  %v3550_v23 = vpop.f32.mrb[124].mxu0  ;;  %v3663_v37 = vpop.f32.mrb[124].mxu1  ;;  %11530 = vmatpush3.bf16.msra.mxu1 %v12290_v52 }
 0x987   : > { %v3551_v13 = vadd.f32 %v3550_v23, %v15227_v51  ;;  %v3664_v59 = vadd.f32 %v3663_v37, %v15231_v49  ;;  %v3552_v34 = vpop.f32.mrb[125].mxu0  ;;  %v3665_v8 = vpop.f32.mrb[125].mxu1  ;;  %11531 = vmatprep.subr.bf16.mxu1 %v12291_v50 }
 0x988   : > { %v3553_v16 = vadd.f32 %v3552_v34, %v15235_v54  ;;  %v3666_v7 = vadd.f32 %v3665_v8, %v15239_v11  ;;  %v3554_v5 = vpop.f32.mrb[126].mxu0  ;;  %v3667_v27 = vpop.f32.mrb[126].mxu1  ;;  %4402 = vmatprep.mubr.bf16.mxu1 %v3934_v10  ;;  %4499 = vmatprep.mubr.bf16.mxu0 %v3936_v35  ;;  %v12296_v10 = vld [vmem:[%s13936_s18 + $0x2b0] sm:$0xff]  }
 0x989   : > { %v3555_v1 = vadd.f32 %v3554_v5, %v15227_v51  ;;  %v3668_v20 = vadd.f32 %v3667_v27, %v15231_v49  ;;  %v3556_v55 = vpop.f32.mrb[127].mxu0  ;;  %v3669_v57 = vpop.f32.mrb[127].mxu1  ;;  %4403 = vmatmul.mubr.bf16.gmra.mrb[152].mxu1 %v3933_v28  ;;  %4500 = vmatmul.mubr.bf16.gmra.mrb[184].mxu0 %v3935_v60  ;;  %v3861_v48 = vmax.f32 %v3551_v13, 0.0  ;;  %v3863_v58 = vmax.f32 %v3664_v59, 0.0  ;;  %v12297_v13 = vld [vmem:[%s13936_s18 + $0x2f8] sm:$0xff]  }
 0x98a   : > { %v3557_v4 = vadd.f32 %v3556_v55, %v15235_v54  ;;  %v3670_v45 = vadd.f32 %v3669_v57, %v15239_v11  ;;  %11532 = vmatpush3.bf16.msra.mxu1 %v12292_v26  ;;  %v3862_v12 = vmax.f32 %v3553_v16, 0.0  ;;  %v3864_v9 = vmax.f32 %v3666_v7, 0.0  ;;  %v12298_v55 = vld [vmem:[%s13936_s18 + $0x2b8] sm:$0xff]  }
 0x98b   : > { %v3867_v0 = vmax.f32 %v3555_v1, 0.0  ;;  %v3869_v52 = vmax.f32 %v3668_v20, 0.0  ;;  %11533 = vmatprep.subr.bf16.mxu1 %v12293_v25 }
 0x98c   : > { %v3868_v15 = vmax.f32 %v3557_v4, 0.0  ;;  %v3870_v50 = vmax.f32 %v3670_v45, 0.0 }
 0x98d   : > { %v3939_v44 = vpack.c.bf16 %v3867_v0, %v3861_v48  ;;  %v3941_v18 = vpack.c.bf16 %v3869_v52, %v3863_v58 }
 0x98e   : > { %v3940_v42 = vpack.c.bf16 %v3868_v15, %v3862_v12  ;;  %v3942_v40 = vpack.c.bf16 %v3870_v50, %v3864_v9  ;;  %v3560_v28 = vpop.f32.mrb[128].mxu0  ;;  %v3673_v60 = vpop.f32.mrb[128].mxu1  ;;  %11534 = vmatpush3.bf16.msra.mxu1 %v12294_v19 }
 0x98f   : > { %v3561_v35 = vadd.f32 %v3560_v28, %v15227_v51  ;;  %v3674_v23 = vadd.f32 %v3673_v60, %v15231_v49  ;;  %v3562_v37 = vpop.f32.mrb[129].mxu0  ;;  %v3675_v26 = vpop.f32.mrb[129].mxu1  ;;  %11535 = vmatprep.subr.bf16.mxu1 %v12295_v14 }
 0x990   : > { %v3563_v59 = vadd.f32 %v3562_v37, %v15235_v54  ;;  %v3676_v34 = vadd.f32 %v3675_v26, %v15239_v11  ;;  %v3564_v8 = vpop.f32.mrb[130].mxu0  ;;  %v3677_v25 = vpop.f32.mrb[130].mxu1  ;;  %4410 = vmatprep.mubr.bf16.mxu1 %v3940_v42  ;;  %4507 = vmatprep.mubr.bf16.mxu0 %v3942_v40 }
 0x991   : > { %v3565_v16 = vadd.f32 %v3564_v8, %v15227_v51  ;;  %v3678_v7 = vadd.f32 %v3677_v25, %v15231_v49  ;;  %v3566_v5 = vpop.f32.mrb[131].mxu0  ;;  %v3679_v27 = vpop.f32.mrb[131].mxu1  ;;  %4411 = vmatmul.mubr.bf16.gmra.mrb[156].mxu1 %v3939_v44  ;;  %4508 = vmatmul.mubr.bf16.gmra.mrb[188].mxu0 %v3941_v18  ;;  %v3873_v57 = vmax.f32 %v3561_v35, 0.0  ;;  %v3875_v4 = vmax.f32 %v3674_v23, 0.0 }
 0x992   : > { %v3567_v1 = vadd.f32 %v3566_v5, %v15235_v54  ;;  %v3680_v20 = vadd.f32 %v3679_v27, %v15239_v11  ;;  %11536 = vmatpush3.bf16.msra.mxu1 %v12296_v10  ;;  %v3874_v48 = vmax.f32 %v3563_v59, 0.0  ;;  %v3876_v58 = vmax.f32 %v3676_v34, 0.0 }
 0x993   : > { %v3879_v45 = vmax.f32 %v3565_v16, 0.0  ;;  %v3881_v19 = vmax.f32 %v3678_v7, 0.0  ;;  %11537 = vmatprep.subr.bf16.mxu1 %v12297_v13 }
 0x994   : > { %v3880_v0 = vmax.f32 %v3567_v1, 0.0  ;;  %v3882_v52 = vmax.f32 %v3680_v20, 0.0 }
 0x995   : > { %v3945_v14 = vpack.c.bf16 %v3879_v45, %v3873_v57  ;;  %v3947_v12 = vpack.c.bf16 %v3881_v19, %v3875_v4 }
 0x996   : > { %v3946_v9 = vpack.c.bf16 %v3880_v0, %v3874_v48  ;;  %v3948_v15 = vpack.c.bf16 %v3882_v52, %v3876_v58  ;;  %v3570_v50 = vpop.f32.mrb[132].mxu0  ;;  %v3683_v44 = vpop.f32.mrb[132].mxu1  ;;  %11538 = vmatpush3.bf16.msra.mxu1 %v12298_v55 }
 0x997   : > { %v3571_v18 = vadd.f32 %v3570_v50, %v15227_v51  ;;  %v3684_v42 = vadd.f32 %v3683_v44, %v15231_v49  ;;  %v3572_v40 = vpop.f32.mrb[133].mxu0  ;;  %v3685_v28 = vpop.f32.mrb[133].mxu1 }
 0x998   : > { %v3573_v60 = vadd.f32 %v3572_v40, %v15235_v54  ;;  %v3686_v10 = vadd.f32 %v3685_v28, %v15239_v11  ;;  %v3574_v35 = vpop.f32.mrb[134].mxu0  ;;  %v3687_v23 = vpop.f32.mrb[134].mxu1  ;;  %4418 = vmatprep.mubr.bf16.mxu1 %v3946_v9  ;;  %4515 = vmatprep.mubr.bf16.mxu0 %v3948_v15 }
 0x999   : > { %v3575_v37 = vadd.f32 %v3574_v35, %v15227_v51  ;;  %v3688_v26 = vadd.f32 %v3687_v23, %v15231_v49  ;;  %v3576_v13 = vpop.f32.mrb[135].mxu0  ;;  %v3689_v59 = vpop.f32.mrb[135].mxu1  ;;  %4419 = vmatmul.mubr.bf16.gmra.mrb[160].mxu1 %v3945_v14  ;;  %4516 = vmatmul.mubr.bf16.gmra.mrb[192].mxu0 %v3947_v12  ;;  %v3885_v25 = vmax.f32 %v3571_v18, 0.0  ;;  %v3887_v16 = vmax.f32 %v3684_v42, 0.0 }
 0x99a   : > { %v3577_v34 = vadd.f32 %v3576_v13, %v15235_v54  ;;  %v3690_v8 = vadd.f32 %v3689_v59, %v15239_v11  ;;  %v3886_v27 = vmax.f32 %v3573_v60, 0.0  ;;  %v3888_v1 = vmax.f32 %v3686_v10, 0.0 }
 0x99b   : > { %v3891_v7 = vmax.f32 %v3575_v37, 0.0  ;;  %v3893_v5 = vmax.f32 %v3688_v26, 0.0 }
 0x99c   : > { %v3892_v20 = vmax.f32 %v3577_v34, 0.0  ;;  %v3894_v55 = vmax.f32 %v3690_v8, 0.0 }
 0x99d   : > { %v3951_v57 = vpack.c.bf16 %v3891_v7, %v3885_v25  ;;  %v3953_v4 = vpack.c.bf16 %v3893_v5, %v3887_v16 }
 0x99e   : > { %v3952_v45 = vpack.c.bf16 %v3892_v20, %v3886_v27  ;;  %v3954_v19 = vpack.c.bf16 %v3894_v55, %v3888_v1  ;;  %v3580_v48 = vpop.f32.mrb[136].mxu0  ;;  %v3693_v58 = vpop.f32.mrb[136].mxu1 }
 0x99f   : > { %v3581_v0 = vadd.f32 %v3580_v48, %v15227_v51  ;;  %v3694_v52 = vadd.f32 %v3693_v58, %v15231_v49  ;;  %v3582_v14 = vpop.f32.mrb[137].mxu0  ;;  %v3695_v12 = vpop.f32.mrb[137].mxu1 }
 0x9a0   : > { %v3583_v9 = vadd.f32 %v3582_v14, %v15235_v54  ;;  %v3696_v15 = vadd.f32 %v3695_v12, %v15239_v11  ;;  %v3584_v50 = vpop.f32.mrb[138].mxu0  ;;  %v3697_v44 = vpop.f32.mrb[138].mxu1  ;;  %4426 = vmatprep.mubr.bf16.mxu1 %v3952_v45  ;;  %4523 = vmatprep.mubr.bf16.mxu0 %v3954_v19 }
 0x9a1   : > { %v3585_v18 = vadd.f32 %v3584_v50, %v15227_v51  ;;  %v3698_v42 = vadd.f32 %v3697_v44, %v15231_v49  ;;  %v3586_v40 = vpop.f32.mrb[139].mxu0  ;;  %v3699_v28 = vpop.f32.mrb[139].mxu1  ;;  %4427 = vmatmul.mubr.bf16.gmra.mrb[164].mxu1 %v3951_v57  ;;  %4524 = vmatmul.mubr.bf16.gmra.mrb[196].mxu0 %v3953_v4  ;;  %v3897_v35 = vmax.f32 %v3581_v0, 0.0  ;;  %v3899_v23 = vmax.f32 %v3694_v52, 0.0 }
 0x9a2   : > { %v3587_v60 = vadd.f32 %v3586_v40, %v15235_v54  ;;  %v3700_v10 = vadd.f32 %v3699_v28, %v15239_v11  ;;  %v3898_v13 = vmax.f32 %v3583_v9, 0.0  ;;  %v3900_v59 = vmax.f32 %v3696_v15, 0.0 }
 0x9a3   : > { %v3903_v37 = vmax.f32 %v3585_v18, 0.0  ;;  %v3905_v26 = vmax.f32 %v3698_v42, 0.0  ;;  %v15322_v50 = vrot.slane %v15223_v53, %v14465_v17  ;;  %v15326_v44 = vrot.slane %v15223_v53, %v14468_v6 }
 0x9a4   : > { %v3904_v34 = vmax.f32 %v3587_v60, 0.0  ;;  %v3906_v8 = vmax.f32 %v3700_v10, 0.0 }
 0x9a5   : > { %v3957_v25 = vpack.c.bf16 %v3903_v37, %v3897_v35  ;;  %v3959_v16 = vpack.c.bf16 %v3905_v26, %v3899_v23 }
 0x9a6   : > { %v3958_v7 = vpack.c.bf16 %v3904_v34, %v3898_v13  ;;  %v3960_v5 = vpack.c.bf16 %v3906_v8, %v3900_v59  ;;  %v3590_v27 = vpop.f32.mrb[140].mxu0  ;;  %v3703_v1 = vpop.f32.mrb[140].mxu1 }
 0x9a7   : > { %v3591_v20 = vadd.f32 %v3590_v27, %v15227_v51  ;;  %v3704_v55 = vadd.f32 %v3703_v1, %v15231_v49  ;;  %v3592_v57 = vpop.f32.mrb[141].mxu0  ;;  %v3705_v4 = vpop.f32.mrb[141].mxu1 }
 0x9a8   : > { %v3593_v45 = vadd.f32 %v3592_v57, %v15235_v54  ;;  %v3706_v19 = vadd.f32 %v3705_v4, %v15239_v11  ;;  %v3594_v48 = vpop.f32.mrb[142].mxu0  ;;  %v3707_v58 = vpop.f32.mrb[142].mxu1  ;;  %4434 = vmatprep.mubr.bf16.mxu1 %v3958_v7  ;;  %4531 = vmatprep.mubr.bf16.mxu0 %v3960_v5 }
 0x9a9   : > { %v3595_v0 = vadd.f32 %v3594_v48, %v15227_v51  ;;  %v3708_v52 = vadd.f32 %v3707_v58, %v15231_v49  ;;  %v3596_v14 = vpop.f32.mrb[143].mxu0  ;;  %v3709_v12 = vpop.f32.mrb[143].mxu1  ;;  %4435 = vmatmul.mubr.bf16.gmra.mrb[168].mxu1 %v3957_v25  ;;  %4532 = vmatmul.mubr.bf16.gmra.mrb[200].mxu0 %v3959_v16  ;;  %v3909_v18 = vmax.f32 %v3591_v20, 0.0  ;;  %v3911_v51 = vmax.f32 %v3704_v55, 0.0 }
 0x9aa   : > { %v3597_v9 = vadd.f32 %v3596_v14, %v15235_v54  ;;  %v3710_v15 = vadd.f32 %v3709_v12, %v15239_v11  ;;  %v3910_v40 = vmax.f32 %v3593_v45, 0.0  ;;  %v3912_v28 = vmax.f32 %v3706_v19, 0.0 }
 0x9ab   : > { %v3915_v42 = vmax.f32 %v3595_v0, 0.0  ;;  %v3917_v49 = vmax.f32 %v3708_v52, 0.0 }
 0x9ac   : > { %v3916_v60 = vmax.f32 %v3597_v9, 0.0  ;;  %v3918_v10 = vmax.f32 %v3710_v15, 0.0 }
 0x9ad   : > { %v3963_v35 = vpack.c.bf16 %v3915_v42, %v3909_v18  ;;  %v3965_v54 = vpack.c.bf16 %v3917_v49, %v3911_v51 }
 0x9ae   : > { %v3964_v23 = vpack.c.bf16 %v3916_v60, %v3910_v40  ;;  %v3966_v11 = vpack.c.bf16 %v3918_v10, %v3912_v28  ;;  %v3746_v37 = vpop.f32.mrb[144].mxu0 }
 0x9af   : > { %v3747_v26 = vadd.f32 %v3746_v37, %v15322_v50  ;;  %v3748_v13 = vpop.f32.mrb[145].mxu0 }
 0x9b0   : > { %v3749_v59 = vadd.f32 %v3748_v13, %v15326_v44  ;;  %v3750_v53 = vpop.f32.mrb[146].mxu0  ;;  %4442 = vmatprep.mubr.bf16.mxu1 %v3964_v23  ;;  %4539 = vmatprep.mubr.bf16.mxu0 %v3966_v11 }
 0x9b1   : > { %v3751_v34 = vadd.f32 %v3750_v53, %v15322_v50  ;;  %v3752_v8 = vpop.f32.mrb[147].mxu0  ;;  %4443 = vmatmul.mubr.bf16.gmra.mrb[172].mxu1 %v3963_v35  ;;  %4540 = vmatmul.mubr.bf16.gmra.mrb[204].mxu0 %v3965_v54  ;;  %v3829_v16 = vmax.f32 %v3747_v26, 0.0 }
 0x9b2   : > { %v3753_v25 = vadd.f32 %v3752_v8, %v15326_v44  ;;  %v3830_v5 = vmax.f32 %v3749_v59, 0.0 }
 0x9b3   : > { %v3835_v7 = vmax.f32 %v3751_v34, 0.0 }
 0x9b4   : > { %v3836_v27 = vmax.f32 %v3753_v25, 0.0 }
 0x9b5   : > { %v3925_v1 = vpack.c.bf16 %v3835_v7, %v3829_v16 }
 0x9b6   : > { %v3926_v20 = vpack.c.bf16 %v3836_v27, %v3830_v5  ;;  %v3756_v55 = vpop.f32.mrb[148].mxu0 }
 0x9b7   : > { %v3757_v57 = vadd.f32 %v3756_v55, %v15322_v50  ;;  %v3758_v4 = vpop.f32.mrb[149].mxu0 }
 0x9b8   : > { %v3759_v45 = vadd.f32 %v3758_v4, %v15326_v44  ;;  %v3760_v19 = vpop.f32.mrb[150].mxu0  ;;  %4580 = vmatprep.mubr.bf16.mxu1 %v3926_v20 }
 0x9b9   : > { %v3761_v48 = vadd.f32 %v3760_v19, %v15322_v50  ;;  %v3762_v58 = vpop.f32.mrb[151].mxu0  ;;  %4581 = vmatmul.mubr.bf16.vlgmr.msra.gmra.mrb[176].mxu1 %v3925_v1  ;;  %v3841_v52 = vmax.f32 %v3757_v57, 0.0 }
 0x9ba   : > { %v3763_v0 = vadd.f32 %v3762_v58, %v15326_v44  ;;  %v3842_v12 = vmax.f32 %v3759_v45, 0.0 }
 0x9bb   : > { %v3847_v14 = vmax.f32 %v3761_v48, 0.0 }
 0x9bc   : > { %v3848_v9 = vmax.f32 %v3763_v0, 0.0 }
 0x9bd   : > { %v3931_v15 = vpack.c.bf16 %v3847_v14, %v3841_v52 }
 0x9be   : > { %v3932_v18 = vpack.c.bf16 %v3848_v9, %v3842_v12  ;;  %v3766_v51 = vpop.f32.mrb[152].mxu0 }
 0x9bf   : > { %v3767_v42 = vadd.f32 %v3766_v51, %v15322_v50  ;;  %v3768_v49 = vpop.f32.mrb[153].mxu0 }
 0x9c0   : > { %v3769_v40 = vadd.f32 %v3768_v49, %v15326_v44  ;;  %v3770_v28 = vpop.f32.mrb[154].mxu0  ;;  %4588 = vmatprep.mubr.bf16.mxu1 %v3932_v18 }
 0x9c1   : > { %v3771_v60 = vadd.f32 %v3770_v28, %v15322_v50  ;;  %v3772_v10 = vpop.f32.mrb[155].mxu0  ;;  %4589 = vmatmul.mubr.bf16.gmra.mrb[180].mxu1 %v3931_v15  ;;  %v3853_v54 = vmax.f32 %v3767_v42, 0.0 }
 0x9c2   : > { %v3773_v35 = vadd.f32 %v3772_v10, %v15326_v44  ;;  %v3854_v11 = vmax.f32 %v3769_v40, 0.0 }
 0x9c3   : > { %v3859_v23 = vmax.f32 %v3771_v60, 0.0 }
 0x9c4   : > { %v3860_v37 = vmax.f32 %v3773_v35, 0.0 }
 0x9c5   : > { %v3937_v26 = vpack.c.bf16 %v3859_v23, %v3853_v54 }
 0x9c6   : > { %v3938_v13 = vpack.c.bf16 %v3860_v37, %v3854_v11  ;;  %v3776_v59 = vpop.f32.mrb[156].mxu0 }
 0x9c7   : > { %v3777_v53 = vadd.f32 %v3776_v59, %v15322_v50  ;;  %v3778_v34 = vpop.f32.mrb[157].mxu0 }
 0x9c8   : > { %v3779_v8 = vadd.f32 %v3778_v34, %v15326_v44  ;;  %v3780_v25 = vpop.f32.mrb[158].mxu0  ;;  %4596 = vmatprep.mubr.bf16.mxu1 %v3938_v13 }
 0x9c9   : > { %v3781_v16 = vadd.f32 %v3780_v25, %v15322_v50  ;;  %v3782_v7 = vpop.f32.mrb[159].mxu0  ;;  %4597 = vmatmul.mubr.bf16.gmra.mrb[184].mxu1 %v3937_v26  ;;  %v3865_v27 = vmax.f32 %v3777_v53, 0.0 }
 0x9ca   : > { %v3783_v5 = vadd.f32 %v3782_v7, %v15326_v44  ;;  %v3866_v20 = vmax.f32 %v3779_v8, 0.0 }
 0x9cb   : > { %v3871_v1 = vmax.f32 %v3781_v16, 0.0 }
 0x9cc   : > { %v3872_v55 = vmax.f32 %v3783_v5, 0.0 }
 0x9cd   : > { %v3943_v57 = vpack.c.bf16 %v3871_v1, %v3865_v27 }
 0x9ce   : > { %v3944_v4 = vpack.c.bf16 %v3872_v55, %v3866_v20  ;;  %v3786_v45 = vpop.f32.mrb[160].mxu0 }
 0x9cf   : > { %v3787_v19 = vadd.f32 %v3786_v45, %v15322_v50  ;;  %v3788_v48 = vpop.f32.mrb[161].mxu0 }
 0x9d0   : > { %v3789_v58 = vadd.f32 %v3788_v48, %v15326_v44  ;;  %v3790_v0 = vpop.f32.mrb[162].mxu0  ;;  %4604 = vmatprep.mubr.bf16.mxu1 %v3944_v4 }
 0x9d1   : > { %v3791_v52 = vadd.f32 %v3790_v0, %v15322_v50  ;;  %v3792_v14 = vpop.f32.mrb[163].mxu0  ;;  %4605 = vmatmul.mubr.bf16.gmra.mrb[188].mxu1 %v3943_v57  ;;  %v3877_v9 = vmax.f32 %v3787_v19, 0.0 }
 0x9d2   : > { %v3793_v12 = vadd.f32 %v3792_v14, %v15326_v44  ;;  %v3878_v18 = vmax.f32 %v3789_v58, 0.0 }
 0x9d3   : > { %v3883_v15 = vmax.f32 %v3791_v52, 0.0 }
 0x9d4   : > { %v3884_v51 = vmax.f32 %v3793_v12, 0.0 }
 0x9d5   : > { %v3949_v42 = vpack.c.bf16 %v3883_v15, %v3877_v9 }
 0x9d6   : > { %v3950_v49 = vpack.c.bf16 %v3884_v51, %v3878_v18  ;;  %v3796_v40 = vpop.f32.mrb[164].mxu0 }
 0x9d7   : > { %v3797_v28 = vadd.f32 %v3796_v40, %v15322_v50  ;;  %v3798_v60 = vpop.f32.mrb[165].mxu0 }
 0x9d8   : > { %v3799_v10 = vadd.f32 %v3798_v60, %v15326_v44  ;;  %v3800_v35 = vpop.f32.mrb[166].mxu0  ;;  %4612 = vmatprep.mubr.bf16.mxu1 %v3950_v49 }
 0x9d9   : > { %v3801_v54 = vadd.f32 %v3800_v35, %v15322_v50  ;;  %v3802_v23 = vpop.f32.mrb[167].mxu0  ;;  %4613 = vmatmul.mubr.bf16.gmra.mrb[192].mxu1 %v3949_v42  ;;  %v3889_v37 = vmax.f32 %v3797_v28, 0.0 }
 0x9da   : > { %v3803_v11 = vadd.f32 %v3802_v23, %v15326_v44  ;;  %v3890_v13 = vmax.f32 %v3799_v10, 0.0 }
 0x9db   : > { %v3895_v26 = vmax.f32 %v3801_v54, 0.0  ;;  %v15362_v54 = vld [vmem:[%s13925_s21 + $0x34] ss:$0 sm:$0xff] }
 0x9dc   : > { %v3896_v59 = vmax.f32 %v3803_v11, 0.0 }
 0x9dd   : > { %v3955_v53 = vpack.c.bf16 %v3895_v26, %v3889_v37 }
 0x9de   : > { %v3956_v34 = vpack.c.bf16 %v3896_v59, %v3890_v13  ;;  %v3806_v8 = vpop.f32.mrb[168].mxu0 }
 0x9df   : > { %v3807_v25 = vadd.f32 %v3806_v8, %v15322_v50  ;;  %v3808_v16 = vpop.f32.mrb[169].mxu0 }
 0x9e0   : > { %v3809_v7 = vadd.f32 %v3808_v16, %v15326_v44  ;;  %v3810_v5 = vpop.f32.mrb[170].mxu0  ;;  %4620 = vmatprep.mubr.bf16.mxu1 %v3956_v34 }
 0x9e1   : > { %v3811_v27 = vadd.f32 %v3810_v5, %v15322_v50  ;;  %v3812_v1 = vpop.f32.mrb[171].mxu0  ;;  %4621 = vmatmul.mubr.bf16.gmra.mrb[196].mxu1 %v3955_v53  ;;  %v3901_v55 = vmax.f32 %v3807_v25, 0.0 }
 0x9e2   : > { %v3813_v20 = vadd.f32 %v3812_v1, %v15326_v44  ;;  %v3902_v4 = vmax.f32 %v3809_v7, 0.0 }
 0x9e3   : > { %v3907_v57 = vmax.f32 %v3811_v27, 0.0 }
 0x9e4   : > { %v3908_v45 = vmax.f32 %v3813_v20, 0.0 }
 0x9e5   : > { %v3961_v19 = vpack.c.bf16 %v3907_v57, %v3901_v55 }
 0x9e6   : > { %v3962_v48 = vpack.c.bf16 %v3908_v45, %v3902_v4  ;;  %v3816_v58 = vpop.f32.mrb[172].mxu0 }
 0x9e7   : > { %v3817_v0 = vadd.f32 %v3816_v58, %v15322_v50  ;;  %v3818_v52 = vpop.f32.mrb[173].mxu0 }
 0x9e8   : > { %v3819_v14 = vadd.f32 %v3818_v52, %v15326_v44  ;;  %v3820_v12 = vpop.f32.mrb[174].mxu0  ;;  %4628 = vmatprep.mubr.bf16.mxu1 %v3962_v48 }
 0x9e9   : > { %v3821_v9 = vadd.f32 %v3820_v12, %v15322_v50  ;;  %v3822_v15 = vpop.f32.mrb[175].mxu0  ;;  %4629 = vmatmul.mubr.bf16.gmra.mrb[200].mxu1 %v3961_v19  ;;  %v3913_v51 = vmax.f32 %v3817_v0, 0.0 }
 0x9ea   : > { %v3823_v18 = vadd.f32 %v3822_v15, %v15326_v44  ;;  %v3914_v49 = vmax.f32 %v3819_v14, 0.0 }
 0x9eb   : > { %v3919_v42 = vmax.f32 %v3821_v9, 0.0 }
 0x9ec   : > { %v3920_v40 = vmax.f32 %v3823_v18, 0.0 }
 0x9ed   : > { %v3967_v28 = vpack.c.bf16 %v3919_v42, %v3913_v51 }
 0x9ee   : > { %v3968_v60 = vpack.c.bf16 %v3920_v40, %v3914_v49 }
 0x9f0   : > { %4636 = vmatprep.mubr.bf16.mxu1 %v3968_v60 }
 0x9f1   : > { %4637 = vmatmul.mubr.bf16.gmra.mrb[204].mxu1 %v3967_v28 }
 0x9f2   : > { %5633 = vmatprep.mubr.bf16.mxu1 %v13528_v63 }
 0xa4c   : > { %v11411_v10 = vpop.f32.mrb[144].mxu1  ;;  %v11475_v35 = vpop.f32.mrb[176].mxu0 }
 0xa4d   : > { %v11412_v23 = vpop.f32.mrb[145].mxu1  ;;  %v11476_v50 = vpop.f32.mrb[177].mxu0 }
 0xa4e   : > { %v11413_v11 = vadd.f32 %v11412_v23, %v11411_v10  ;;  %v11477_v37 = vadd.f32 %v11476_v50, %v11475_v35  ;;  %v11414_v26 = vpop.f32.mrb[146].mxu1  ;;  %v11478_v44 = vpop.f32.mrb[178].mxu0 }
 0xa4f   : > { %v11415_v13 = vpop.f32.mrb[147].mxu1  ;;  %v11479_v59 = vpop.f32.mrb[179].mxu0 }
 0xa50   : > { %v4389_v53 = vadd.f32 %v11413_v11, %v15362_v54  ;;  %v11416_v34 = vadd.f32 %v11415_v13, %v11414_v26  ;;  %v11480_v8 = vadd.f32 %v11479_v59, %v11478_v44 }
 0xa52   : > { %v15365_v25 = vadd.f32 %v11477_v37, %v4389_v53  ;;  %v4392_v16 = vadd.f32 %v11416_v34, %v15362_v54 }
 0xa54   : > { %v15368_v7 = vadd.f32 %v11480_v8, %v4392_v16  ;;  %v11417_v5 = vpop.f32.mrb[148].mxu1  ;;  %v11481_v27 = vpop.f32.mrb[180].mxu0 }
 0xa55   : > { %v11418_v1 = vpop.f32.mrb[149].mxu1  ;;  %v11482_v20 = vpop.f32.mrb[181].mxu0 }
 0xa56   : > { %v11419_v55 = vadd.f32 %v11418_v1, %v11417_v5  ;;  %v11483_v57 = vadd.f32 %v11482_v20, %v11481_v27  ;;  %v11420_v4 = vpop.f32.mrb[150].mxu1  ;;  %v11484_v45 = vpop.f32.mrb[182].mxu0 }
 0xa57   : > { %v11421_v19 = vpop.f32.mrb[151].mxu1  ;;  %v11485_v48 = vpop.f32.mrb[183].mxu0 }
 0xa58   : > { %v4397_v58 = vadd.f32 %v11419_v55, %v15362_v54  ;;  %v11422_v0 = vadd.f32 %v11421_v19, %v11420_v4  ;;  %v11486_v52 = vadd.f32 %v11485_v48, %v11484_v45 }
 0xa5a   : > { %v15371_v14 = vadd.f32 %v11483_v57, %v4397_v58  ;;  %v4400_v12 = vadd.f32 %v11422_v0, %v15362_v54 }
 0xa5c   : > { %v15374_v9 = vadd.f32 %v11486_v52, %v4400_v12  ;;  %v11423_v15 = vpop.f32.mrb[152].mxu1  ;;  %v11487_v18 = vpop.f32.mrb[184].mxu0 }
 0xa5d   : > { %v11424_v51 = vpop.f32.mrb[153].mxu1  ;;  %v11488_v42 = vpop.f32.mrb[185].mxu0 }
 0xa5e   : > { %v11425_v49 = vadd.f32 %v11424_v51, %v11423_v15  ;;  %v11489_v40 = vadd.f32 %v11488_v42, %v11487_v18  ;;  %v11426_v28 = vpop.f32.mrb[154].mxu1  ;;  %v11490_v60 = vpop.f32.mrb[186].mxu0 }
 0xa5f   : > { %v11427_v10 = vpop.f32.mrb[155].mxu1  ;;  %v11491_v35 = vpop.f32.mrb[187].mxu0 }
 0xa60   : > { %v4405_v23 = vadd.f32 %v11425_v49, %v15362_v54  ;;  %v11428_v50 = vadd.f32 %v11427_v10, %v11426_v28  ;;  %v11492_v11 = vadd.f32 %v11491_v35, %v11490_v60 }
 0xa62   : > { %v15377_v37 = vadd.f32 %v11489_v40, %v4405_v23  ;;  %v4408_v26 = vadd.f32 %v11428_v50, %v15362_v54 }
 0xa64   : > { %v15380_v44 = vadd.f32 %v11492_v11, %v4408_v26  ;;  %v11429_v13 = vpop.f32.mrb[156].mxu1  ;;  %v11493_v59 = vpop.f32.mrb[188].mxu0 }
 0xa65   : > { %v11430_v53 = vpop.f32.mrb[157].mxu1  ;;  %v11494_v34 = vpop.f32.mrb[189].mxu0 }
 0xa66   : > { %v11431_v8 = vadd.f32 %v11430_v53, %v11429_v13  ;;  %v11495_v16 = vadd.f32 %v11494_v34, %v11493_v59  ;;  %v11432_v5 = vpop.f32.mrb[158].mxu1  ;;  %v11496_v27 = vpop.f32.mrb[190].mxu0 }
 0xa67   : > { %v11433_v1 = vpop.f32.mrb[159].mxu1  ;;  %v11497_v20 = vpop.f32.mrb[191].mxu0 }
 0xa68   : > { %v4413_v55 = vadd.f32 %v11431_v8, %v15362_v54  ;;  %v11434_v57 = vadd.f32 %v11433_v1, %v11432_v5  ;;  %v11498_v4 = vadd.f32 %v11497_v20, %v11496_v27 }
 0xa6a   : > { %v15383_v45 = vadd.f32 %v11495_v16, %v4413_v55  ;;  %v4416_v19 = vadd.f32 %v11434_v57, %v15362_v54 }
 0xa6c   : > { %v15386_v48 = vadd.f32 %v11498_v4, %v4416_v19  ;;  %v11435_v58 = vpop.f32.mrb[160].mxu1  ;;  %v11499_v0 = vpop.f32.mrb[192].mxu0 }
 0xa6d   : > { %v11436_v52 = vpop.f32.mrb[161].mxu1  ;;  %v11500_v12 = vpop.f32.mrb[193].mxu0 }
 0xa6e   : > { %v11437_v15 = vadd.f32 %v11436_v52, %v11435_v58  ;;  %v11501_v18 = vadd.f32 %v11500_v12, %v11499_v0  ;;  %v11438_v51 = vpop.f32.mrb[162].mxu1  ;;  %v11502_v42 = vpop.f32.mrb[194].mxu0 }
 0xa6f   : > { %v11439_v49 = vpop.f32.mrb[163].mxu1  ;;  %v11503_v40 = vpop.f32.mrb[195].mxu0 }
 0xa70   : > { %v4421_v28 = vadd.f32 %v11437_v15, %v15362_v54  ;;  %v11440_v60 = vadd.f32 %v11439_v49, %v11438_v51  ;;  %v11504_v10 = vadd.f32 %v11503_v40, %v11502_v42 }
 0xa72   : > { %v15389_v35 = vadd.f32 %v11501_v18, %v4421_v28  ;;  %v4424_v23 = vadd.f32 %v11440_v60, %v15362_v54 }
 0xa74   : > { %v15392_v50 = vadd.f32 %v11504_v10, %v4424_v23  ;;  %v11441_v11 = vpop.f32.mrb[164].mxu1  ;;  %v11505_v26 = vpop.f32.mrb[196].mxu0 }
 0xa75   : > { %v11442_v13 = vpop.f32.mrb[165].mxu1  ;;  %v11506_v59 = vpop.f32.mrb[197].mxu0 }
 0xa76   : > { %v11443_v53 = vadd.f32 %v11442_v13, %v11441_v11  ;;  %v11507_v34 = vadd.f32 %v11506_v59, %v11505_v26  ;;  %v11444_v8 = vpop.f32.mrb[166].mxu1  ;;  %v11508_v16 = vpop.f32.mrb[198].mxu0 }
 0xa77   : > { %v11445_v5 = vpop.f32.mrb[167].mxu1  ;;  %v11509_v27 = vpop.f32.mrb[199].mxu0 }
 0xa78   : > { %v4429_v1 = vadd.f32 %v11443_v53, %v15362_v54  ;;  %v11446_v20 = vadd.f32 %v11445_v5, %v11444_v8  ;;  %v11510_v55 = vadd.f32 %v11509_v27, %v11508_v16 }
 0xa7a   : > { %v15395_v57 = vadd.f32 %v11507_v34, %v4429_v1  ;;  %v4432_v4 = vadd.f32 %v11446_v20, %v15362_v54 }
 0xa7c   : > { %v15398_v19 = vadd.f32 %v11510_v55, %v4432_v4  ;;  %v11447_v58 = vpop.f32.mrb[168].mxu1  ;;  %v11511_v0 = vpop.f32.mrb[200].mxu0 }
 0xa7d   : > { %v11448_v52 = vpop.f32.mrb[169].mxu1  ;;  %v11512_v12 = vpop.f32.mrb[201].mxu0 }
 0xa7e   : > { %v11449_v15 = vadd.f32 %v11448_v52, %v11447_v58  ;;  %v11513_v18 = vadd.f32 %v11512_v12, %v11511_v0  ;;  %v11450_v51 = vpop.f32.mrb[170].mxu1  ;;  %v11514_v42 = vpop.f32.mrb[202].mxu0 }
 0xa7f   : > { %v11451_v49 = vpop.f32.mrb[171].mxu1  ;;  %v11515_v40 = vpop.f32.mrb[203].mxu0 }
 0xa80   : > { %v4437_v28 = vadd.f32 %v11449_v15, %v15362_v54  ;;  %v11452_v60 = vadd.f32 %v11451_v49, %v11450_v51  ;;  %v11516_v10 = vadd.f32 %v11515_v40, %v11514_v42 }
 0xa82   : > { %v15401_v23 = vadd.f32 %v11513_v18, %v4437_v28  ;;  %v4440_v11 = vadd.f32 %v11452_v60, %v15362_v54 }
 0xa84   : > { %v15404_v26 = vadd.f32 %v11516_v10, %v4440_v11  ;;  %v11453_v13 = vpop.f32.mrb[172].mxu1  ;;  %v11517_v59 = vpop.f32.mrb[204].mxu0 }
 0xa85   : > { %v11454_v53 = vpop.f32.mrb[173].mxu1  ;;  %v11518_v34 = vpop.f32.mrb[205].mxu0 }
 0xa86   : > { %v11455_v8 = vadd.f32 %v11454_v53, %v11453_v13  ;;  %v11519_v16 = vadd.f32 %v11518_v34, %v11517_v59  ;;  %v11456_v5 = vpop.f32.mrb[174].mxu1  ;;  %v11520_v27 = vpop.f32.mrb[206].mxu0 }
 0xa87   : > { %v11457_v1 = vpop.f32.mrb[175].mxu1  ;;  %v11521_v20 = vpop.f32.mrb[207].mxu0 }
 0xa88   : > { %v4445_v55 = vadd.f32 %v11455_v8, %v15362_v54  ;;  %v11458_v4 = vadd.f32 %v11457_v1, %v11456_v5  ;;  %v11522_v58 = vadd.f32 %v11521_v20, %v11520_v27 }
 0xa8a   : > { %v15407_v0 = vadd.f32 %v11519_v16, %v4445_v55  ;;  %v4448_v52 = vadd.f32 %v11458_v4, %v15362_v54 }
 0xa8c   : > { %v15410_v12 = vadd.f32 %v11522_v58, %v4448_v52  ;;  %v11539_v15 = vpop.f32.mrb[176].mxu1 }
 0xa8d   : > { %v11540_v18 = vpop.f32.mrb[177].mxu1 }
 0xa8e   : > { %v11541_v51 = vadd.f32 %v11540_v18, %v11539_v15  ;;  %v11542_v42 = vpop.f32.mrb[178].mxu1 }
 0xa8f   : > { %v11543_v49 = vpop.f32.mrb[179].mxu1 }
 0xa90   : > { %v4583_v40 = vadd.f32 %v11541_v51, %v15365_v25  ;;  %v11544_v28 = vadd.f32 %v11543_v49, %v11542_v42 }
 0xa92   : > { %v4586_v60 = vadd.f32 %v11544_v28, %v15368_v7  ;;  %v15415_v10 = vadd.f32 %v4583_v40, %v15031_v46 }
 0xa94   : > { %v11545_v11 = vpop.f32.mrb[180].mxu1  ;;  %4661 = vadd.xlane.f32.xlu0 %v15415_v10  ;;  %v15419_v54 = vadd.f32 %v4586_v60, %v15034_v47 }
 0xa95   : > { %v11546_v13 = vpop.f32.mrb[181].mxu1 }
 0xa96   : > { %v11547_v59 = vadd.f32 %v11546_v13, %v11545_v11  ;;  %v11548_v53 = vpop.f32.mrb[182].mxu1  ;;  %4663 = vadd.xlane.f32.xlu1 %v15419_v54 }
 0xa97   : > { %v11549_v34 = vpop.f32.mrb[183].mxu1 }
 0xa98   : > { %v4591_v25 = vadd.f32 %v11547_v59, %v15371_v14  ;;  %v11550_v8 = vadd.f32 %v11549_v34, %v11548_v53 }
 0xa9a   : > { %v4594_v7 = vadd.f32 %v11550_v8, %v15374_v9  ;;  %v15425_v46 = vadd.f32 %v4591_v25, %v15059_v56 }
 0xa9c   : > { %v11551_v16 = vpop.f32.mrb[184].mxu1  ;;  %4665 = vadd.xlane.f32.xlu0 %v15425_v46  ;;  %v15429_v47 = vadd.f32 %v4594_v7, %v15054_v61 }
 0xa9d   : > { %v11552_v5 = vpop.f32.mrb[185].mxu1 }
 0xa9e   : > { %v11553_v27 = vadd.f32 %v11552_v5, %v11551_v16  ;;  %v11554_v1 = vpop.f32.mrb[186].mxu1  ;;  %4667 = vadd.xlane.f32.xlu1 %v15429_v47 }
 0xa9f   : > { %v11555_v20 = vpop.f32.mrb[187].mxu1 }
 0xaa0   : > { %v4599_v14 = vadd.f32 %v11553_v27, %v15377_v37  ;;  %v11556_v55 = vadd.f32 %v11555_v20, %v11554_v1 }
 0xaa2   : > { %v4602_v9 = vadd.f32 %v11556_v55, %v15380_v44  ;;  %v15435_v56 = vadd.f32 %v4599_v14, %v15082_v3 }
 0xaa4   : > { %v11557_v4 = vpop.f32.mrb[188].mxu1  ;;  %4669 = vadd.xlane.f32.xlu0 %v15435_v56  ;;  %v15439_v61 = vadd.f32 %v4602_v9, %v15085_v24 }
 0xaa5   : > { %v11558_v58 = vpop.f32.mrb[189].mxu1 }
 0xaa6   : > { %v11559_v52 = vadd.f32 %v11558_v58, %v11557_v4  ;;  %v11560_v15 = vpop.f32.mrb[190].mxu1  ;;  %4671 = vadd.xlane.f32.xlu1 %v15439_v61 }
 0xaa7   : > { %v11561_v18 = vpop.f32.mrb[191].mxu1 }
 0xaa8   : > { %v4607_v37 = vadd.f32 %v11559_v52, %v15383_v45  ;;  %v11562_v51 = vadd.f32 %v11561_v18, %v11560_v15  ;;  %v12299_v15 = vld [vmem:[%s13932_s12 + $0x80] sm:$0xff]   ;;  %v12300_v18 = vld [vmem:[%s13932_s12 + $0x88] sm:$0xff]  }
 0xaa9   : > { %11859 = vmatprep.subr.bf16.mxu0 %v12299_v15 }
 0xaaa   : > { %v4610_v44 = vadd.f32 %v11562_v51, %v15386_v48  ;;  %v15445_v3 = vadd.f32 %v4607_v37, %v15111_v32  ;;  %11860 = vmatpush3.bf16.msra.mxu0 %v12299_v15  ;;  %v12301_v37 = vld [vmem:[%s13932_s12 + $0x90] sm:$0xff]  }
 0xaab   : > { %11861 = vmatprep.subr.bf16.mxu0 %v12300_v18 }
 0xaac   : > { %v11563_v42 = vpop.f32.mrb[192].mxu1  ;;  %4673 = vadd.xlane.f32.xlu0 %v15445_v3  ;;  %v15449_v24 = vadd.f32 %v4610_v44, %v15105_v36 }
 0xaad   : > { %v11564_v49 = vpop.f32.mrb[193].mxu1 }
 0xaae   : > { %v11565_v40 = vadd.f32 %v11564_v49, %v11563_v42  ;;  %v11566_v28 = vpop.f32.mrb[194].mxu1  ;;  %4675 = vadd.xlane.f32.xlu1 %v15449_v24  ;;  %11862 = vmatpush3.bf16.msra.mxu0 %v12300_v18 }
 0xaaf   : > { %v11567_v60 = vpop.f32.mrb[195].mxu1  ;;  %11863 = vmatprep.subr.bf16.mxu0 %v12301_v37 }
 0xab0   : > { %v4615_v45 = vadd.f32 %v11565_v40, %v15389_v35  ;;  %v11568_v11 = vadd.f32 %v11567_v60, %v11566_v28 }
 0xab2   : > { %v4618_v48 = vadd.f32 %v11568_v11, %v15392_v50  ;;  %v15455_v32 = vadd.f32 %v4615_v45, %v15132_v22  ;;  %11864 = vmatpush3.bf16.msra.mxu0 %v12301_v37  ;;  %v12305_v37 = vld [vmem:[%s13932_s12 + $0xb0] sm:$0xff]  }
 0xab4   : > { %v11569_v13 = vpop.f32.mrb[196].mxu1  ;;  %4677 = vadd.xlane.f32.xlu0 %v15455_v32  ;;  %v15459_v36 = vadd.f32 %v4618_v48, %v15135_v2 }
 0xab5   : > { %v11570_v59 = vpop.f32.mrb[197].mxu1 }
 0xab6   : > { %v11571_v53 = vadd.f32 %v11570_v59, %v11569_v13  ;;  %v11572_v34 = vpop.f32.mrb[198].mxu1  ;;  %4679 = vadd.xlane.f32.xlu1 %v15459_v36 }
 0xab7   : > { %v11573_v25 = vpop.f32.mrb[199].mxu1 }
 0xab8   : > { %v4623_v35 = vadd.f32 %v11571_v53, %v15395_v57  ;;  %v11574_v8 = vadd.f32 %v11573_v25, %v11572_v34 }
 0xaba   : > { %v4626_v50 = vadd.f32 %v11574_v8, %v15398_v19  ;;  %v15465_v22 = vadd.f32 %v4623_v35, %v15153_v38 }
 0xabc   : > { %v11575_v7 = vpop.f32.mrb[200].mxu1  ;;  %4681 = vadd.xlane.f32.xlu0 %v15465_v22  ;;  %v15469_v2 = vadd.f32 %v4626_v50, %v15150_v21 }
 0xabd   : > { %v11576_v16 = vpop.f32.mrb[201].mxu1 }
 0xabe   : > { %v11577_v5 = vadd.f32 %v11576_v16, %v11575_v7  ;;  %v11578_v27 = vpop.f32.mrb[202].mxu1  ;;  %4683 = vadd.xlane.f32.xlu1 %v15469_v2  ;;  %v12303_v16 = vld [vmem:[%s13932_s12 + $0xa0] sm:$0xff]  }
 0xabf   : > { %v11579_v1 = vpop.f32.mrb[203].mxu1 }
 0xac0   : > { %v4631_v57 = vadd.f32 %v11577_v5, %v15401_v23  ;;  %v11580_v20 = vadd.f32 %v11579_v1, %v11578_v27 }
 0xac2   : > { %v4634_v19 = vadd.f32 %v11580_v20, %v15404_v26  ;;  %v15475_v38 = vadd.f32 %v4631_v57, %v15168_v43 }
 0xac4   : > { %v11581_v14 = vpop.f32.mrb[204].mxu1  ;;  %4685 = vadd.xlane.f32.xlu0 %v15475_v38  ;;  %v15479_v21 = vadd.f32 %v4634_v19, %v15171_v62 }
 0xac5   : > { %v11582_v55 = vpop.f32.mrb[205].mxu1 }
 0xac6   : > { %v11583_v9 = vadd.f32 %v11582_v55, %v11581_v14  ;;  %v11584_v4 = vpop.f32.mrb[206].mxu1  ;;  %4687 = vadd.xlane.f32.xlu1 %v15479_v21 }
 0xac7   : > { %v11585_v23 = vpop.f32.mrb[207].mxu1 }
 0xac8   : > { %v4639_v26 = vadd.f32 %v11583_v9, %v15407_v0  ;;  %v11586_v43 = vadd.f32 %v11585_v23, %v11584_v4  ;;  %v12302_v0 = vld [vmem:[%s13932_s12 + $0x98] sm:$0xff]  }
 0xac9   : > { %11865 = vmatprep.subr.bf16.mxu0 %v12302_v0 }
 0xaca   : > { %v4642_v58 = vadd.f32 %v11586_v43, %v15410_v12  ;;  %v15485_v52 = vadd.f32 %v4639_v26, %v15185_v39  ;;  %11866 = vmatpush3.bf16.msra.mxu0 %v12302_v0 }
 0xacb   : > { %11867 = vmatprep.subr.bf16.mxu0 %v12303_v16 }
 0xacc   : > { %4689 = vadd.xlane.f32.xlu0 %v15485_v52  ;;  %v15489_v62 = vadd.f32 %v4642_v58, %v15182_v33  ;;  %v12304_v58 = vld [vmem:[%s13932_s12 + $0xa8] sm:$0xff]  }
 0xace   : > { %4691 = vadd.xlane.f32.xlu1 %v15489_v62  ;;  %11868 = vmatpush3.bf16.msra.mxu0 %v12303_v16 }
 0xacf   : > { %11869 = vmatprep.subr.bf16.mxu0 %v12304_v58 }
 0xad2   : > { %11870 = vmatpush3.bf16.msra.mxu0 %v12304_v58  ;;  %v15587_v58 = vld [vmem:[%s13925_s21 + $0x36] ss:$0 sm:$0xff] }
 0xad3   : > { %11871 = vmatprep.subr.bf16.mxu0 %v12305_v37 }
 0xad6   : > { %11872 = vmatpush3.bf16.msra.mxu0 %v12305_v37 }
 0xb21   : > { %v4662_v39 = vpop.xlane.xlu0 %4661 }
 0xb22   : > { %v4693_v12 = vmul.f32 0.0078125, %v4662_v39 }
 0xb23   : > { %v4664_v51 = vpop.xlane.xlu1 %4663 }
 0xb24   : > { %v15497_v33 = vsub.f32 %v15415_v10, %v4693_v12  ;;  %v4694_v44 = vmul.f32 0.0078125, %v4664_v51 }
 0xb26   : > { %v15500_v42 = vsub.f32 %v15419_v54, %v4694_v44  ;;  %v4725_v49 = vmul.f32 %v15497_v33, %v15497_v33 }
 0xb28   : > { %4741 = vadd.xlane.f32.xlu0 %v4725_v49  ;;  %v4726_v40 = vmul.f32 %v15500_v42, %v15500_v42 }
 0xb29   : > { %v4666_v28 = vpop.xlane.xlu0 %4665 }
 0xb2a   : > { %v4695_v60 = vmul.f32 0.0078125, %v4666_v28  ;;  %4743 = vadd.xlane.f32.xlu1 %v4726_v40 }
 0xb2b   : > { %v4668_v45 = vpop.xlane.xlu1 %4667 }
 0xb2c   : > { %v15507_v11 = vsub.f32 %v15425_v46, %v4695_v60  ;;  %v4696_v10 = vmul.f32 0.0078125, %v4668_v45 }
 0xb2e   : > { %v15510_v48 = vsub.f32 %v15429_v47, %v4696_v10  ;;  %v4727_v54 = vmul.f32 %v15507_v11, %v15507_v11 }
 0xb30   : > { %4745 = vadd.xlane.f32.xlu0 %v4727_v54  ;;  %v4728_v13 = vmul.f32 %v15510_v48, %v15510_v48 }
 0xb31   : > { %v4670_v59 = vpop.xlane.xlu0 %4669 }
 0xb32   : > { %v4697_v53 = vmul.f32 0.0078125, %v4670_v59  ;;  %4747 = vadd.xlane.f32.xlu1 %v4728_v13 }
 0xb33   : > { %v4672_v34 = vpop.xlane.xlu1 %4671 }
 0xb34   : > { %v15517_v25 = vsub.f32 %v15435_v56, %v4697_v53  ;;  %v4698_v46 = vmul.f32 0.0078125, %v4672_v34 }
 0xb36   : > { %v15520_v35 = vsub.f32 %v15439_v61, %v4698_v46  ;;  %v4729_v47 = vmul.f32 %v15517_v25, %v15517_v25 }
 0xb38   : > { %4749 = vadd.xlane.f32.xlu0 %v4729_v47  ;;  %v4730_v8 = vmul.f32 %v15520_v35, %v15520_v35 }
 0xb39   : > { %v4674_v50 = vpop.xlane.xlu0 %4673 }
 0xb3a   : > { %v4699_v7 = vmul.f32 0.0078125, %v4674_v50  ;;  %4751 = vadd.xlane.f32.xlu1 %v4730_v8 }
 0xb3b   : > { %v4676_v5 = vpop.xlane.xlu1 %4675 }
 0xb3c   : > { %v15528_v27 = vsub.f32 %v15445_v3, %v4699_v7  ;;  %v4700_v56 = vmul.f32 0.0078125, %v4676_v5 }
 0xb3e   : > { %v15531_v61 = vsub.f32 %v15449_v24, %v4700_v56  ;;  %v4731_v1 = vmul.f32 %v15528_v27, %v15528_v27 }
 0xb40   : > { %4753 = vadd.xlane.f32.xlu0 %v4731_v1  ;;  %v4732_v57 = vmul.f32 %v15531_v61, %v15531_v61 }
 0xb41   : > { %v4678_v20 = vpop.xlane.xlu0 %4677 }
 0xb42   : > { %v4701_v19 = vmul.f32 0.0078125, %v4678_v20  ;;  %4755 = vadd.xlane.f32.xlu1 %v4732_v57  ;;  %v15581_v57 = vld [vmem:[%s13925_s21 + $0x35] ss:$0 sm:$0xff] }
 0xb43   : > { %v4680_v14 = vpop.xlane.xlu1 %4679 }
 0xb44   : > { %v15538_v3 = vsub.f32 %v15455_v32, %v4701_v19  ;;  %v4702_v55 = vmul.f32 0.0078125, %v4680_v14 }
 0xb46   : > { %v15541_v24 = vsub.f32 %v15459_v36, %v4702_v55  ;;  %v4733_v9 = vmul.f32 %v15538_v3, %v15538_v3 }
 0xb48   : > { %4757 = vadd.xlane.f32.xlu0 %v4733_v9  ;;  %v4734_v4 = vmul.f32 %v15541_v24, %v15541_v24 }
 0xb49   : > { %v4682_v23 = vpop.xlane.xlu0 %4681 }
 0xb4a   : > { %v4703_v26 = vmul.f32 0.0078125, %v4682_v23  ;;  %4759 = vadd.xlane.f32.xlu1 %v4734_v4 }
 0xb4b   : > { %v4684_v43 = vpop.xlane.xlu1 %4683 }
 0xb4c   : > { %v15549_v32 = vsub.f32 %v15465_v22, %v4703_v26  ;;  %v4704_v15 = vmul.f32 0.0078125, %v4684_v43  ;;  %v12306_v22 = vld [vmem:[%s13932_s12 + $0xb8] sm:$0xff]  }
 0xb4d   : > { %11873 = vmatprep.subr.bf16.mxu0 %v12306_v22 }
 0xb4e   : > { %v15552_v36 = vsub.f32 %v15469_v2, %v4704_v15  ;;  %v4735_v18 = vmul.f32 %v15549_v32, %v15549_v32  ;;  %11874 = vmatpush3.bf16.msra.mxu0 %v12306_v22 }
 0xb50   : > { %4761 = vadd.xlane.f32.xlu0 %v4735_v18  ;;  %v4736_v0 = vmul.f32 %v15552_v36, %v15552_v36 }
 0xb51   : > { %v4686_v39 = vpop.xlane.xlu0 %4685 }
 0xb52   : > { %v4705_v12 = vmul.f32 0.0078125, %v4686_v39  ;;  %4763 = vadd.xlane.f32.xlu1 %v4736_v0 }
 0xb53   : > { %v4688_v51 = vpop.xlane.xlu1 %4687 }
 0xb54   : > { %v15561_v44 = vsub.f32 %v15475_v38, %v4705_v12  ;;  %v4706_v2 = vmul.f32 0.0078125, %v4688_v51 }
 0xb56   : > { %v15564_v49 = vsub.f32 %v15479_v21, %v4706_v2  ;;  %v4737_v40 = vmul.f32 %v15561_v44, %v15561_v44 }
 0xb58   : > { %4765 = vadd.xlane.f32.xlu0 %v4737_v40  ;;  %v4738_v28 = vmul.f32 %v15564_v49, %v15564_v49 }
 0xb59   : > { %v4690_v60 = vpop.xlane.xlu0 %4689 }
 0xb5a   : > { %v4707_v45 = vmul.f32 0.0078125, %v4690_v60  ;;  %4767 = vadd.xlane.f32.xlu1 %v4738_v28 }
 0xb5b   : > { %v4692_v10 = vpop.xlane.xlu1 %4691 }
 0xb5c   : > { %v15571_v38 = vsub.f32 %v15485_v52, %v4707_v45  ;;  %v4708_v54 = vmul.f32 0.0078125, %v4692_v10 }
 0xb5e   : > { %v15574_v13 = vsub.f32 %v15489_v62, %v4708_v54  ;;  %v4739_v21 = vmul.f32 %v15571_v38, %v15571_v38 }
 0xb60   : > { %4769 = vadd.xlane.f32.xlu0 %v4739_v21  ;;  %v4740_v59 = vmul.f32 %v15574_v13, %v15574_v13 }
 0xb62   : > { %4771 = vadd.xlane.f32.xlu1 %v4740_v59 }
 0xbb5   : > { %v4742_v53 = vpop.xlane.xlu0 %4741 }
 0xbb6   : > { %v4773_v34 = vmul.f32 0.0078125, %v4742_v53 }
 0xbb7   : > { %v4744_v46 = vpop.xlane.xlu1 %4743 }
 0xbb8   : > { %v4789_v47 = vadd.f32 1e-05, %v4773_v34  ;;  %v4774_v8 = vmul.f32 0.0078125, %v4744_v46 }
 0xbba   : > { %12523 = vrsqrt.f32 %v4789_v47  ;;  %v4790_v52 = vadd.f32 1e-05, %v4774_v8 }
 0xbbc   : > { %12525 = vrsqrt.f32 %v4790_v52 }
 0xbbd   : > { %v4746_v50 = vpop.xlane.xlu0 %4745 }
 0xbbe   : > { %v4775_v62 = vmul.f32 0.0078125, %v4746_v50 }
 0xbbf   : > { %v4748_v7 = vpop.xlane.xlu1 %4747 }
 0xbc0   : > { %v4791_v16 = vadd.f32 1e-05, %v4775_v62  ;;  %v4776_v5 = vmul.f32 0.0078125, %v4748_v7 }
 0xbc2   : > { %12527 = vrsqrt.f32 %v4791_v16  ;;  %v4792_v56 = vadd.f32 1e-05, %v4776_v5 }
 0xbc4   : > { %v12524_v1 = vpop.eup %12523  ;;  %12529 = vrsqrt.f32 %v4792_v56 }
 0xbc5   : > { %v4750_v20 = vpop.xlane.xlu0 %4749  ;;  %v4821_v19 = vmul.f32 %v12524_v1, %v15497_v33 }
 0xbc6   : > { %v12526_v14 = vpop.eup %12525  ;;  %v4777_v55 = vmul.f32 0.0078125, %v4750_v20 }
 0xbc7   : > { %v4752_v9 = vpop.xlane.xlu1 %4751  ;;  %v4822_v4 = vmul.f32 %v12526_v14, %v15500_v42  ;;  %v4837_v23 = vmul.f32 %v15581_v57, %v4821_v19 }
 0xbc8   : > { %v4793_v26 = vadd.f32 1e-05, %v4777_v55  ;;  %v4778_v43 = vmul.f32 0.0078125, %v4752_v9 }
 0xbc9   : > { %v4838_v15 = vmul.f32 %v15581_v57, %v4822_v4  ;;  %v15591_v37 = vadd.f32 %v15587_v58, %v4837_v23 }
 0xbca   : > { %12531 = vrsqrt.f32 %v4793_v26  ;;  %v4794_v18 = vadd.f32 1e-05, %v4778_v43 }
 0xbcb   : > { %v15594_v33 = vadd.f32 %v15587_v58, %v4838_v15 }
 0xbcc   : > { %v12528_v0 = vpop.eup %12527  ;;  %12533 = vrsqrt.f32 %v4794_v18 }
 0xbcd   : > { %v4823_v42 = vmul.f32 %v12528_v0, %v15507_v11  ;;  %v4754_v39 = vpop.xlane.xlu0 %4753  ;;  %v4879_v12 = vpack.c.bf16 %v15594_v33, %v15591_v37 }
 0xbce   : > { %v12530_v22 = vpop.eup %12529  ;;  %v4779_v51 = vmul.f32 0.0078125, %v4754_v39 }
 0xbcf   : > { %v4839_v2 = vmul.f32 %v15581_v57, %v4823_v42  ;;  %v4824_v40 = vmul.f32 %v12530_v22, %v15510_v48  ;;  %v4756_v28 = vpop.xlane.xlu1 %4755  ;;  %11875 = vmatprep.mubr.bf16.mxu0 %v4879_v12 }
 0xbd0   : > { %v4795_v60 = vadd.f32 1e-05, %v4779_v51  ;;  %v4780_v45 = vmul.f32 0.0078125, %v4756_v28 }
 0xbd1   : > { %v4840_v10 = vmul.f32 %v15581_v57, %v4824_v40  ;;  %v15603_v11 = vadd.f32 %v15587_v58, %v4839_v2 }
 0xbd2   : > { %12535 = vrsqrt.f32 %v4795_v60  ;;  %v4796_v54 = vadd.f32 1e-05, %v4780_v45 }
 0xbd3   : > { %v15606_v21 = vadd.f32 %v15587_v58, %v4840_v10 }
 0xbd4   : > { %v12532_v59 = vpop.eup %12531  ;;  %12537 = vrsqrt.f32 %v4796_v54 }
 0xbd5   : > { %v4758_v53 = vpop.xlane.xlu0 %4757  ;;  %v4880_v48 = vpack.c.bf16 %v15606_v21, %v15603_v11  ;;  %v4825_v34 = vmul.f32 %v12532_v59, %v15517_v25 }
 0xbd6   : > { %v12534_v46 = vpop.eup %12533  ;;  %v4781_v47 = vmul.f32 0.0078125, %v4758_v53 }
 0xbd7   : > { %v4760_v8 = vpop.xlane.xlu1 %4759  ;;  %11876 = vmatmul.mubr.bf16.vlgmr.msra.gmra.mrb[208].mxu0 %v4880_v48  ;;  %v4826_v52 = vmul.f32 %v12534_v46, %v15520_v35  ;;  %v4841_v50 = vmul.f32 %v15581_v57, %v4825_v34 }
 0xbd8   : > { %v4797_v62 = vadd.f32 1e-05, %v4781_v47  ;;  %v4782_v7 = vmul.f32 0.0078125, %v4760_v8 }
 0xbd9   : > { %v4842_v16 = vmul.f32 %v15581_v57, %v4826_v52  ;;  %v15615_v56 = vadd.f32 %v15587_v58, %v4841_v50 }
 0xbda   : > { %12539 = vrsqrt.f32 %v4797_v62  ;;  %v4798_v5 = vadd.f32 1e-05, %v4782_v7 }
 0xbdb   : > { %v15618_v1 = vadd.f32 %v15587_v58, %v4842_v16 }
 0xbdc   : > { %v12536_v25 = vpop.eup %12535  ;;  %12541 = vrsqrt.f32 %v4798_v5 }
 0xbdd   : > { %v4762_v20 = vpop.xlane.xlu0 %4761  ;;  %v4881_v35 = vpack.c.bf16 %v15618_v1, %v15615_v56  ;;  %v4827_v19 = vmul.f32 %v12536_v25, %v15528_v27 }
 0xbde   : > { %v12538_v14 = vpop.eup %12537  ;;  %v4783_v55 = vmul.f32 0.0078125, %v4762_v20 }
 0xbdf   : > { %v4764_v9 = vpop.xlane.xlu1 %4763  ;;  %11879 = vmatprep.mubr.bf16.mxu0 %v4881_v35  ;;  %v4828_v4 = vmul.f32 %v12538_v14, %v15531_v61  ;;  %v4843_v23 = vmul.f32 %v15581_v57, %v4827_v19 }
 0xbe0   : > { %v4799_v26 = vadd.f32 1e-05, %v4783_v55  ;;  %v4784_v43 = vmul.f32 0.0078125, %v4764_v9 }
 0xbe1   : > { %v4844_v15 = vmul.f32 %v15581_v57, %v4828_v4  ;;  %v15627_v0 = vadd.f32 %v15587_v58, %v4843_v23 }
 0xbe2   : > { %12543 = vrsqrt.f32 %v4799_v26  ;;  %v4800_v18 = vadd.f32 1e-05, %v4784_v43 }
 0xbe3   : > { %v15630_v42 = vadd.f32 %v15587_v58, %v4844_v15 }
 0xbe4   : > { %v12540_v27 = vpop.eup %12539  ;;  %12545 = vrsqrt.f32 %v4800_v18 }
 0xbe5   : > { %v4766_v39 = vpop.xlane.xlu0 %4765  ;;  %v4882_v61 = vpack.c.bf16 %v15630_v42, %v15627_v0  ;;  %v4829_v12 = vmul.f32 %v12540_v27, %v15538_v3 }
 0xbe6   : > { %v12542_v22 = vpop.eup %12541  ;;  %v4785_v51 = vmul.f32 0.0078125, %v4766_v39 }
 0xbe7   : > { %v4768_v2 = vpop.xlane.xlu1 %4767  ;;  %11880 = vmatmul.mubr.bf16.gmra.mrb[212].mxu0 %v4882_v61  ;;  %v4830_v40 = vmul.f32 %v12542_v22, %v15541_v24  ;;  %v4845_v28 = vmul.f32 %v15581_v57, %v4829_v12 }
 0xbe8   : > { %v4801_v60 = vadd.f32 1e-05, %v4785_v51  ;;  %v4786_v45 = vmul.f32 0.0078125, %v4768_v2 }
 0xbe9   : > { %v4846_v10 = vmul.f32 %v15581_v57, %v4830_v40  ;;  %v15639_v59 = vadd.f32 %v15587_v58, %v4845_v28 }
 0xbea   : > { %12547 = vrsqrt.f32 %v4801_v60  ;;  %v4802_v54 = vadd.f32 1e-05, %v4786_v45 }
 0xbeb   : > { %v15642_v53 = vadd.f32 %v15587_v58, %v4846_v10 }
 0xbec   : > { %v12544_v3 = vpop.eup %12543  ;;  %12549 = vrsqrt.f32 %v4802_v54 }
 0xbed   : > { %v4770_v48 = vpop.xlane.xlu0 %4769  ;;  %v4883_v24 = vpack.c.bf16 %v15642_v53, %v15639_v59  ;;  %v4831_v34 = vmul.f32 %v12544_v3, %v15549_v32 }
 0xbee   : > { %v12546_v46 = vpop.eup %12545  ;;  %v4787_v47 = vmul.f32 0.0078125, %v4770_v48 }
 0xbef   : > { %v4772_v8 = vpop.xlane.xlu1 %4771  ;;  %11883 = vmatprep.mubr.bf16.mxu0 %v4883_v24  ;;  %v4832_v52 = vmul.f32 %v12546_v46, %v15552_v36  ;;  %v4847_v50 = vmul.f32 %v15581_v57, %v4831_v34 }
 0xbf0   : > { %v4803_v62 = vadd.f32 1e-05, %v4787_v47  ;;  %v4788_v7 = vmul.f32 0.0078125, %v4772_v8 }
 0xbf1   : > { %v4848_v16 = vmul.f32 %v15581_v57, %v4832_v52  ;;  %v15651_v25 = vadd.f32 %v15587_v58, %v4847_v50 }
 0xbf2   : > { %12551 = vrsqrt.f32 %v4803_v62  ;;  %v4804_v5 = vadd.f32 1e-05, %v4788_v7 }
 0xbf3   : > { %v15654_v20 = vadd.f32 %v15587_v58, %v4848_v16 }
 0xbf4   : > { %v12548_v32 = vpop.eup %12547  ;;  %12553 = vrsqrt.f32 %v4804_v5 }
 0xbf5   : > { %v4884_v35 = vpack.c.bf16 %v15654_v20, %v15651_v25  ;;  %v4833_v36 = vmul.f32 %v12548_v32, %v15561_v44 }
 0xbf6   : > { %v12550_v19 = vpop.eup %12549 }
 0xbf7   : > { %11884 = vmatmul.mubr.bf16.gmra.mrb[216].mxu0 %v4884_v35  ;;  %v4834_v14 = vmul.f32 %v12550_v19, %v15564_v49  ;;  %v4849_v55 = vmul.f32 %v15581_v57, %v4833_v36 }
 0xbf9   : > { %v4850_v9 = vmul.f32 %v15581_v57, %v4834_v14  ;;  %v15663_v4 = vadd.f32 %v15587_v58, %v4849_v55 }
 0xbfb   : > { %v15666_v23 = vadd.f32 %v15587_v58, %v4850_v9 }
 0xbfc   : > { %v12552_v26 = vpop.eup %12551 }
 0xbfd   : > { %v4885_v43 = vpack.c.bf16 %v15666_v23, %v15663_v4  ;;  %v4835_v44 = vmul.f32 %v12552_v26, %v15571_v38  ;;  %v10450_v38 = vld [vmem:[%s13925_s21 + $0x61] ss:$0 sm:$0xff] }
 0xbfe   : > { %v12554_v15 = vpop.eup %12553 }
 0xbff   : > { %11887 = vmatprep.mubr.bf16.mxu0 %v4885_v43  ;;  %v4836_v49 = vmul.f32 %v12554_v15, %v15574_v13  ;;  %v4851_v18 = vmul.f32 %v15581_v57, %v4835_v44 }
 0xc01   : > { %v4852_v27 = vmul.f32 %v15581_v57, %v4836_v49  ;;  %v15675_v39 = vadd.f32 %v15587_v58, %v4851_v18  ;;  %v12312_v49 = vld [vmem:[%s13934_s13 + $0x334] ss:$24 sps:$4 sm:$0xff]   ;;  %v12310_v18 = vld [vmem:[%s13934_s13 + $0x330] ss:$24 sps:$4 sm:$0xff]  }
 0xc03   : > { %v15678_v61 = vadd.f32 %v15587_v58, %v4852_v27  ;;  %v12322_v27 = vld [vmem:[%s13934_s13 + $0x308] ss:$24 sps:$4 sm:$0xff]  }
 0xc05   : > { %v4886_v12 = vpack.c.bf16 %v15678_v61, %v15675_v39 }
 0xc07   : > { %11888 = vmatmul.mubr.bf16.gmra.mrb[220].mxu0 %v4886_v12  ;;  %v12327_v12 = vld [vmem:[%s13934_s13 + $0x33c] ss:$24 sps:$4 sm:$0xff]  }
 0xc08   : > { %5746 = vmatprep.mubr.bf16.mxu0 %v13528_v63 }
 0xcaa   : > { %v11877_v22 = vpop.f32.mrb[208].mxu0 }
 0xcab   : > { %v4986_v51 = vpop.f32.mrb[209].mxu0  ;;  %v4995_v28 = vadd.f32 %v11877_v22, %v10450_v38  ;;  %v12313_v22 = vld [vmem:[%s13934_s13 + $0x360] ss:$24 sps:$4 sm:$0xff]  }
 0xcac   : > { %v4987_v13 = vadd.f32 %v10450_v38, %v4986_v51  ;;  %v11878_v2 = vpop.f32.mrb[210].mxu0  ;;  %v12318_v51 = vld [vmem:[%s13934_s13 + $0x394] ss:$24 sps:$4 sm:$0xff]  }
 0xcad   : > { %v4989_v40 = vpop.f32.mrb[211].mxu0  ;;  %v4998_v45 = vadd.f32 %v11878_v2, %v10450_v38  ;;  %v15692_v10 = vadd.f32 %v4995_v28, %v15603_v11  ;;  %v12321_v2 = vld [vmem:[%s13934_s13 + $0x3c4] ss:$24 sps:$4 sm:$0xff]  }
 0xcae   : > { %v15685_v57 = vadd.f32 %v4987_v13, %v15591_v37  ;;  %v4990_v60 = vadd.f32 %v10450_v38, %v4989_v40  ;;  %v12316_v13 = vld [vmem:[%s13934_s13 + $0x390] ss:$24 sps:$4 sm:$0xff]   ;;  %v12319_v40 = vld [vmem:[%s13934_s13 + $0x3c0] ss:$24 sps:$4 sm:$0xff]  }
 0xcaf   : > { %v15696_v54 = vadd.f32 %v4998_v45, %v15606_v21 }
 0xcb0   : > { %v15688_v58 = vadd.f32 %v4990_v60, %v15594_v33  ;;  %5065 = vadd.xlane.f32.xlu0 %v15685_v57 }
 0xcb2   : > { %5067 = vadd.xlane.f32.xlu1 %v15688_v58 }
 0xcb4   : > { %5069 = vadd.xlane.f32.xlu0 %v15692_v10 }
 0xcb6   : > { %5071 = vadd.xlane.f32.xlu1 %v15696_v54 }
 0xcba   : > { %v11881_v37 = vpop.f32.mrb[212].mxu0 }
 0xcbb   : > { %v5002_v3 = vpop.f32.mrb[213].mxu0  ;;  %v5011_v34 = vadd.f32 %v11881_v37, %v10450_v38 }
 0xcbc   : > { %v5003_v48 = vadd.f32 %v10450_v38, %v5002_v3  ;;  %v11882_v24 = vpop.f32.mrb[214].mxu0 }
 0xcbd   : > { %v5005_v33 = vpop.f32.mrb[215].mxu0  ;;  %v5014_v47 = vadd.f32 %v11882_v24, %v10450_v38  ;;  %v15708_v21 = vadd.f32 %v5011_v34, %v15627_v0 }
 0xcbe   : > { %v15701_v46 = vadd.f32 %v5003_v48, %v15615_v56  ;;  %v5006_v11 = vadd.f32 %v10450_v38, %v5005_v33 }
 0xcbf   : > { %v15712_v52 = vadd.f32 %v5014_v47, %v15630_v42 }
 0xcc0   : > { %v15704_v8 = vadd.f32 %v5006_v11, %v15618_v1  ;;  %5073 = vadd.xlane.f32.xlu0 %v15701_v46 }
 0xcc2   : > { %5075 = vadd.xlane.f32.xlu1 %v15704_v8 }
 0xcc4   : > { %5077 = vadd.xlane.f32.xlu0 %v15708_v21 }
 0xcc6   : > { %5079 = vadd.xlane.f32.xlu1 %v15712_v52 }
 0xcca   : > { %v11885_v56 = vpop.f32.mrb[216].mxu0 }
 0xccb   : > { %v5018_v50 = vpop.f32.mrb[217].mxu0  ;;  %v5027_v16 = vadd.f32 %v11885_v56, %v10450_v38 }
 0xccc   : > { %v5019_v62 = vadd.f32 %v10450_v38, %v5018_v50  ;;  %v11886_v7 = vpop.f32.mrb[218].mxu0 }
 0xccd   : > { %v5021_v1 = vpop.f32.mrb[219].mxu0  ;;  %v5030_v32 = vadd.f32 %v11886_v7, %v10450_v38  ;;  %v15724_v42 = vadd.f32 %v5027_v16, %v15651_v25 }
 0xcce   : > { %v15717_v5 = vadd.f32 %v5019_v62, %v15639_v59  ;;  %v5022_v0 = vadd.f32 %v10450_v38, %v5021_v1 }
 0xccf   : > { %v15728_v36 = vadd.f32 %v5030_v32, %v15654_v20 }
 0xcd0   : > { %v15720_v35 = vadd.f32 %v5022_v0, %v15642_v53  ;;  %5081 = vadd.xlane.f32.xlu0 %v15717_v5 }
 0xcd2   : > { %5083 = vadd.xlane.f32.xlu1 %v15720_v35 }
 0xcd4   : > { %5085 = vadd.xlane.f32.xlu0 %v15724_v42 }
 0xcd6   : > { %5087 = vadd.xlane.f32.xlu1 %v15728_v36 }
 0xcda   : > { %v11889_v59 = vpop.f32.mrb[220].mxu0 }
 0xcdb   : > { %v5034_v19 = vpop.f32.mrb[221].mxu0  ;;  %v5043_v9 = vadd.f32 %v11889_v59, %v10450_v38 }
 0xcdc   : > { %v5035_v53 = vadd.f32 %v10450_v38, %v5034_v19  ;;  %v11890_v14 = vpop.f32.mrb[222].mxu0 }
 0xcdd   : > { %v5037_v55 = vpop.f32.mrb[223].mxu0  ;;  %v5046_v26 = vadd.f32 %v11890_v14, %v10450_v38  ;;  %v15740_v44 = vadd.f32 %v5043_v9, %v15675_v39  ;;  %v12324_v39 = vld [vmem:[%s13934_s13 + $0x30c] ss:$24 sps:$4 sm:$0xff]  }
 0xcde   : > { %v15733_v25 = vadd.f32 %v5035_v53, %v15663_v4  ;;  %v5038_v20 = vadd.f32 %v10450_v38, %v5037_v55  ;;  %v12307_v4 = vld [vmem:[%s13934_s13 + $0x300] ss:$24 sps:$4 sm:$0xff]   ;;  %5714 = vmatprep.subr.bf16.mxu0 %v12324_v39  ;;  %v12333_v14 = vld [vmem:[%s13934_s13 + $0x36c] ss:$24 sps:$4 sm:$0xff]  }
 0xcdf   : > { %v15744_v15 = vadd.f32 %v5046_v26, %v15678_v61  ;;  %v12315_v61 = vld [vmem:[%s13934_s13 + $0x364] ss:$24 sps:$4 sm:$0xff]   ;;  %5715 = vmatpush1.bf16.msra.mxu0 %v12322_v27  ;;  %v12325_v38 = vld [vmem:[%s13934_s13 + $0x338] ss:$24 sps:$4 sm:$0xff]  }
 0xce0   : > { %v15736_v43 = vadd.f32 %v5038_v20, %v15666_v23  ;;  %5089 = vadd.xlane.f32.xlu0 %v15733_v25  ;;  %v12309_v23 = vld [vmem:[%s13934_s13 + $0x304] ss:$24 sps:$4 sm:$0xff]   ;;  %5716 = vmatprep.subr.bf16.mxu0 %v12327_v12  ;;  %v12331_v20 = vld [vmem:[%s13934_s13 + $0x368] ss:$24 sps:$4 sm:$0xff]  }
 0xce1   : > { %5601 = vmatprep.subr.bf16.mxu1 %v12309_v23  ;;  %v12334_v23 = vld [vmem:[%s13934_s13 + $0x398] ss:$24 sps:$4 sm:$0xff]   ;;  %v12345_v12 = vld [vmem:[%s13934_s13 + $0x3fc] ss:$24 sps:$4 sm:$0xff]  }
 0xce2   : > { %5091 = vadd.xlane.f32.xlu1 %v15736_v43  ;;  %5602 = vmatpush1.bf16.msra.mxu1 %v12307_v4 }
 0xce3   : > { %5603 = vmatprep.subr.bf16.mxu1 %v12312_v49  ;;  %5717 = vmatpush1.bf16.msra.mxu0 %v12325_v38  ;;  %v12340_v49 = vld [vmem:[%s13934_s13 + $0x3c8] ss:$24 sps:$4 sm:$0xff]  }
 0xce4   : > { %5093 = vadd.xlane.f32.xlu0 %v15740_v44  ;;  %5718 = vmatprep.subr.bf16.mxu0 %v12333_v14 }
 0xce6   : > { %5095 = vadd.xlane.f32.xlu1 %v15744_v15  ;;  %5604 = vmatpush1.bf16.msra.mxu1 %v12310_v18 }
 0xce7   : > { %5605 = vmatprep.subr.bf16.mxu1 %v12315_v61  ;;  %5719 = vmatpush1.bf16.msra.mxu0 %v12331_v20  ;;  %v12330_v61 = vld [vmem:[%s13934_s13 + $0x3f4] ss:$24 sps:$4 sm:$0xff]  }
 0xcea   : > { %5606 = vmatpush1.bf16.msra.mxu1 %v12313_v22 }
 0xceb   : > { %5607 = vmatprep.subr.bf16.mxu1 %v12318_v51  ;;  %v12328_v51 = vld [vmem:[%s13934_s13 + $0x3f0] ss:$24 sps:$4 sm:$0xff]  }
 0xcee   : > { %5608 = vmatpush1.bf16.msra.mxu1 %v12316_v13  ;;  %v12343_v13 = vld [vmem:[%s13934_s13 + $0x3f8] ss:$24 sps:$4 sm:$0xff]  }
 0xcef   : > { %5609 = vmatprep.subr.bf16.mxu1 %v12321_v2 }
 0xcf2   : > { %5610 = vmatpush1.bf16.msra.mxu1 %v12319_v40 }
 0xcf3   : > { %5611 = vmatprep.subr.bf16.mxu1 %v12330_v61 }
 0xcf6   : > { %5612 = vmatpush1.bf16.msra.mxu1 %v12328_v51 }
 0xd3d   : > { %v5066_v28 = vpop.xlane.xlu0 %5065 }
 0xd3e   : > { %v5097_v60 = vmul.f32 0.0078125, %v5066_v28 }
 0xd3f   : > { %v5068_v45 = vpop.xlane.xlu1 %5067 }
 0xd40   : > { %v15763_v37 = vsub.f32 %v15685_v57, %v5097_v60  ;;  %v5098_v3 = vmul.f32 0.0078125, %v5068_v45  ;;  %v12339_v45 = vld [vmem:[%s13934_s13 + $0x424] ss:$24 sps:$4 sm:$0xff]  }
 0xd41   : > { %v5070_v48 = vpop.xlane.xlu0 %5069  ;;  %5613 = vmatprep.subr.bf16.mxu1 %v12339_v45 }
 0xd42   : > { %v15766_v24 = vsub.f32 %v15688_v58, %v5098_v3  ;;  %v5099_v33 = vmul.f32 0.0078125, %v5070_v48  ;;  %v5129_v34 = vmul.f32 %v15763_v37, %v15763_v37  ;;  %v12351_v3 = vld [vmem:[%s13934_s13 + $0x42c] ss:$24 sps:$4 sm:$0xff]  }
 0xd43   : > { %v5072_v11 = vpop.xlane.xlu1 %5071 }
 0xd44   : > { %v15771_v47 = vsub.f32 %v15692_v10, %v5099_v33  ;;  %v5100_v56 = vmul.f32 0.0078125, %v5072_v11  ;;  %5145 = vadd.xlane.f32.xlu0 %v5129_v34  ;;  %v5130_v50 = vmul.f32 %v15766_v24, %v15766_v24  ;;  %v12337_v34 = vld [vmem:[%s13934_s13 + $0x420] ss:$24 sps:$4 sm:$0xff]  }
 0xd45   : > { %v12349_v11 = vld [vmem:[%s13934_s13 + $0x428] ss:$24 sps:$4 sm:$0xff]   ;;  %5614 = vmatpush1.bf16.msra.mxu1 %v12337_v34 }
 0xd46   : > { %v15776_v57 = vsub.f32 %v15696_v54, %v5100_v56  ;;  %5147 = vadd.xlane.f32.xlu1 %v5130_v50  ;;  %v5131_v58 = vmul.f32 %v15771_v47, %v15771_v47 }
 0xd48   : > { %5149 = vadd.xlane.f32.xlu0 %v5131_v58  ;;  %v5132_v62 = vmul.f32 %v15776_v57, %v15776_v57  ;;  %v12348_v58 = vld [vmem:[%s13934_s13 + $0x454] ss:$24 sps:$4 sm:$0xff]  }
 0xd49   : > { %5615 = vmatprep.subr.bf16.mxu1 %v12348_v58 }
 0xd4a   : > { %5151 = vadd.xlane.f32.xlu1 %v5132_v62  ;;  %v12354_v62 = vld [vmem:[%s13934_s13 + $0x45c] ss:$24 sps:$4 sm:$0xff]  }
 0xd4d   : > { %v5074_v10 = vpop.xlane.xlu0 %5073 }
 0xd4e   : > { %v5101_v7 = vmul.f32 0.0078125, %v5074_v10 }
 0xd4f   : > { %v5076_v1 = vpop.xlane.xlu1 %5075 }
 0xd50   : > { %v15783_v16 = vsub.f32 %v15701_v46, %v5101_v7  ;;  %v5102_v0 = vmul.f32 0.0078125, %v5076_v1  ;;  %v12352_v7 = vld [vmem:[%s13934_s13 + $0x458] ss:$24 sps:$4 sm:$0xff]  }
 0xd51   : > { %v5078_v54 = vpop.xlane.xlu0 %5077 }
 0xd52   : > { %v15786_v32 = vsub.f32 %v15704_v8, %v5102_v0  ;;  %v5103_v59 = vmul.f32 0.0078125, %v5078_v54  ;;  %v5133_v19 = vmul.f32 %v15783_v16, %v15783_v16 }
 0xd53   : > { %v5080_v53 = vpop.xlane.xlu1 %5079 }
 0xd54   : > { %v15792_v55 = vsub.f32 %v15708_v21, %v5103_v59  ;;  %v5104_v9 = vmul.f32 0.0078125, %v5080_v53  ;;  %5153 = vadd.xlane.f32.xlu0 %v5133_v19  ;;  %v5134_v46 = vmul.f32 %v15786_v32, %v15786_v32  ;;  %v12336_v21 = vld [vmem:[%s13934_s13 + $0x39c] ss:$24 sps:$4 sm:$0xff]  }
 0xd55   : > { %5720 = vmatprep.subr.bf16.mxu0 %v12336_v21 }
 0xd56   : > { %v15798_v8 = vsub.f32 %v15712_v52, %v5104_v9  ;;  %5155 = vadd.xlane.f32.xlu1 %v5134_v46  ;;  %v5135_v26 = vmul.f32 %v15792_v55, %v15792_v55  ;;  %5721 = vmatpush1.bf16.msra.mxu0 %v12334_v23  ;;  %v12342_v52 = vld [vmem:[%s13934_s13 + $0x3cc] ss:$24 sps:$4 sm:$0xff]  }
 0xd57   : > { %5722 = vmatprep.subr.bf16.mxu0 %v12342_v52 }
 0xd58   : > { %5157 = vadd.xlane.f32.xlu0 %v5135_v26  ;;  %v5136_v4 = vmul.f32 %v15798_v8, %v15798_v8 }
 0xd5a   : > { %5159 = vadd.xlane.f32.xlu1 %v5136_v4  ;;  %5723 = vmatpush1.bf16.msra.mxu0 %v12340_v49 }
 0xd5b   : > { %5724 = vmatprep.subr.bf16.mxu0 %v12345_v12 }
 0xd5d   : > { %v5082_v18 = vpop.xlane.xlu0 %5081 }
 0xd5e   : > { %v5105_v27 = vmul.f32 0.0078125, %v5082_v18  ;;  %5725 = vmatpush1.bf16.msra.mxu0 %v12343_v13 }
 0xd5f   : > { %v5084_v39 = vpop.xlane.xlu1 %5083  ;;  %5726 = vmatprep.subr.bf16.mxu0 %v12351_v3 }
 0xd60   : > { %v15811_v38 = vsub.f32 %v15717_v5, %v5105_v27  ;;  %v5106_v22 = vmul.f32 0.0078125, %v5084_v39 }
 0xd61   : > { %v5086_v2 = vpop.xlane.xlu0 %5085 }
 0xd62   : > { %v15816_v40 = vsub.f32 %v15720_v35, %v5106_v22  ;;  %v5107_v28 = vmul.f32 0.0078125, %v5086_v2  ;;  %v5137_v60 = vmul.f32 %v15811_v38, %v15811_v38  ;;  %5727 = vmatpush1.bf16.msra.mxu0 %v12349_v11  ;;  %v12379_v11 = vld [vmem:[%s13936_s18 + $0x340] sm:$0xff]  }
 0xd63   : > { %v5088_v5 = vpop.xlane.xlu1 %5087  ;;  %5728 = vmatprep.subr.bf16.mxu0 %v12354_v62  ;;  %v15869_v62 = vld [vmem:[%s13925_s21 + $0x63] ss:$0 sm:$0xff] }
 0xd64   : > { %v15823_v48 = vsub.f32 %v15724_v42, %v5107_v28  ;;  %v5108_v33 = vmul.f32 0.0078125, %v5088_v5  ;;  %5161 = vadd.xlane.f32.xlu0 %v5137_v60  ;;  %v5138_v35 = vmul.f32 %v15816_v40, %v15816_v40  ;;  %v12346_v42 = vld [vmem:[%s13934_s13 + $0x450] ss:$24 sps:$4 sm:$0xff]  }
 0xd65   : > { %5616 = vmatpush1.bf16.msra.mxu1 %v12346_v42  ;;  %v15862_v28 = vld [vmem:[%s13925_s21 + $0x62] ss:$0 sm:$0xff] }
 0xd66   : > { %v15830_v56 = vsub.f32 %v15728_v36, %v5108_v33  ;;  %5163 = vadd.xlane.f32.xlu1 %v5138_v35  ;;  %v5139_v50 = vmul.f32 %v15823_v48, %v15823_v48  ;;  %5729 = vmatpush1.bf16.msra.mxu0 %v12352_v7  ;;  %v12357_v36 = vld [vmem:[%s13934_s13 + $0x314] ss:$24 sps:$4 sm:$0xff]  }
 0xd67   : > { %5827 = vmatprep.subr.bf16.mxu1 %v12357_v36  ;;  %11603 = vmatprep.subr.bf16.mxu0 %v12379_v11 }
 0xd68   : > { %5165 = vadd.xlane.f32.xlu0 %v5139_v50  ;;  %v5140_v10 = vmul.f32 %v15830_v56, %v15830_v56 }
 0xd6a   : > { %5167 = vadd.xlane.f32.xlu1 %v5140_v10 }
 0xd6d   : > { %v5090_v1 = vpop.xlane.xlu0 %5089 }
 0xd6e   : > { %v5109_v0 = vmul.f32 0.0078125, %v5090_v1 }
 0xd6f   : > { %v5092_v54 = vpop.xlane.xlu1 %5091 }
 0xd70   : > { %v15842_v59 = vsub.f32 %v15733_v25, %v5109_v0  ;;  %v5110_v19 = vmul.f32 0.0078125, %v5092_v54 }
 0xd71   : > { %v5094_v53 = vpop.xlane.xlu0 %5093 }
 0xd72   : > { %v15845_v14 = vsub.f32 %v15736_v43, %v5110_v19  ;;  %v5111_v9 = vmul.f32 0.0078125, %v5094_v53  ;;  %v5141_v46 = vmul.f32 %v15842_v59, %v15842_v59 }
 0xd73   : > { %v5096_v20 = vpop.xlane.xlu1 %5095 }
 0xd74   : > { %v15850_v26 = vsub.f32 %v15740_v44, %v5111_v9  ;;  %v5112_v21 = vmul.f32 0.0078125, %v5096_v20  ;;  %5169 = vadd.xlane.f32.xlu0 %v5141_v46  ;;  %v5142_v4 = vmul.f32 %v15845_v14, %v15845_v14  ;;  %v12355_v20 = vld [vmem:[%s13934_s13 + $0x310] ss:$24 sps:$4 sm:$0xff]  }
 0xd76   : > { %v15855_v25 = vsub.f32 %v15744_v15, %v5112_v21  ;;  %5171 = vadd.xlane.f32.xlu1 %v5142_v4  ;;  %v5143_v43 = vmul.f32 %v15850_v26, %v15850_v26  ;;  %v12360_v4 = vld [vmem:[%s13934_s13 + $0x344] ss:$24 sps:$4 sm:$0xff]  }
 0xd78   : > { %5173 = vadd.xlane.f32.xlu0 %v5143_v43  ;;  %v5144_v23 = vmul.f32 %v15855_v25, %v15855_v25 }
 0xd7a   : > { %5175 = vadd.xlane.f32.xlu1 %v5144_v23 }
 0xdd1   : > { %v5146_v52 = vpop.xlane.xlu0 %5145 }
 0xdd2   : > { %v5177_v44 = vmul.f32 0.0078125, %v5146_v52  ;;  %v12380_v52 = vld [vmem:[%s13936_s18 + $0x300] sm:$0xff]  }
 0xdd3   : > { %v5148_v49 = vpop.xlane.xlu1 %5147 }
 0xdd4   : > { %v5193_v18 = vadd.f32 1e-05, %v5177_v44  ;;  %v5178_v27 = vmul.f32 0.0078125, %v5148_v49  ;;  %v12358_v44 = vld [vmem:[%s13934_s13 + $0x340] ss:$24 sps:$4 sm:$0xff]  }
 0xdd5   : > { %v5150_v39 = vpop.xlane.xlu0 %5149 }
 0xdd6   : > { %12555 = vrsqrt.f32 %v5193_v18  ;;  %v5194_v61 = vadd.f32 1e-05, %v5178_v27  ;;  %v5179_v15 = vmul.f32 0.0078125, %v5150_v39  ;;  %v12363_v18 = vld [vmem:[%s13934_s13 + $0x374] ss:$24 sps:$4 sm:$0xff]  }
 0xdd7   : > { %v5152_v12 = vpop.xlane.xlu1 %5151  ;;  %v12382_v27 = vld [vmem:[%s13936_s18 + $0x308] sm:$0xff]  }
 0xdd8   : > { %12557 = vrsqrt.f32 %v5194_v61  ;;  %v5195_v22 = vadd.f32 1e-05, %v5179_v15  ;;  %v5180_v51 = vmul.f32 0.0078125, %v5152_v12 }
 0xdda   : > { %12559 = vrsqrt.f32 %v5195_v22  ;;  %v5196_v13 = vadd.f32 1e-05, %v5180_v51  ;;  %v12361_v22 = vld [vmem:[%s13934_s13 + $0x370] ss:$24 sps:$4 sm:$0xff]  }
 0xddc   : > { %12561 = vrsqrt.f32 %v5196_v13  ;;  %v12383_v13 = vld [vmem:[%s13936_s18 + $0x350] sm:$0xff]  }
 0xde0   : > { %v12556_v2 = vpop.eup %12555 }
 0xde1   : > { %v5225_v60 = vmul.f32 %v12556_v2, %v15763_v37  ;;  %v5154_v5 = vpop.xlane.xlu0 %5153 }
 0xde2   : > { %v12558_v45 = vpop.eup %12557  ;;  %v5181_v3 = vmul.f32 0.0078125, %v5154_v5  ;;  %v12366_v5 = vld [vmem:[%s13934_s13 + $0x3a4] ss:$24 sps:$4 sm:$0xff]  }
 0xde3   : > { %v5241_v33 = vmul.f32 %v15862_v28, %v5225_v60  ;;  %v5226_v35 = vmul.f32 %v12558_v45, %v15766_v24  ;;  %v5156_v34 = vpop.xlane.xlu1 %5155  ;;  %v12384_v45 = vld [vmem:[%s13936_s18 + $0x310] sm:$0xff]  }
 0xde4   : > { %v12560_v50 = vpop.eup %12559  ;;  %v5197_v42 = vadd.f32 1e-05, %v5181_v3  ;;  %v5182_v58 = vmul.f32 0.0078125, %v5156_v34  ;;  %v12385_v34 = vld [vmem:[%s13936_s18 + $0x358] sm:$0xff]  }
 0xde5   : > { %v5242_v10 = vmul.f32 %v15862_v28, %v5226_v35  ;;  %v5158_v7 = vpop.xlane.xlu0 %5157  ;;  %v15873_v24 = vadd.f32 %v15869_v62, %v5241_v33  ;;  %v5227_v19 = vmul.f32 %v12560_v50, %v15771_v47 }
 0xde6   : > { %v12562_v37 = vpop.eup %12561  ;;  %12563 = vrsqrt.f32 %v5197_v42  ;;  %v5198_v36 = vadd.f32 1e-05, %v5182_v58  ;;  %v5183_v1 = vmul.f32 0.0078125, %v5158_v7 }
 0xde7   : > { %v5160_v0 = vpop.xlane.xlu1 %5159  ;;  %v15876_v54 = vadd.f32 %v15869_v62, %v5242_v10  ;;  %v5228_v53 = vmul.f32 %v12562_v37, %v15776_v57  ;;  %v5243_v47 = vmul.f32 %v15862_v28, %v5227_v19  ;;  %v12381_v57 = vld [vmem:[%s13936_s18 + $0x348] sm:$0xff]   ;;  %v12364_v10 = vld [vmem:[%s13934_s13 + $0x3a0] ss:$24 sps:$4 sm:$0xff]  }
 0xde8   : > { %12565 = vrsqrt.f32 %v5198_v36  ;;  %v5199_v9 = vadd.f32 1e-05, %v5183_v1  ;;  %v5184_v46 = vmul.f32 0.0078125, %v5160_v0  ;;  %v12369_v36 = vld [vmem:[%s13934_s13 + $0x3d4] ss:$24 sps:$4 sm:$0xff]   ;;  %v12386_v1 = vld [vmem:[%s13936_s18 + $0x318] sm:$0xff]  }
 0xde9   : > { %v15883_v21 = vpack.c.bf16 %v15876_v54, %v15873_v24  ;;  %v5244_v43 = vmul.f32 %v15862_v28, %v5228_v53  ;;  %v15901_v39 = vadd.f32 %v15869_v62, %v5243_v47  ;;  %v12391_v47 = vld [vmem:[%s13936_s18 + $0x360] sm:$0xff]  }
 0xdea   : > { %12567 = vrsqrt.f32 %v5199_v9  ;;  %v5200_v23 = vadd.f32 1e-05, %v5184_v46 }
 0xdeb   : > { %5634 = vmatmul.mubr.bf16.vlgmr.msra.gmra.mrb[208].mxu1 %v15883_v21  ;;  %5747 = vmatmul.mubr.bf16.vlgmr.msra.gmra.mrb[224].mxu0 %v15883_v21  ;;  %v15896_v49 = vadd.f32 %v15869_v62, %v5244_v43 }
 0xdec   : > { %12569 = vrsqrt.f32 %v5200_v23  ;;  %5828 = vmatpush1.bf16.msra.mxu1 %v12355_v20  ;;  %5643 = vmatprep.mubr.bf16.mxu1 %v13528_v63 }
 0xded   : > { %5756 = vmatprep.mubr.bf16.mxu0 %v13528_v63  ;;  %5829 = vmatprep.subr.bf16.mxu1 %v12360_v4  ;;  %v15905_v12 = vpack.c.bf16 %v15896_v49, %v15901_v39 }
 0xdee   : > { %11604 = vmatpush3.bf16.msra.mxu0 %v12380_v52  ;;  %v12367_v52 = vld [vmem:[%s13934_s13 + $0x3d0] ss:$24 sps:$4 sm:$0xff]  }
 0xdef   : > { %11605 = vmatprep.subr.bf16.mxu0 %v12381_v57  ;;  %v12392_v57 = vld [vmem:[%s13936_s18 + $0x320] sm:$0xff]  }
 0xdf0   : > { %v12564_v61 = vpop.eup %12563  ;;  %5830 = vmatpush1.bf16.msra.mxu1 %v12358_v44 }
 0xdf1   : > { %v5162_v15 = vpop.xlane.xlu0 %5161  ;;  %5831 = vmatprep.subr.bf16.mxu1 %v12363_v18  ;;  %v5229_v51 = vmul.f32 %v12564_v61, %v15783_v16  ;;  %v12397_v18 = vld [vmem:[%s13936_s18 + $0x368] sm:$0xff]   ;;  %v12370_v61 = vld [vmem:[%s13934_s13 + $0x400] ss:$24 sps:$4 sm:$0xff]  }
 0xdf2   : > { %v12566_v2 = vpop.eup %12565  ;;  %v5185_v60 = vmul.f32 0.0078125, %v5162_v15  ;;  %11606 = vmatpush3.bf16.msra.mxu0 %v12382_v27  ;;  %v12375_v15 = vld [vmem:[%s13934_s13 + $0x434] ss:$24 sps:$4 sm:$0xff]  }
 0xdf3   : > { %v5164_v3 = vpop.xlane.xlu1 %5163  ;;  %5644 = vmatmul.mubr.bf16.gmra.mrb[212].mxu1 %v15905_v12  ;;  %5757 = vmatmul.mubr.bf16.gmra.mrb[228].mxu0 %v15905_v12  ;;  %v5230_v33 = vmul.f32 %v12566_v2, %v15786_v32  ;;  %v5245_v35 = vmul.f32 %v15862_v28, %v5229_v51 }
 0xdf4   : > { %v12568_v11 = vpop.eup %12567  ;;  %v5201_v16 = vadd.f32 1e-05, %v5185_v60  ;;  %v5186_v50 = vmul.f32 0.0078125, %v5164_v3  ;;  %5653 = vmatprep.mubr.bf16.mxu1 %v13528_v63  ;;  %5766 = vmatprep.mubr.bf16.mxu0 %v13528_v63 }
 0xdf5   : > { %v5166_v42 = vpop.xlane.xlu0 %5165  ;;  %v5246_v58 = vmul.f32 %v15862_v28, %v5230_v33  ;;  %5832 = vmatpush1.bf16.msra.mxu1 %v12361_v22  ;;  %11607 = vmatprep.subr.bf16.mxu0 %v12383_v13  ;;  %v15924_v19 = vadd.f32 %v15869_v62, %v5245_v35  ;;  %v5231_v9 = vmul.f32 %v12568_v11, %v15792_v55  ;;  %v12398_v22 = vld [vmem:[%s13936_s18 + $0x328] sm:$0xff]   ;;  %v12378_v35 = vld [vmem:[%s13934_s13 + $0x464] ss:$24 sps:$4 sm:$0xff]  }
 0xdf6   : > { %v12570_v7 = vpop.eup %12569  ;;  %12571 = vrsqrt.f32 %v5201_v16  ;;  %v5202_v32 = vadd.f32 1e-05, %v5186_v50  ;;  %v5187_v37 = vmul.f32 0.0078125, %v5166_v42  ;;  %5833 = vmatprep.subr.bf16.mxu1 %v12366_v5  ;;  %11608 = vmatpush3.bf16.msra.mxu0 %v12384_v45  ;;  %v12373_v45 = vld [vmem:[%s13934_s13 + $0x430] ss:$24 sps:$4 sm:$0xff]  }
 0xdf7   : > { %v5168_v0 = vpop.xlane.xlu1 %5167  ;;  %v15927_v53 = vadd.f32 %v15869_v62, %v5246_v58  ;;  %v5232_v46 = vmul.f32 %v12570_v7, %v15798_v8  ;;  %11609 = vmatprep.subr.bf16.mxu0 %v12385_v34  ;;  %v12372_v8 = vld [vmem:[%s13934_s13 + $0x404] ss:$24 sps:$4 sm:$0xff]   ;;  %v5247_v44 = vmul.f32 %v15862_v28, %v5231_v9  ;;  %v12376_v7 = vld [vmem:[%s13934_s13 + $0x460] ss:$24 sps:$4 sm:$0xff]  }
 0xdf8   : > { %12573 = vrsqrt.f32 %v5202_v32  ;;  %v5203_v20 = vadd.f32 1e-05, %v5187_v37  ;;  %v5188_v4 = vmul.f32 0.0078125, %v5168_v0 }
 0xdf9   : > { %v15933_v43 = vpack.c.bf16 %v15927_v53, %v15924_v19  ;;  %v5248_v23 = vmul.f32 %v15862_v28, %v5232_v46  ;;  %5834 = vmatpush1.bf16.msra.mxu1 %v12364_v10  ;;  %v15953_v51 = vadd.f32 %v15869_v62, %v5247_v44 }
 0xdfa   : > { %12575 = vrsqrt.f32 %v5203_v20  ;;  %v5204_v55 = vadd.f32 1e-05, %v5188_v4  ;;  %5835 = vmatprep.subr.bf16.mxu1 %v12369_v36  ;;  %11610 = vmatpush3.bf16.msra.mxu0 %v12386_v1 }
 0xdfb   : > { %5654 = vmatmul.mubr.bf16.gmra.mrb[216].mxu1 %v15933_v43  ;;  %5767 = vmatmul.mubr.bf16.gmra.mrb[232].mxu0 %v15933_v43  ;;  %v15947_v27 = vadd.f32 %v15869_v62, %v5248_v23 }
 0xdfc   : > { %12577 = vrsqrt.f32 %v5204_v55  ;;  %5663 = vmatprep.mubr.bf16.mxu1 %v13528_v63  ;;  %5776 = vmatprep.mubr.bf16.mxu0 %v13528_v63 }
 0xdfd   : > { %5836 = vmatpush1.bf16.msra.mxu1 %v12367_v52  ;;  %11611 = vmatprep.subr.bf16.mxu0 %v12391_v47  ;;  %v15957_v60 = vpack.c.bf16 %v15947_v27, %v15953_v51 }
 0xdfe   : > { %5837 = vmatprep.subr.bf16.mxu1 %v12372_v8  ;;  %11612 = vmatpush3.bf16.msra.mxu0 %v12392_v57 }
 0xdff   : > { %11613 = vmatprep.subr.bf16.mxu0 %v12397_v18 }
 0xe00   : > { %v12572_v13 = vpop.eup %12571 }
 0xe01   : > { %v5170_v2 = vpop.xlane.xlu0 %5169  ;;  %v5233_v5 = vmul.f32 %v12572_v13, %v15811_v38  ;;  %5838 = vmatpush1.bf16.msra.mxu1 %v12370_v61 }
 0xe02   : > { %v12574_v3 = vpop.eup %12573  ;;  %v5189_v33 = vmul.f32 0.0078125, %v5170_v2  ;;  %5839 = vmatprep.subr.bf16.mxu1 %v12375_v15  ;;  %11614 = vmatpush3.bf16.msra.mxu0 %v12398_v22 }
 0xe03   : > { %v5172_v34 = vpop.xlane.xlu1 %5171  ;;  %5664 = vmatmul.mubr.bf16.gmra.mrb[220].mxu1 %v15957_v60  ;;  %5777 = vmatmul.mubr.bf16.gmra.mrb[236].mxu0 %v15957_v60  ;;  %v5234_v11 = vmul.f32 %v12574_v3, %v15816_v40  ;;  %v5249_v16 = vmul.f32 %v15862_v28, %v5233_v5  ;;  %v12387_v40 = vld [vmem:[%s13936_s18 + $0x3c0] sm:$0xff]  }
 0xe04   : > { %v12576_v50 = vpop.eup %12575  ;;  %v5205_v38 = vadd.f32 1e-05, %v5189_v33  ;;  %v5190_v42 = vmul.f32 0.0078125, %v5172_v34  ;;  %5673 = vmatprep.mubr.bf16.mxu1 %v13528_v63  ;;  %5786 = vmatprep.mubr.bf16.mxu0 %v13528_v63 }
 0xe05   : > { %v5174_v58 = vpop.xlane.xlu0 %5173  ;;  %v5250_v10 = vmul.f32 %v15862_v28, %v5234_v11  ;;  %5840 = vmatpush1.bf16.msra.mxu1 %v12373_v45  ;;  %v15972_v0 = vadd.f32 %v15869_v62, %v5249_v16  ;;  %v5235_v46 = vmul.f32 %v12576_v50, %v15823_v48  ;;  %v12389_v16 = vld [vmem:[%s13936_s18 + $0x3c8] sm:$0xff]   ;;  %v12393_v50 = vld [vmem:[%s13936_s18 + $0x3d0] sm:$0xff]  }
 0xe06   : > { %v12578_v32 = vpop.eup %12577  ;;  %12579 = vrsqrt.f32 %v5205_v38  ;;  %v5206_v37 = vadd.f32 1e-05, %v5190_v42  ;;  %v5191_v36 = vmul.f32 0.0078125, %v5174_v58  ;;  %5841 = vmatprep.subr.bf16.mxu1 %v12378_v35  ;;  %v12394_v38 = vld [vmem:[%s13936_s18 + $0x390] sm:$0xff]   ;;  %v12395_v42 = vld [vmem:[%s13936_s18 + $0x3d8] sm:$0xff]   ;;  %v12399_v58 = vld [vmem:[%s13936_s18 + $0x3e0] sm:$0xff]  }
 0xe07   : > { %v5176_v1 = vpop.xlane.xlu1 %5175  ;;  %v15975_v9 = vadd.f32 %v15869_v62, %v5250_v10  ;;  %v5236_v20 = vmul.f32 %v12578_v32, %v15830_v56  ;;  %v5251_v48 = vmul.f32 %v15862_v28, %v5235_v46  ;;  %v12400_v10 = vld [vmem:[%s13936_s18 + $0x3a0] sm:$0xff]   ;;  %v12403_v32 = vld [vmem:[%s13936_s18 + $0x370] sm:$0xff]   ;;  %v12409_v46 = vld [vmem:[%s13936_s18 + $0x338] sm:$0xff]  }
 0xe08   : > { %12581 = vrsqrt.f32 %v5206_v37  ;;  %v5207_v4 = vadd.f32 1e-05, %v5191_v36  ;;  %v5192_v23 = vmul.f32 0.0078125, %v5176_v1  ;;  %v12405_v37 = vld [vmem:[%s13936_s18 + $0x3f0] sm:$0xff]   ;;  %11615 = vmatprep.subr.bf16.mxu0 %v12403_v32  ;;  %v12408_v1 = vld [vmem:[%s13936_s18 + $0x3f8] sm:$0xff]   ;;  %v12412_v32 = vld [vmem:[%s13936_s18 + $0x400] sm:$0xff]  }
 0xe09   : > { %v15981_v52 = vpack.c.bf16 %v15975_v9, %v15972_v0  ;;  %v5252_v47 = vmul.f32 %v15862_v28, %v5236_v20  ;;  %5842 = vmatpush1.bf16.msra.mxu1 %v12376_v7  ;;  %v15993_v8 = vadd.f32 %v15869_v62, %v5251_v48  ;;  %v12401_v7 = vld [vmem:[%s13936_s18 + $0x3e8] sm:$0xff]   ;;  %v12404_v36 = vld [vmem:[%s13936_s18 + $0x330] sm:$0xff]   ;;  %v12410_v20 = vld [vmem:[%s13936_s18 + $0x3b8] sm:$0xff]  }
 0xe0a   : > { %12583 = vrsqrt.f32 %v5207_v4  ;;  %v5208_v55 = vadd.f32 1e-05, %v5192_v23  ;;  %11667 = vmatprep.subr.bf16.mxu1 %v12387_v40  ;;  %v12406_v40 = vld [vmem:[%s13936_s18 + $0x3b0] sm:$0xff]   ;;  %11616 = vmatpush3.bf16.msra.mxu0 %v12404_v36 }
 0xe0b   : > { %5674 = vmatmul.mubr.bf16.gmra.mrb[224].mxu1 %v15981_v52  ;;  %5787 = vmatmul.mubr.bf16.gmra.mrb[240].mxu0 %v15981_v52  ;;  %v15990_v56 = vadd.f32 %v15869_v62, %v5252_v47  ;;  %v10448_v4 = vld [vmem:[%s13925_s21 + $0x60] ss:$8 sm:$0xf] }
 0xe0c   : > { %12585 = vrsqrt.f32 %v5208_v55  ;;  %5683 = vmatprep.mubr.bf16.mxu1 %v13528_v63  ;;  %5796 = vmatprep.mubr.bf16.mxu0 %v13528_v63  ;;  %v10449_v23 = vld [vmem:[%s13925_s21 + $0x60] ss:$8 sm:$0x30] }
 0xe0d   : > { %v15997_v44 = vpack.c.bf16 %v15990_v56, %v15993_v8  ;;  %v16070_v47 = vor.u32 %v10449_v23, %v10448_v4 }
 0xe0f   : > { %v16078_v55 = vrot.slane %v16070_v47, %v14369_v29  ;;  %v16082_v48 = vrot.slane %v16070_v47, %v14372_v30 }
 0xe10   : > { %v12580_v57 = vpop.eup %12579 }
 0xe11   : > { %v5237_v18 = vmul.f32 %v12580_v57, %v15842_v59 }
 0xe12   : > { %v12582_v61 = vpop.eup %12581 }
 0xe13   : > { %5684 = vmatmul.mubr.bf16.gmra.mrb[228].mxu1 %v15997_v44  ;;  %5797 = vmatmul.mubr.bf16.gmra.mrb[244].mxu0 %v15997_v44  ;;  %v5238_v15 = vmul.f32 %v12582_v61, %v15845_v14  ;;  %v5253_v22 = vmul.f32 %v15862_v28, %v5237_v18 }
 0xe14   : > { %v12584_v13 = vpop.eup %12583  ;;  %5693 = vmatprep.mubr.bf16.mxu1 %v13528_v63  ;;  %5806 = vmatprep.mubr.bf16.mxu0 %v13528_v63 }
 0xe15   : > { %v5254_v2 = vmul.f32 %v15862_v28, %v5238_v15  ;;  %v16008_v45 = vadd.f32 %v15869_v62, %v5253_v22  ;;  %v5239_v3 = vmul.f32 %v12584_v13, %v15850_v26 }
 0xe16   : > { %v12586_v5 = vpop.eup %12585 }
 0xe17   : > { %v16011_v59 = vadd.f32 %v15869_v62, %v5254_v2  ;;  %v5240_v14 = vmul.f32 %v12586_v5, %v15855_v25  ;;  %v5255_v34 = vmul.f32 %v15862_v28, %v5239_v3 }
 0xe19   : > { %v16017_v33 = vpack.c.bf16 %v16011_v59, %v16008_v45  ;;  %v5256_v35 = vmul.f32 %v15862_v28, %v5240_v14  ;;  %v16029_v25 = vadd.f32 %v15869_v62, %v5255_v34  ;;  %v12388_v28 = vld [vmem:[%s13936_s18 + $0x380] sm:$0xff]  }
 0xe1b   : > { %5694 = vmatmul.mubr.bf16.gmra.mrb[232].mxu1 %v16017_v33  ;;  %5807 = vmatmul.mubr.bf16.gmra.mrb[248].mxu0 %v16017_v33  ;;  %v16026_v26 = vadd.f32 %v15869_v62, %v5256_v35  ;;  %v12390_v62 = vld [vmem:[%s13936_s18 + $0x388] sm:$0xff]  }
 0xe1c   : > { %5703 = vmatprep.mubr.bf16.mxu1 %v13528_v63  ;;  %5816 = vmatprep.mubr.bf16.mxu0 %v13528_v63 }
 0xe1d   : > { %v5280_v11 = vpack.c.bf16 %v16026_v26, %v16029_v25 }
 0xe23   : > { %5704 = vmatmul.mubr.bf16.gmra.mrb[236].mxu1 %v5280_v11  ;;  %5817 = vmatmul.mubr.bf16.gmra.mrb[252].mxu0 %v5280_v11 }
 0xe24   : > { %5859 = vmatprep.mubr.bf16.mxu1 %v13528_v63 }
 0xe2b   : > { %5860 = vmatmul.mubr.bf16.vlgmr.msra.gmra.mrb[240].mxu1 %v15883_v21  ;;  %v12396_v21 = vld [vmem:[%s13936_s18 + $0x398] sm:$0xff]  }
 0xe2c   : > { %5869 = vmatprep.mubr.bf16.mxu1 %v13528_v63  ;;  %11668 = vmatpush3.bf16.msra.mxu1 %v12388_v28 }
 0xe2d   : > { %11669 = vmatprep.subr.bf16.mxu1 %v12389_v16 }
 0xe30   : > { %11670 = vmatpush3.bf16.msra.mxu1 %v12390_v62 }
 0xe31   : > { %11671 = vmatprep.subr.bf16.mxu1 %v12393_v50 }
 0xe33   : > { %5870 = vmatmul.mubr.bf16.gmra.mrb[244].mxu1 %v15905_v12  ;;  %v12402_v12 = vld [vmem:[%s13936_s18 + $0x3a8] sm:$0xff]  }
 0xe34   : > { %5879 = vmatprep.mubr.bf16.mxu1 %v13528_v63  ;;  %11672 = vmatpush3.bf16.msra.mxu1 %v12394_v38 }
 0xe35   : > { %11673 = vmatprep.subr.bf16.mxu1 %v12395_v42 }
 0xe38   : > { %11674 = vmatpush3.bf16.msra.mxu1 %v12396_v21 }
 0xe39   : > { %11675 = vmatprep.subr.bf16.mxu1 %v12399_v58 }
 0xe3b   : > { %5880 = vmatmul.mubr.bf16.gmra.mrb[248].mxu1 %v15933_v43  ;;  %v12407_v43 = vld [vmem:[%s13936_s18 + $0x378] sm:$0xff]  }
 0xe3c   : > { %5889 = vmatprep.mubr.bf16.mxu1 %v13528_v63  ;;  %11676 = vmatpush3.bf16.msra.mxu1 %v12400_v10 }
 0xe3d   : > { %11677 = vmatprep.subr.bf16.mxu1 %v12401_v7  ;;  %11617 = vmatprep.subr.bf16.mxu0 %v12407_v43 }
 0xe3e   : > { %11618 = vmatpush3.bf16.msra.mxu0 %v12409_v46 }
 0xe40   : > { %11678 = vmatpush3.bf16.msra.mxu1 %v12402_v12 }
 0xe41   : > { %11679 = vmatprep.subr.bf16.mxu1 %v12405_v37 }
 0xe43   : > { %5890 = vmatmul.mubr.bf16.gmra.mrb[252].mxu1 %v15957_v60  ;;  %v12411_v60 = vld [vmem:[%s13936_s18 + $0x440] sm:$0xff]  }
 0xe44   : > { %5899 = vmatprep.mubr.bf16.mxu1 %v13528_v63  ;;  %11680 = vmatpush3.bf16.msra.mxu1 %v12406_v40 }
 0xe45   : > { %11681 = vmatprep.subr.bf16.mxu1 %v12408_v1  ;;  %11731 = vmatprep.subr.bf16.mxu0 %v12411_v60  ;;  %v12413_v1 = vld [vmem:[%s13936_s18 + $0x448] sm:$0xff]  }
 0xe48   : > { %11682 = vmatpush3.bf16.msra.mxu1 %v12410_v20 }
 0xe49   : > { %11891 = vmatprep.subr.bf16.mxu1 %v12411_v60 }
 0xe4b   : > { %5900 = vmatmul.mubr.bf16.gmra.mrb[0].mxu1 %v15981_v52  ;;  %v16074_v52 = vrot.slane %v16070_v47, %v14366_v41 }
 0xe4c   : > { %5909 = vmatprep.mubr.bf16.mxu1 %v13528_v63 }
 0xe53   : > { %5910 = vmatmul.mubr.bf16.gmra.mrb[4].mxu1 %v15997_v44 }
 0xe54   : > { %5919 = vmatprep.mubr.bf16.mxu1 %v13528_v63 }
 0xe5b   : > { %5920 = vmatmul.mubr.bf16.gmra.mrb[8].mxu1 %v16017_v33 }
 0xe5c   : > { %5929 = vmatprep.mubr.bf16.mxu1 %v13528_v63  ;;  %v16086_v63 = vrot.slane %v16070_v47, %v14375_v31 }
 0xe63   : > { %5930 = vmatmul.mubr.bf16.gmra.mrb[12].mxu1 %v5280_v11 }
 0xebe   : > { %v5635_v57 = vpop.f32.mrb[208].mxu1  ;;  %v5748_v44 = vpop.f32.mrb[224].mxu0 }
 0xebf   : > { %v5636_v18 = vadd.f32 %v5635_v57, %v16074_v52  ;;  %v5749_v61 = vadd.f32 %v5748_v44, %v16078_v55  ;;  %v5637_v41 = vpop.f32.mrb[209].mxu1  ;;  %v5750_v15 = vpop.f32.mrb[225].mxu0 }
 0xec0   : > { %v5638_v22 = vadd.f32 %v5637_v41, %v16082_v48  ;;  %v5751_v29 = vadd.f32 %v5750_v15, %v16086_v63  ;;  %v5639_v13 = vpop.f32.mrb[210].mxu1  ;;  %v5752_v2 = vpop.f32.mrb[226].mxu0  ;;  %v12414_v15 = vld [vmem:[%s13936_s18 + $0x408] sm:$0xff]  }
 0xec1   : > { %v5640_v30 = vadd.f32 %v5639_v13, %v16074_v52  ;;  %v5753_v5 = vadd.f32 %v5752_v2, %v16078_v55  ;;  %v5641_v31 = vpop.f32.mrb[211].mxu1  ;;  %v5754_v3 = vpop.f32.mrb[227].mxu0  ;;  %v5940_v35 = vmax.f32 %v5636_v18, 0.0  ;;  %v5942_v34 = vmax.f32 %v5749_v61, 0.0 }
 0xec2   : > { %v5642_v14 = vadd.f32 %v5641_v31, %v16082_v48  ;;  %v5755_v33 = vadd.f32 %v5754_v3, %v16086_v63  ;;  %v5941_v16 = vmax.f32 %v5638_v22, 0.0  ;;  %v5943_v62 = vmax.f32 %v5751_v29, 0.0 }
 0xec3   : > { %v5946_v11 = vmax.f32 %v5640_v30, 0.0  ;;  %v5948_v28 = vmax.f32 %v5753_v5, 0.0  ;;  %v12415_v30 = vld [vmem:[%s13936_s18 + $0x450] sm:$0xff]  }
 0xec4   : > { %v5947_v50 = vmax.f32 %v5642_v14, 0.0  ;;  %v5949_v38 = vmax.f32 %v5755_v33, 0.0 }
 0xec5   : > { %v6036_v42 = vpack.c.bf16 %v5946_v11, %v5940_v35  ;;  %v6038_v21 = vpack.c.bf16 %v5948_v28, %v5942_v34 }
 0xec6   : > { %v6037_v58 = vpack.c.bf16 %v5947_v50, %v5941_v16  ;;  %v6039_v10 = vpack.c.bf16 %v5949_v38, %v5943_v62  ;;  %v5645_v7 = vpop.f32.mrb[212].mxu1  ;;  %v5758_v12 = vpop.f32.mrb[228].mxu0  ;;  %v12416_v62 = vld [vmem:[%s13936_s18 + $0x410] sm:$0xff]  }
 0xec7   : > { %v5646_v37 = vadd.f32 %v5645_v7, %v16074_v52  ;;  %v5759_v36 = vadd.f32 %v5758_v12, %v16078_v55  ;;  %v5647_v40 = vpop.f32.mrb[213].mxu1  ;;  %v5760_v43 = vpop.f32.mrb[229].mxu0 }
 0xec8   : > { %v5648_v46 = vadd.f32 %v5647_v40, %v16082_v48  ;;  %v5761_v20 = vadd.f32 %v5760_v43, %v16086_v63  ;;  %v5649_v60 = vpop.f32.mrb[214].mxu1  ;;  %v5762_v4 = vpop.f32.mrb[230].mxu0  ;;  %6501 = vmatprep.mubr.bf16.mxu0 %v6037_v58  ;;  %6598 = vmatprep.mubr.bf16.mxu1 %v6039_v10  ;;  %v12417_v58 = vld [vmem:[%s13936_s18 + $0x458] sm:$0xff]  }
 0xec9   : > { %v5650_v23 = vadd.f32 %v5649_v60, %v16074_v52  ;;  %v5763_v57 = vadd.f32 %v5762_v4, %v16078_v55  ;;  %v5651_v44 = vpop.f32.mrb[215].mxu1  ;;  %v5764_v18 = vpop.f32.mrb[231].mxu0  ;;  %6502 = vmatmul.mubr.bf16.vlgmr.msra.gmra.mrb[0].mxu0 %v6036_v42  ;;  %6599 = vmatmul.mubr.bf16.vlgmr.msra.gmra.mrb[16].mxu1 %v6038_v21  ;;  %v5952_v22 = vmax.f32 %v5646_v37, 0.0  ;;  %v5954_v29 = vmax.f32 %v5759_v36, 0.0 }
 0xeca   : > { %v5652_v61 = vadd.f32 %v5651_v44, %v16082_v48  ;;  %v5765_v41 = vadd.f32 %v5764_v18, %v16086_v63  ;;  %11732 = vmatpush3.bf16.msra.mxu0 %v12412_v32  ;;  %11899 = vmatpush3.bf16.msra.mxu1 %v12412_v32  ;;  %v5953_v5 = vmax.f32 %v5648_v46, 0.0  ;;  %v5955_v31 = vmax.f32 %v5761_v20, 0.0  ;;  %v12418_v20 = vld [vmem:[%s13936_s18 + $0x418] sm:$0xff]   ;;  %v12419_v44 = vld [vmem:[%s13936_s18 + $0x460] sm:$0xff]  }
 0xecb   : > { %v5958_v13 = vmax.f32 %v5650_v23, 0.0  ;;  %v5960_v2 = vmax.f32 %v5763_v57, 0.0  ;;  %11733 = vmatprep.subr.bf16.mxu0 %v12413_v1  ;;  %11892 = vmatprep.subr.bf16.mxu1 %v12413_v1 }
 0xecc   : > { %v5959_v3 = vmax.f32 %v5652_v61, 0.0  ;;  %v5961_v14 = vmax.f32 %v5765_v41, 0.0 }
 0xecd   : > { %v6042_v33 = vpack.c.bf16 %v5958_v13, %v5952_v22  ;;  %v6044_v35 = vpack.c.bf16 %v5960_v2, %v5954_v29 }
 0xece   : > { %v6043_v34 = vpack.c.bf16 %v5959_v3, %v5953_v5  ;;  %v6045_v11 = vpack.c.bf16 %v5961_v14, %v5955_v31  ;;  %v5655_v28 = vpop.f32.mrb[216].mxu1  ;;  %v5768_v16 = vpop.f32.mrb[232].mxu0  ;;  %11734 = vmatpush3.bf16.msra.mxu0 %v12414_v15  ;;  %11900 = vmatpush3.bf16.msra.mxu1 %v12414_v15  ;;  %v12420_v31 = vld [vmem:[%s13936_s18 + $0x420] sm:$0xff]  }
 0xecf   : > { %v5656_v50 = vadd.f32 %v5655_v28, %v16074_v52  ;;  %v5769_v38 = vadd.f32 %v5768_v16, %v16078_v55  ;;  %v5657_v42 = vpop.f32.mrb[217].mxu1  ;;  %v5770_v21 = vpop.f32.mrb[233].mxu0  ;;  %11735 = vmatprep.subr.bf16.mxu0 %v12415_v30  ;;  %11893 = vmatprep.subr.bf16.mxu1 %v12415_v30 }
 0xed0   : > { %v5658_v10 = vadd.f32 %v5657_v42, %v16082_v48  ;;  %v5771_v7 = vadd.f32 %v5770_v21, %v16086_v63  ;;  %v5659_v12 = vpop.f32.mrb[218].mxu1  ;;  %v5772_v32 = vpop.f32.mrb[234].mxu0  ;;  %6509 = vmatprep.mubr.bf16.mxu0 %v6043_v34  ;;  %6606 = vmatprep.mubr.bf16.mxu1 %v6045_v11  ;;  %v12421_v34 = vld [vmem:[%s13936_s18 + $0x468] sm:$0xff]  }
 0xed1   : > { %v5660_v37 = vadd.f32 %v5659_v12, %v16074_v52  ;;  %v5773_v36 = vadd.f32 %v5772_v32, %v16078_v55  ;;  %v5661_v40 = vpop.f32.mrb[219].mxu1  ;;  %v5774_v43 = vpop.f32.mrb[235].mxu0  ;;  %6510 = vmatmul.mubr.bf16.gmra.mrb[4].mxu0 %v6042_v33  ;;  %6607 = vmatmul.mubr.bf16.gmra.mrb[20].mxu1 %v6044_v35  ;;  %v5964_v60 = vmax.f32 %v5656_v50, 0.0  ;;  %v5966_v4 = vmax.f32 %v5769_v38, 0.0 }
 0xed2   : > { %v5662_v1 = vadd.f32 %v5661_v40, %v16082_v48  ;;  %v5775_v46 = vadd.f32 %v5774_v43, %v16086_v63  ;;  %11736 = vmatpush3.bf16.msra.mxu0 %v12416_v62  ;;  %11901 = vmatpush3.bf16.msra.mxu1 %v12416_v62  ;;  %v5965_v18 = vmax.f32 %v5658_v10, 0.0  ;;  %v5967_v61 = vmax.f32 %v5771_v7, 0.0  ;;  %v12422_v7 = vld [vmem:[%s13936_s18 + $0x428] sm:$0xff]   ;;  %v12423_v40 = vld [vmem:[%s13936_s18 + $0x470] sm:$0xff]  }
 0xed3   : > { %v5970_v23 = vmax.f32 %v5660_v37, 0.0  ;;  %v5972_v57 = vmax.f32 %v5773_v36, 0.0  ;;  %11737 = vmatprep.subr.bf16.mxu0 %v12417_v58  ;;  %11894 = vmatprep.subr.bf16.mxu1 %v12417_v58 }
 0xed4   : > { %v5971_v41 = vmax.f32 %v5662_v1, 0.0  ;;  %v5973_v15 = vmax.f32 %v5775_v46, 0.0 }
 0xed5   : > { %v6048_v22 = vpack.c.bf16 %v5970_v23, %v5964_v60  ;;  %v6050_v29 = vpack.c.bf16 %v5972_v57, %v5966_v4 }
 0xed6   : > { %v6049_v13 = vpack.c.bf16 %v5971_v41, %v5965_v18  ;;  %v6051_v2 = vpack.c.bf16 %v5973_v15, %v5967_v61  ;;  %v5665_v30 = vpop.f32.mrb[220].mxu1  ;;  %v5778_v5 = vpop.f32.mrb[236].mxu0  ;;  %11738 = vmatpush3.bf16.msra.mxu0 %v12418_v20  ;;  %11902 = vmatpush3.bf16.msra.mxu1 %v12418_v20  ;;  %v12424_v61 = vld [vmem:[%s13936_s18 + $0x430] sm:$0xff]  }
 0xed7   : > { %v5666_v3 = vadd.f32 %v5665_v30, %v16074_v52  ;;  %v5779_v14 = vadd.f32 %v5778_v5, %v16078_v55  ;;  %v5667_v33 = vpop.f32.mrb[221].mxu1  ;;  %v5780_v35 = vpop.f32.mrb[237].mxu0  ;;  %11739 = vmatprep.subr.bf16.mxu0 %v12419_v44  ;;  %11895 = vmatprep.subr.bf16.mxu1 %v12419_v44 }
 0xed8   : > { %v5668_v11 = vadd.f32 %v5667_v33, %v16082_v48  ;;  %v5781_v28 = vadd.f32 %v5780_v35, %v16086_v63  ;;  %v5669_v16 = vpop.f32.mrb[222].mxu1  ;;  %v5782_v62 = vpop.f32.mrb[238].mxu0  ;;  %6517 = vmatprep.mubr.bf16.mxu0 %v6049_v13  ;;  %6614 = vmatprep.mubr.bf16.mxu1 %v6051_v2  ;;  %v12425_v13 = vld [vmem:[%s13936_s18 + $0x478] sm:$0xff]  }
 0xed9   : > { %v5670_v50 = vadd.f32 %v5669_v16, %v16074_v52  ;;  %v5783_v38 = vadd.f32 %v5782_v62, %v16078_v55  ;;  %v5671_v42 = vpop.f32.mrb[223].mxu1  ;;  %v5784_v21 = vpop.f32.mrb[239].mxu0  ;;  %6518 = vmatmul.mubr.bf16.gmra.mrb[8].mxu0 %v6048_v22  ;;  %6615 = vmatmul.mubr.bf16.gmra.mrb[24].mxu1 %v6050_v29  ;;  %v5976_v12 = vmax.f32 %v5666_v3, 0.0  ;;  %v5978_v32 = vmax.f32 %v5779_v14, 0.0 }
 0xeda   : > { %v5672_v58 = vadd.f32 %v5671_v42, %v16082_v48  ;;  %v5785_v10 = vadd.f32 %v5784_v21, %v16086_v63  ;;  %11740 = vmatpush3.bf16.msra.mxu0 %v12420_v31  ;;  %11903 = vmatpush3.bf16.msra.mxu1 %v12420_v31  ;;  %v5977_v43 = vmax.f32 %v5668_v11, 0.0  ;;  %v5979_v1 = vmax.f32 %v5781_v28, 0.0  ;;  %v12426_v28 = vld [vmem:[%s13936_s18 + $0x438] sm:$0xff]  }
 0xedb   : > { %v5982_v37 = vmax.f32 %v5670_v50, 0.0  ;;  %v5984_v36 = vmax.f32 %v5783_v38, 0.0  ;;  %11741 = vmatprep.subr.bf16.mxu0 %v12421_v34  ;;  %11896 = vmatprep.subr.bf16.mxu1 %v12421_v34 }
 0xedc   : > { %v5983_v46 = vmax.f32 %v5672_v58, 0.0  ;;  %v5985_v20 = vmax.f32 %v5785_v10, 0.0 }
 0xedd   : > { %v6054_v60 = vpack.c.bf16 %v5982_v37, %v5976_v12  ;;  %v6056_v4 = vpack.c.bf16 %v5984_v36, %v5978_v32 }
 0xede   : > { %v6055_v23 = vpack.c.bf16 %v5983_v46, %v5977_v43  ;;  %v6057_v57 = vpack.c.bf16 %v5985_v20, %v5979_v1  ;;  %v5675_v44 = vpop.f32.mrb[224].mxu1  ;;  %v5788_v18 = vpop.f32.mrb[240].mxu0  ;;  %11742 = vmatpush3.bf16.msra.mxu0 %v12422_v7  ;;  %11904 = vmatpush3.bf16.msra.mxu1 %v12422_v7 }
 0xedf   : > { %v5676_v41 = vadd.f32 %v5675_v44, %v16074_v52  ;;  %v5789_v15 = vadd.f32 %v5788_v18, %v16078_v55  ;;  %v5677_v22 = vpop.f32.mrb[225].mxu1  ;;  %v5790_v29 = vpop.f32.mrb[241].mxu0  ;;  %11743 = vmatprep.subr.bf16.mxu0 %v12423_v40  ;;  %11897 = vmatprep.subr.bf16.mxu1 %v12423_v40 }
 0xee0   : > { %v5678_v2 = vadd.f32 %v5677_v22, %v16082_v48  ;;  %v5791_v30 = vadd.f32 %v5790_v29, %v16086_v63  ;;  %v5679_v5 = vpop.f32.mrb[226].mxu1  ;;  %v5792_v31 = vpop.f32.mrb[242].mxu0  ;;  %6525 = vmatprep.mubr.bf16.mxu0 %v6055_v23  ;;  %6622 = vmatprep.mubr.bf16.mxu1 %v6057_v57 }
 0xee1   : > { %v5680_v3 = vadd.f32 %v5679_v5, %v16074_v52  ;;  %v5793_v14 = vadd.f32 %v5792_v31, %v16078_v55  ;;  %v5681_v33 = vpop.f32.mrb[227].mxu1  ;;  %v5794_v35 = vpop.f32.mrb[243].mxu0  ;;  %6526 = vmatmul.mubr.bf16.gmra.mrb[12].mxu0 %v6054_v60  ;;  %6623 = vmatmul.mubr.bf16.gmra.mrb[28].mxu1 %v6056_v4  ;;  %v5988_v16 = vmax.f32 %v5676_v41, 0.0  ;;  %v5990_v62 = vmax.f32 %v5789_v15, 0.0 }
 0xee2   : > { %v5682_v34 = vadd.f32 %v5681_v33, %v16082_v48  ;;  %v5795_v11 = vadd.f32 %v5794_v35, %v16086_v63  ;;  %11744 = vmatpush3.bf16.msra.mxu0 %v12424_v61  ;;  %11905 = vmatpush3.bf16.msra.mxu1 %v12424_v61  ;;  %v5989_v42 = vmax.f32 %v5678_v2, 0.0  ;;  %v5991_v21 = vmax.f32 %v5791_v30, 0.0 }
 0xee3   : > { %v5994_v50 = vmax.f32 %v5680_v3, 0.0  ;;  %v5996_v38 = vmax.f32 %v5793_v14, 0.0  ;;  %11745 = vmatprep.subr.bf16.mxu0 %v12425_v13  ;;  %11898 = vmatprep.subr.bf16.mxu1 %v12425_v13 }
 0xee4   : > { %v5995_v58 = vmax.f32 %v5682_v34, 0.0  ;;  %v5997_v10 = vmax.f32 %v5795_v11, 0.0 }
 0xee5   : > { %v6060_v7 = vpack.c.bf16 %v5994_v50, %v5988_v16  ;;  %v6062_v12 = vpack.c.bf16 %v5996_v38, %v5990_v62 }
 0xee6   : > { %v6061_v32 = vpack.c.bf16 %v5995_v58, %v5989_v42  ;;  %v6063_v37 = vpack.c.bf16 %v5997_v10, %v5991_v21  ;;  %v5685_v36 = vpop.f32.mrb[228].mxu1  ;;  %v5798_v40 = vpop.f32.mrb[244].mxu0  ;;  %11746 = vmatpush3.bf16.msra.mxu0 %v12426_v28  ;;  %11906 = vmatpush3.bf16.msra.mxu1 %v12426_v28 }
 0xee7   : > { %v5686_v43 = vadd.f32 %v5685_v36, %v16074_v52  ;;  %v5799_v1 = vadd.f32 %v5798_v40, %v16078_v55  ;;  %v5687_v46 = vpop.f32.mrb[229].mxu1  ;;  %v5800_v20 = vpop.f32.mrb[245].mxu0 }
 0xee8   : > { %v5688_v60 = vadd.f32 %v5687_v46, %v16082_v48  ;;  %v5801_v4 = vadd.f32 %v5800_v20, %v16086_v63  ;;  %v5689_v23 = vpop.f32.mrb[230].mxu1  ;;  %v5802_v57 = vpop.f32.mrb[246].mxu0  ;;  %6533 = vmatprep.mubr.bf16.mxu0 %v6061_v32  ;;  %6630 = vmatprep.mubr.bf16.mxu1 %v6063_v37 }
 0xee9   : > { %v5690_v44 = vadd.f32 %v5689_v23, %v16074_v52  ;;  %v5803_v18 = vadd.f32 %v5802_v57, %v16078_v55  ;;  %v5691_v61 = vpop.f32.mrb[231].mxu1  ;;  %v5804_v41 = vpop.f32.mrb[247].mxu0  ;;  %6534 = vmatmul.mubr.bf16.gmra.mrb[16].mxu0 %v6060_v7  ;;  %6631 = vmatmul.mubr.bf16.gmra.mrb[32].mxu1 %v6062_v12  ;;  %v6000_v29 = vmax.f32 %v5686_v43, 0.0  ;;  %v6002_v13 = vmax.f32 %v5799_v1, 0.0 }
 0xeea   : > { %v5692_v15 = vadd.f32 %v5691_v61, %v16082_v48  ;;  %v5805_v22 = vadd.f32 %v5804_v41, %v16086_v63  ;;  %v6001_v5 = vmax.f32 %v5688_v60, 0.0  ;;  %v6003_v31 = vmax.f32 %v5801_v4, 0.0 }
 0xeeb   : > { %v6006_v2 = vmax.f32 %v5690_v44, 0.0  ;;  %v6008_v30 = vmax.f32 %v5803_v18, 0.0 }
 0xeec   : > { %v6007_v3 = vmax.f32 %v5692_v15, 0.0  ;;  %v6009_v14 = vmax.f32 %v5805_v22, 0.0 }
 0xeed   : > { %v6066_v33 = vpack.c.bf16 %v6006_v2, %v6000_v29  ;;  %v6068_v35 = vpack.c.bf16 %v6008_v30, %v6002_v13 }
 0xeee   : > { %v6067_v34 = vpack.c.bf16 %v6007_v3, %v6001_v5  ;;  %v6069_v11 = vpack.c.bf16 %v6009_v14, %v6003_v31  ;;  %v5695_v28 = vpop.f32.mrb[232].mxu1  ;;  %v5808_v16 = vpop.f32.mrb[248].mxu0 }
 0xeef   : > { %v5696_v62 = vadd.f32 %v5695_v28, %v16074_v52  ;;  %v5809_v50 = vadd.f32 %v5808_v16, %v16078_v55  ;;  %v5697_v38 = vpop.f32.mrb[233].mxu1  ;;  %v5810_v42 = vpop.f32.mrb[249].mxu0 }
 0xef0   : > { %v5698_v21 = vadd.f32 %v5697_v38, %v16082_v48  ;;  %v5811_v58 = vadd.f32 %v5810_v42, %v16086_v63  ;;  %v5699_v10 = vpop.f32.mrb[234].mxu1  ;;  %v5812_v7 = vpop.f32.mrb[250].mxu0  ;;  %6541 = vmatprep.mubr.bf16.mxu0 %v6067_v34  ;;  %6638 = vmatprep.mubr.bf16.mxu1 %v6069_v11  ;;  %v16173_v38 = vrot.slane %v16070_v47, %v14468_v6 }
 0xef1   : > { %v5700_v12 = vadd.f32 %v5699_v10, %v16074_v52  ;;  %v5813_v32 = vadd.f32 %v5812_v7, %v16078_v55  ;;  %v5701_v37 = vpop.f32.mrb[235].mxu1  ;;  %v5814_v36 = vpop.f32.mrb[251].mxu0  ;;  %6542 = vmatmul.mubr.bf16.gmra.mrb[20].mxu0 %v6066_v33  ;;  %6639 = vmatmul.mubr.bf16.gmra.mrb[36].mxu1 %v6068_v35  ;;  %v6012_v1 = vmax.f32 %v5696_v62, 0.0  ;;  %v6014_v46 = vmax.f32 %v5809_v50, 0.0 }
 0xef2   : > { %v5702_v40 = vadd.f32 %v5701_v37, %v16082_v48  ;;  %v5815_v43 = vadd.f32 %v5814_v36, %v16086_v63  ;;  %v6013_v4 = vmax.f32 %v5698_v21, 0.0  ;;  %v6015_v23 = vmax.f32 %v5811_v58, 0.0 }
 0xef3   : > { %v6018_v20 = vmax.f32 %v5700_v12, 0.0  ;;  %v6020_v60 = vmax.f32 %v5813_v32, 0.0  ;;  %v16169_v50 = vrot.slane %v16070_v47, %v14465_v17 }
 0xef4   : > { %v6019_v57 = vmax.f32 %v5702_v40, 0.0  ;;  %v6021_v44 = vmax.f32 %v5815_v43, 0.0 }
 0xef5   : > { %v6072_v18 = vpack.c.bf16 %v6018_v20, %v6012_v1  ;;  %v6074_v61 = vpack.c.bf16 %v6020_v60, %v6014_v46 }
 0xef6   : > { %v6073_v41 = vpack.c.bf16 %v6019_v57, %v6013_v4  ;;  %v6075_v15 = vpack.c.bf16 %v6021_v44, %v6015_v23  ;;  %v5705_v22 = vpop.f32.mrb[236].mxu1  ;;  %v5818_v29 = vpop.f32.mrb[252].mxu0 }
 0xef7   : > { %v5706_v13 = vadd.f32 %v5705_v22, %v16074_v52  ;;  %v5819_v2 = vadd.f32 %v5818_v29, %v16078_v55  ;;  %v5707_v30 = vpop.f32.mrb[237].mxu1  ;;  %v5820_v5 = vpop.f32.mrb[253].mxu0 }
 0xef8   : > { %v5708_v31 = vadd.f32 %v5707_v30, %v16082_v48  ;;  %v5821_v3 = vadd.f32 %v5820_v5, %v16086_v63  ;;  %v5709_v14 = vpop.f32.mrb[238].mxu1  ;;  %v5822_v33 = vpop.f32.mrb[254].mxu0  ;;  %6549 = vmatprep.mubr.bf16.mxu0 %v6073_v41  ;;  %6646 = vmatprep.mubr.bf16.mxu1 %v6075_v15 }
 0xef9   : > { %v5710_v35 = vadd.f32 %v5709_v14, %v16074_v52  ;;  %v5823_v34 = vadd.f32 %v5822_v33, %v16078_v55  ;;  %v5711_v11 = vpop.f32.mrb[239].mxu1  ;;  %v5824_v28 = vpop.f32.mrb[255].mxu0  ;;  %6550 = vmatmul.mubr.bf16.gmra.mrb[24].mxu0 %v6072_v18  ;;  %6647 = vmatmul.mubr.bf16.gmra.mrb[40].mxu1 %v6074_v61  ;;  %v6024_v42 = vmax.f32 %v5706_v13, 0.0  ;;  %v6026_v52 = vmax.f32 %v5819_v2, 0.0 }
 0xefa   : > { %v5712_v16 = vadd.f32 %v5711_v11, %v16082_v48  ;;  %v5825_v62 = vadd.f32 %v5824_v28, %v16086_v63  ;;  %v6025_v58 = vmax.f32 %v5708_v31, 0.0  ;;  %v6027_v10 = vmax.f32 %v5821_v3, 0.0 }
 0xefb   : > { %v6030_v21 = vmax.f32 %v5710_v35, 0.0  ;;  %v6032_v55 = vmax.f32 %v5823_v34, 0.0 }
 0xefc   : > { %v6031_v7 = vmax.f32 %v5712_v16, 0.0  ;;  %v6033_v12 = vmax.f32 %v5825_v62, 0.0 }
 0xefd   : > { %v6078_v32 = vpack.c.bf16 %v6030_v21, %v6024_v42  ;;  %v6080_v48 = vpack.c.bf16 %v6032_v55, %v6026_v52 }
 0xefe   : > { %v6079_v37 = vpack.c.bf16 %v6031_v7, %v6025_v58  ;;  %v6081_v63 = vpack.c.bf16 %v6033_v12, %v6027_v10  ;;  %v5861_v36 = vpop.f32.mrb[240].mxu1 }
 0xeff   : > { %v5862_v17 = vadd.f32 %v5861_v36, %v16169_v50  ;;  %v5863_v40 = vpop.f32.mrb[241].mxu1 }
 0xf00   : > { %v5864_v43 = vadd.f32 %v5863_v40, %v16173_v38  ;;  %v5865_v6 = vpop.f32.mrb[242].mxu1  ;;  %6557 = vmatprep.mubr.bf16.mxu0 %v6079_v37  ;;  %6654 = vmatprep.mubr.bf16.mxu1 %v6081_v63 }
 0xf01   : > { %v5866_v47 = vadd.f32 %v5865_v6, %v16169_v50  ;;  %v5867_v1 = vpop.f32.mrb[243].mxu1  ;;  %6558 = vmatmul.mubr.bf16.gmra.mrb[28].mxu0 %v6078_v32  ;;  %6655 = vmatmul.mubr.bf16.gmra.mrb[44].mxu1 %v6080_v48  ;;  %v5944_v20 = vmax.f32 %v5862_v17, 0.0 }
 0xf02   : > { %v5868_v46 = vadd.f32 %v5867_v1, %v16173_v38  ;;  %v5945_v4 = vmax.f32 %v5864_v43, 0.0 }
 0xf03   : > { %v5950_v60 = vmax.f32 %v5866_v47, 0.0 }
 0xf04   : > { %v5951_v23 = vmax.f32 %v5868_v46, 0.0 }
 0xf05   : > { %v6040_v57 = vpack.c.bf16 %v5950_v60, %v5944_v20 }
 0xf06   : > { %v6041_v44 = vpack.c.bf16 %v5951_v23, %v5945_v4  ;;  %v5871_v18 = vpop.f32.mrb[244].mxu1 }
 0xf07   : > { %v5872_v61 = vadd.f32 %v5871_v18, %v16169_v50  ;;  %v5873_v41 = vpop.f32.mrb[245].mxu1 }
 0xf08   : > { %v5874_v15 = vadd.f32 %v5873_v41, %v16173_v38  ;;  %v5875_v22 = vpop.f32.mrb[246].mxu1  ;;  %6695 = vmatprep.mubr.bf16.mxu0 %v6041_v44 }
 0xf09   : > { %v5876_v29 = vadd.f32 %v5875_v22, %v16169_v50  ;;  %v5877_v13 = vpop.f32.mrb[247].mxu1  ;;  %6696 = vmatmul.mubr.bf16.vlgmr.msra.gmra.mrb[32].mxu0 %v6040_v57  ;;  %v5956_v30 = vmax.f32 %v5872_v61, 0.0 }
 0xf0a   : > { %v5878_v2 = vadd.f32 %v5877_v13, %v16173_v38  ;;  %v5957_v31 = vmax.f32 %v5874_v15, 0.0 }
 0xf0b   : > { %v5962_v5 = vmax.f32 %v5876_v29, 0.0 }
 0xf0c   : > { %v5963_v3 = vmax.f32 %v5878_v2, 0.0 }
 0xf0d   : > { %v6046_v14 = vpack.c.bf16 %v5962_v5, %v5956_v30 }
 0xf0e   : > { %v6047_v33 = vpack.c.bf16 %v5963_v3, %v5957_v31  ;;  %v5881_v35 = vpop.f32.mrb[248].mxu1 }
 0xf0f   : > { %v5882_v34 = vadd.f32 %v5881_v35, %v16169_v50  ;;  %v5883_v11 = vpop.f32.mrb[249].mxu1 }
 0xf10   : > { %v5884_v28 = vadd.f32 %v5883_v11, %v16173_v38  ;;  %v5885_v16 = vpop.f32.mrb[250].mxu1  ;;  %6703 = vmatprep.mubr.bf16.mxu0 %v6047_v33 }
 0xf11   : > { %v5886_v62 = vadd.f32 %v5885_v16, %v16169_v50  ;;  %v5887_v42 = vpop.f32.mrb[251].mxu1  ;;  %6704 = vmatmul.mubr.bf16.gmra.mrb[36].mxu0 %v6046_v14  ;;  %v5968_v21 = vmax.f32 %v5882_v34, 0.0 }
 0xf12   : > { %v5888_v52 = vadd.f32 %v5887_v42, %v16173_v38  ;;  %v5969_v58 = vmax.f32 %v5884_v28, 0.0 }
 0xf13   : > { %v5974_v55 = vmax.f32 %v5886_v62, 0.0 }
 0xf14   : > { %v5975_v10 = vmax.f32 %v5888_v52, 0.0 }
 0xf15   : > { %v6052_v7 = vpack.c.bf16 %v5974_v55, %v5968_v21 }
 0xf16   : > { %v6053_v12 = vpack.c.bf16 %v5975_v10, %v5969_v58  ;;  %v5891_v32 = vpop.f32.mrb[252].mxu1 }
 0xf17   : > { %v5892_v48 = vadd.f32 %v5891_v32, %v16169_v50  ;;  %v5893_v37 = vpop.f32.mrb[253].mxu1 }
 0xf18   : > { %v5894_v63 = vadd.f32 %v5893_v37, %v16173_v38  ;;  %v5895_v36 = vpop.f32.mrb[254].mxu1  ;;  %6711 = vmatprep.mubr.bf16.mxu0 %v6053_v12 }
 0xf19   : > { %v5896_v17 = vadd.f32 %v5895_v36, %v16169_v50  ;;  %v5897_v40 = vpop.f32.mrb[255].mxu1  ;;  %6712 = vmatmul.mubr.bf16.gmra.mrb[40].mxu0 %v6052_v7  ;;  %v5980_v6 = vmax.f32 %v5892_v48, 0.0 }
 0xf1a   : > { %v5898_v43 = vadd.f32 %v5897_v40, %v16173_v38  ;;  %v5981_v1 = vmax.f32 %v5894_v63, 0.0 }
 0xf1b   : > { %v5986_v47 = vmax.f32 %v5896_v17, 0.0 }
 0xf1c   : > { %v5987_v46 = vmax.f32 %v5898_v43, 0.0 }
 0xf1d   : > { %v6058_v20 = vpack.c.bf16 %v5986_v47, %v5980_v6 }
 0xf1e   : > { %v6059_v60 = vpack.c.bf16 %v5987_v46, %v5981_v1  ;;  %v5901_v4 = vpop.f32.mrb[0].mxu1 }
 0xf1f   : > { %v5902_v23 = vadd.f32 %v5901_v4, %v16169_v50  ;;  %v5903_v57 = vpop.f32.mrb[1].mxu1 }
 0xf20   : > { %v5904_v44 = vadd.f32 %v5903_v57, %v16173_v38  ;;  %v5905_v18 = vpop.f32.mrb[2].mxu1  ;;  %6719 = vmatprep.mubr.bf16.mxu0 %v6059_v60 }
 0xf21   : > { %v5906_v61 = vadd.f32 %v5905_v18, %v16169_v50  ;;  %v5907_v41 = vpop.f32.mrb[3].mxu1  ;;  %6720 = vmatmul.mubr.bf16.gmra.mrb[44].mxu0 %v6058_v20  ;;  %v5992_v22 = vmax.f32 %v5902_v23, 0.0 }
 0xf22   : > { %v5908_v15 = vadd.f32 %v5907_v41, %v16173_v38  ;;  %v5993_v13 = vmax.f32 %v5904_v44, 0.0 }
 0xf23   : > { %v5998_v29 = vmax.f32 %v5906_v61, 0.0 }
 0xf24   : > { %v5999_v2 = vmax.f32 %v5908_v15, 0.0 }
 0xf25   : > { %v6064_v30 = vpack.c.bf16 %v5998_v29, %v5992_v22 }
 0xf26   : > { %v6065_v5 = vpack.c.bf16 %v5999_v2, %v5993_v13  ;;  %v5911_v31 = vpop.f32.mrb[4].mxu1 }
 0xf27   : > { %v5912_v3 = vadd.f32 %v5911_v31, %v16169_v50  ;;  %v5913_v14 = vpop.f32.mrb[5].mxu1 }
 0xf28   : > { %v5914_v33 = vadd.f32 %v5913_v14, %v16173_v38  ;;  %v5915_v35 = vpop.f32.mrb[6].mxu1  ;;  %6727 = vmatprep.mubr.bf16.mxu0 %v6065_v5 }
 0xf29   : > { %v5916_v34 = vadd.f32 %v5915_v35, %v16169_v50  ;;  %v5917_v11 = vpop.f32.mrb[7].mxu1  ;;  %6728 = vmatmul.mubr.bf16.gmra.mrb[48].mxu0 %v6064_v30  ;;  %v6004_v16 = vmax.f32 %v5912_v3, 0.0  ;;  %v16208_v30 = vld [vmem:[%s13925_s21 + $0x64] ss:$0 sm:$0xff] }
 0xf2a   : > { %v5918_v28 = vadd.f32 %v5917_v11, %v16173_v38  ;;  %v6005_v42 = vmax.f32 %v5914_v33, 0.0 }
 0xf2b   : > { %v6010_v62 = vmax.f32 %v5916_v34, 0.0 }
 0xf2c   : > { %v6011_v52 = vmax.f32 %v5918_v28, 0.0 }
 0xf2d   : > { %v6070_v21 = vpack.c.bf16 %v6010_v62, %v6004_v16 }
 0xf2e   : > { %v6071_v55 = vpack.c.bf16 %v6011_v52, %v6005_v42  ;;  %v5921_v58 = vpop.f32.mrb[8].mxu1 }
 0xf2f   : > { %v5922_v10 = vadd.f32 %v5921_v58, %v16169_v50  ;;  %v5923_v7 = vpop.f32.mrb[9].mxu1 }
 0xf30   : > { %v5924_v12 = vadd.f32 %v5923_v7, %v16173_v38  ;;  %v5925_v32 = vpop.f32.mrb[10].mxu1  ;;  %6735 = vmatprep.mubr.bf16.mxu0 %v6071_v55 }
 0xf31   : > { %v5926_v48 = vadd.f32 %v5925_v32, %v16169_v50  ;;  %v5927_v37 = vpop.f32.mrb[11].mxu1  ;;  %6736 = vmatmul.mubr.bf16.gmra.mrb[52].mxu0 %v6070_v21  ;;  %v6016_v36 = vmax.f32 %v5922_v10, 0.0 }
 0xf32   : > { %v5928_v63 = vadd.f32 %v5927_v37, %v16173_v38  ;;  %v6017_v40 = vmax.f32 %v5924_v12, 0.0 }
 0xf33   : > { %v6022_v17 = vmax.f32 %v5926_v48, 0.0 }
 0xf34   : > { %v6023_v43 = vmax.f32 %v5928_v63, 0.0 }
 0xf35   : > { %v6076_v6 = vpack.c.bf16 %v6022_v17, %v6016_v36 }
 0xf36   : > { %v6077_v47 = vpack.c.bf16 %v6023_v43, %v6017_v40  ;;  %v5931_v1 = vpop.f32.mrb[12].mxu1 }
 0xf37   : > { %v5932_v46 = vadd.f32 %v5931_v1, %v16169_v50  ;;  %v5933_v20 = vpop.f32.mrb[13].mxu1 }
 0xf38   : > { %v5934_v60 = vadd.f32 %v5933_v20, %v16173_v38  ;;  %v5935_v4 = vpop.f32.mrb[14].mxu1  ;;  %6743 = vmatprep.mubr.bf16.mxu1 %v6077_v47 }
 0xf39   : > { %v5936_v23 = vadd.f32 %v5935_v4, %v16169_v50  ;;  %v5937_v57 = vpop.f32.mrb[15].mxu1  ;;  %6744 = vmatmul.mubr.bf16.vlgmr.msra.gmra.mrb[48].mxu1 %v6076_v6  ;;  %v6028_v18 = vmax.f32 %v5932_v46, 0.0 }
 0xf3a   : > { %v5938_v44 = vadd.f32 %v5937_v57, %v16173_v38  ;;  %v6029_v41 = vmax.f32 %v5934_v60, 0.0 }
 0xf3b   : > { %v6034_v61 = vmax.f32 %v5936_v23, 0.0 }
 0xf3c   : > { %v6035_v15 = vmax.f32 %v5938_v44, 0.0 }
 0xf3d   : > { %v6082_v22 = vpack.c.bf16 %v6034_v61, %v6028_v18 }
 0xf3e   : > { %v6083_v29 = vpack.c.bf16 %v6035_v15, %v6029_v41 }
 0xf40   : > { %6751 = vmatprep.mubr.bf16.mxu1 %v6083_v29 }
 0xf41   : > { %6752 = vmatmul.mubr.bf16.gmra.mrb[52].mxu1 %v6082_v22 }
 0xf9c   : > { %v11619_v13 = vpop.f32.mrb[0].mxu0  ;;  %v11683_v2 = vpop.f32.mrb[16].mxu1 }
 0xf9d   : > { %v11620_v5 = vpop.f32.mrb[1].mxu0  ;;  %v11684_v31 = vpop.f32.mrb[17].mxu1 }
 0xf9e   : > { %v11621_v3 = vadd.f32 %v11620_v5, %v11619_v13  ;;  %v11685_v50 = vadd.f32 %v11684_v31, %v11683_v2  ;;  %v11622_v14 = vpop.f32.mrb[2].mxu0  ;;  %v11686_v33 = vpop.f32.mrb[18].mxu1 }
 0xf9f   : > { %v11623_v35 = vpop.f32.mrb[3].mxu0  ;;  %v11687_v38 = vpop.f32.mrb[19].mxu1 }
 0xfa0   : > { %v6504_v34 = vadd.f32 %v11621_v3, %v16208_v30  ;;  %v11624_v11 = vadd.f32 %v11623_v35, %v11622_v14  ;;  %v11688_v28 = vadd.f32 %v11687_v38, %v11686_v33 }
 0xfa2   : > { %v16211_v16 = vadd.f32 %v11685_v50, %v6504_v34  ;;  %v6507_v62 = vadd.f32 %v11624_v11, %v16208_v30 }
 0xfa4   : > { %v16214_v42 = vadd.f32 %v11688_v28, %v6507_v62  ;;  %v11625_v52 = vpop.f32.mrb[4].mxu0  ;;  %v11689_v21 = vpop.f32.mrb[20].mxu1 }
 0xfa5   : > { %v11626_v55 = vpop.f32.mrb[5].mxu0  ;;  %v11690_v58 = vpop.f32.mrb[21].mxu1 }
 0xfa6   : > { %v11627_v10 = vadd.f32 %v11626_v55, %v11625_v52  ;;  %v11691_v7 = vadd.f32 %v11690_v58, %v11689_v21  ;;  %v11628_v12 = vpop.f32.mrb[6].mxu0  ;;  %v11692_v32 = vpop.f32.mrb[22].mxu1 }
 0xfa7   : > { %v11629_v48 = vpop.f32.mrb[7].mxu0  ;;  %v11693_v37 = vpop.f32.mrb[23].mxu1 }
 0xfa8   : > { %v6512_v63 = vadd.f32 %v11627_v10, %v16208_v30  ;;  %v11630_v36 = vadd.f32 %v11629_v48, %v11628_v12  ;;  %v11694_v17 = vadd.f32 %v11693_v37, %v11692_v32 }
 0xfaa   : > { %v16217_v40 = vadd.f32 %v11691_v7, %v6512_v63  ;;  %v6515_v43 = vadd.f32 %v11630_v36, %v16208_v30 }
 0xfac   : > { %v16220_v6 = vadd.f32 %v11694_v17, %v6515_v43  ;;  %v11631_v47 = vpop.f32.mrb[8].mxu0  ;;  %v11695_v1 = vpop.f32.mrb[24].mxu1 }
 0xfad   : > { %v11632_v46 = vpop.f32.mrb[9].mxu0  ;;  %v11696_v20 = vpop.f32.mrb[25].mxu1 }
 0xfae   : > { %v11633_v60 = vadd.f32 %v11632_v46, %v11631_v47  ;;  %v11697_v4 = vadd.f32 %v11696_v20, %v11695_v1  ;;  %v11634_v23 = vpop.f32.mrb[10].mxu0  ;;  %v11698_v57 = vpop.f32.mrb[26].mxu1 }
 0xfaf   : > { %v11635_v44 = vpop.f32.mrb[11].mxu0  ;;  %v11699_v18 = vpop.f32.mrb[27].mxu1 }
 0xfb0   : > { %v6520_v61 = vadd.f32 %v11633_v60, %v16208_v30  ;;  %v11636_v41 = vadd.f32 %v11635_v44, %v11634_v23  ;;  %v11700_v15 = vadd.f32 %v11699_v18, %v11698_v57 }
 0xfb2   : > { %v16223_v22 = vadd.f32 %v11697_v4, %v6520_v61  ;;  %v6523_v29 = vadd.f32 %v11636_v41, %v16208_v30 }
 0xfb4   : > { %v16226_v13 = vadd.f32 %v11700_v15, %v6523_v29  ;;  %v11637_v2 = vpop.f32.mrb[12].mxu0  ;;  %v11701_v5 = vpop.f32.mrb[28].mxu1 }
 0xfb5   : > { %v11638_v31 = vpop.f32.mrb[13].mxu0  ;;  %v11702_v3 = vpop.f32.mrb[29].mxu1 }
 0xfb6   : > { %v11639_v50 = vadd.f32 %v11638_v31, %v11637_v2  ;;  %v11703_v14 = vadd.f32 %v11702_v3, %v11701_v5  ;;  %v11640_v33 = vpop.f32.mrb[14].mxu0  ;;  %v11704_v35 = vpop.f32.mrb[30].mxu1 }
 0xfb7   : > { %v11641_v38 = vpop.f32.mrb[15].mxu0  ;;  %v11705_v34 = vpop.f32.mrb[31].mxu1 }
 0xfb8   : > { %v6528_v11 = vadd.f32 %v11639_v50, %v16208_v30  ;;  %v11642_v28 = vadd.f32 %v11641_v38, %v11640_v33  ;;  %v11706_v62 = vadd.f32 %v11705_v34, %v11704_v35 }
 0xfba   : > { %v16229_v52 = vadd.f32 %v11703_v14, %v6528_v11  ;;  %v6531_v21 = vadd.f32 %v11642_v28, %v16208_v30 }
 0xfbc   : > { %v16232_v55 = vadd.f32 %v11706_v62, %v6531_v21  ;;  %v11643_v58 = vpop.f32.mrb[16].mxu0  ;;  %v11707_v10 = vpop.f32.mrb[32].mxu1 }
 0xfbd   : > { %v11644_v7 = vpop.f32.mrb[17].mxu0  ;;  %v11708_v12 = vpop.f32.mrb[33].mxu1 }
 0xfbe   : > { %v11645_v32 = vadd.f32 %v11644_v7, %v11643_v58  ;;  %v11709_v48 = vadd.f32 %v11708_v12, %v11707_v10  ;;  %v11646_v37 = vpop.f32.mrb[18].mxu0  ;;  %v11710_v63 = vpop.f32.mrb[34].mxu1 }
 0xfbf   : > { %v11647_v36 = vpop.f32.mrb[19].mxu0  ;;  %v11711_v17 = vpop.f32.mrb[35].mxu1 }
 0xfc0   : > { %v6536_v43 = vadd.f32 %v11645_v32, %v16208_v30  ;;  %v11648_v47 = vadd.f32 %v11647_v36, %v11646_v37  ;;  %v11712_v1 = vadd.f32 %v11711_v17, %v11710_v63 }
 0xfc2   : > { %v16235_v46 = vadd.f32 %v11709_v48, %v6536_v43  ;;  %v6539_v20 = vadd.f32 %v11648_v47, %v16208_v30 }
 0xfc4   : > { %v16238_v60 = vadd.f32 %v11712_v1, %v6539_v20  ;;  %v11649_v4 = vpop.f32.mrb[20].mxu0  ;;  %v11713_v23 = vpop.f32.mrb[36].mxu1 }
 0xfc5   : > { %v11650_v57 = vpop.f32.mrb[21].mxu0  ;;  %v11714_v44 = vpop.f32.mrb[37].mxu1 }
 0xfc6   : > { %v11651_v18 = vadd.f32 %v11650_v57, %v11649_v4  ;;  %v11715_v61 = vadd.f32 %v11714_v44, %v11713_v23  ;;  %v11652_v41 = vpop.f32.mrb[22].mxu0  ;;  %v11716_v15 = vpop.f32.mrb[38].mxu1 }
 0xfc7   : > { %v11653_v29 = vpop.f32.mrb[23].mxu0  ;;  %v11717_v2 = vpop.f32.mrb[39].mxu1 }
 0xfc8   : > { %v6544_v5 = vadd.f32 %v11651_v18, %v16208_v30  ;;  %v11654_v31 = vadd.f32 %v11653_v29, %v11652_v41  ;;  %v11718_v3 = vadd.f32 %v11717_v2, %v11716_v15 }
 0xfca   : > { %v16241_v50 = vadd.f32 %v11715_v61, %v6544_v5  ;;  %v6547_v14 = vadd.f32 %v11654_v31, %v16208_v30 }
 0xfcc   : > { %v16244_v33 = vadd.f32 %v11718_v3, %v6547_v14  ;;  %v11655_v35 = vpop.f32.mrb[24].mxu0  ;;  %v11719_v38 = vpop.f32.mrb[40].mxu1 }
 0xfcd   : > { %v11656_v34 = vpop.f32.mrb[25].mxu0  ;;  %v11720_v11 = vpop.f32.mrb[41].mxu1 }
 0xfce   : > { %v11657_v28 = vadd.f32 %v11656_v34, %v11655_v35  ;;  %v11721_v62 = vadd.f32 %v11720_v11, %v11719_v38  ;;  %v11658_v21 = vpop.f32.mrb[26].mxu0  ;;  %v11722_v58 = vpop.f32.mrb[42].mxu1 }
 0xfcf   : > { %v11659_v10 = vpop.f32.mrb[27].mxu0  ;;  %v11723_v7 = vpop.f32.mrb[43].mxu1 }
 0xfd0   : > { %v6552_v12 = vadd.f32 %v11657_v28, %v16208_v30  ;;  %v11660_v32 = vadd.f32 %v11659_v10, %v11658_v21  ;;  %v11724_v48 = vadd.f32 %v11723_v7, %v11722_v58 }
 0xfd2   : > { %v16247_v37 = vadd.f32 %v11721_v62, %v6552_v12  ;;  %v6555_v63 = vadd.f32 %v11660_v32, %v16208_v30 }
 0xfd4   : > { %v16250_v36 = vadd.f32 %v11724_v48, %v6555_v63  ;;  %v11661_v17 = vpop.f32.mrb[28].mxu0  ;;  %v11725_v43 = vpop.f32.mrb[44].mxu1 }
 0xfd5   : > { %v11662_v47 = vpop.f32.mrb[29].mxu0  ;;  %v11726_v1 = vpop.f32.mrb[45].mxu1 }
 0xfd6   : > { %v11663_v20 = vadd.f32 %v11662_v47, %v11661_v17  ;;  %v11727_v4 = vadd.f32 %v11726_v1, %v11725_v43  ;;  %v11664_v23 = vpop.f32.mrb[30].mxu0  ;;  %v11728_v57 = vpop.f32.mrb[46].mxu1 }
 0xfd7   : > { %v11665_v44 = vpop.f32.mrb[31].mxu0  ;;  %v11729_v18 = vpop.f32.mrb[47].mxu1 }
 0xfd8   : > { %v6560_v61 = vadd.f32 %v11663_v20, %v16208_v30  ;;  %v11666_v41 = vadd.f32 %v11665_v44, %v11664_v23  ;;  %v11730_v15 = vadd.f32 %v11729_v18, %v11728_v57 }
 0xfda   : > { %v16253_v29 = vadd.f32 %v11727_v4, %v6560_v61  ;;  %v6563_v2 = vadd.f32 %v11666_v41, %v16208_v30 }
 0xfdc   : > { %v16256_v5 = vadd.f32 %v11730_v15, %v6563_v2  ;;  %v11747_v31 = vpop.f32.mrb[32].mxu0 }
 0xfdd   : > { %v11748_v3 = vpop.f32.mrb[33].mxu0 }
 0xfde   : > { %v11749_v14 = vadd.f32 %v11748_v3, %v11747_v31  ;;  %v11750_v35 = vpop.f32.mrb[34].mxu0 }
 0xfdf   : > { %v11751_v38 = vpop.f32.mrb[35].mxu0 }
 0xfe0   : > { %v6698_v34 = vadd.f32 %v11749_v14, %v16211_v16  ;;  %v11752_v11 = vadd.f32 %v11751_v38, %v11750_v35 }
 0xfe2   : > { %v6701_v28 = vadd.f32 %v11752_v11, %v16214_v42  ;;  %v16261_v62 = vadd.f32 %v6698_v34, %v15873_v24 }
 0xfe4   : > { %v11753_v21 = vpop.f32.mrb[36].mxu0  ;;  %6776 = vadd.xlane.f32.xlu0 %v16261_v62  ;;  %v16265_v30 = vadd.f32 %v6701_v28, %v15876_v54 }
 0xfe5   : > { %v11754_v58 = vpop.f32.mrb[37].mxu0 }
 0xfe6   : > { %v11755_v10 = vadd.f32 %v11754_v58, %v11753_v21  ;;  %v11756_v7 = vpop.f32.mrb[38].mxu0  ;;  %6778 = vadd.xlane.f32.xlu1 %v16265_v30 }
 0xfe7   : > { %v11757_v12 = vpop.f32.mrb[39].mxu0 }
 0xfe8   : > { %v6706_v16 = vadd.f32 %v11755_v10, %v16217_v40  ;;  %v11758_v32 = vadd.f32 %v11757_v12, %v11756_v7 }
 0xfea   : > { %v6709_v42 = vadd.f32 %v11758_v32, %v16220_v6  ;;  %v16271_v24 = vadd.f32 %v6706_v16, %v15901_v39 }
 0xfec   : > { %v11759_v48 = vpop.f32.mrb[40].mxu0  ;;  %6780 = vadd.xlane.f32.xlu0 %v16271_v24  ;;  %v16275_v54 = vadd.f32 %v6709_v42, %v15896_v49 }
 0xfed   : > { %v11760_v63 = vpop.f32.mrb[41].mxu0 }
 0xfee   : > { %v11761_v17 = vadd.f32 %v11760_v63, %v11759_v48  ;;  %v11762_v43 = vpop.f32.mrb[42].mxu0  ;;  %6782 = vadd.xlane.f32.xlu1 %v16275_v54 }
 0xfef   : > { %v11763_v47 = vpop.f32.mrb[43].mxu0 }
 0xff0   : > { %v6714_v40 = vadd.f32 %v11761_v17, %v16223_v22  ;;  %v11764_v1 = vadd.f32 %v11763_v47, %v11762_v43 }
 0xff2   : > { %v6717_v6 = vadd.f32 %v11764_v1, %v16226_v13  ;;  %v16281_v39 = vadd.f32 %v6714_v40, %v15924_v19 }
 0xff4   : > { %v11765_v20 = vpop.f32.mrb[44].mxu0  ;;  %6784 = vadd.xlane.f32.xlu0 %v16281_v39  ;;  %v16285_v49 = vadd.f32 %v6717_v6, %v15927_v53 }
 0xff5   : > { %v11766_v4 = vpop.f32.mrb[45].mxu0 }
 0xff6   : > { %v11767_v23 = vadd.f32 %v11766_v4, %v11765_v20  ;;  %v11768_v57 = vpop.f32.mrb[46].mxu0  ;;  %6786 = vadd.xlane.f32.xlu1 %v16285_v49 }
 0xff7   : > { %v11769_v44 = vpop.f32.mrb[47].mxu0 }
 0xff8   : > { %v6722_v22 = vadd.f32 %v11767_v23, %v16229_v52  ;;  %v11770_v18 = vadd.f32 %v11769_v44, %v11768_v57 }
 0xffa   : > { %v6725_v13 = vadd.f32 %v11770_v18, %v16232_v55  ;;  %v16291_v19 = vadd.f32 %v6722_v22, %v15953_v51 }
 0xffc   : > { %v11771_v61 = vpop.f32.mrb[48].mxu0  ;;  %6788 = vadd.xlane.f32.xlu0 %v16291_v19  ;;  %v16295_v53 = vadd.f32 %v6725_v13, %v15947_v27 }
 0xffd   : > { %v11772_v41 = vpop.f32.mrb[49].mxu0 }
 0xffe   : > { %v11773_v15 = vadd.f32 %v11772_v41, %v11771_v61  ;;  %v11774_v2 = vpop.f32.mrb[50].mxu0  ;;  %6790 = vadd.xlane.f32.xlu1 %v16295_v53 }
 0xfff   : > { %v11775_v31 = vpop.f32.mrb[51].mxu0 }
0x1000   : > { %v6730_v52 = vadd.f32 %v11773_v15, %v16235_v46  ;;  %v11776_v3 = vadd.f32 %v11775_v31, %v11774_v2 }
0x1002   : > { %v6733_v55 = vadd.f32 %v11776_v3, %v16238_v60  ;;  %v16301_v51 = vadd.f32 %v6730_v52, %v15972_v0 }
0x1004   : > { %v11777_v14 = vpop.f32.mrb[52].mxu0  ;;  %6792 = vadd.xlane.f32.xlu0 %v16301_v51  ;;  %v16305_v27 = vadd.f32 %v6733_v55, %v15975_v9 }
0x1005   : > { %v11778_v35 = vpop.f32.mrb[53].mxu0 }
0x1006   : > { %v11779_v38 = vadd.f32 %v11778_v35, %v11777_v14  ;;  %v11780_v34 = vpop.f32.mrb[54].mxu0  ;;  %6794 = vadd.xlane.f32.xlu1 %v16305_v27 }
0x1007   : > { %v11781_v11 = vpop.f32.mrb[55].mxu0 }
0x1008   : > { %v6738_v46 = vadd.f32 %v11779_v38, %v16241_v50  ;;  %v11782_v28 = vadd.f32 %v11781_v11, %v11780_v34 }
0x100a   : > { %v6741_v60 = vadd.f32 %v11782_v28, %v16244_v33  ;;  %v16311_v0 = vadd.f32 %v6738_v46, %v15993_v8 }
0x100c   : > { %v11783_v21 = vpop.f32.mrb[48].mxu1  ;;  %6796 = vadd.xlane.f32.xlu0 %v16311_v0  ;;  %v16315_v9 = vadd.f32 %v6741_v60, %v15990_v56 }
0x100d   : > { %v11784_v58 = vpop.f32.mrb[49].mxu1 }
0x100e   : > { %v11785_v10 = vadd.f32 %v11784_v58, %v11783_v21  ;;  %v11786_v7 = vpop.f32.mrb[50].mxu1  ;;  %6798 = vadd.xlane.f32.xlu1 %v16315_v9 }
0x100f   : > { %v11787_v12 = vpop.f32.mrb[51].mxu1 }
0x1010   : > { %v6746_v50 = vadd.f32 %v11785_v10, %v16247_v37  ;;  %v11788_v16 = vadd.f32 %v11787_v12, %v11786_v7 }
0x1012   : > { %v6749_v33 = vadd.f32 %v11788_v16, %v16250_v36  ;;  %v16321_v8 = vadd.f32 %v6746_v50, %v16008_v45 }
0x1014   : > { %v11789_v32 = vpop.f32.mrb[52].mxu1  ;;  %6800 = vadd.xlane.f32.xlu0 %v16321_v8  ;;  %v16325_v56 = vadd.f32 %v6749_v33, %v16011_v59 }
0x1015   : > { %v11790_v42 = vpop.f32.mrb[53].mxu1 }
0x1016   : > { %v11791_v48 = vadd.f32 %v11790_v42, %v11789_v32  ;;  %v11792_v63 = vpop.f32.mrb[54].mxu1  ;;  %6802 = vadd.xlane.f32.xlu1 %v16325_v56 }
0x1017   : > { %v11793_v17 = vpop.f32.mrb[55].mxu1 }
0x1018   : > { %v6754_v37 = vadd.f32 %v11791_v48, %v16253_v29  ;;  %v11794_v43 = vadd.f32 %v11793_v17, %v11792_v63 }
0x101a   : > { %v6757_v36 = vadd.f32 %v11794_v43, %v16256_v5  ;;  %v16331_v45 = vadd.f32 %v6754_v37, %v16029_v25 }
0x101c   : > { %6804 = vadd.xlane.f32.xlu0 %v16331_v45  ;;  %v16335_v47 = vadd.f32 %v6757_v36, %v16026_v26 }
0x101e   : > { %6806 = vadd.xlane.f32.xlu1 %v16335_v47 }
0x1071   : > { %v6777_v59 = vpop.xlane.xlu0 %6776 }
0x1072   : > { %v6808_v40 = vmul.f32 0.0078125, %v6777_v59 }
0x1073   : > { %v6779_v1 = vpop.xlane.xlu1 %6778 }
0x1074   : > { %v16339_v6 = vsub.f32 %v16261_v62, %v6808_v40  ;;  %v6809_v29 = vmul.f32 0.0078125, %v6779_v1 }
0x1076   : > { %v16342_v20 = vsub.f32 %v16265_v30, %v6809_v29  ;;  %v6840_v25 = vmul.f32 %v16339_v6, %v16339_v6 }
0x1078   : > { %6856 = vadd.xlane.f32.xlu0 %v6840_v25  ;;  %v6841_v26 = vmul.f32 %v16342_v20, %v16342_v20 }
0x1079   : > { %v6781_v5 = vpop.xlane.xlu0 %6780 }
0x107a   : > { %v6810_v4 = vmul.f32 0.0078125, %v6781_v5  ;;  %6858 = vadd.xlane.f32.xlu1 %v6841_v26 }
0x107b   : > { %v6783_v23 = vpop.xlane.xlu1 %6782 }
0x107c   : > { %v16349_v57 = vsub.f32 %v16271_v24, %v6810_v4  ;;  %v6811_v62 = vmul.f32 0.0078125, %v6783_v23 }
0x107e   : > { %v16352_v44 = vsub.f32 %v16275_v54, %v6811_v62  ;;  %v6842_v30 = vmul.f32 %v16349_v57, %v16349_v57 }
0x1080   : > { %6860 = vadd.xlane.f32.xlu0 %v6842_v30  ;;  %v6843_v22 = vmul.f32 %v16352_v44, %v16352_v44 }
0x1081   : > { %v6785_v18 = vpop.xlane.xlu0 %6784 }
0x1082   : > { %v6812_v13 = vmul.f32 0.0078125, %v6785_v18  ;;  %6862 = vadd.xlane.f32.xlu1 %v6843_v22 }
0x1083   : > { %v6787_v61 = vpop.xlane.xlu1 %6786 }
0x1084   : > { %v16359_v41 = vsub.f32 %v16281_v39, %v6812_v13  ;;  %v6813_v24 = vmul.f32 0.0078125, %v6787_v61  ;;  %v16419_v13 = vld [vmem:[%s13925_s21 + $0x65] ss:$0 sm:$0xff] }
0x1086   : > { %v16362_v15 = vsub.f32 %v16285_v49, %v6813_v24  ;;  %v6844_v54 = vmul.f32 %v16359_v41, %v16359_v41 }
0x1088   : > { %6864 = vadd.xlane.f32.xlu0 %v6844_v54  ;;  %v6845_v2 = vmul.f32 %v16362_v15, %v16362_v15 }
0x1089   : > { %v6789_v31 = vpop.xlane.xlu0 %6788 }
0x108a   : > { %v6814_v52 = vmul.f32 0.0078125, %v6789_v31  ;;  %6866 = vadd.xlane.f32.xlu1 %v6845_v2  ;;  %v16423_v2 = vld [vmem:[%s13925_s21 + $0x66] ss:$0 sm:$0xff] }
0x108b   : > { %v6791_v3 = vpop.xlane.xlu1 %6790 }
0x108c   : > { %v16369_v55 = vsub.f32 %v16291_v19, %v6814_v52  ;;  %v6815_v39 = vmul.f32 0.0078125, %v6791_v3 }
0x108e   : > { %v16372_v14 = vsub.f32 %v16295_v53, %v6815_v39  ;;  %v6846_v49 = vmul.f32 %v16369_v55, %v16369_v55 }
0x1090   : > { %6868 = vadd.xlane.f32.xlu0 %v6846_v49  ;;  %v6847_v35 = vmul.f32 %v16372_v14, %v16372_v14 }
0x1091   : > { %v6793_v38 = vpop.xlane.xlu0 %6792 }
0x1092   : > { %v6816_v34 = vmul.f32 0.0078125, %v6793_v38  ;;  %6870 = vadd.xlane.f32.xlu1 %v6847_v35 }
0x1093   : > { %v6795_v11 = vpop.xlane.xlu1 %6794 }
0x1094   : > { %v16379_v46 = vsub.f32 %v16301_v51, %v6816_v34  ;;  %v6817_v19 = vmul.f32 0.0078125, %v6795_v11 }
0x1096   : > { %v16382_v28 = vsub.f32 %v16305_v27, %v6817_v19  ;;  %v6848_v53 = vmul.f32 %v16379_v46, %v16379_v46 }
0x1098   : > { %6872 = vadd.xlane.f32.xlu0 %v6848_v53  ;;  %v6849_v60 = vmul.f32 %v16382_v28, %v16382_v28 }
0x1099   : > { %v6797_v21 = vpop.xlane.xlu0 %6796 }
0x109a   : > { %v6818_v58 = vmul.f32 0.0078125, %v6797_v21  ;;  %6874 = vadd.xlane.f32.xlu1 %v6849_v60 }
0x109b   : > { %v6799_v10 = vpop.xlane.xlu1 %6798 }
0x109c   : > { %v16389_v7 = vsub.f32 %v16311_v0, %v6818_v58  ;;  %v6819_v51 = vmul.f32 0.0078125, %v6799_v10 }
0x109e   : > { %v16392_v12 = vsub.f32 %v16315_v9, %v6819_v51  ;;  %v6850_v27 = vmul.f32 %v16389_v7, %v16389_v7 }
0x10a0   : > { %6876 = vadd.xlane.f32.xlu0 %v6850_v27  ;;  %v6851_v50 = vmul.f32 %v16392_v12, %v16392_v12 }
0x10a1   : > { %v6801_v16 = vpop.xlane.xlu0 %6800 }
0x10a2   : > { %v6820_v33 = vmul.f32 0.0078125, %v6801_v16  ;;  %6878 = vadd.xlane.f32.xlu1 %v6851_v50 }
0x10a3   : > { %v6803_v32 = vpop.xlane.xlu1 %6802 }
0x10a4   : > { %v16399_v42 = vsub.f32 %v16321_v8, %v6820_v33  ;;  %v6821_v0 = vmul.f32 0.0078125, %v6803_v32 }
0x10a6   : > { %v16402_v48 = vsub.f32 %v16325_v56, %v6821_v0  ;;  %v6852_v9 = vmul.f32 %v16399_v42, %v16399_v42 }
0x10a8   : > { %6880 = vadd.xlane.f32.xlu0 %v6852_v9  ;;  %v6853_v63 = vmul.f32 %v16402_v48, %v16402_v48 }
0x10a9   : > { %v6805_v17 = vpop.xlane.xlu0 %6804 }
0x10aa   : > { %v6822_v37 = vmul.f32 0.0078125, %v6805_v17  ;;  %6882 = vadd.xlane.f32.xlu1 %v6853_v63 }
0x10ab   : > { %v6807_v43 = vpop.xlane.xlu1 %6806 }
0x10ac   : > { %v16409_v36 = vsub.f32 %v16331_v45, %v6822_v37  ;;  %v6823_v8 = vmul.f32 0.0078125, %v6807_v43 }
0x10ae   : > { %v16412_v59 = vsub.f32 %v16335_v47, %v6823_v8  ;;  %v6854_v56 = vmul.f32 %v16409_v36, %v16409_v36 }
0x10b0   : > { %6884 = vadd.xlane.f32.xlu0 %v6854_v56  ;;  %v6855_v40 = vmul.f32 %v16412_v59, %v16412_v59 }
0x10b2   : > { %6886 = vadd.xlane.f32.xlu1 %v6855_v40 }
0x1105   : > { %v6857_v1 = vpop.xlane.xlu0 %6856 }
0x1106   : > { %v6888_v29 = vmul.f32 0.0078125, %v6857_v1 }
0x1107   : > { %v6859_v25 = vpop.xlane.xlu1 %6858 }
0x1108   : > { %v6904_v26 = vadd.f32 1e-05, %v6888_v29  ;;  %v6889_v5 = vmul.f32 0.0078125, %v6859_v25 }
0x110a   : > { %12587 = vrsqrt.f32 %v6904_v26  ;;  %v6905_v45 = vadd.f32 1e-05, %v6889_v5 }
0x110c   : > { %12589 = vrsqrt.f32 %v6905_v45 }
0x110d   : > { %v6861_v47 = vpop.xlane.xlu0 %6860 }
0x110e   : > { %v6890_v4 = vmul.f32 0.0078125, %v6861_v47 }
0x110f   : > { %v6863_v23 = vpop.xlane.xlu1 %6862 }
0x1110   : > { %v6906_v62 = vadd.f32 1e-05, %v6890_v4  ;;  %v6891_v30 = vmul.f32 0.0078125, %v6863_v23 }
0x1112   : > { %12591 = vrsqrt.f32 %v6906_v62  ;;  %v6907_v22 = vadd.f32 1e-05, %v6891_v30 }
0x1114   : > { %v12588_v18 = vpop.eup %12587  ;;  %12593 = vrsqrt.f32 %v6907_v22 }
0x1115   : > { %v6936_v61 = vmul.f32 %v12588_v18, %v16339_v6  ;;  %v6865_v24 = vpop.xlane.xlu0 %6864 }
0x1116   : > { %v12590_v54 = vpop.eup %12589  ;;  %v6892_v31 = vmul.f32 0.0078125, %v6865_v24 }
0x1117   : > { %v6952_v52 = vmul.f32 %v16419_v13, %v6936_v61  ;;  %v6937_v3 = vmul.f32 %v12590_v54, %v16342_v20  ;;  %v6867_v39 = vpop.xlane.xlu1 %6866 }
0x1118   : > { %v6908_v49 = vadd.f32 1e-05, %v6892_v31  ;;  %v6893_v35 = vmul.f32 0.0078125, %v6867_v39 }
0x1119   : > { %v16428_v38 = vadd.f32 %v16423_v2, %v6952_v52  ;;  %v6953_v34 = vmul.f32 %v16419_v13, %v6937_v3 }
0x111a   : > { %12595 = vrsqrt.f32 %v6908_v49  ;;  %v6909_v11 = vadd.f32 1e-05, %v6893_v35 }
0x111b   : > { %6984 = vst [vmem:[#allocation2] sm:$0xff] %v16428_v38  ;;  %v16433_v6 = vadd.f32 %v16423_v2, %v6953_v34 }
0x111c   : > { %v12592_v19 = vpop.eup %12591  ;;  %12597 = vrsqrt.f32 %v6909_v11 }
0x111d   : > { %6985 = vst [vmem:[#allocation2 + $0x8] sm:$0xff] %v16433_v6  ;;  %v6938_v20 = vmul.f32 %v12592_v19, %v16349_v57  ;;  %v6869_v53 = vpop.xlane.xlu0 %6868 }
0x111e   : > { %v12594_v60 = vpop.eup %12593  ;;  %v6894_v21 = vmul.f32 0.0078125, %v6869_v53 }
0x111f   : > { %v6954_v58 = vmul.f32 %v16419_v13, %v6938_v20  ;;  %v6939_v10 = vmul.f32 %v12594_v60, %v16352_v44  ;;  %v6871_v51 = vpop.xlane.xlu1 %6870 }
0x1120   : > { %v6910_v27 = vadd.f32 1e-05, %v6894_v21  ;;  %v6895_v50 = vmul.f32 0.0078125, %v6871_v51 }
0x1121   : > { %v16440_v16 = vadd.f32 %v16423_v2, %v6954_v58  ;;  %v6955_v33 = vmul.f32 %v16419_v13, %v6939_v10 }
0x1122   : > { %12599 = vrsqrt.f32 %v6910_v27  ;;  %v6911_v32 = vadd.f32 1e-05, %v6895_v50 }
0x1123   : > { %6986 = vst [vmem:[#allocation2 + $0x10] sm:$0xff] %v16440_v16  ;;  %v16445_v57 = vadd.f32 %v16423_v2, %v6955_v33 }
0x1124   : > { %v12596_v0 = vpop.eup %12595  ;;  %12601 = vrsqrt.f32 %v6911_v32 }
0x1125   : > { %6987 = vst [vmem:[#allocation2 + $0x18] sm:$0xff] %v16445_v57  ;;  %v6940_v44 = vmul.f32 %v12596_v0, %v16359_v41  ;;  %v6873_v9 = vpop.xlane.xlu0 %6872 }
0x1126   : > { %v12598_v63 = vpop.eup %12597  ;;  %v6896_v17 = vmul.f32 0.0078125, %v6873_v9 }
0x1127   : > { %v6956_v37 = vmul.f32 %v16419_v13, %v6940_v44  ;;  %v6941_v43 = vmul.f32 %v12598_v63, %v16362_v15  ;;  %v6875_v8 = vpop.xlane.xlu1 %6874 }
0x1128   : > { %v6912_v56 = vadd.f32 1e-05, %v6896_v17  ;;  %v6897_v40 = vmul.f32 0.0078125, %v6875_v8 }
0x1129   : > { %v16452_v1 = vadd.f32 %v16423_v2, %v6956_v37  ;;  %v6957_v29 = vmul.f32 %v16419_v13, %v6941_v43 }
0x112a   : > { %12603 = vrsqrt.f32 %v6912_v56  ;;  %v6913_v25 = vadd.f32 1e-05, %v6897_v40 }
0x112b   : > { %6988 = vst [vmem:[#allocation2 + $0x20] sm:$0xff] %v16452_v1  ;;  %v16457_v41 = vadd.f32 %v16423_v2, %v6957_v29 }
0x112c   : > { %v12600_v26 = vpop.eup %12599  ;;  %12605 = vrsqrt.f32 %v6913_v25 }
0x112d   : > { %6989 = vst [vmem:[#allocation2 + $0x28] sm:$0xff] %v16457_v41  ;;  %v6942_v15 = vmul.f32 %v12600_v26, %v16369_v55  ;;  %v6877_v5 = vpop.xlane.xlu0 %6876 }
0x112e   : > { %v12602_v45 = vpop.eup %12601  ;;  %v6898_v47 = vmul.f32 0.0078125, %v6877_v5 }
0x112f   : > { %v6958_v4 = vmul.f32 %v16419_v13, %v6942_v15  ;;  %v6943_v23 = vmul.f32 %v12602_v45, %v16372_v14  ;;  %v6879_v62 = vpop.xlane.xlu1 %6878 }
0x1130   : > { %v6914_v30 = vadd.f32 1e-05, %v6898_v47  ;;  %v6899_v22 = vmul.f32 0.0078125, %v6879_v62  ;;  %v11127_v47 = vpack.c.bf16 (!%p10720_p12), %v16433_v6, %v16428_v38 }
0x1131   : > { %v16464_v18 = vadd.f32 %v16423_v2, %v6958_v4  ;;  %v6959_v61 = vmul.f32 %v16419_v13, %v6943_v23 }
0x1132   : > { %12607 = vrsqrt.f32 %v6914_v30  ;;  %v6915_v24 = vadd.f32 1e-05, %v6899_v22  ;;  %11128 = vst [vmem:[#allocation3] sm:$0xff] (!%p10720_p12), %v11127_v47  }
0x1133   : > { %6990 = vst [vmem:[#allocation2 + $0x30] sm:$0xff] %v16464_v18  ;;  %v16469_v55 = vadd.f32 %v16423_v2, %v6959_v61 }
0x1134   : > { %v12604_v54 = vpop.eup %12603  ;;  %12609 = vrsqrt.f32 %v6915_v24 }
0x1135   : > { %6991 = vst [vmem:[#allocation2 + $0x38] sm:$0xff] %v16469_v55  ;;  %v6944_v14 = vmul.f32 %v12604_v54, %v16379_v46  ;;  %v6881_v31 = vpop.xlane.xlu0 %6880  ;;  %v11142_v4 = vpack.c.bf16 (!%p10720_p12), %v16469_v55, %v16464_v18 }
0x1136   : > { %v12606_v52 = vpop.eup %12605  ;;  %v6900_v3 = vmul.f32 0.0078125, %v6881_v31 }
0x1137   : > { %v6960_v39 = vmul.f32 %v16419_v13, %v6944_v14  ;;  %v6945_v49 = vmul.f32 %v12606_v52, %v16382_v28  ;;  %v6883_v35 = vpop.xlane.xlu1 %6882  ;;  %11167 = vst [vmem:[#allocation3 + $0x18] sm:$0xff] (!%p10720_p12), %v11142_v4  }
0x1138   : > { %v6916_v34 = vadd.f32 1e-05, %v6900_v3  ;;  %v6901_v11 = vmul.f32 0.0078125, %v6883_v35 }
0x1139   : > { %v6976_v19 = vadd.f32 %v16423_v2, %v6960_v39  ;;  %v6961_v20 = vmul.f32 %v16419_v13, %v6945_v49 }
0x113a   : > { %12611 = vrsqrt.f32 %v6916_v34  ;;  %v6917_v53 = vadd.f32 1e-05, %v6901_v11 }
0x113b   : > { %6992 = vst [vmem:[#allocation2 + $0x40] sm:$0xff] %v6976_v19  ;;  %v6977_v60 = vadd.f32 %v16423_v2, %v6961_v20 }
0x113c   : > { %v12608_v46 = vpop.eup %12607  ;;  %12613 = vrsqrt.f32 %v6917_v53 }
0x113d   : > { %6993 = vst [vmem:[#allocation2 + $0x48] sm:$0xff] %v6977_v60  ;;  %v6946_v21 = vmul.f32 %v12608_v46, %v16389_v7  ;;  %v6885_v58 = vpop.xlane.xlu0 %6884 }
0x113e   : > { %v12610_v10 = vpop.eup %12609  ;;  %v6902_v28 = vmul.f32 0.0078125, %v6885_v58 }
0x113f   : > { %v6962_v51 = vmul.f32 %v16419_v13, %v6946_v21  ;;  %v6947_v27 = vmul.f32 %v12610_v10, %v16392_v12  ;;  %v6887_v50 = vpop.xlane.xlu1 %6886 }
0x1140   : > { %v6918_v33 = vadd.f32 1e-05, %v6902_v28  ;;  %v6903_v32 = vmul.f32 0.0078125, %v6887_v50 }
0x1141   : > { %v6978_v0 = vadd.f32 %v16423_v2, %v6962_v51  ;;  %v6963_v44 = vmul.f32 %v16419_v13, %v6947_v27 }
0x1142   : > { %12615 = vrsqrt.f32 %v6918_v33  ;;  %v6919_v9 = vadd.f32 1e-05, %v6903_v32 }
0x1143   : > { %6994 = vst [vmem:[#allocation2 + $0x50] sm:$0xff] %v6978_v0  ;;  %v6979_v63 = vadd.f32 %v16423_v2, %v6963_v44 }
0x1144   : > { %v12612_v7 = vpop.eup %12611  ;;  %12617 = vrsqrt.f32 %v6919_v9 }
0x1145   : > { %6995 = vst [vmem:[#allocation2 + $0x58] sm:$0xff] %v6979_v63  ;;  %v6948_v17 = vmul.f32 %v12612_v7, %v16399_v42  ;;  %v11152_v23 = vpack.c.bf16 (!%p10720_p12), %v6979_v63, %v6978_v0 }
0x1146   : > { %v12614_v37 = vpop.eup %12613 }
0x1147   : > { %v6964_v12 = vmul.f32 %v16419_v13, %v6948_v17  ;;  %v6949_v43 = vmul.f32 %v12614_v37, %v16402_v48  ;;  %11168 = vst [vmem:[#allocation3 + $0x28] sm:$0xff] (!%p10720_p12), %v11152_v23  }
0x1149   : > { %v6980_v8 = vadd.f32 %v16423_v2, %v6964_v12  ;;  %v6965_v56 = vmul.f32 %v16419_v13, %v6949_v43 }
0x114b   : > { %6996 = vst [vmem:[#allocation2 + $0x60] sm:$0xff] %v6980_v8  ;;  %v6981_v40 = vadd.f32 %v16423_v2, %v6965_v56 }
0x114c   : > { %v12616_v29 = vpop.eup %12615 }
0x114d   : > { %6997 = vst [vmem:[#allocation2 + $0x68] sm:$0xff] %v6981_v40  ;;  %v6950_v25 = vmul.f32 %v12616_v29, %v16409_v36  ;;  %v11132_v36 = vpack.c.bf16 (!%p10720_p12), %v16445_v57, %v16440_v16  ;;  %v11157_v62 = vpack.c.bf16 (!%p10720_p12), %v6981_v40, %v6980_v8 }
0x114e   : > { %v12618_v26 = vpop.eup %12617 }
0x114f   : > { %v6966_v15 = vmul.f32 %v16419_v13, %v6950_v25  ;;  %v6951_v42 = vmul.f32 %v12618_v26, %v16412_v59  ;;  %7003 = sbr.rel (%p10720_p12) target bundleno = 4440 (0x1158), region = 88  ;;  %v11137_v59 = vpack.c.bf16 (!%p10720_p12), %v16457_v41, %v16452_v1  ;;  %11165 = vst [vmem:[#allocation3 + $0x8] sm:$0xff] (!%p10720_p12), %v11132_v36   ;;  %11169 = vst [vmem:[#allocation3 + $0x30] sm:$0xff] (!%p10720_p12), %v11157_v62  }
0x1151   : > { %v6982_v5 = vadd.f32 %v16423_v2, %v6966_v15  ;;  %v6967_v48 = vmul.f32 %v16419_v13, %v6951_v42  ;;  %v11147_v13 = vpack.c.bf16 (!%p10720_p12), %v6977_v60, %v6976_v19  ;;  %11166 = vst [vmem:[#allocation3 + $0x10] sm:$0xff] (!%p10720_p12), %v11137_v59  }
0x1153   : > { %6998 = vst [vmem:[#allocation2 + $0x70] sm:$0xff] %v6982_v5  ;;  %v6983_v45 = vadd.f32 %v16423_v2, %v6967_v48  ;;  %11148 = vst [vmem:[#allocation3 + $0x20] sm:$0xff] (!%p10720_p12), %v11147_v13  }
0x1155   : > { %6999 = vst [vmem:[#allocation2 + $0x78] sm:$0xff] %v6983_v45  ;;  %v11162_v2 = vpack.c.bf16 (!%p10720_p12), %v6983_v45, %v6982_v5 }
0x1157   : > { %11170 = vst [vmem:[#allocation3 + $0x38] sm:$0xff] %v11162_v2  }
0x1158 PF: > { %p10721_p2 = scmp.lt.s32.totalorder %s13602_s8, 1 }
0x1159   : > { %v12621_v38 = vld [vmem:[%s13938_s20 + $0x4] ss:$24 sps:$4 sm:$0xff] (!%p10721_p2)   ;;  %v12625_v16 = vld [vmem:[%s13938_s20] ss:$24 sps:$4 sm:$0xff] (!%p10721_p2)   ;;  %v12627_v1 = vld [vmem:[%s13938_s20 + $0x34] ss:$24 sps:$4 sm:$0xff] (!%p10721_p2)  }
0x115a   : > { %7040 = sbr.rel (%p10721_p2) target bundleno = 5046 (0x13b6), region = 92  ;;  %v12623_v6 = vld [vmem:[%s13938_s20 + $0x304] ss:$24 sps:$4 sm:$0xff] (!%p10721_p2)   ;;  %9389 = vmatprep.subr.bf16.mxu0 (!%p10721_p2), %v12621_v38  ;;  %v12626_v57 = vld [vmem:[%s13938_s20 + $0x300] ss:$24 sps:$4 sm:$0xff] (!%p10721_p2)   ;;  %s10722_s24 = sadd.s32 (!%p10721_p2), 4294967295, %s13602_s8 }
0x115b   : > { %9430 = vmatprep.subr.bf16.mxu1 (!%p10721_p2), %v12623_v6  ;;  %9390 = vmatpush1.bf16.msra.mxu0 (!%p10721_p2), %v12625_v16  ;;  %v12629_v41 = vld [vmem:[%s13938_s20 + $0x334] ss:$24 sps:$4 sm:$0xff] (!%p10721_p2)   ;;  %v12631_v30 = vld [vmem:[%s13938_s20 + $0x30] ss:$24 sps:$4 sm:$0xff] (!%p10721_p2)   ;;  %v12633_v18 = vld [vmem:[%s13938_s20 + $0x64] ss:$24 sps:$4 sm:$0xff] (!%p10721_p2)  }
0x115c   : > { %9431 = vmatpush1.bf16.msra.mxu1 (!%p10721_p2), %v12626_v57  ;;  %9391 = vmatprep.subr.bf16.mxu0 (!%p10721_p2), %v12627_v1  ;;  %v12632_v22 = vld [vmem:[%s13938_s20 + $0x330] ss:$24 sps:$4 sm:$0xff] (!%p10721_p2)   ;;  %v12635_v61 = vld [vmem:[%s13938_s20 + $0x364] ss:$24 sps:$4 sm:$0xff] (!%p10721_p2)   ;;  %v12637_v24 = vld [vmem:[%s13938_s20 + $0x60] ss:$24 sps:$4 sm:$0xff] (!%p10721_p2)  }
0x115d   : > { %9432 = vmatprep.subr.bf16.mxu1 (!%p10721_p2), %v12629_v41  ;;  %v12638_v55 = vld [vmem:[%s13938_s20 + $0x360] ss:$24 sps:$4 sm:$0xff] (!%p10721_p2)   ;;  %v12639_v54 = vld [vmem:[%s13938_s20 + $0x94] ss:$24 sps:$4 sm:$0xff] (!%p10721_p2)   ;;  %v12643_v31 = vld [vmem:[%s13938_s20 + $0x90] ss:$24 sps:$4 sm:$0xff] (!%p10721_p2)  }
0x115e   : > { %v12641_v14 = vld [vmem:[%s13938_s20 + $0x394] ss:$24 sps:$4 sm:$0xff] (!%p10721_p2)   ;;  %v12644_v52 = vld [vmem:[%s13938_s20 + $0x390] ss:$24 sps:$4 sm:$0xff] (!%p10721_p2)   ;;  %v12645_v3 = vld [vmem:[%s13938_s20 + $0xc4] ss:$24 sps:$4 sm:$0xff] (!%p10721_p2)  }
0x115f   : > { %9392 = vmatpush1.bf16.msra.mxu0 (!%p10721_p2), %v12631_v30  ;;  %v12647_v39 = vld [vmem:[%s13938_s20 + $0x3c4] ss:$24 sps:$4 sm:$0xff] (!%p10721_p2)   ;;  %v12649_v49 = vld [vmem:[%s13938_s20 + $0xc0] ss:$24 sps:$4 sm:$0xff] (!%p10721_p2)   ;;  %v12651_v34 = vld [vmem:[%s13938_s20 + $0xf4] ss:$24 sps:$4 sm:$0xff] (!%p10721_p2)  }
0x1160   : > { %9433 = vmatpush1.bf16.msra.mxu1 (!%p10721_p2), %v12632_v22  ;;  %9393 = vmatprep.subr.bf16.mxu0 (!%p10721_p2), %v12633_v18  ;;  %v12650_v35 = vld [vmem:[%s13938_s20 + $0x3c0] ss:$24 sps:$4 sm:$0xff] (!%p10721_p2)   ;;  %v12653_v11 = vld [vmem:[%s13938_s20 + $0x3f4] ss:$24 sps:$4 sm:$0xff] (!%p10721_p2)   ;;  %v12655_v19 = vld [vmem:[%s13938_s20 + $0xf0] ss:$24 sps:$4 sm:$0xff] (!%p10721_p2)  }
0x1161   : > { %9434 = vmatprep.subr.bf16.mxu1 %v12635_v61  ;;  %v12656_v20 = vld [vmem:[%s13938_s20 + $0x3f0] ss:$24 sps:$4 sm:$0xff]   ;;  %v12657_v53 = vld [vmem:[%s13938_s20 + $0x124] ss:$24 sps:$4 sm:$0xff]   ;;  %v12661_v46 = vld [vmem:[%s13938_s20 + $0x120] ss:$24 sps:$4 sm:$0xff]  }
0x1162   : > { %v12659_v60 = vld [vmem:[%s13938_s20 + $0x424] ss:$24 sps:$4 sm:$0xff]   ;;  %v12662_v21 = vld [vmem:[%s13938_s20 + $0x420] ss:$24 sps:$4 sm:$0xff]   ;;  %v12663_v58 = vld [vmem:[%s13938_s20 + $0x154] ss:$24 sps:$4 sm:$0xff]  }
0x1163   : > { %9394 = vmatpush1.bf16.msra.mxu0 %v12637_v24  ;;  %v12665_v10 = vld [vmem:[%s13938_s20 + $0x454] ss:$24 sps:$4 sm:$0xff]   ;;  %v12667_v28 = vld [vmem:[%s13938_s20 + $0x150] ss:$24 sps:$4 sm:$0xff]   ;;  %v12669_v27 = vld [vmem:[%s13938_s20 + $0x184] ss:$24 sps:$4 sm:$0xff]  }
0x1164   : > { %9435 = vmatpush1.bf16.msra.mxu1 %v12638_v55  ;;  %9395 = vmatprep.subr.bf16.mxu0 %v12639_v54  ;;  %v12668_v51 = vld [vmem:[%s13938_s20 + $0x450] ss:$24 sps:$4 sm:$0xff]   ;;  %p7042_p10 = scmp.gt.s32.totalorder %s10722_s24, 0  ;;  %v12671_v50 = vld [vmem:[%s13938_s20 + $0x484] ss:$24 sps:$4 sm:$0xff]  }
0x1165   : > { %9436 = vmatprep.subr.bf16.mxu1 %v12641_v14  ;;  %v12673_v33 = vld [vmem:[%s13938_s20 + $0x180] ss:$24 sps:$4 sm:$0xff]   ;;  %v12675_v0 = vld [vmem:[%s13938_s20 + $0x1b4] ss:$24 sps:$4 sm:$0xff]   ;;  %v12679_v9 = vld [vmem:[%s13938_s20 + $0x1b0] ss:$24 sps:$4 sm:$0xff]  }
0x1166   : > { %v12674_v32 = vld [vmem:[%s13938_s20 + $0x480] ss:$24 sps:$4 sm:$0xff]   ;;  %s17066_s24 = smov (!%p7042_p10, %s10722_s24), 0  ;;  %v12677_v44 = vld [vmem:[%s13938_s20 + $0x4b4] ss:$24 sps:$4 sm:$0xff]  }
0x1167   : > { %9396 = vmatpush1.bf16.msra.mxu0 %v12643_v31  ;;  %v12680_v63 = vld [vmem:[%s13938_s20 + $0x4b0] ss:$24 sps:$4 sm:$0xff]   ;;  %v12681_v7 = vld [vmem:[%s13938_s20 + $0x1e4] ss:$24 sps:$4 sm:$0xff]   ;;  %s11123_s23 = sshll.u32 %s17066_s24, 5 }
0x1168   : > { %9437 = vmatpush1.bf16.msra.mxu1 %v12644_v52  ;;  %9397 = vmatprep.subr.bf16.mxu0 %v12645_v3  ;;  %v12683_v17 = vld [vmem:[%s13938_s20 + $0x4e4] ss:$24 sps:$4 sm:$0xff]   ;;  %v12685_v37 = vld [vmem:[%s13938_s20 + $0x1e0] ss:$24 sps:$4 sm:$0xff]   ;;  %v12687_v43 = vld [vmem:[%s13938_s20 + $0x214] ss:$24 sps:$4 sm:$0xff]  }
0x1169   : > { %9438 = vmatprep.subr.bf16.mxu1 %v12647_v39  ;;  %v12686_v12 = vld [vmem:[%s13938_s20 + $0x4e0] ss:$24 sps:$4 sm:$0xff]   ;;  %v12689_v8 = vld [vmem:[%s13938_s20 + $0x514] ss:$24 sps:$4 sm:$0xff]   ;;  %s16553_s2 = scalar_lea.vmem [#allocation3], %s11123_s23 }
0x116a   : > { %v7053_v56 = vld [vmem:[%s16553_s2] sm:$0xff]  ;;  %v7054_v29 = vld [vmem:[%s16553_s2 + $0x8] sm:$0xff] }
0x116b   : > { %9398 = vmatpush1.bf16.msra.mxu0 %v12649_v49  ;;  %v16556_v40 = vcombine.high %v7053_v56, %v7053_v56  ;;  %v12691_v25 = vld [vmem:[%s13938_s20 + $0x210] ss:$24 sps:$4 sm:$0xff]   ;;  %v16561_v15 = vcombine.high %v7054_v29, %v7054_v29  ;;  %v12693_v42 = vld [vmem:[%s13938_s20 + $0x244] ss:$24 sps:$4 sm:$0xff]   ;;  %v12697_v48 = vld [vmem:[%s13938_s20 + $0x240] ss:$24 sps:$4 sm:$0xff]   ;;  %v16583_v30 = vcombine.low %v7053_v56, %v7053_v56  ;;  %v16585_v22 = vcombine.low %v7054_v29, %v7054_v29 }
0x116c   : > { %9439 = vmatpush1.bf16.msra.mxu1 %v12650_v35  ;;  %9399 = vmatprep.subr.bf16.mxu0 %v12651_v34  ;;  %v12692_v26 = vld [vmem:[%s13938_s20 + $0x510] ss:$24 sps:$4 sm:$0xff]   ;;  %v12695_v5 = vld [vmem:[%s13938_s20 + $0x544] ss:$24 sps:$4 sm:$0xff]   ;;  %v12698_v45 = vld [vmem:[%s13938_s20 + $0x540] ss:$24 sps:$4 sm:$0xff]  }
0x116d   : > { %9440 = vmatprep.subr.bf16.mxu1 %v12653_v11  ;;  %9421 = vmatprep.mubr.bf16.mxu0 %v16556_v40  ;;  %v12699_v47 = vld [vmem:[%s13938_s20 + $0x274] ss:$24 sps:$4 sm:$0xff]   ;;  %v12703_v59 = vld [vmem:[%s13938_s20 + $0x270] ss:$24 sps:$4 sm:$0xff]   ;;  %v12705_v13 = vld [vmem:[%s13938_s20 + $0x2a4] ss:$24 sps:$4 sm:$0xff]  }
0x116e   : > { %9462 = vmatprep.mubr.bf16.mxu1 %v16561_v15  ;;  %v12701_v36 = vld [vmem:[%s13938_s20 + $0x574] ss:$24 sps:$4 sm:$0xff]   ;;  %v12704_v4 = vld [vmem:[%s13938_s20 + $0x570] ss:$24 sps:$4 sm:$0xff]   ;;  %v12707_v23 = vld [vmem:[%s13938_s20 + $0x5a4] ss:$24 sps:$4 sm:$0xff]  }
0x116f   : > { %9400 = vmatpush1.bf16.msra.mxu0 %v12655_v19  ;;  %v12709_v62 = vld [vmem:[%s13938_s20 + $0x2a0] ss:$24 sps:$4 sm:$0xff]   ;;  %v12711_v38 = vld [vmem:[%s13938_s20 + $0x2d4] ss:$24 sps:$4 sm:$0xff]   ;;  %v12715_v16 = vld [vmem:[%s13938_s20 + $0x2d0] ss:$24 sps:$4 sm:$0xff]  }
0x1170   : > { %9441 = vmatpush1.bf16.msra.mxu1 %v12656_v20  ;;  %9401 = vmatprep.subr.bf16.mxu0 %v12657_v53  ;;  %v12710_v2 = vld [vmem:[%s13938_s20 + $0x5a0] ss:$24 sps:$4 sm:$0xff]   ;;  %v12713_v6 = vld [vmem:[%s13938_s20 + $0x5d4] ss:$24 sps:$4 sm:$0xff]   ;;  %v12716_v57 = vld [vmem:[%s13938_s20 + $0x5d0] ss:$24 sps:$4 sm:$0xff]  }
0x1171   : > { %9442 = vmatprep.subr.bf16.mxu1 %v12659_v60  ;;  %v12723_v1 = vld [vmem:[%s13938_s20 + $0x604] ss:$24 sps:$4 sm:$0xff]   ;;  %v12721_v18 = vld [vmem:[%s13938_s20 + $0x600] ss:$24 sps:$4 sm:$0xff]   ;;  %v12729_v24 = vld [vmem:[%s13938_s20 + $0x634] ss:$24 sps:$4 sm:$0xff]  }
0x1172   : > { %v12726_v41 = vld [vmem:[%s13938_s20 + $0x904] ss:$24 sps:$4 sm:$0xff]   ;;  %v12724_v61 = vld [vmem:[%s13938_s20 + $0x900] ss:$24 sps:$4 sm:$0xff]   ;;  %v12732_v55 = vld [vmem:[%s13938_s20 + $0x934] ss:$24 sps:$4 sm:$0xff]  }
0x1173   : > { %9402 = vmatpush1.bf16.msra.mxu0 %v12661_v46  ;;  %v12727_v54 = vld [vmem:[%s13938_s20 + $0x630] ss:$24 sps:$4 sm:$0xff]   ;;  %v12735_v31 = vld [vmem:[%s13938_s20 + $0x664] ss:$24 sps:$4 sm:$0xff]   ;;  %v12733_v3 = vld [vmem:[%s13938_s20 + $0x660] ss:$24 sps:$4 sm:$0xff]  }
0x1174   : > { %9443 = vmatpush1.bf16.msra.mxu1 %v12662_v21  ;;  %9403 = vmatprep.subr.bf16.mxu0 %v12663_v58  ;;  %v12730_v14 = vld [vmem:[%s13938_s20 + $0x930] ss:$24 sps:$4 sm:$0xff]   ;;  %v12738_v52 = vld [vmem:[%s13938_s20 + $0x964] ss:$24 sps:$4 sm:$0xff]   ;;  %v12736_v39 = vld [vmem:[%s13938_s20 + $0x960] ss:$24 sps:$4 sm:$0xff]  }
0x1175   : > { %9444 = vmatprep.subr.bf16.mxu1 %v12665_v10  ;;  %v12741_v49 = vld [vmem:[%s13938_s20 + $0x694] ss:$24 sps:$4 sm:$0xff]   ;;  %v12739_v34 = vld [vmem:[%s13938_s20 + $0x690] ss:$24 sps:$4 sm:$0xff]   ;;  %v12747_v19 = vld [vmem:[%s13938_s20 + $0x6c4] ss:$24 sps:$4 sm:$0xff]  }
0x1176   : > { %v12744_v35 = vld [vmem:[%s13938_s20 + $0x994] ss:$24 sps:$4 sm:$0xff]   ;;  %v12742_v11 = vld [vmem:[%s13938_s20 + $0x990] ss:$24 sps:$4 sm:$0xff]   ;;  %v12750_v20 = vld [vmem:[%s13938_s20 + $0x9c4] ss:$24 sps:$4 sm:$0xff]  }
0x1177   : > { %9404 = vmatpush1.bf16.msra.mxu0 %v12667_v28  ;;  %v12745_v53 = vld [vmem:[%s13938_s20 + $0x6c0] ss:$24 sps:$4 sm:$0xff]   ;;  %v12753_v46 = vld [vmem:[%s13938_s20 + $0x6f4] ss:$24 sps:$4 sm:$0xff]   ;;  %v12751_v58 = vld [vmem:[%s13938_s20 + $0x6f0] ss:$24 sps:$4 sm:$0xff]  }
0x1178   : > { %9445 = vmatpush1.bf16.msra.mxu1 %v12668_v51  ;;  %9405 = vmatprep.subr.bf16.mxu0 %v12669_v27  ;;  %v12748_v60 = vld [vmem:[%s13938_s20 + $0x9c0] ss:$24 sps:$4 sm:$0xff]   ;;  %v12756_v21 = vld [vmem:[%s13938_s20 + $0x9f4] ss:$24 sps:$4 sm:$0xff]   ;;  %v12754_v10 = vld [vmem:[%s13938_s20 + $0x9f0] ss:$24 sps:$4 sm:$0xff]  }
0x1179   : > { %9446 = vmatprep.subr.bf16.mxu1 %v12671_v50  ;;  %v12759_v28 = vld [vmem:[%s13938_s20 + $0x724] ss:$24 sps:$4 sm:$0xff]   ;;  %v16617_v50 = vld [vmem:[%s16553_s2 + $0x18] sm:$0xff] }
0x117a   : > { %v12762_v51 = vld [vmem:[%s13938_s20 + $0xa24] ss:$24 sps:$4 sm:$0xff]   ;;  %v12777_v56 = vld [vmem:[%s13938_s20 + $0x7b4] ss:$24 sps:$4 sm:$0xff]  }
0x117b   : > { %9406 = vmatpush1.bf16.msra.mxu0 %v12673_v33  ;;  %v16614_v27 = vld [vmem:[%s16553_s2 + $0x10] sm:$0xff]  ;;  %v12780_v29 = vld [vmem:[%s13938_s20 + $0xab4] ss:$24 sps:$4 sm:$0xff]  }
0x117c   : > { %9447 = vmatpush1.bf16.msra.mxu1 %v12674_v32  ;;  %9407 = vmatprep.subr.bf16.mxu0 %v12675_v0  ;;  %v12757_v33 = vld [vmem:[%s13938_s20 + $0x720] ss:$24 sps:$4 sm:$0xff]   ;;  %v16623_v0 = vcombine.high %v16614_v27, %v16614_v27 }
0x117d   : > { %9448 = vmatprep.subr.bf16.mxu1 %v12677_v44  ;;  %v12760_v32 = vld [vmem:[%s13938_s20 + $0xa20] ss:$24 sps:$4 sm:$0xff]   ;;  %v16627_v44 = vcombine.high %v16617_v50, %v16617_v50 }
0x117f   : > { %9408 = vmatpush1.bf16.msra.mxu0 %v12679_v9  ;;  %v12765_v9 = vld [vmem:[%s13938_s20 + $0x754] ss:$24 sps:$4 sm:$0xff]  }
0x1180   : > { %9449 = vmatpush1.bf16.msra.mxu1 %v12680_v63  ;;  %9409 = vmatprep.subr.bf16.mxu0 %v12681_v7  ;;  %v12768_v63 = vld [vmem:[%s13938_s20 + $0xa54] ss:$24 sps:$4 sm:$0xff]   ;;  %v12763_v7 = vld [vmem:[%s13938_s20 + $0x750] ss:$24 sps:$4 sm:$0xff]  }
0x1181   : > { %9450 = vmatprep.subr.bf16.mxu1 %v12683_v17  ;;  %v12766_v17 = vld [vmem:[%s13938_s20 + $0xa50] ss:$24 sps:$4 sm:$0xff]  }
0x1183   : > { %9410 = vmatpush1.bf16.msra.mxu0 %v12685_v37  ;;  %v12771_v37 = vld [vmem:[%s13938_s20 + $0x784] ss:$24 sps:$4 sm:$0xff]  }
0x1184   : > { %9451 = vmatpush1.bf16.msra.mxu1 %v12686_v12  ;;  %9411 = vmatprep.subr.bf16.mxu0 %v12687_v43  ;;  %v12774_v12 = vld [vmem:[%s13938_s20 + $0xa84] ss:$24 sps:$4 sm:$0xff]   ;;  %v12769_v43 = vld [vmem:[%s13938_s20 + $0x780] ss:$24 sps:$4 sm:$0xff]  }
0x1185   : > { %9452 = vmatprep.subr.bf16.mxu1 %v12689_v8  ;;  %v12772_v8 = vld [vmem:[%s13938_s20 + $0xa80] ss:$24 sps:$4 sm:$0xff]  }
0x1187   : > { %9412 = vmatpush1.bf16.msra.mxu0 %v12691_v25  ;;  %v12775_v25 = vld [vmem:[%s13938_s20 + $0x7b0] ss:$24 sps:$4 sm:$0xff]  }
0x1188   : > { %9453 = vmatpush1.bf16.msra.mxu1 %v12692_v26  ;;  %9413 = vmatprep.subr.bf16.mxu0 %v12693_v42  ;;  %v12778_v26 = vld [vmem:[%s13938_s20 + $0xab0] ss:$24 sps:$4 sm:$0xff]   ;;  %v12783_v42 = vld [vmem:[%s13938_s20 + $0x7e4] ss:$24 sps:$4 sm:$0xff]  }
0x1189   : > { %9454 = vmatprep.subr.bf16.mxu1 %v12695_v5  ;;  %v12786_v5 = vld [vmem:[%s13938_s20 + $0xae4] ss:$24 sps:$4 sm:$0xff]  }
0x118b   : > { %9414 = vmatpush1.bf16.msra.mxu0 %v12697_v48  ;;  %v12781_v48 = vld [vmem:[%s13938_s20 + $0x7e0] ss:$24 sps:$4 sm:$0xff]  }
0x118c   : > { %9455 = vmatpush1.bf16.msra.mxu1 %v12698_v45  ;;  %9415 = vmatprep.subr.bf16.mxu0 %v12699_v47  ;;  %v12784_v45 = vld [vmem:[%s13938_s20 + $0xae0] ss:$24 sps:$4 sm:$0xff]   ;;  %v12789_v47 = vld [vmem:[%s13938_s20 + $0x814] ss:$24 sps:$4 sm:$0xff]  }
0x118d   : > { %9456 = vmatprep.subr.bf16.mxu1 %v12701_v36  ;;  %v12792_v36 = vld [vmem:[%s13938_s20 + $0xb14] ss:$24 sps:$4 sm:$0xff]  }
0x118f   : > { %9416 = vmatpush1.bf16.msra.mxu0 %v12703_v59  ;;  %v12787_v59 = vld [vmem:[%s13938_s20 + $0x810] ss:$24 sps:$4 sm:$0xff]  }
0x1190   : > { %9457 = vmatpush1.bf16.msra.mxu1 %v12704_v4  ;;  %9417 = vmatprep.subr.bf16.mxu0 %v12705_v13  ;;  %v12790_v4 = vld [vmem:[%s13938_s20 + $0xb10] ss:$24 sps:$4 sm:$0xff]   ;;  %v12795_v13 = vld [vmem:[%s13938_s20 + $0x844] ss:$24 sps:$4 sm:$0xff]  }
0x1191   : > { %9458 = vmatprep.subr.bf16.mxu1 %v12707_v23  ;;  %v12798_v23 = vld [vmem:[%s13938_s20 + $0xb44] ss:$24 sps:$4 sm:$0xff]  }
0x1193   : > { %9418 = vmatpush1.bf16.msra.mxu0 %v12709_v62  ;;  %v12793_v62 = vld [vmem:[%s13938_s20 + $0x840] ss:$24 sps:$4 sm:$0xff]  }
0x1194   : > { %9459 = vmatpush1.bf16.msra.mxu1 %v12710_v2  ;;  %9419 = vmatprep.subr.bf16.mxu0 %v12711_v38  ;;  %v12796_v2 = vld [vmem:[%s13938_s20 + $0xb40] ss:$24 sps:$4 sm:$0xff]   ;;  %v12801_v38 = vld [vmem:[%s13938_s20 + $0x874] ss:$24 sps:$4 sm:$0xff]  }
0x1195   : > { %9460 = vmatprep.subr.bf16.mxu1 %v12713_v6  ;;  %v12804_v6 = vld [vmem:[%s13938_s20 + $0xb74] ss:$24 sps:$4 sm:$0xff]  }
0x1197   : > { %9420 = vmatpush1.bf16.msra.mxu0 %v12715_v16  ;;  %v12799_v16 = vld [vmem:[%s13938_s20 + $0x870] ss:$24 sps:$4 sm:$0xff]  }
0x1198   : > { %9461 = vmatpush1.bf16.msra.mxu1 %v12716_v57  ;;  %9471 = vmatprep.subr.bf16.mxu0 %v12723_v1  ;;  %v12802_v57 = vld [vmem:[%s13938_s20 + $0xb70] ss:$24 sps:$4 sm:$0xff]   ;;  %v12807_v1 = vld [vmem:[%s13938_s20 + $0x8a4] ss:$24 sps:$4 sm:$0xff]  }
0x1199   : > { %9512 = vmatprep.subr.bf16.mxu1 %v12726_v41  ;;  %v12810_v41 = vld [vmem:[%s13938_s20 + $0xba4] ss:$24 sps:$4 sm:$0xff]  }
0x119a   : > { %9422 = vmatmul.mubr.bf16.vlgmr.msra.gmra.mrb[0].mxu0 %v16583_v30 }
0x119b   : > { %9463 = vmatmul.mubr.bf16.vlgmr.msra.gmra.mrb[0].mxu1 %v16585_v22  ;;  %9472 = vmatpush1.bf16.msra.mxu0 %v12721_v18  ;;  %v12805_v18 = vld [vmem:[%s13938_s20 + $0x8a0] ss:$24 sps:$4 sm:$0xff]  }
0x119c   : > { %9513 = vmatpush1.bf16.msra.mxu1 %v12724_v61  ;;  %9473 = vmatprep.subr.bf16.mxu0 %v12729_v24  ;;  %v12808_v61 = vld [vmem:[%s13938_s20 + $0xba0] ss:$24 sps:$4 sm:$0xff]   ;;  %v12813_v24 = vld [vmem:[%s13938_s20 + $0x8d4] ss:$24 sps:$4 sm:$0xff]  }
0x119d   : > { %9514 = vmatprep.subr.bf16.mxu1 %v12732_v55  ;;  %9503 = vmatprep.mubr.bf16.mxu0 %v16623_v0  ;;  %v12816_v55 = vld [vmem:[%s13938_s20 + $0xbd4] ss:$24 sps:$4 sm:$0xff]  }
0x119e   : > { %9544 = vmatprep.mubr.bf16.mxu1 %v16627_v44 }
0x119f   : > { %9474 = vmatpush1.bf16.msra.mxu0 %v12727_v54  ;;  %v12811_v54 = vld [vmem:[%s13938_s20 + $0x8d0] ss:$24 sps:$4 sm:$0xff]  }
0x11a0   : > { %9515 = vmatpush1.bf16.msra.mxu1 %v12730_v14  ;;  %9475 = vmatprep.subr.bf16.mxu0 %v12735_v31  ;;  %v12814_v14 = vld [vmem:[%s13938_s20 + $0xbd0] ss:$24 sps:$4 sm:$0xff]   ;;  %v12823_v31 = vld [vmem:[%s13938_s20 + $0xc] ss:$24 sps:$4 sm:$0xff]  }
0x11a1   : > { %9516 = vmatprep.subr.bf16.mxu1 %v12738_v52  ;;  %v12826_v52 = vld [vmem:[%s13938_s20 + $0x30c] ss:$24 sps:$4 sm:$0xff]  }
0x11a3   : > { %9476 = vmatpush1.bf16.msra.mxu0 %v12733_v3  ;;  %v16671_v3 = vcombine.low %v16614_v27, %v16614_v27  ;;  %v12847_v27 = vld [vmem:[%s13938_s20 + $0xcc] ss:$24 sps:$4 sm:$0xff]  }
0x11a4   : > { %9517 = vmatpush1.bf16.msra.mxu1 %v12736_v39  ;;  %9477 = vmatprep.subr.bf16.mxu0 %v12741_v49  ;;  %v16675_v39 = vcombine.low %v16617_v50, %v16617_v50  ;;  %v12821_v49 = vld [vmem:[%s13938_s20 + $0x8] ss:$24 sps:$4 sm:$0xff]   ;;  %v12850_v50 = vld [vmem:[%s13938_s20 + $0x3cc] ss:$24 sps:$4 sm:$0xff]  }
0x11a5   : > { %9518 = vmatprep.subr.bf16.mxu1 %v12744_v35  ;;  %v12824_v35 = vld [vmem:[%s13938_s20 + $0x308] ss:$24 sps:$4 sm:$0xff]  }
0x11a7   : > { %9478 = vmatpush1.bf16.msra.mxu0 %v12739_v34  ;;  %v12829_v34 = vld [vmem:[%s13938_s20 + $0x3c] ss:$24 sps:$4 sm:$0xff]  }
0x11a8   : > { %9519 = vmatpush1.bf16.msra.mxu1 %v12742_v11  ;;  %9479 = vmatprep.subr.bf16.mxu0 %v12747_v19  ;;  %v12832_v11 = vld [vmem:[%s13938_s20 + $0x33c] ss:$24 sps:$4 sm:$0xff]   ;;  %v12827_v19 = vld [vmem:[%s13938_s20 + $0x38] ss:$24 sps:$4 sm:$0xff]  }
0x11a9   : > { %9520 = vmatprep.subr.bf16.mxu1 %v12750_v20  ;;  %v12830_v20 = vld [vmem:[%s13938_s20 + $0x338] ss:$24 sps:$4 sm:$0xff]  }
0x11ab   : > { %9480 = vmatpush1.bf16.msra.mxu0 %v12745_v53  ;;  %v12835_v53 = vld [vmem:[%s13938_s20 + $0x6c] ss:$24 sps:$4 sm:$0xff]  }
0x11ac   : > { %9521 = vmatpush1.bf16.msra.mxu1 %v12748_v60  ;;  %9481 = vmatprep.subr.bf16.mxu0 %v12753_v46  ;;  %v12838_v60 = vld [vmem:[%s13938_s20 + $0x36c] ss:$24 sps:$4 sm:$0xff]   ;;  %v12833_v46 = vld [vmem:[%s13938_s20 + $0x68] ss:$24 sps:$4 sm:$0xff]  }
0x11ad   : > { %9522 = vmatprep.subr.bf16.mxu1 %v12756_v21  ;;  %v12836_v21 = vld [vmem:[%s13938_s20 + $0x368] ss:$24 sps:$4 sm:$0xff]  }
0x11af   : > { %9482 = vmatpush1.bf16.msra.mxu0 %v12751_v58  ;;  %v12841_v58 = vld [vmem:[%s13938_s20 + $0x9c] ss:$24 sps:$4 sm:$0xff]  }
0x11b0   : > { %9523 = vmatpush1.bf16.msra.mxu1 %v12754_v10  ;;  %9483 = vmatprep.subr.bf16.mxu0 %v12759_v28  ;;  %v12844_v10 = vld [vmem:[%s13938_s20 + $0x39c] ss:$24 sps:$4 sm:$0xff]   ;;  %v12839_v28 = vld [vmem:[%s13938_s20 + $0x98] ss:$24 sps:$4 sm:$0xff]  }
0x11b1   : > { %9524 = vmatprep.subr.bf16.mxu1 %v12762_v51  ;;  %v12842_v51 = vld [vmem:[%s13938_s20 + $0x398] ss:$24 sps:$4 sm:$0xff]  }
0x11b3   : > { %9484 = vmatpush1.bf16.msra.mxu0 %v12757_v33  ;;  %v12845_v33 = vld [vmem:[%s13938_s20 + $0xc8] ss:$24 sps:$4 sm:$0xff]  }
0x11b4   : > { %9525 = vmatpush1.bf16.msra.mxu1 %v12760_v32  ;;  %9485 = vmatprep.subr.bf16.mxu0 %v12765_v9  ;;  %v12848_v32 = vld [vmem:[%s13938_s20 + $0x3c8] ss:$24 sps:$4 sm:$0xff]   ;;  %v12853_v9 = vld [vmem:[%s13938_s20 + $0xfc] ss:$24 sps:$4 sm:$0xff]  }
0x11b5   : > { %9526 = vmatprep.subr.bf16.mxu1 %v12768_v63  ;;  %v12856_v63 = vld [vmem:[%s13938_s20 + $0x3fc] ss:$24 sps:$4 sm:$0xff]  }
0x11b7   : > { %9486 = vmatpush1.bf16.msra.mxu0 %v12763_v7  ;;  %v12851_v7 = vld [vmem:[%s13938_s20 + $0xf8] ss:$24 sps:$4 sm:$0xff]  }
0x11b8   : > { %9527 = vmatpush1.bf16.msra.mxu1 %v12766_v17  ;;  %9487 = vmatprep.subr.bf16.mxu0 %v12771_v37  ;;  %v12854_v17 = vld [vmem:[%s13938_s20 + $0x3f8] ss:$24 sps:$4 sm:$0xff]   ;;  %v12859_v37 = vld [vmem:[%s13938_s20 + $0x12c] ss:$24 sps:$4 sm:$0xff]  }
0x11b9   : > { %9528 = vmatprep.subr.bf16.mxu1 %v12774_v12  ;;  %v12862_v12 = vld [vmem:[%s13938_s20 + $0x42c] ss:$24 sps:$4 sm:$0xff]  }
0x11bb   : > { %9488 = vmatpush1.bf16.msra.mxu0 %v12769_v43  ;;  %v12857_v43 = vld [vmem:[%s13938_s20 + $0x128] ss:$24 sps:$4 sm:$0xff]  }
0x11bc   : > { %9529 = vmatpush1.bf16.msra.mxu1 %v12772_v8  ;;  %9489 = vmatprep.subr.bf16.mxu0 %v12777_v56  ;;  %v12860_v8 = vld [vmem:[%s13938_s20 + $0x428] ss:$24 sps:$4 sm:$0xff]   ;;  %v12865_v56 = vld [vmem:[%s13938_s20 + $0x15c] ss:$24 sps:$4 sm:$0xff]  }
0x11bd   : > { %9530 = vmatprep.subr.bf16.mxu1 %v12780_v29  ;;  %v12868_v29 = vld [vmem:[%s13938_s20 + $0x45c] ss:$24 sps:$4 sm:$0xff]  }
0x11bf   : > { %9490 = vmatpush1.bf16.msra.mxu0 %v12775_v25  ;;  %v12863_v25 = vld [vmem:[%s13938_s20 + $0x158] ss:$24 sps:$4 sm:$0xff]  }
0x11c0   : > { %9531 = vmatpush1.bf16.msra.mxu1 %v12778_v26  ;;  %9491 = vmatprep.subr.bf16.mxu0 %v12783_v42  ;;  %v12866_v26 = vld [vmem:[%s13938_s20 + $0x458] ss:$24 sps:$4 sm:$0xff]   ;;  %v12871_v42 = vld [vmem:[%s13938_s20 + $0x18c] ss:$24 sps:$4 sm:$0xff]  }
0x11c1   : > { %9532 = vmatprep.subr.bf16.mxu1 %v12786_v5  ;;  %v12874_v5 = vld [vmem:[%s13938_s20 + $0x48c] ss:$24 sps:$4 sm:$0xff]  }
0x11c3   : > { %9492 = vmatpush1.bf16.msra.mxu0 %v12781_v48  ;;  %v12869_v48 = vld [vmem:[%s13938_s20 + $0x188] ss:$24 sps:$4 sm:$0xff]  }
0x11c4   : > { %9533 = vmatpush1.bf16.msra.mxu1 %v12784_v45  ;;  %9493 = vmatprep.subr.bf16.mxu0 %v12789_v47  ;;  %v12872_v45 = vld [vmem:[%s13938_s20 + $0x488] ss:$24 sps:$4 sm:$0xff]   ;;  %v12877_v47 = vld [vmem:[%s13938_s20 + $0x1bc] ss:$24 sps:$4 sm:$0xff]  }
0x11c5   : > { %9534 = vmatprep.subr.bf16.mxu1 %v12792_v36  ;;  %v12880_v36 = vld [vmem:[%s13938_s20 + $0x4bc] ss:$24 sps:$4 sm:$0xff]  }
0x11c7   : > { %9494 = vmatpush1.bf16.msra.mxu0 %v12787_v59  ;;  %v12875_v59 = vld [vmem:[%s13938_s20 + $0x1b8] ss:$24 sps:$4 sm:$0xff]  }
0x11c8   : > { %9535 = vmatpush1.bf16.msra.mxu1 %v12790_v4  ;;  %9495 = vmatprep.subr.bf16.mxu0 %v12795_v13  ;;  %v12878_v4 = vld [vmem:[%s13938_s20 + $0x4b8] ss:$24 sps:$4 sm:$0xff]   ;;  %v12883_v13 = vld [vmem:[%s13938_s20 + $0x1ec] ss:$24 sps:$4 sm:$0xff]  }
0x11c9   : > { %9536 = vmatprep.subr.bf16.mxu1 %v12798_v23  ;;  %v12886_v23 = vld [vmem:[%s13938_s20 + $0x4ec] ss:$24 sps:$4 sm:$0xff]  }
0x11cb   : > { %9496 = vmatpush1.bf16.msra.mxu0 %v12793_v62  ;;  %v12881_v62 = vld [vmem:[%s13938_s20 + $0x1e8] ss:$24 sps:$4 sm:$0xff]  }
0x11cc   : > { %9537 = vmatpush1.bf16.msra.mxu1 %v12796_v2  ;;  %9497 = vmatprep.subr.bf16.mxu0 %v12801_v38  ;;  %v12884_v2 = vld [vmem:[%s13938_s20 + $0x4e8] ss:$24 sps:$4 sm:$0xff]   ;;  %v12889_v38 = vld [vmem:[%s13938_s20 + $0x21c] ss:$24 sps:$4 sm:$0xff]  }
0x11cd   : > { %9538 = vmatprep.subr.bf16.mxu1 %v12804_v6  ;;  %v12892_v6 = vld [vmem:[%s13938_s20 + $0x51c] ss:$24 sps:$4 sm:$0xff]  }
0x11cf   : > { %9498 = vmatpush1.bf16.msra.mxu0 %v12799_v16  ;;  %v12887_v16 = vld [vmem:[%s13938_s20 + $0x218] ss:$24 sps:$4 sm:$0xff]  }
0x11d0   : > { %9539 = vmatpush1.bf16.msra.mxu1 %v12802_v57  ;;  %9499 = vmatprep.subr.bf16.mxu0 %v12807_v1  ;;  %v12890_v57 = vld [vmem:[%s13938_s20 + $0x518] ss:$24 sps:$4 sm:$0xff]   ;;  %v12895_v1 = vld [vmem:[%s13938_s20 + $0x24c] ss:$24 sps:$4 sm:$0xff]  }
0x11d1   : > { %9540 = vmatprep.subr.bf16.mxu1 %v12810_v41  ;;  %v12898_v41 = vld [vmem:[%s13938_s20 + $0x54c] ss:$24 sps:$4 sm:$0xff]  }
0x11d3   : > { %9500 = vmatpush1.bf16.msra.mxu0 %v12805_v18  ;;  %v12893_v18 = vld [vmem:[%s13938_s20 + $0x248] ss:$24 sps:$4 sm:$0xff]  }
0x11d4   : > { %9541 = vmatpush1.bf16.msra.mxu1 %v12808_v61  ;;  %9501 = vmatprep.subr.bf16.mxu0 %v12813_v24  ;;  %v12896_v61 = vld [vmem:[%s13938_s20 + $0x548] ss:$24 sps:$4 sm:$0xff]   ;;  %v12901_v24 = vld [vmem:[%s13938_s20 + $0x27c] ss:$24 sps:$4 sm:$0xff]  }
0x11d5   : > { %9542 = vmatprep.subr.bf16.mxu1 %v12816_v55  ;;  %v12904_v55 = vld [vmem:[%s13938_s20 + $0x57c] ss:$24 sps:$4 sm:$0xff]  }
0x11d7   : > { %9502 = vmatpush1.bf16.msra.mxu0 %v12811_v54  ;;  %v12899_v54 = vld [vmem:[%s13938_s20 + $0x278] ss:$24 sps:$4 sm:$0xff]  }
0x11d8   : > { %9543 = vmatpush1.bf16.msra.mxu1 %v12814_v14  ;;  %9553 = vmatprep.subr.bf16.mxu0 %v12823_v31  ;;  %v12902_v14 = vld [vmem:[%s13938_s20 + $0x578] ss:$24 sps:$4 sm:$0xff]   ;;  %v12907_v31 = vld [vmem:[%s13938_s20 + $0x2ac] ss:$24 sps:$4 sm:$0xff]  }
0x11d9   : > { %9594 = vmatprep.subr.bf16.mxu1 %v12826_v52  ;;  %v12910_v52 = vld [vmem:[%s13938_s20 + $0x5ac] ss:$24 sps:$4 sm:$0xff]  }
0x11da   : > { %9504 = vmatmul.mubr.bf16.vlgmr.msra.gmra.mrb[4].mxu0 %v16671_v3 }
0x11db   : > { %9545 = vmatmul.mubr.bf16.vlgmr.msra.gmra.mrb[4].mxu1 %v16675_v39  ;;  %9554 = vmatpush1.bf16.msra.mxu0 %v12821_v49  ;;  %v12905_v49 = vld [vmem:[%s13938_s20 + $0x2a8] ss:$24 sps:$4 sm:$0xff]  }
0x11dc   : > { %9595 = vmatpush1.bf16.msra.mxu1 %v12824_v35  ;;  %9555 = vmatprep.subr.bf16.mxu0 %v12829_v34  ;;  %v12908_v35 = vld [vmem:[%s13938_s20 + $0x5a8] ss:$24 sps:$4 sm:$0xff]   ;;  %v12913_v34 = vld [vmem:[%s13938_s20 + $0x2dc] ss:$24 sps:$4 sm:$0xff]  }
0x11dd   : > { %9596 = vmatprep.subr.bf16.mxu1 %v12832_v11  ;;  %9585 = vmatprep.mubr.bf16.mxu0 %v16556_v40  ;;  %v12916_v11 = vld [vmem:[%s13938_s20 + $0x5dc] ss:$24 sps:$4 sm:$0xff]  }
0x11de   : > { %9626 = vmatprep.mubr.bf16.mxu1 %v16561_v15 }
0x11df   : > { %9556 = vmatpush1.bf16.msra.mxu0 %v12827_v19  ;;  %v12911_v19 = vld [vmem:[%s13938_s20 + $0x2d8] ss:$24 sps:$4 sm:$0xff]  }
0x11e0   : > { %9597 = vmatpush1.bf16.msra.mxu1 %v12830_v20  ;;  %9557 = vmatprep.subr.bf16.mxu0 %v12835_v53  ;;  %v12914_v20 = vld [vmem:[%s13938_s20 + $0x5d8] ss:$24 sps:$4 sm:$0xff]   ;;  %v12919_v53 = vld [vmem:[%s13938_s20 + $0x60c] ss:$24 sps:$4 sm:$0xff]  }
0x11e1   : > { %9598 = vmatprep.subr.bf16.mxu1 %v12838_v60  ;;  %v12922_v60 = vld [vmem:[%s13938_s20 + $0x90c] ss:$24 sps:$4 sm:$0xff]  }
0x11e3   : > { %9558 = vmatpush1.bf16.msra.mxu0 %v12833_v46  ;;  %v12917_v46 = vld [vmem:[%s13938_s20 + $0x608] ss:$24 sps:$4 sm:$0xff]  }
0x11e4   : > { %9599 = vmatpush1.bf16.msra.mxu1 %v12836_v21  ;;  %9559 = vmatprep.subr.bf16.mxu0 %v12841_v58  ;;  %v12920_v21 = vld [vmem:[%s13938_s20 + $0x908] ss:$24 sps:$4 sm:$0xff]   ;;  %v12925_v58 = vld [vmem:[%s13938_s20 + $0x63c] ss:$24 sps:$4 sm:$0xff]  }
0x11e5   : > { %9600 = vmatprep.subr.bf16.mxu1 %v12844_v10  ;;  %v12928_v10 = vld [vmem:[%s13938_s20 + $0x93c] ss:$24 sps:$4 sm:$0xff]  }
0x11e7   : > { %9560 = vmatpush1.bf16.msra.mxu0 %v12839_v28  ;;  %v12923_v28 = vld [vmem:[%s13938_s20 + $0x638] ss:$24 sps:$4 sm:$0xff]  }
0x11e8   : > { %9601 = vmatpush1.bf16.msra.mxu1 %v12842_v51  ;;  %9561 = vmatprep.subr.bf16.mxu0 %v12847_v27  ;;  %v12926_v51 = vld [vmem:[%s13938_s20 + $0x938] ss:$24 sps:$4 sm:$0xff]   ;;  %v12931_v27 = vld [vmem:[%s13938_s20 + $0x66c] ss:$24 sps:$4 sm:$0xff]  }
0x11e9   : > { %9602 = vmatprep.subr.bf16.mxu1 %v12850_v50  ;;  %v12934_v50 = vld [vmem:[%s13938_s20 + $0x96c] ss:$24 sps:$4 sm:$0xff]  }
0x11eb   : > { %9562 = vmatpush1.bf16.msra.mxu0 %v12845_v33  ;;  %v12929_v33 = vld [vmem:[%s13938_s20 + $0x668] ss:$24 sps:$4 sm:$0xff]  }
0x11ec   : > { %9603 = vmatpush1.bf16.msra.mxu1 %v12848_v32  ;;  %9563 = vmatprep.subr.bf16.mxu0 %v12853_v9  ;;  %v12932_v32 = vld [vmem:[%s13938_s20 + $0x968] ss:$24 sps:$4 sm:$0xff]   ;;  %v12937_v9 = vld [vmem:[%s13938_s20 + $0x69c] ss:$24 sps:$4 sm:$0xff]  }
0x11ed   : > { %9604 = vmatprep.subr.bf16.mxu1 %v12856_v63  ;;  %v12940_v63 = vld [vmem:[%s13938_s20 + $0x99c] ss:$24 sps:$4 sm:$0xff]  }
0x11ef   : > { %9564 = vmatpush1.bf16.msra.mxu0 %v12851_v7  ;;  %v12935_v7 = vld [vmem:[%s13938_s20 + $0x698] ss:$24 sps:$4 sm:$0xff]  }
0x11f0   : > { %9605 = vmatpush1.bf16.msra.mxu1 %v12854_v17  ;;  %9565 = vmatprep.subr.bf16.mxu0 %v12859_v37  ;;  %v12938_v17 = vld [vmem:[%s13938_s20 + $0x998] ss:$24 sps:$4 sm:$0xff]   ;;  %v12943_v37 = vld [vmem:[%s13938_s20 + $0x6cc] ss:$24 sps:$4 sm:$0xff]  }
0x11f1   : > { %9606 = vmatprep.subr.bf16.mxu1 %v12862_v12  ;;  %v12946_v12 = vld [vmem:[%s13938_s20 + $0x9cc] ss:$24 sps:$4 sm:$0xff]  }
0x11f3   : > { %9566 = vmatpush1.bf16.msra.mxu0 %v12857_v43  ;;  %v12941_v43 = vld [vmem:[%s13938_s20 + $0x6c8] ss:$24 sps:$4 sm:$0xff]  }
0x11f4   : > { %9607 = vmatpush1.bf16.msra.mxu1 %v12860_v8  ;;  %9567 = vmatprep.subr.bf16.mxu0 %v12865_v56  ;;  %v12944_v8 = vld [vmem:[%s13938_s20 + $0x9c8] ss:$24 sps:$4 sm:$0xff]   ;;  %v12949_v56 = vld [vmem:[%s13938_s20 + $0x6fc] ss:$24 sps:$4 sm:$0xff]  }
0x11f5   : > { %9608 = vmatprep.subr.bf16.mxu1 %v12868_v29  ;;  %v12952_v29 = vld [vmem:[%s13938_s20 + $0x9fc] ss:$24 sps:$4 sm:$0xff]  }
0x11f7   : > { %9568 = vmatpush1.bf16.msra.mxu0 %v12863_v25  ;;  %v12947_v25 = vld [vmem:[%s13938_s20 + $0x6f8] ss:$24 sps:$4 sm:$0xff]  }
0x11f8   : > { %9609 = vmatpush1.bf16.msra.mxu1 %v12866_v26  ;;  %9569 = vmatprep.subr.bf16.mxu0 %v12871_v42  ;;  %v12950_v26 = vld [vmem:[%s13938_s20 + $0x9f8] ss:$24 sps:$4 sm:$0xff]   ;;  %v12955_v42 = vld [vmem:[%s13938_s20 + $0x72c] ss:$24 sps:$4 sm:$0xff]  }
0x11f9   : > { %9610 = vmatprep.subr.bf16.mxu1 %v12874_v5  ;;  %v12958_v5 = vld [vmem:[%s13938_s20 + $0xa2c] ss:$24 sps:$4 sm:$0xff]  }
0x11fb   : > { %9570 = vmatpush1.bf16.msra.mxu0 %v12869_v48  ;;  %v12953_v48 = vld [vmem:[%s13938_s20 + $0x728] ss:$24 sps:$4 sm:$0xff]  }
0x11fc   : > { %9611 = vmatpush1.bf16.msra.mxu1 %v12872_v45  ;;  %9571 = vmatprep.subr.bf16.mxu0 %v12877_v47  ;;  %v12956_v45 = vld [vmem:[%s13938_s20 + $0xa28] ss:$24 sps:$4 sm:$0xff]   ;;  %v12961_v47 = vld [vmem:[%s13938_s20 + $0x75c] ss:$24 sps:$4 sm:$0xff]  }
0x11fd   : > { %9612 = vmatprep.subr.bf16.mxu1 %v12880_v36  ;;  %v12964_v36 = vld [vmem:[%s13938_s20 + $0xa5c] ss:$24 sps:$4 sm:$0xff]  }
0x11ff   : > { %9572 = vmatpush1.bf16.msra.mxu0 %v12875_v59  ;;  %v12959_v59 = vld [vmem:[%s13938_s20 + $0x758] ss:$24 sps:$4 sm:$0xff]  }
0x1200   : > { %9613 = vmatpush1.bf16.msra.mxu1 %v12878_v4  ;;  %9573 = vmatprep.subr.bf16.mxu0 %v12883_v13  ;;  %v12962_v4 = vld [vmem:[%s13938_s20 + $0xa58] ss:$24 sps:$4 sm:$0xff]   ;;  %v12967_v13 = vld [vmem:[%s13938_s20 + $0x78c] ss:$24 sps:$4 sm:$0xff]  }
0x1201   : > { %9614 = vmatprep.subr.bf16.mxu1 %v12886_v23  ;;  %v12970_v23 = vld [vmem:[%s13938_s20 + $0xa8c] ss:$24 sps:$4 sm:$0xff]  }
0x1203   : > { %9574 = vmatpush1.bf16.msra.mxu0 %v12881_v62  ;;  %v12965_v62 = vld [vmem:[%s13938_s20 + $0x788] ss:$24 sps:$4 sm:$0xff]  }
0x1204   : > { %9615 = vmatpush1.bf16.msra.mxu1 %v12884_v2  ;;  %9575 = vmatprep.subr.bf16.mxu0 %v12889_v38  ;;  %v12968_v2 = vld [vmem:[%s13938_s20 + $0xa88] ss:$24 sps:$4 sm:$0xff]   ;;  %v12973_v38 = vld [vmem:[%s13938_s20 + $0x7bc] ss:$24 sps:$4 sm:$0xff]  }
0x1205   : > { %9616 = vmatprep.subr.bf16.mxu1 %v12892_v6  ;;  %v12976_v6 = vld [vmem:[%s13938_s20 + $0xabc] ss:$24 sps:$4 sm:$0xff]  }
0x1207   : > { %9576 = vmatpush1.bf16.msra.mxu0 %v12887_v16  ;;  %v12971_v16 = vld [vmem:[%s13938_s20 + $0x7b8] ss:$24 sps:$4 sm:$0xff]  }
0x1208   : > { %9617 = vmatpush1.bf16.msra.mxu1 %v12890_v57  ;;  %9577 = vmatprep.subr.bf16.mxu0 %v12895_v1  ;;  %v12974_v57 = vld [vmem:[%s13938_s20 + $0xab8] ss:$24 sps:$4 sm:$0xff]   ;;  %v12979_v1 = vld [vmem:[%s13938_s20 + $0x7ec] ss:$24 sps:$4 sm:$0xff]  }
0x1209   : > { %9618 = vmatprep.subr.bf16.mxu1 %v12898_v41  ;;  %v12982_v41 = vld [vmem:[%s13938_s20 + $0xaec] ss:$24 sps:$4 sm:$0xff]  }
0x120b   : > { %9578 = vmatpush1.bf16.msra.mxu0 %v12893_v18  ;;  %v12977_v18 = vld [vmem:[%s13938_s20 + $0x7e8] ss:$24 sps:$4 sm:$0xff]  }
0x120c   : > { %9619 = vmatpush1.bf16.msra.mxu1 %v12896_v61  ;;  %9579 = vmatprep.subr.bf16.mxu0 %v12901_v24  ;;  %v12980_v61 = vld [vmem:[%s13938_s20 + $0xae8] ss:$24 sps:$4 sm:$0xff]   ;;  %v12985_v24 = vld [vmem:[%s13938_s20 + $0x81c] ss:$24 sps:$4 sm:$0xff]  }
0x120d   : > { %9620 = vmatprep.subr.bf16.mxu1 %v12904_v55  ;;  %v12988_v55 = vld [vmem:[%s13938_s20 + $0xb1c] ss:$24 sps:$4 sm:$0xff]  }
0x120f   : > { %9580 = vmatpush1.bf16.msra.mxu0 %v12899_v54  ;;  %v12983_v54 = vld [vmem:[%s13938_s20 + $0x818] ss:$24 sps:$4 sm:$0xff]  }
0x1210   : > { %9621 = vmatpush1.bf16.msra.mxu1 %v12902_v14  ;;  %9581 = vmatprep.subr.bf16.mxu0 %v12907_v31  ;;  %v12986_v14 = vld [vmem:[%s13938_s20 + $0xb18] ss:$24 sps:$4 sm:$0xff]   ;;  %v12991_v31 = vld [vmem:[%s13938_s20 + $0x84c] ss:$24 sps:$4 sm:$0xff]  }
0x1211   : > { %9622 = vmatprep.subr.bf16.mxu1 %v12910_v52  ;;  %v12994_v52 = vld [vmem:[%s13938_s20 + $0xb4c] ss:$24 sps:$4 sm:$0xff]  }
0x1213   : > { %9582 = vmatpush1.bf16.msra.mxu0 %v12905_v49  ;;  %v12989_v49 = vld [vmem:[%s13938_s20 + $0x848] ss:$24 sps:$4 sm:$0xff]  }
0x1214   : > { %9623 = vmatpush1.bf16.msra.mxu1 %v12908_v35  ;;  %9583 = vmatprep.subr.bf16.mxu0 %v12913_v34  ;;  %v12992_v35 = vld [vmem:[%s13938_s20 + $0xb48] ss:$24 sps:$4 sm:$0xff]   ;;  %v12997_v34 = vld [vmem:[%s13938_s20 + $0x87c] ss:$24 sps:$4 sm:$0xff]  }
0x1215   : > { %9624 = vmatprep.subr.bf16.mxu1 %v12916_v11  ;;  %v13000_v11 = vld [vmem:[%s13938_s20 + $0xb7c] ss:$24 sps:$4 sm:$0xff]  }
0x1217   : > { %9584 = vmatpush1.bf16.msra.mxu0 %v12911_v19  ;;  %v12995_v19 = vld [vmem:[%s13938_s20 + $0x878] ss:$24 sps:$4 sm:$0xff]  }
0x1218   : > { %9625 = vmatpush1.bf16.msra.mxu1 %v12914_v20  ;;  %9635 = vmatprep.subr.bf16.mxu0 %v12919_v53  ;;  %v12998_v20 = vld [vmem:[%s13938_s20 + $0xb78] ss:$24 sps:$4 sm:$0xff]   ;;  %v13003_v53 = vld [vmem:[%s13938_s20 + $0x8ac] ss:$24 sps:$4 sm:$0xff]  }
0x1219   : > { %9676 = vmatprep.subr.bf16.mxu1 %v12922_v60  ;;  %v13006_v60 = vld [vmem:[%s13938_s20 + $0xbac] ss:$24 sps:$4 sm:$0xff]  }
0x121a   : > { %9586 = vmatmul.mubr.bf16.vlgmr.msra.gmra.mrb[8].mxu0 %v16583_v30 }
0x121b   : > { %9627 = vmatmul.mubr.bf16.vlgmr.msra.gmra.mrb[8].mxu1 %v16585_v22  ;;  %9636 = vmatpush1.bf16.msra.mxu0 %v12917_v46  ;;  %v13001_v46 = vld [vmem:[%s13938_s20 + $0x8a8] ss:$24 sps:$4 sm:$0xff]  }
0x121c   : > { %9677 = vmatpush1.bf16.msra.mxu1 %v12920_v21  ;;  %9637 = vmatprep.subr.bf16.mxu0 %v12925_v58  ;;  %v13004_v21 = vld [vmem:[%s13938_s20 + $0xba8] ss:$24 sps:$4 sm:$0xff]   ;;  %v13009_v58 = vld [vmem:[%s13938_s20 + $0x8dc] ss:$24 sps:$4 sm:$0xff]  }
0x121d   : > { %9678 = vmatprep.subr.bf16.mxu1 %v12928_v10  ;;  %9667 = vmatprep.mubr.bf16.mxu0 %v16623_v0  ;;  %v13012_v10 = vld [vmem:[%s13938_s20 + $0xbdc] ss:$24 sps:$4 sm:$0xff]  }
0x121e   : > { %9708 = vmatprep.mubr.bf16.mxu1 %v16627_v44 }
0x121f   : > { %9638 = vmatpush1.bf16.msra.mxu0 %v12923_v28  ;;  %v13007_v28 = vld [vmem:[%s13938_s20 + $0x8d8] ss:$24 sps:$4 sm:$0xff]  }
0x1220   : > { %9679 = vmatpush1.bf16.msra.mxu1 %v12926_v51  ;;  %9639 = vmatprep.subr.bf16.mxu0 %v12931_v27  ;;  %v13010_v51 = vld [vmem:[%s13938_s20 + $0xbd8] ss:$24 sps:$4 sm:$0xff]   ;;  %v13015_v27 = vld [vmem:[%s13938_s20 + $0x14] ss:$24 sps:$4 sm:$0xff]  }
0x1221   : > { %9680 = vmatprep.subr.bf16.mxu1 %v12934_v50  ;;  %v13018_v50 = vld [vmem:[%s13938_s20 + $0x314] ss:$24 sps:$4 sm:$0xff]  }
0x1223   : > { %9640 = vmatpush1.bf16.msra.mxu0 %v12929_v33  ;;  %v13013_v33 = vld [vmem:[%s13938_s20 + $0x10] ss:$24 sps:$4 sm:$0xff]  }
0x1224   : > { %9681 = vmatpush1.bf16.msra.mxu1 %v12932_v32  ;;  %9641 = vmatprep.subr.bf16.mxu0 %v12937_v9  ;;  %v13016_v32 = vld [vmem:[%s13938_s20 + $0x310] ss:$24 sps:$4 sm:$0xff]   ;;  %v13021_v9 = vld [vmem:[%s13938_s20 + $0x44] ss:$24 sps:$4 sm:$0xff]  }
0x1225   : > { %9682 = vmatprep.subr.bf16.mxu1 %v12940_v63  ;;  %v13024_v63 = vld [vmem:[%s13938_s20 + $0x344] ss:$24 sps:$4 sm:$0xff]  }
0x1227   : > { %9642 = vmatpush1.bf16.msra.mxu0 %v12935_v7  ;;  %v13019_v7 = vld [vmem:[%s13938_s20 + $0x40] ss:$24 sps:$4 sm:$0xff]  }
0x1228   : > { %9683 = vmatpush1.bf16.msra.mxu1 %v12938_v17  ;;  %9643 = vmatprep.subr.bf16.mxu0 %v12943_v37  ;;  %v13022_v17 = vld [vmem:[%s13938_s20 + $0x340] ss:$24 sps:$4 sm:$0xff]   ;;  %v13027_v37 = vld [vmem:[%s13938_s20 + $0x74] ss:$24 sps:$4 sm:$0xff]  }
0x1229   : > { %9684 = vmatprep.subr.bf16.mxu1 %v12946_v12  ;;  %v13030_v12 = vld [vmem:[%s13938_s20 + $0x374] ss:$24 sps:$4 sm:$0xff]  }
0x122b   : > { %9644 = vmatpush1.bf16.msra.mxu0 %v12941_v43  ;;  %v13025_v43 = vld [vmem:[%s13938_s20 + $0x70] ss:$24 sps:$4 sm:$0xff]  }
0x122c   : > { %9685 = vmatpush1.bf16.msra.mxu1 %v12944_v8  ;;  %9645 = vmatprep.subr.bf16.mxu0 %v12949_v56  ;;  %v13028_v8 = vld [vmem:[%s13938_s20 + $0x370] ss:$24 sps:$4 sm:$0xff]   ;;  %v13033_v56 = vld [vmem:[%s13938_s20 + $0xa4] ss:$24 sps:$4 sm:$0xff]  }
0x122d   : > { %9686 = vmatprep.subr.bf16.mxu1 %v12952_v29  ;;  %v13036_v29 = vld [vmem:[%s13938_s20 + $0x3a4] ss:$24 sps:$4 sm:$0xff]  }
0x122f   : > { %9646 = vmatpush1.bf16.msra.mxu0 %v12947_v25  ;;  %v13031_v25 = vld [vmem:[%s13938_s20 + $0xa0] ss:$24 sps:$4 sm:$0xff]  }
0x1230   : > { %9687 = vmatpush1.bf16.msra.mxu1 %v12950_v26  ;;  %9647 = vmatprep.subr.bf16.mxu0 %v12955_v42  ;;  %v13042_v26 = vld [vmem:[%s13938_s20 + $0x3d4] ss:$24 sps:$4 sm:$0xff]   ;;  %v13037_v42 = vld [vmem:[%s13938_s20 + $0xd0] ss:$24 sps:$4 sm:$0xff]  }
0x1231   : > { %9688 = vmatprep.subr.bf16.mxu1 %v12958_v5  ;;  %v13040_v5 = vld [vmem:[%s13938_s20 + $0x3d0] ss:$24 sps:$4 sm:$0xff]  }
0x1233   : > { %9648 = vmatpush1.bf16.msra.mxu0 %v12953_v48  ;;  %v13045_v48 = vld [vmem:[%s13938_s20 + $0x104] ss:$24 sps:$4 sm:$0xff]  }
0x1234   : > { %9689 = vmatpush1.bf16.msra.mxu1 %v12956_v45  ;;  %9649 = vmatprep.subr.bf16.mxu0 %v12961_v47  ;;  %v13048_v45 = vld [vmem:[%s13938_s20 + $0x404] ss:$24 sps:$4 sm:$0xff]   ;;  %v13043_v47 = vld [vmem:[%s13938_s20 + $0x100] ss:$24 sps:$4 sm:$0xff]  }
0x1235   : > { %9690 = vmatprep.subr.bf16.mxu1 %v12964_v36  ;;  %v13046_v36 = vld [vmem:[%s13938_s20 + $0x400] ss:$24 sps:$4 sm:$0xff]  }
0x1237   : > { %9650 = vmatpush1.bf16.msra.mxu0 %v12959_v59  ;;  %v13051_v59 = vld [vmem:[%s13938_s20 + $0x134] ss:$24 sps:$4 sm:$0xff]  }
0x1238   : > { %9691 = vmatpush1.bf16.msra.mxu1 %v12962_v4  ;;  %9651 = vmatprep.subr.bf16.mxu0 %v12967_v13  ;;  %v13054_v4 = vld [vmem:[%s13938_s20 + $0x434] ss:$24 sps:$4 sm:$0xff]  }
0x1239   : > { %9692 = vmatprep.subr.bf16.mxu1 %v12970_v23 }
0x123b   : > { %9652 = vmatpush1.bf16.msra.mxu0 %v12965_v62 }
0x123c   : > { %9693 = vmatpush1.bf16.msra.mxu1 %v12968_v2  ;;  %9653 = vmatprep.subr.bf16.mxu0 %v12973_v38 }
0x123d   : > { %9694 = vmatprep.subr.bf16.mxu1 %v12976_v6 }
0x123f   : > { %9654 = vmatpush1.bf16.msra.mxu0 %v12971_v16 }
0x1240   : > { %9695 = vmatpush1.bf16.msra.mxu1 %v12974_v57  ;;  %9655 = vmatprep.subr.bf16.mxu0 %v12979_v1  ;;  %v13049_v1 = vld [vmem:[%s13938_s20 + $0x130] ss:$24 sps:$4 sm:$0xff]  }
0x1241   : > { %9696 = vmatprep.subr.bf16.mxu1 %v12982_v41  ;;  %v13052_v41 = vld [vmem:[%s13938_s20 + $0x430] ss:$24 sps:$4 sm:$0xff]  }
0x1243   : > { %9656 = vmatpush1.bf16.msra.mxu0 %v12977_v18 }
0x1244   : > { %9697 = vmatpush1.bf16.msra.mxu1 %v12980_v61  ;;  %9657 = vmatprep.subr.bf16.mxu0 %v12985_v24  ;;  %v13057_v24 = vld [vmem:[%s13938_s20 + $0x164] ss:$24 sps:$4 sm:$0xff]  }
0x1245   : > { %9698 = vmatprep.subr.bf16.mxu1 %v12988_v55  ;;  %v13060_v55 = vld [vmem:[%s13938_s20 + $0x464] ss:$24 sps:$4 sm:$0xff]  }
0x1247   : > { %9658 = vmatpush1.bf16.msra.mxu0 %v12983_v54  ;;  %v13055_v54 = vld [vmem:[%s13938_s20 + $0x160] ss:$24 sps:$4 sm:$0xff]  }
0x1248   : > { %9699 = vmatpush1.bf16.msra.mxu1 %v12986_v14  ;;  %9659 = vmatprep.subr.bf16.mxu0 %v12991_v31  ;;  %v13058_v14 = vld [vmem:[%s13938_s20 + $0x460] ss:$24 sps:$4 sm:$0xff]   ;;  %v13063_v31 = vld [vmem:[%s13938_s20 + $0x194] ss:$24 sps:$4 sm:$0xff]  }
0x1249   : > { %9700 = vmatprep.subr.bf16.mxu1 %v12994_v52  ;;  %v13066_v52 = vld [vmem:[%s13938_s20 + $0x494] ss:$24 sps:$4 sm:$0xff]  }
0x124b   : > { %9660 = vmatpush1.bf16.msra.mxu0 %v12989_v49  ;;  %v13061_v49 = vld [vmem:[%s13938_s20 + $0x190] ss:$24 sps:$4 sm:$0xff]  }
0x124c   : > { %9701 = vmatpush1.bf16.msra.mxu1 %v12992_v35  ;;  %9661 = vmatprep.subr.bf16.mxu0 %v12997_v34  ;;  %v13064_v35 = vld [vmem:[%s13938_s20 + $0x490] ss:$24 sps:$4 sm:$0xff]   ;;  %v13069_v34 = vld [vmem:[%s13938_s20 + $0x1c4] ss:$24 sps:$4 sm:$0xff]  }
0x124d   : > { %9702 = vmatprep.subr.bf16.mxu1 %v13000_v11  ;;  %v13072_v11 = vld [vmem:[%s13938_s20 + $0x4c4] ss:$24 sps:$4 sm:$0xff]  }
0x124f   : > { %9662 = vmatpush1.bf16.msra.mxu0 %v12995_v19  ;;  %v13067_v19 = vld [vmem:[%s13938_s20 + $0x1c0] ss:$24 sps:$4 sm:$0xff]  }
0x1250   : > { %9703 = vmatpush1.bf16.msra.mxu1 %v12998_v20  ;;  %9663 = vmatprep.subr.bf16.mxu0 %v13003_v53  ;;  %v13070_v20 = vld [vmem:[%s13938_s20 + $0x4c0] ss:$24 sps:$4 sm:$0xff]   ;;  %v13075_v53 = vld [vmem:[%s13938_s20 + $0x1f4] ss:$24 sps:$4 sm:$0xff]  }
0x1251   : > { %9704 = vmatprep.subr.bf16.mxu1 %v13006_v60  ;;  %v13078_v60 = vld [vmem:[%s13938_s20 + $0x4f4] ss:$24 sps:$4 sm:$0xff]  }
0x1253   : > { %9664 = vmatpush1.bf16.msra.mxu0 %v13001_v46  ;;  %v13073_v46 = vld [vmem:[%s13938_s20 + $0x1f0] ss:$24 sps:$4 sm:$0xff]  }
0x1254   : > { %9705 = vmatpush1.bf16.msra.mxu1 %v13004_v21  ;;  %9665 = vmatprep.subr.bf16.mxu0 %v13009_v58  ;;  %v13076_v21 = vld [vmem:[%s13938_s20 + $0x4f0] ss:$24 sps:$4 sm:$0xff]   ;;  %v13081_v58 = vld [vmem:[%s13938_s20 + $0x224] ss:$24 sps:$4 sm:$0xff]  }
0x1255   : > { %9706 = vmatprep.subr.bf16.mxu1 %v13012_v10  ;;  %v13084_v10 = vld [vmem:[%s13938_s20 + $0x524] ss:$24 sps:$4 sm:$0xff]  }
0x1257   : > { %9666 = vmatpush1.bf16.msra.mxu0 %v13007_v28  ;;  %v13079_v28 = vld [vmem:[%s13938_s20 + $0x220] ss:$24 sps:$4 sm:$0xff]  }
0x1258   : > { %9707 = vmatpush1.bf16.msra.mxu1 %v13010_v51  ;;  %9717 = vmatprep.subr.bf16.mxu0 %v13015_v27  ;;  %v13082_v51 = vld [vmem:[%s13938_s20 + $0x520] ss:$24 sps:$4 sm:$0xff]   ;;  %v13087_v27 = vld [vmem:[%s13938_s20 + $0x254] ss:$24 sps:$4 sm:$0xff]  }
0x1259   : > { %9758 = vmatprep.subr.bf16.mxu1 %v13018_v50  ;;  %v13090_v50 = vld [vmem:[%s13938_s20 + $0x554] ss:$24 sps:$4 sm:$0xff]  }
0x125a   : > { %9668 = vmatmul.mubr.bf16.vlgmr.msra.gmra.mrb[12].mxu0 %v16671_v3 }
0x125b   : > { %9709 = vmatmul.mubr.bf16.vlgmr.msra.gmra.mrb[12].mxu1 %v16675_v39  ;;  %9718 = vmatpush1.bf16.msra.mxu0 %v13013_v33  ;;  %v13085_v33 = vld [vmem:[%s13938_s20 + $0x250] ss:$24 sps:$4 sm:$0xff]  }
0x125c   : > { %9759 = vmatpush1.bf16.msra.mxu1 %v13016_v32  ;;  %9719 = vmatprep.subr.bf16.mxu0 %v13021_v9  ;;  %v13088_v32 = vld [vmem:[%s13938_s20 + $0x550] ss:$24 sps:$4 sm:$0xff]   ;;  %v13093_v9 = vld [vmem:[%s13938_s20 + $0x284] ss:$24 sps:$4 sm:$0xff]  }
0x125d   : > { %9760 = vmatprep.subr.bf16.mxu1 %v13024_v63  ;;  %9749 = vmatprep.mubr.bf16.mxu0 %v16556_v40  ;;  %v13034_v40 = vld [vmem:[%s13938_s20 + $0x3a0] ss:$24 sps:$4 sm:$0xff]   ;;  %v13096_v63 = vld [vmem:[%s13938_s20 + $0x584] ss:$24 sps:$4 sm:$0xff]  }
0x125e   : > { %9790 = vmatprep.mubr.bf16.mxu1 %v16561_v15  ;;  %v13039_v15 = vld [vmem:[%s13938_s20 + $0xd4] ss:$24 sps:$4 sm:$0xff]  }
0x125f   : > { %9720 = vmatpush1.bf16.msra.mxu0 %v13019_v7  ;;  %v13091_v7 = vld [vmem:[%s13938_s20 + $0x280] ss:$24 sps:$4 sm:$0xff]  }
0x1260   : > { %9761 = vmatpush1.bf16.msra.mxu1 %v13022_v17  ;;  %9721 = vmatprep.subr.bf16.mxu0 %v13027_v37  ;;  %v13094_v17 = vld [vmem:[%s13938_s20 + $0x580] ss:$24 sps:$4 sm:$0xff]   ;;  %v13099_v37 = vld [vmem:[%s13938_s20 + $0x2b4] ss:$24 sps:$4 sm:$0xff]  }
0x1261   : > { %9762 = vmatprep.subr.bf16.mxu1 %v13030_v12  ;;  %v13102_v12 = vld [vmem:[%s13938_s20 + $0x5b4] ss:$24 sps:$4 sm:$0xff]  }
0x1263   : > { %9722 = vmatpush1.bf16.msra.mxu0 %v13025_v43  ;;  %v13097_v43 = vld [vmem:[%s13938_s20 + $0x2b0] ss:$24 sps:$4 sm:$0xff]  }
0x1264   : > { %9763 = vmatpush1.bf16.msra.mxu1 %v13028_v8  ;;  %9723 = vmatprep.subr.bf16.mxu0 %v13033_v56  ;;  %v13100_v8 = vld [vmem:[%s13938_s20 + $0x5b0] ss:$24 sps:$4 sm:$0xff]   ;;  %v13105_v56 = vld [vmem:[%s13938_s20 + $0x2e4] ss:$24 sps:$4 sm:$0xff]  }
0x1265   : > { %9764 = vmatprep.subr.bf16.mxu1 %v13036_v29  ;;  %v13108_v29 = vld [vmem:[%s13938_s20 + $0x5e4] ss:$24 sps:$4 sm:$0xff]  }
0x1267   : > { %9724 = vmatpush1.bf16.msra.mxu0 %v13031_v25  ;;  %v13103_v25 = vld [vmem:[%s13938_s20 + $0x2e0] ss:$24 sps:$4 sm:$0xff]  }
0x1268   : > { %9765 = vmatpush1.bf16.msra.mxu1 %v13034_v40  ;;  %9725 = vmatprep.subr.bf16.mxu0 %v13039_v15  ;;  %v13106_v40 = vld [vmem:[%s13938_s20 + $0x5e0] ss:$24 sps:$4 sm:$0xff]   ;;  %v13111_v15 = vld [vmem:[%s13938_s20 + $0x614] ss:$24 sps:$4 sm:$0xff]  }
0x1269   : > { %9766 = vmatprep.subr.bf16.mxu1 %v13042_v26  ;;  %v13114_v26 = vld [vmem:[%s13938_s20 + $0x914] ss:$24 sps:$4 sm:$0xff]  }
0x126b   : > { %9726 = vmatpush1.bf16.msra.mxu0 %v13037_v42  ;;  %v13109_v42 = vld [vmem:[%s13938_s20 + $0x610] ss:$24 sps:$4 sm:$0xff]  }
0x126c   : > { %9767 = vmatpush1.bf16.msra.mxu1 %v13040_v5  ;;  %9727 = vmatprep.subr.bf16.mxu0 %v13045_v48  ;;  %v13112_v5 = vld [vmem:[%s13938_s20 + $0x910] ss:$24 sps:$4 sm:$0xff]   ;;  %v13117_v48 = vld [vmem:[%s13938_s20 + $0x644] ss:$24 sps:$4 sm:$0xff]  }
0x126d   : > { %9768 = vmatprep.subr.bf16.mxu1 %v13048_v45  ;;  %v9423_v13 = vpop.f32.mrb[0].mxu0  ;;  %v13120_v45 = vld [vmem:[%s13938_s20 + $0x944] ss:$24 sps:$4 sm:$0xff]  }
0x126e   : > { %v9464_v23 = vpop.f32.mrb[0].mxu1  ;;  %v9425_v2 = vpop.f32.mrb[1].mxu0 }
0x126f   : > { %v16841_v62 = vadd.f32 %v9464_v23, %v9423_v13  ;;  %v9466_v38 = vpop.f32.mrb[1].mxu1  ;;  %v9427_v16 = vpop.f32.mrb[2].mxu0  ;;  %9728 = vmatpush1.bf16.msra.mxu0 %v13043_v47  ;;  %v13115_v47 = vld [vmem:[%s13938_s20 + $0x640] ss:$24 sps:$4 sm:$0xff]   ;;  %v13129_v13 = vld [vmem:[%s13938_s20 + $0x6a4] ss:$24 sps:$4 sm:$0xff]  }
0x1270   : > { %v16843_v6 = vadd.f32 %v9466_v38, %v9425_v2  ;;  %v9468_v57 = vpop.f32.mrb[2].mxu1  ;;  %9769 = vmatpush1.bf16.msra.mxu1 %v13046_v36  ;;  %v9428_v18 = vpop.f32.mrb[3].mxu0  ;;  %9729 = vmatprep.subr.bf16.mxu0 %v13051_v59  ;;  %v13118_v36 = vld [vmem:[%s13938_s20 + $0x940] ss:$24 sps:$4 sm:$0xff]   ;;  %v13123_v59 = vld [vmem:[%s13938_s20 + $0x674] ss:$24 sps:$4 sm:$0xff]  }
0x1271   : > { %v9469_v61 = vpop.f32.mrb[3].mxu1  ;;  %9770 = vmatprep.subr.bf16.mxu1 %v13054_v4  ;;  %v13126_v4 = vld [vmem:[%s13938_s20 + $0x974] ss:$24 sps:$4 sm:$0xff]   ;;  %v13132_v23 = vld [vmem:[%s13938_s20 + $0x9a4] ss:$24 sps:$4 sm:$0xff]  }
0x1272   : > { %v13127_v2 = vld [vmem:[%s13938_s20 + $0x6a0] ss:$24 sps:$4 sm:$0xff]   ;;  %v13138_v38 = vld [vmem:[%s13938_s20 + $0x9d4] ss:$24 sps:$4 sm:$0xff]   ;;  %v13133_v16 = vld [vmem:[%s13938_s20 + $0x6d0] ss:$24 sps:$4 sm:$0xff]  }
0x1273   : > { %9730 = vmatpush1.bf16.msra.mxu0 %v13049_v1  ;;  %v13136_v57 = vld [vmem:[%s13938_s20 + $0x9d0] ss:$24 sps:$4 sm:$0xff]   ;;  %v13141_v1 = vld [vmem:[%s13938_s20 + $0x704] ss:$24 sps:$4 sm:$0xff]   ;;  %v13139_v18 = vld [vmem:[%s13938_s20 + $0x700] ss:$24 sps:$4 sm:$0xff]  }
0x1274   : > { %9771 = vmatpush1.bf16.msra.mxu1 %v13052_v41  ;;  %9731 = vmatprep.subr.bf16.mxu0 %v13057_v24  ;;  %v13144_v41 = vld [vmem:[%s13938_s20 + $0xa04] ss:$24 sps:$4 sm:$0xff]   ;;  %v13142_v61 = vld [vmem:[%s13938_s20 + $0xa00] ss:$24 sps:$4 sm:$0xff]   ;;  %v13147_v24 = vld [vmem:[%s13938_s20 + $0x734] ss:$24 sps:$4 sm:$0xff]  }
0x1275   : > { %9772 = vmatprep.subr.bf16.mxu1 %v13060_v55  ;;  %v13150_v55 = vld [vmem:[%s13938_s20 + $0xa34] ss:$24 sps:$4 sm:$0xff]  }
0x1277   : > { %9732 = vmatpush1.bf16.msra.mxu0 %v13055_v54 }
0x1278   : > { %9773 = vmatpush1.bf16.msra.mxu1 %v13058_v14  ;;  %9733 = vmatprep.subr.bf16.mxu0 %v13063_v31 }
0x1279   : > { %9774 = vmatprep.subr.bf16.mxu1 %v13066_v52  ;;  %v7044_v52 = vld [vmem:[#allocation14] sm:$0xff] }
0x127b   : > { %9734 = vmatpush1.bf16.msra.mxu0 %v13061_v49 }
0x127c   : > { %9775 = vmatpush1.bf16.msra.mxu1 %v13064_v35  ;;  %9735 = vmatprep.subr.bf16.mxu0 %v13069_v34  ;;  %v7045_v35 = vld [vmem:[#allocation14 + $0x8] sm:$0xff] }
0x127d   : > { %9776 = vmatprep.subr.bf16.mxu1 %v13072_v11 }
0x127f   : > { %9736 = vmatpush1.bf16.msra.mxu0 %v13067_v19 }
0x1280   : > { %9777 = vmatpush1.bf16.msra.mxu1 %v13070_v20  ;;  %9737 = vmatprep.subr.bf16.mxu0 %v13075_v53  ;;  %v13145_v53 = vld [vmem:[%s13938_s20 + $0x730] ss:$24 sps:$4 sm:$0xff]  }
0x1281   : > { %9778 = vmatprep.subr.bf16.mxu1 %v13078_v60  ;;  %v13148_v60 = vld [vmem:[%s13938_s20 + $0xa30] ss:$24 sps:$4 sm:$0xff]  }
0x1283   : > { %9738 = vmatpush1.bf16.msra.mxu0 %v13073_v46 }
0x1284   : > { %9779 = vmatpush1.bf16.msra.mxu1 %v13076_v21  ;;  %9739 = vmatprep.subr.bf16.mxu0 %v13081_v58  ;;  %v13153_v58 = vld [vmem:[%s13938_s20 + $0x764] ss:$24 sps:$4 sm:$0xff]  }
0x1285   : > { %9780 = vmatprep.subr.bf16.mxu1 %v13084_v10  ;;  %v13156_v10 = vld [vmem:[%s13938_s20 + $0xa64] ss:$24 sps:$4 sm:$0xff]  }
0x1287   : > { %9740 = vmatpush1.bf16.msra.mxu0 %v13079_v28 }
0x1288   : > { %9781 = vmatpush1.bf16.msra.mxu1 %v13082_v51  ;;  %9741 = vmatprep.subr.bf16.mxu0 %v13087_v27  ;;  %v13151_v27 = vld [vmem:[%s13938_s20 + $0x760] ss:$24 sps:$4 sm:$0xff]  }
0x1289   : > { %9782 = vmatprep.subr.bf16.mxu1 %v13090_v50  ;;  %v13154_v50 = vld [vmem:[%s13938_s20 + $0xa60] ss:$24 sps:$4 sm:$0xff]  }
0x128b   : > { %9742 = vmatpush1.bf16.msra.mxu0 %v13085_v33  ;;  %v13159_v33 = vld [vmem:[%s13938_s20 + $0x794] ss:$24 sps:$4 sm:$0xff]  }
0x128c   : > { %9783 = vmatpush1.bf16.msra.mxu1 %v13088_v32  ;;  %9743 = vmatprep.subr.bf16.mxu0 %v13093_v9  ;;  %v13162_v32 = vld [vmem:[%s13938_s20 + $0xa94] ss:$24 sps:$4 sm:$0xff]   ;;  %v13157_v9 = vld [vmem:[%s13938_s20 + $0x790] ss:$24 sps:$4 sm:$0xff]  }
0x128d   : > { %9784 = vmatprep.subr.bf16.mxu1 %v13096_v63  ;;  %v13160_v63 = vld [vmem:[%s13938_s20 + $0xa90] ss:$24 sps:$4 sm:$0xff]  }
0x128f   : > { %9744 = vmatpush1.bf16.msra.mxu0 %v13091_v7  ;;  %v13165_v7 = vld [vmem:[%s13938_s20 + $0x7c4] ss:$24 sps:$4 sm:$0xff]  }
0x1290   : > { %9785 = vmatpush1.bf16.msra.mxu1 %v13094_v17  ;;  %9745 = vmatprep.subr.bf16.mxu0 %v13099_v37  ;;  %v13168_v17 = vld [vmem:[%s13938_s20 + $0xac4] ss:$24 sps:$4 sm:$0xff]   ;;  %v13163_v37 = vld [vmem:[%s13938_s20 + $0x7c0] ss:$24 sps:$4 sm:$0xff]  }
0x1291   : > { %9786 = vmatprep.subr.bf16.mxu1 %v13102_v12  ;;  %v13166_v12 = vld [vmem:[%s13938_s20 + $0xac0] ss:$24 sps:$4 sm:$0xff]  }
0x1293   : > { %9746 = vmatpush1.bf16.msra.mxu0 %v13097_v43  ;;  %v13171_v43 = vld [vmem:[%s13938_s20 + $0x7f4] ss:$24 sps:$4 sm:$0xff]  }
0x1294   : > { %9787 = vmatpush1.bf16.msra.mxu1 %v13100_v8  ;;  %9747 = vmatprep.subr.bf16.mxu0 %v13105_v56  ;;  %v13174_v8 = vld [vmem:[%s13938_s20 + $0xaf4] ss:$24 sps:$4 sm:$0xff]   ;;  %v13169_v56 = vld [vmem:[%s13938_s20 + $0x7f0] ss:$24 sps:$4 sm:$0xff]  }
0x1295   : > { %9788 = vmatprep.subr.bf16.mxu1 %v13108_v29  ;;  %v13172_v29 = vld [vmem:[%s13938_s20 + $0xaf0] ss:$24 sps:$4 sm:$0xff]  }
0x1297   : > { %9748 = vmatpush1.bf16.msra.mxu0 %v13103_v25  ;;  %v13177_v25 = vld [vmem:[%s13938_s20 + $0x824] ss:$24 sps:$4 sm:$0xff]  }
0x1298   : > { %9789 = vmatpush1.bf16.msra.mxu1 %v13106_v40  ;;  %9799 = vmatprep.subr.bf16.mxu0 %v13111_v15  ;;  %v13180_v40 = vld [vmem:[%s13938_s20 + $0xb24] ss:$24 sps:$4 sm:$0xff]   ;;  %v13175_v15 = vld [vmem:[%s13938_s20 + $0x820] ss:$24 sps:$4 sm:$0xff]  }
0x1299   : > { %9840 = vmatprep.subr.bf16.mxu1 %v13114_v26  ;;  %v13178_v26 = vld [vmem:[%s13938_s20 + $0xb20] ss:$24 sps:$4 sm:$0xff]  }
0x129a   : > { %9750 = vmatmul.mubr.bf16.vlgmr.msra.gmra.mrb[16].mxu0 %v16583_v30  ;;  %v13121_v30 = vld [vmem:[%s13938_s20 + $0x670] ss:$24 sps:$4 sm:$0xff]  }
0x129b   : > { %9791 = vmatmul.mubr.bf16.vlgmr.msra.gmra.mrb[16].mxu1 %v16585_v22  ;;  %9800 = vmatpush1.bf16.msra.mxu0 %v13109_v42  ;;  %v13124_v22 = vld [vmem:[%s13938_s20 + $0x970] ss:$24 sps:$4 sm:$0xff]   ;;  %v13183_v42 = vld [vmem:[%s13938_s20 + $0x854] ss:$24 sps:$4 sm:$0xff]  }
0x129c   : > { %9841 = vmatpush1.bf16.msra.mxu1 %v13112_v5  ;;  %9801 = vmatprep.subr.bf16.mxu0 %v13117_v48  ;;  %v13186_v5 = vld [vmem:[%s13938_s20 + $0xb54] ss:$24 sps:$4 sm:$0xff]   ;;  %v13181_v48 = vld [vmem:[%s13938_s20 + $0x850] ss:$24 sps:$4 sm:$0xff]  }
0x129d   : > { %9842 = vmatprep.subr.bf16.mxu1 %v13120_v45  ;;  %9831 = vmatprep.mubr.bf16.mxu0 %v16623_v0  ;;  %v13130_v0 = vld [vmem:[%s13938_s20 + $0x9a0] ss:$24 sps:$4 sm:$0xff]   ;;  %v13184_v45 = vld [vmem:[%s13938_s20 + $0xb50] ss:$24 sps:$4 sm:$0xff]  }
0x129e   : > { %9872 = vmatprep.mubr.bf16.mxu1 %v16627_v44  ;;  %v13135_v44 = vld [vmem:[%s13938_s20 + $0x6d4] ss:$24 sps:$4 sm:$0xff]  }
0x129f   : > { %9802 = vmatpush1.bf16.msra.mxu0 %v13115_v47  ;;  %v13189_v47 = vld [vmem:[%s13938_s20 + $0x884] ss:$24 sps:$4 sm:$0xff]  }
0x12a0   : > { %9843 = vmatpush1.bf16.msra.mxu1 %v13118_v36  ;;  %9803 = vmatprep.subr.bf16.mxu0 %v13123_v59  ;;  %v13192_v36 = vld [vmem:[%s13938_s20 + $0xb84] ss:$24 sps:$4 sm:$0xff]   ;;  %v13187_v59 = vld [vmem:[%s13938_s20 + $0x880] ss:$24 sps:$4 sm:$0xff]  }
0x12a1   : > { %9844 = vmatprep.subr.bf16.mxu1 %v13126_v4  ;;  %v13190_v4 = vld [vmem:[%s13938_s20 + $0xb80] ss:$24 sps:$4 sm:$0xff]  }
0x12a3   : > { %9804 = vmatpush1.bf16.msra.mxu0 %v13121_v30  ;;  %v13195_v30 = vld [vmem:[%s13938_s20 + $0x8b4] ss:$24 sps:$4 sm:$0xff]  }
0x12a4   : > { %9845 = vmatpush1.bf16.msra.mxu1 %v13124_v22  ;;  %9805 = vmatprep.subr.bf16.mxu0 %v13129_v13  ;;  %v13198_v22 = vld [vmem:[%s13938_s20 + $0xbb4] ss:$24 sps:$4 sm:$0xff]   ;;  %v13193_v13 = vld [vmem:[%s13938_s20 + $0x8b0] ss:$24 sps:$4 sm:$0xff]  }
0x12a5   : > { %9846 = vmatprep.subr.bf16.mxu1 %v13132_v23  ;;  %v13196_v23 = vld [vmem:[%s13938_s20 + $0xbb0] ss:$24 sps:$4 sm:$0xff]  }
0x12a7   : > { %9806 = vmatpush1.bf16.msra.mxu0 %v13127_v2  ;;  %v13201_v2 = vld [vmem:[%s13938_s20 + $0x8e4] ss:$24 sps:$4 sm:$0xff]  }
0x12a8   : > { %9847 = vmatpush1.bf16.msra.mxu1 %v13130_v0  ;;  %9807 = vmatprep.subr.bf16.mxu0 %v13135_v44  ;;  %v13204_v0 = vld [vmem:[%s13938_s20 + $0xbe4] ss:$24 sps:$4 sm:$0xff]   ;;  %v13199_v44 = vld [vmem:[%s13938_s20 + $0x8e0] ss:$24 sps:$4 sm:$0xff]  }
0x12a9   : > { %9848 = vmatprep.subr.bf16.mxu1 %v13138_v38  ;;  %v13202_v38 = vld [vmem:[%s13938_s20 + $0xbe0] ss:$24 sps:$4 sm:$0xff]  }
0x12ab   : > { %9808 = vmatpush1.bf16.msra.mxu0 %v13133_v16 }
0x12ac   : > { %9849 = vmatpush1.bf16.msra.mxu1 %v13136_v57  ;;  %9809 = vmatprep.subr.bf16.mxu0 %v13141_v1 }
0x12ad   : > { %9850 = vmatprep.subr.bf16.mxu1 %v13144_v41  ;;  %v9505_v54 = vpop.f32.mrb[4].mxu0 }
0x12ae   : > { %v9546_v14 = vpop.f32.mrb[4].mxu1  ;;  %v9506_v31 = vadd.f32 %v9505_v54, %v16841_v62  ;;  %v9507_v49 = vpop.f32.mrb[5].mxu0 }
0x12af   : > { %v9548_v34 = vpop.f32.mrb[5].mxu1  ;;  %v9508_v11 = vadd.f32 %v9507_v49, %v16843_v6  ;;  %v9509_v19 = vpop.f32.mrb[6].mxu0  ;;  %9810 = vmatpush1.bf16.msra.mxu0 %v13139_v18 }
0x12b0   : > { %v9550_v20 = vpop.f32.mrb[6].mxu1  ;;  %9851 = vmatpush1.bf16.msra.mxu1 %v13142_v61  ;;  %v9547_v46 = vadd.f32 %v9546_v14, %v9506_v31  ;;  %v9510_v21 = vpop.f32.mrb[7].mxu0  ;;  %9811 = vmatprep.subr.bf16.mxu0 %v13147_v24 }
0x12b1   : > { %v9551_v62 = vpop.f32.mrb[7].mxu1  ;;  %9852 = vmatprep.subr.bf16.mxu1 %v13150_v55  ;;  %v9549_v28 = vadd.f32 %v9548_v34, %v9508_v11  ;;  %v7046_v11 = vld [vmem:[#allocation14 + $0x10] sm:$0xff] }
0x12b2   : > { %v9881_v6 = vadd.f32 %v9547_v46, %v7044_v52 }
0x12b3   : > { %v9882_v51 = vadd.f32 %v9549_v28, %v7045_v35  ;;  %9812 = vmatpush1.bf16.msra.mxu0 %v13145_v53  ;;  %v7047_v53 = vld [vmem:[#allocation14 + $0x18] sm:$0xff] }
0x12b4   : > { %9853 = vmatpush1.bf16.msra.mxu1 %v13148_v60  ;;  %9887 = vst [vmem:[#allocation14] sm:$0xff] %v9881_v6  ;;  %9813 = vmatprep.subr.bf16.mxu0 %v13153_v58 }
0x12b5   : > { %9854 = vmatprep.subr.bf16.mxu1 %v13156_v10  ;;  %9888 = vst [vmem:[#allocation14 + $0x8] sm:$0xff] %v9882_v51 }
0x12b7   : > { %9814 = vmatpush1.bf16.msra.mxu0 %v13151_v27 }
0x12b8   : > { %9855 = vmatpush1.bf16.msra.mxu1 %v13154_v50  ;;  %9815 = vmatprep.subr.bf16.mxu0 %v13159_v33 }
0x12b9   : > { %9856 = vmatprep.subr.bf16.mxu1 %v13162_v32 }
0x12bb   : > { %9816 = vmatpush1.bf16.msra.mxu0 %v13157_v9 }
0x12bc   : > { %9857 = vmatpush1.bf16.msra.mxu1 %v13160_v63  ;;  %9817 = vmatprep.subr.bf16.mxu0 %v13165_v7 }
0x12bd   : > { %9858 = vmatprep.subr.bf16.mxu1 %v13168_v17 }
0x12bf   : > { %9818 = vmatpush1.bf16.msra.mxu0 %v13163_v37 }
0x12c0   : > { %9859 = vmatpush1.bf16.msra.mxu1 %v13166_v12  ;;  %9819 = vmatprep.subr.bf16.mxu0 %v13171_v43 }
0x12c1   : > { %9860 = vmatprep.subr.bf16.mxu1 %v13174_v8  ;;  %v7048_v8 = vld [vmem:[#allocation14 + $0x20] sm:$0xff] }
0x12c3   : > { %9820 = vmatpush1.bf16.msra.mxu0 %v13169_v56 }
0x12c4   : > { %9861 = vmatpush1.bf16.msra.mxu1 %v13172_v29  ;;  %9821 = vmatprep.subr.bf16.mxu0 %v13177_v25 }
0x12c5   : > { %9862 = vmatprep.subr.bf16.mxu1 %v13180_v40 }
0x12c7   : > { %9822 = vmatpush1.bf16.msra.mxu0 %v13175_v15  ;;  %v7049_v15 = vld [vmem:[#allocation14 + $0x28] sm:$0xff] }
0x12c8   : > { %9863 = vmatpush1.bf16.msra.mxu1 %v13178_v26  ;;  %9823 = vmatprep.subr.bf16.mxu0 %v13183_v42 }
0x12c9   : > { %9864 = vmatprep.subr.bf16.mxu1 %v13186_v5 }
0x12cb   : > { %9824 = vmatpush1.bf16.msra.mxu0 %v13181_v48 }
0x12cc   : > { %9865 = vmatpush1.bf16.msra.mxu1 %v13184_v45  ;;  %9825 = vmatprep.subr.bf16.mxu0 %v13189_v47 }
0x12cd   : > { %9866 = vmatprep.subr.bf16.mxu1 %v13192_v36 }
0x12cf   : > { %9826 = vmatpush1.bf16.msra.mxu0 %v13187_v59 }
0x12d0   : > { %9867 = vmatpush1.bf16.msra.mxu1 %v13190_v4  ;;  %9827 = vmatprep.subr.bf16.mxu0 %v13195_v30 }
0x12d1   : > { %9868 = vmatprep.subr.bf16.mxu1 %v13198_v22 }
0x12d3   : > { %9828 = vmatpush1.bf16.msra.mxu0 %v13193_v13 }
0x12d4   : > { %9869 = vmatpush1.bf16.msra.mxu1 %v13196_v23  ;;  %9829 = vmatprep.subr.bf16.mxu0 %v13201_v2 }
0x12d5   : > { %9870 = vmatprep.subr.bf16.mxu1 %v13204_v0 }
0x12d7   : > { %9830 = vmatpush1.bf16.msra.mxu0 %v13199_v44 }
0x12d8   : > { %9871 = vmatpush1.bf16.msra.mxu1 %v13202_v38 }
0x12da   : > { %9832 = vmatmul.mubr.bf16.vlgmr.msra.gmra.mrb[20].mxu0 %v16671_v3 }
0x12db   : > { %9873 = vmatmul.mubr.bf16.vlgmr.msra.gmra.mrb[20].mxu1 %v16675_v39 }
0x12ed   : > { %v9587_v16 = vpop.f32.mrb[8].mxu0 }
0x12ee   : > { %v9628_v57 = vpop.f32.mrb[8].mxu1  ;;  %v9589_v41 = vpop.f32.mrb[9].mxu0 }
0x12ef   : > { %v9629_v1 = vadd.f32 %v9628_v57, %v9587_v16  ;;  %v9630_v18 = vpop.f32.mrb[9].mxu1  ;;  %v9591_v24 = vpop.f32.mrb[10].mxu0 }
0x12f0   : > { %v9631_v61 = vadd.f32 %v9630_v18, %v9589_v41  ;;  %v9632_v55 = vpop.f32.mrb[10].mxu1  ;;  %v9592_v54 = vpop.f32.mrb[11].mxu0 }
0x12f1   : > { %v9633_v14 = vpop.f32.mrb[11].mxu1 }
0x132d   : > { %v9669_v31 = vpop.f32.mrb[12].mxu0 }
0x132e   : > { %v9710_v52 = vpop.f32.mrb[12].mxu1  ;;  %v9670_v49 = vadd.f32 %v9669_v31, %v9629_v1  ;;  %v9671_v35 = vpop.f32.mrb[13].mxu0 }
0x132f   : > { %v9712_v34 = vpop.f32.mrb[13].mxu1  ;;  %v9672_v19 = vadd.f32 %v9671_v35, %v9631_v61  ;;  %v9673_v3 = vpop.f32.mrb[14].mxu0 }
0x1330   : > { %v9714_v20 = vpop.f32.mrb[14].mxu1  ;;  %v9711_v39 = vadd.f32 %v9710_v52, %v9670_v49  ;;  %v9674_v60 = vpop.f32.mrb[15].mxu0 }
0x1331   : > { %v9715_v46 = vpop.f32.mrb[15].mxu1  ;;  %v9713_v21 = vadd.f32 %v9712_v34, %v9672_v19 }
0x1332   : > { %v9883_v62 = vadd.f32 %v9711_v39, %v7046_v11 }
0x1333   : > { %v9884_v58 = vadd.f32 %v9713_v21, %v7047_v53 }
0x1334   : > { %9889 = vst [vmem:[#allocation14 + $0x10] sm:$0xff] %v9883_v62 }
0x1335   : > { %9890 = vst [vmem:[#allocation14 + $0x18] sm:$0xff] %v9884_v58 }
0x136d   : > { %v9751_v10 = vpop.f32.mrb[16].mxu0 }
0x136e   : > { %v9792_v28 = vpop.f32.mrb[16].mxu1  ;;  %v9753_v51 = vpop.f32.mrb[17].mxu0 }
0x136f   : > { %v9793_v6 = vadd.f32 %v9792_v28, %v9751_v10  ;;  %v9794_v27 = vpop.f32.mrb[17].mxu1  ;;  %v9755_v33 = vpop.f32.mrb[18].mxu0 }
0x1370   : > { %v9795_v50 = vadd.f32 %v9794_v27, %v9753_v51  ;;  %v9796_v32 = vpop.f32.mrb[18].mxu1  ;;  %v9756_v9 = vpop.f32.mrb[19].mxu0 }
0x1371   : > { %v9797_v63 = vpop.f32.mrb[19].mxu1 }
0x13ad   : > { %v9833_v7 = vpop.f32.mrb[20].mxu0 }
0x13ae   : > { %v9874_v17 = vpop.f32.mrb[20].mxu1  ;;  %v9834_v37 = vadd.f32 %v9833_v7, %v9793_v6  ;;  %v9835_v12 = vpop.f32.mrb[21].mxu0 }
0x13af   : > { %v9876_v43 = vpop.f32.mrb[21].mxu1  ;;  %v9836_v56 = vadd.f32 %v9835_v12, %v9795_v50  ;;  %v9837_v29 = vpop.f32.mrb[22].mxu0 }
0x13b0   : > { %v9878_v25 = vpop.f32.mrb[22].mxu1  ;;  %v9875_v40 = vadd.f32 %v9874_v17, %v9834_v37  ;;  %v9838_v26 = vpop.f32.mrb[23].mxu0 }
0x13b1   : > { %v9879_v42 = vpop.f32.mrb[23].mxu1  ;;  %v9877_v5 = vadd.f32 %v9876_v43, %v9836_v56 }
0x13b2   : > { %v9885_v48 = vadd.f32 %v9875_v40, %v7048_v8 }
0x13b3   : > { %v9886_v45 = vadd.f32 %v9877_v5, %v7049_v15 }
0x13b4   : > { %9891 = vst [vmem:[#allocation14 + $0x20] sm:$0xff] %v9885_v48 }
0x13b5   : > { %9892 = vst [vmem:[#allocation14 + $0x28] sm:$0xff] %v9886_v45 }
0x13b6 PF: > { %p11973_p13 = scmp.eq.s32.totalorder %s13602_s8, 2  ;;  %s13529_s22 = smov [#allocation14]  }
0x13b7   : > { %s9900_s14 = sshll.u32 %s13529_s22, 4  ;;  %s9901_s14 = int_to_ptr.vmem [resolvable:$true] %s9900_s14 }
0x13b8   : > { %s13411_s16 = scalar_lea.vmem %s9901_s14, 768  ;;  %p13418_p3 = scmp.lt.s32.totalorder %s9901_s14, %s9901_s14 }
0x13b9   : > { %p13412_p7 = scmp.ne.s32.totalorder %s9901_s14, %s13411_s16  ;;  %p13419_p6 = scmp.lt.s32.totalorder %s13411_s16, %s13411_s16 }
0x13bb   : > { %p13413_p9 = pnand %p13412_p7, %p11973_p13  ;;  %p13420_p11 = por %p13419_p6, %p13418_p3 }
0x13bd   : > { %p13414_p0 = pneg %p13413_p9 }
0x13bf   : > { %p13421_p5 = pnand %p13420_p11, %p13414_p0 }
0x13c1   : > { %13424 = shalt.err (!%p13421_p5)
}
0x13c2   : > { %s17055_s21 = sld [smem:[#allocation24_spill]] }
0x13c8   : > { %s13425_s19 = scalar_lea.hbm %s17055_s21, 768 }
0x13c9   : > { %p13426_p4 = scmp.ne.s32.totalorder %s17055_s21, %s13425_s19  ;;  %p13431_p12 = scmp.lt.u32.totalorder %s13425_s19, %s17055_s21 }
0x13cb   : > { %p13427_p1 = pnand %p13426_p4, %p11973_p13 }
0x13cd   : > { %p13428_p8 = pneg %p13427_p1 }
0x13cf   : > { %p13433_p2 = pnand %p13431_p12, %p13428_p8 }
0x13d1   : > { %13436 = shalt.err (!%p13433_p2)
}
0x13d2   : > { %11939 = dma.vmem_to_hbm [thread:$0]  (%p11973_p13), %s9901_s14, 768, %s17055_s21, [#allocation6]  }
0x13d3   : > { %13482 = dma.done.wait (%p11973_p13), [#allocation6], 768  }
0x13d4   : > { %13484 = vsyncadd (%p11973_p13), [#allocation6], 4294966528 }
0x13d5 PF: > { %p17_p10 = scmp.ge.s32.totalorder %s13849_s0, 5   ;;  %s17056_s24 = smov %s13491_s25 }
0x13d6   : > { %s17057_s25 = smov %s13495_s26  ;;  %s17058_s26 = smov %s13875_s15 }
0x13d7   : > { %s17059_s27 = smov %s13503_s28  ;;  %s17060_s28 = smov %s13507_s29 }
0x13d8   : > { %s17061_s29 = smov %s13864_s10  ;;  %s17062_s30 = smov %s13849_s0 }
0x13d9   :  { %19 = sbr.rel (!%p17_p10) target bundleno = 10 (0xa), region = 162 }
0x13e0   :  { %9913 = vsyncpa [#allocation5], 1 }
0x13e1   :  { %9915 = vsyncpa [#allocation5 + $0x1], 1 }
0x13e2   :  { %9916 = vsyncpa [#allocation8], 1 }
0x13e3   :  { %9917 = vsyncpa [#allocation6], 1 }
0x13e4   :  { %9919 = vsyncpa [#allocation6 + $0x1], 1 }

</bundles_post_ra>
